<compile_context>
chip_gen: v7x
topology: tpu7x:2x2x1
jax: 0.10.0
libtpu: 0.0.40
codegen_flags: <defaults>
</compile_context>

<pallas_src>
import functools
import numpy as np
import jax
import jax.numpy as jnp
from jax import lax
from jax.experimental import pallas as pl
from jax.experimental.pallas import tpu as pltpu


# ----------------------------------------------------------------------------
# Small synthetic config (stand-in for CLIP-B/16 sizes used by RPO)
# ----------------------------------------------------------------------------
CFG = dict(
    K=2,            # number of read-only prompts
    d_t=32,         # text transformer width        (CLIP: 512)
    d_v=64,         # visual transformer width      (CLIP: 768)
    d_e=32,         # shared embedding dim          (CLIP: 512)
    heads_t=4,
    heads_v=4,
    layers_t=2,
    layers_v=2,
    L_text=16,      # text context length           (CLIP: 77)
    patch=4,
    image_size=16,
    channels=3,
    vocab=100,
    eot_token=99,   # analog of 49407
)

# TODO(synk): at production CLIP-B/16 sizes, budget VMEM per generation
# (~96 MiB on v5e/v6e with 128 MiB physical, smaller on v7x's 64 MiB) and mark
# constant-index operands pipeline_mode=pl.Buffered(1).
_VMEM_LIMIT = 64 * 1024 * 1024


# ----------------------------------------------------------------------------
# In-kernel helpers (traced inside Pallas bodies)
# ----------------------------------------------------------------------------
def _ln_f32(x, g, b, eps=1e-5):
    """LayerNorm in f32 over the last dim. g/b are (1, D) loaded params."""
    g = g.astype(jnp.float32)
    b = b.astype(jnp.float32)
    mu = jnp.mean(x, axis=-1, keepdims=True)
    var = jnp.mean(jnp.square(x - mu), axis=-1, keepdims=True)
    return (x - mu) * lax.rsqrt(var + eps) * g + b


def _softmax_rows(s):
    """Row softmax in f32; EUP reciprocal; safe for (nearly) fully-masked rows."""
    mx = jnp.maximum(jnp.max(s, axis=-1, keepdims=True), -1e30)
    p = jnp.exp(s - mx)
    denom = jnp.maximum(jnp.sum(p, axis=-1, keepdims=True), 1e-30)
    return p * pl.reciprocal(denom, approx=True)


# ----------------------------------------------------------------------------
# Fused transformer branch: ONE pallas_call, grid = (batch, layers).
# Residual stream stays in f32 VMEM scratch across the layer axis.
# ----------------------------------------------------------------------------
def _branch_kernel(*refs, n_heads, K, is_text, has_pre_ln):
    idx = 0
    len_ref = None
    if is_text:
        len_ref = refs[idx]; idx += 1           # scalar-prefetch (SMEM): (N,)
    x_ref = refs[idx]; idx += 1                 # (1, L, D) bf16 input stream
    prompt_ref = None
    if is_text:
        prompt_ref = refs[idx]; idx += 1        # (K, D) learnable text prompts
    pg_ref = pb_ref = None
    if has_pre_ln:
        pg_ref, pb_ref = refs[idx], refs[idx + 1]; idx += 2
    (g1_ref, b1_ref, wq_ref, wk_ref, wv_ref, bq_ref, bk_ref, bv_ref,
     wo_ref, bo_ref, g2_ref, b2_ref, wfc_ref, bfc_ref, wpr_ref, bpr_ref
     ) = refs[idx:idx + 16]
    o_ref = refs[idx + 16]                      # (1, K, D) output rows
    res_ref = refs[idx + 17]                    # (L, D) f32 residual scratch

    b = pl.program_id(0)
    l = pl.program_id(1)
    n_layers = pl.num_programs(1)
    L, D = res_ref.shape
    dh = D // n_heads
    scale = dh ** -0.5

    length = len_ref[b] if is_text else None    # scalar int32 from SMEM

    # ---- layer 0: load stream into f32 scratch (+ ln_pre / prompt insert) ----
    @pl.when(l == 0)
    def _init():
        x0 = x_ref[0].astype(jnp.float32)
        if has_pre_ln:                          # fused visual ln_pre
            x0 = _ln_f32(x0, pg_ref[...], pb_ref[...])
        if is_text:                             # insert K prompts after EOT
            row = lax.broadcasted_iota(jnp.int32, (L, 1), 0)
            for i in range(K):
                pr = prompt_ref[pl.ds(i, 1), :].astype(jnp.float32)  # (1, D)
                x0 = jnp.where(row == length + i, pr, x0)
        res_ref[...] = x0

    x = res_ref[...]                            # (L, D) f32 residual

    # ---- attention mask generated in-kernel (no HBM mask operand) ----
    col = lax.broadcasted_iota(jnp.int32, (L, L), 1)
    if is_text:
        row2 = lax.broadcasted_iota(jnp.int32, (L, L), 0)
        allowed = (col <= row2) & (col < length)      # causal + blank >= len
    else:
        allowed = col < (L - K)                       # nobody attends prompts

    # ---- multi-head attention: head-sliced weights, per-head accumulation ----
    h = _ln_f32(x, g1_ref[0], b1_ref[0]).astype(jnp.bfloat16)
    attn = jnp.zeros((L, D), jnp.float32)
    for hh in range(n_heads):                   # static head loop, all in VMEM
        q = jnp.dot(h, wq_ref[0, hh], preferred_element_type=jnp.float32)
        q = (q + bq_ref[0, hh].astype(jnp.float32)) * scale
        k = jnp.dot(h, wk_ref[0, hh], preferred_element_type=jnp.float32)
        k = k + bk_ref[0, hh].astype(jnp.float32)
        v = jnp.dot(h, wv_ref[0, hh], preferred_element_type=jnp.float32)
        v = v + bv_ref[0, hh].astype(jnp.float32)
        s = lax.dot_general(q.astype(jnp.bfloat16), k.astype(jnp.bfloat16),
                            (((1,), (1,)), ((), ())),
                            preferred_element_type=jnp.float32)
        s = jnp.where(allowed, s, -1e30)
        p = _softmax_rows(s)
        o_h = jnp.dot(p.astype(jnp.bfloat16), v.astype(jnp.bfloat16),
                      preferred_element_type=jnp.float32)
        # fold the head concat into the out-projection (no lane-axis concat)
        attn = attn + jnp.dot(o_h.astype(jnp.bfloat16), wo_ref[0, hh],
                              preferred_element_type=jnp.float32)
    x = x + attn + bo_ref[0].astype(jnp.float32)

    # ---- MLP with QuickGELU, f32 residual ----
    # TODO(synk): chunk the 4*D hidden dim (512-lane slabs) at production widths.
    u = _ln_f32(x, g2_ref[0], b2_ref[0]).astype(jnp.bfloat16)
    u = jnp.dot(u, wfc_ref[0], preferred_element_type=jnp.float32) \
        + bfc_ref[0].astype(jnp.float32)
    u = u * jax.nn.sigmoid(1.702 * u)
    x = x + jnp.dot(u.astype(jnp.bfloat16), wpr_ref[0],
                    preferred_element_type=jnp.float32) \
          + bpr_ref[0].astype(jnp.float32)

    res_ref[...] = x

    # ---- last layer: emit only the K prompt-token rows ----
    @pl.when(l == n_layers - 1)
    def _emit():
        if is_text:                             # dynamic rows at len_prompts+i
            rows = [res_ref[pl.ds(length + i, 1), :] for i in range(K)]
            o_ref[0] = jnp.concatenate(rows, axis=0).astype(o_ref.dtype)
        else:                                   # static tail rows
            o_ref[0] = res_ref[pl.ds(L - K, K), :].astype(o_ref.dtype)


def fused_transformer_branch(x, layers, n_heads, K, lens=None, prompts=None,
                             pre_ln=None, out_dtype=jnp.float32):
    """x: (B, L, D) bf16.  Returns the (B, K, D) prompt-token rows after the
    full transformer stack (residual kept in f32 VMEM across layers)."""
    B, L, D = x.shape
    is_text = lens is not None
    n_layers = layers["ln1_g"].shape[0]

    def io_map(b, l, *_):
        return (b, 0, 0)

    def resident_spec(w):
        nd = w.ndim

        def imap(b, l, *_):
            return (0,) * nd
        return pl.BlockSpec(w.shape, imap)

    def layer_spec(w):
        nd = w.ndim

        def imap(b, l, *_):
            return (l,) + (0,) * (nd - 1)
        return pl.BlockSpec((1,) + w.shape[1:], imap)

    operands = []
    in_specs = []
    num_prefetch = 0
    if is_text:
        operands.append(lens)                   # scalar prefetch -> SMEM
        num_prefetch = 1
    operands.append(x)
    in_specs.append(pl.BlockSpec((1, L, D), io_map))
    if is_text:
        operands.append(prompts)
        in_specs.append(resident_spec(prompts))
    if pre_ln is not None:
        operands += [pre_ln[0], pre_ln[1]]
        in_specs += [resident_spec(pre_ln[0]), resident_spec(pre_ln[1])]

    for name in ("ln1_g", "ln1_b", "wq", "wk", "wv", "bq", "bk", "bv",
                 "wo", "bo", "ln2_g", "ln2_b", "wfc", "bfc", "wpr", "bpr"):
        w = layers[name]
        operands.append(w)
        in_specs.append(layer_spec(w))          # streamed along the layer axis

    kern = functools.partial(_branch_kernel, n_heads=n_heads, K=K,
                             is_text=is_text, has_pre_ln=pre_ln is not None)

    return pl.pallas_call(
        kern,
        out_shape=jax.ShapeDtypeStruct((B, K, D), out_dtype),
        grid_spec=pltpu.PrefetchScalarGridSpec(
            num_scalar_prefetch=num_prefetch,
            grid=(B, n_layers),
            in_specs=in_specs,
            out_specs=pl.BlockSpec((1, K, D), io_map),
            scratch_shapes=[pltpu.VMEM((L, D), jnp.float32)]),
        compiler_params=pltpu.CompilerParams(
            dimension_semantics=("parallel", "arbitrary"),
            vmem_limit_bytes=_VMEM_LIMIT),
    )(*operands)


# ----------------------------------------------------------------------------
# Fused (optional LN) + matmul kernel: patch-embed, ln_final+text_proj,
# ln_post+img_proj.  Bias path is compiled out when absent (no zeros DMA).
# ----------------------------------------------------------------------------
def _ln_mm_kernel(*refs, has_ln, has_bias, activation):
    i = 0
    x_ref = refs[i]; i += 1
    if has_ln:
        g_ref, b_ref = refs[i], refs[i + 1]; i += 2
    w_ref = refs[i]; i += 1
    bias_ref = None
    if has_bias:
        bias_ref = refs[i]; i += 1
    o_ref = refs[i]

    x = x_ref[...]
    if has_ln:
        x = _ln_f32(x.astype(jnp.float32), g_ref[...], b_ref[...])
    y = jnp.dot(x.astype(jnp.bfloat16), w_ref[...],
                preferred_element_type=jnp.float32)
    if has_bias:
        y = y + bias_ref[...].astype(jnp.float32)
    if activation == "quick_gelu":
        y = y * jax.nn.sigmoid(1.702 * y)
    o_ref[...] = y.astype(o_ref.dtype)


def pallas_ln_matmul(x, w, ln=None, bias=None, activation=None,
                     out_dtype=jnp.bfloat16):
    """x: (M, K), w: (K, N) bf16, ln=(g,b) each (1,K). Returns (M, N)."""
    # TODO(synk): M-tile with a "parallel" grid + VMEM f32 accumulator for
    # production CLIP sizes; at these toy shapes a single block is optimal.
    M, Kd = x.shape
    N = w.shape[1]
    operands = [x]
    in_specs = [pl.BlockSpec((M, Kd), lambda i: (0, 0))]
    if ln is not None:
        operands += [ln[0], ln[1]]
        in_specs += [pl.BlockSpec((1, Kd), lambda i: (0, 0)),
                     pl.BlockSpec((1, Kd), lambda i: (0, 0))]
    operands.append(w)
    in_specs.append(pl.BlockSpec((Kd, N), lambda i: (0, 0)))
    if bias is not None:
        operands.append(bias)
        in_specs.append(pl.BlockSpec((1, N), lambda i: (0, 0)))
    kern = functools.partial(_ln_mm_kernel, has_ln=ln is not None,
                             has_bias=bias is not None, activation=activation)
    return pl.pallas_call(
        kern,
        out_shape=jax.ShapeDtypeStruct((M, N), out_dtype),
        grid=(1,),
        in_specs=in_specs,
        out_specs=pl.BlockSpec((M, N), lambda i: (0, 0)),
    )(*operands)


# ----------------------------------------------------------------------------
# K-prompt normalized logit reduction
# ----------------------------------------------------------------------------
def _logits_kernel(img_ref, txt_ref, s_ref, o_ref, *, K):
    img = img_ref[...].astype(jnp.float32)                    # (B, K, D)
    txt = txt_ref[...].astype(jnp.float32)                    # (N, K, D)
    img = img * lax.rsqrt(jnp.sum(img * img, axis=-1, keepdims=True))
    txt = txt * lax.rsqrt(jnp.sum(txt * txt, axis=-1, keepdims=True))
    scale = s_ref[0, 0]
    acc = jnp.zeros((img.shape[0], txt.shape[0]), jnp.float32)
    for kk in range(K):                                       # static K
        acc = acc + lax.dot_general(img[:, kk, :], txt[:, kk, :],
                                    (((1,), (1,)), ((), ())),
                                    preferred_element_type=jnp.float32)
    o_ref[...] = scale * acc * (1.0 / K)


def pallas_logits(img_f, text_f, exp_logit_scale):
    B, K, D = img_f.shape
    N = text_f.shape[0]
    kern = functools.partial(_logits_kernel, K=K)
    return pl.pallas_call(
        kern,
        out_shape=jax.ShapeDtypeStruct((B, N), jnp.float32),
        grid=(1,),
        in_specs=[pl.BlockSpec((B, K, D), lambda i: (0, 0, 0)),
                  pl.BlockSpec((N, K, D), lambda i: (0, 0, 0)),
                  pl.BlockSpec((1, 1), lambda i: (0, 0))],
        out_specs=pl.BlockSpec((B, N), lambda i: (0, 0)),
    )(img_f, text_f, exp_logit_scale.reshape(1, 1).astype(jnp.float32))


# ----------------------------------------------------------------------------
# CustomCLIP forward
# ----------------------------------------------------------------------------
def custom_clip_forward(params, image, cfg, label=None, training=False):
    K = cfg["K"]
    d_t, d_v, d_e = cfg["d_t"], cfg["d_v"], cfg["d_e"]

    # ---------------- text branch: one fused call over all layers ----------
    text_x = params["text_x"]                      # (N, L_t, d_t) bf16
    N = text_x.shape[0]
    text_tail = fused_transformer_branch(
        text_x, params["text_layers"], cfg["heads_t"], K,
        lens=params["len_prompts"], prompts=params["text_prompt"])
    # fused ln_final + text_proj on the K prompt rows per class
    text_f = pallas_ln_matmul(
        text_tail.reshape(N * K, d_t), params["text_proj"],
        ln=(params["ln_final_g"], params["ln_final_b"]),
        out_dtype=jnp.float32).reshape(N, K, d_e)

    # ---------------- image branch ----------------
    B, C, H, W = image.shape
    P = cfg["patch"]
    n_p = (H // P) * (W // P)
    # NCHW -> (B*n_p, C*P*P) patch vectors; conv(stride=kernel=P) == matmul
    patches = image.reshape(B, C, H // P, P, W // P, P)
    patches = patches.transpose(0, 2, 4, 1, 3, 5).reshape(B * n_p, C * P * P)
    img_emb = pallas_ln_matmul(patches.astype(jnp.bfloat16),
                               params["conv_w"]).reshape(B, n_p, d_v)

    cls = jnp.broadcast_to(params["cls_emb"], (B, 1, d_v))
    img_x = jnp.concatenate([cls, img_emb], axis=1) + params["img_pos"][None]
    img_x = jnp.concatenate(
        [img_x, jnp.broadcast_to(params["img_prompt"], (B, K, d_v))], axis=1)

    img_tail = fused_transformer_branch(
        img_x, params["visual_layers"], cfg["heads_v"], K,
        pre_ln=(params["ln_pre_g"], params["ln_pre_b"]))
    # fused ln_post + img_proj on the K appended prompt tokens
    img_f = pallas_ln_matmul(
        img_tail.reshape(B * K, d_v), params["img_proj"],
        ln=(params["ln_post_g"], params["ln_post_b"]),
        out_dtype=jnp.float32).reshape(B, K, d_e)

    # TODO(synk): t_f / i_f (projected EOT / CLS features) are computed in the
    # reference but never feed its returned logits or loss; omitted here.

    logits = pallas_logits(img_f, text_f, jnp.exp(params["logit_scale"]))

    if training and label is not None:
        logp = jax.nn.log_softmax(logits, axis=-1)
        return -jnp.mean(jnp.take_along_axis(logp, label[:, None], axis=1))
    return logits


# ----------------------------------------------------------------------------
# Deterministic synthetic parameter / buffer construction
# ----------------------------------------------------------------------------
def _init_stacked_layers(key, n_layers, d, n_heads):
    """Layer-stacked transformer weights, head-sliced layout for the kernel."""
    dh = d // n_heads
    ks = jax.random.split(key, 6)
    std = 0.02
    bf = jnp.bfloat16
    f32 = jnp.float32

    def rnd(k, shape):
        return (std * jax.random.normal(k, shape, f32)).astype(bf)

    return dict(
        ln1_g=jnp.ones((n_layers, 1, d), f32),
        ln1_b=jnp.zeros((n_layers, 1, d), f32),
        wq=rnd(ks[0], (n_layers, n_heads, d, dh)),
        wk=rnd(ks[1], (n_layers, n_heads, d, dh)),
        wv=rnd(ks[2], (n_layers, n_heads, d, dh)),
        bq=jnp.zeros((n_layers, n_heads, 1, dh), bf),
        bk=jnp.zeros((n_layers, n_heads, 1, dh), bf),
        bv=jnp.zeros((n_layers, n_heads, 1, dh), bf),
        wo=rnd(ks[3], (n_layers, n_heads, dh, d)),
        bo=jnp.zeros((n_layers, 1, d), bf),
        ln2_g=jnp.ones((n_layers, 1, d), f32),
        ln2_b=jnp.zeros((n_layers, 1, d), f32),
        wfc=rnd(ks[4], (n_layers, d, 4 * d)),
        bfc=jnp.zeros((n_layers, 1, 4 * d), bf),
        wpr=rnd(ks[5], (n_layers, 4 * d, d)),
        bpr=jnp.zeros((n_layers, 1, d), bf),
    )


def init_params(key, cfg):
    K, d_t, d_v, d_e = cfg["K"], cfg["d_t"], cfg["d_v"], cfg["d_e"]
    L_t, P, C = cfg["L_text"], cfg["patch"], cfg["channels"]
    n_p = (cfg["image_size"] // P) ** 2
    keys = jax.random.split(key, 16)
    bf = jnp.bfloat16

    # synthetic tokenized class prompts (EOT = max id, pad = 0)
    class_lens = [5, 7, 6]                        # N = 3 classes
    N = len(class_lens)
    toks = np.zeros((N, L_t), dtype=np.int32)
    for c, ln in enumerate(class_lens):
        toks[c, 0] = 1
        toks[c, 1:ln - 1] = np.arange(2, ln) % (cfg["eot_token"] - 1)
        toks[c, ln - 1] = cfg["eot_token"]
    eot_idx = toks.argmax(axis=-1)                # position of EOT
    len_prompts = eot_idx + 1                     # prompt insert position

    tok_emb = 0.02 * jax.random.normal(keys[0], (cfg["vocab"], d_t), jnp.float32)
    text_pos = 0.01 * jax.random.normal(keys[1], (L_t, d_t), jnp.float32)
    text_x = (tok_emb[jnp.asarray(toks)] + text_pos[None]).astype(bf)  # (N,L_t,d_t)

    cls_emb_f32 = 0.02 * jax.random.normal(keys[2], (d_v,), jnp.float32)

    # PromptLearner init: EOT / class embedding + 0.1 * normalized noise
    tnoise = jax.random.normal(keys[3], (K, d_t), jnp.float32)
    tnoise = tnoise / jnp.linalg.norm(tnoise, axis=-1, keepdims=True)
    text_prompt = jnp.tile(tok_emb[cfg["eot_token"]], (K, 1)) + 0.1 * tnoise
    vnoise = jax.random.normal(keys[4], (K, d_v), jnp.float32)
    vnoise = vnoise / jnp.linalg.norm(vnoise, axis=-1, keepdims=True)
    img_prompt = jnp.tile(cls_emb_f32, (K, 1)) + 0.1 * vnoise

    params = dict(
        text_x=text_x,
        len_prompts=jnp.asarray(len_prompts, jnp.int32),
        text_prompt=text_prompt.astype(bf),
        img_prompt=img_prompt.astype(bf),
        text_layers=_init_stacked_layers(keys[5], cfg["layers_t"], d_t,
                                         cfg["heads_t"]),
        visual_layers=_init_stacked_layers(keys[6], cfg["layers_v"], d_v,
                                           cfg["heads_v"]),
        ln_final_g=jnp.ones((1, d_t), jnp.float32),
        ln_final_b=jnp.zeros((1, d_t), jnp.float32),
        text_proj=(0.02 * jax.random.normal(keys[7], (d_t, d_e),
                                            jnp.float32)).astype(bf),
        conv_w=(0.02 * jax.random.normal(keys[8], (C * P * P, d_v),
                                         jnp.float32)).astype(bf),
        cls_emb=cls_emb_f32.astype(bf),
        img_pos=(0.01 * jax.random.normal(keys[9], (1 + n_p, d_v),
                                          jnp.float32)).astype(bf),
        ln_pre_g=jnp.ones((1, d_v), jnp.float32),
        ln_pre_b=jnp.zeros((1, d_v), jnp.float32),
        ln_post_g=jnp.ones((1, d_v), jnp.float32),
        ln_post_b=jnp.zeros((1, d_v), jnp.float32),
        img_proj=(0.02 * jax.random.normal(keys[10], (d_v, d_e),
                                           jnp.float32)).astype(bf),
        logit_scale=jnp.asarray(np.log(1.0 / 0.07), jnp.float32),
    )
    return params


# ----------------------------------------------------------------------------
if __name__ == "__main__":
    key = jax.random.PRNGKey(0)
    pkey, ikey = jax.random.split(key)
    params = init_params(pkey, CFG)

    B = 2
    image = jax.random.normal(
        ikey, (B, CFG["channels"], CFG["image_size"], CFG["image_size"]),
        jnp.float32)                                   # NCHW, like PyTorch

    forward = jax.jit(functools.partial(custom_clip_forward, cfg=CFG))
    logits = forward(params, image)
    logits = jax.block_until_ready(logits)

    assert logits.shape == (B, 3)
    assert bool(jnp.all(jnp.isfinite(logits)))
    print("KERNEL_OK")
</pallas_src>

<mosaic_0001>
module attributes {stable_mosaic.version = 11 : i64} {
  func.func @_ln_mm_kernel(%arg0: i32, %arg1: memref<32x48xbf16, #tpu.memory_space<vmem>>, %arg2: memref<48x64xbf16, #tpu.memory_space<vmem>>, %arg3: memref<32x64xbf16, #tpu.memory_space<vmem>>) attributes {dimension_semantics = [#tpu.dimension_semantics<arbitrary>], iteration_bounds = array<i64: 1>, scalar_prefetch = 0 : i64, scratch_operands = 0 : i64, tpu.core_type = #tpu.core_type<tc>, window_params = [{pipeline_mode = #tpu.pipeline_mode<synchronous>, transform_indices = @transform_0, window_bounds = array<i64: 32, 48>}, {pipeline_mode = #tpu.pipeline_mode<synchronous>, transform_indices = @transform_1, window_bounds = array<i64: 48, 64>}, {pipeline_mode = #tpu.pipeline_mode<synchronous>, transform_indices = @transform_2, window_bounds = array<i64: 32, 64>}]} {
    %c0 = arith.constant 0 : index
    %c0_0 = arith.constant 0 : index
    %0 = vector.load %arg1[%c0, %c0_0] : memref<32x48xbf16, #tpu.memory_space<vmem>>, vector<32x48xbf16>
    %c0_1 = arith.constant 0 : index
    %c0_2 = arith.constant 0 : index
    %1 = vector.load %arg2[%c0_1, %c0_2] : memref<48x64xbf16, #tpu.memory_space<vmem>>, vector<48x64xbf16>
    %cst = arith.constant dense<0.000000e+00> : vector<32x64xf32>
    %2 = tpu.matmul %0, %1, %cst {dimension_numbers = #tpu.dot_dimension_numbers<[1], [0], [0], [1], [0, 0, 1, 1], [], []>} : vector<32x48xbf16>, vector<48x64xbf16>, vector<32x64xf32> -> vector<32x64xf32>
    %3 = arith.truncf %2 : vector<32x64xf32> to vector<32x64xbf16>
    %c0_3 = arith.constant 0 : index
    %c0_4 = arith.constant 0 : index
    %4 = vector.load %arg3[%c0_3, %c0_4] : memref<32x64xbf16, #tpu.memory_space<vmem>>, vector<32x64xbf16>
    tpu.vector_store %arg3[%c0_3, %c0_4], %3 {strides = array<i32>} : memref<32x64xbf16, #tpu.memory_space<vmem>>, vector<32x64xbf16>,
    return
  }
  func.func @transform_0(%arg0: i32) -> (i32, i32) {
    %c0_i32 = arith.constant 0 : i32
    %c0_i32_0 = arith.constant 0 : i32
    %c0_i32_1 = arith.constant 0 : i32
    return %c0_i32, %c0_i32_0 : i32, i32
  }
  func.func @transform_1(%arg0: i32) -> (i32, i32) {
    %c0_i32 = arith.constant 0 : i32
    %c0_i32_0 = arith.constant 0 : i32
    %c0_i32_1 = arith.constant 0 : i32
    return %c0_i32, %c0_i32_0 : i32, i32
  }
  func.func @transform_2(%arg0: i32) -> (i32, i32) {
    %c0_i32 = arith.constant 0 : i32
    %c0_i32_0 = arith.constant 0 : i32
    %c0_i32_1 = arith.constant 0 : i32
    return %c0_i32, %c0_i32_0 : i32, i32
  }
}

module attributes {stable_mosaic.version = 11 : i64} {
  func.func @_branch_kernel(%arg0: i32, %arg1: i32, %arg2: memref<1x19x64xbf16, #tpu.memory_space<vmem>>, %arg3: memref<1x64xf32, #tpu.memory_space<vmem>>, %arg4: memref<1x64xf32, #tpu.memory_space<vmem>>, %arg5: memref<1x1x64xf32, #tpu.memory_space<vmem>>, %arg6: memref<1x1x64xf32, #tpu.memory_space<vmem>>, %arg7: memref<1x4x64x16xbf16, #tpu.memory_space<vmem>>, %arg8: memref<1x4x64x16xbf16, #tpu.memory_space<vmem>>, %arg9: memref<1x4x64x16xbf16, #tpu.memory_space<vmem>>, %arg10: memref<1x4x1x16xbf16, #tpu.memory_space<vmem>>, %arg11: memref<1x4x1x16xbf16, #tpu.memory_space<vmem>>, %arg12: memref<1x4x1x16xbf16, #tpu.memory_space<vmem>>, %arg13: memref<1x4x16x64xbf16, #tpu.memory_space<vmem>>, %arg14: memref<1x1x64xbf16, #tpu.memory_space<vmem>>, %arg15: memref<1x1x64xf32, #tpu.memory_space<vmem>>, %arg16: memref<1x1x64xf32, #tpu.memory_space<vmem>>, %arg17: memref<1x64x256xbf16, #tpu.memory_space<vmem>>, %arg18: memref<1x1x256xbf16, #tpu.memory_space<vmem>>, %arg19: memref<1x256x64xbf16, #tpu.memory_space<vmem>>, %arg20: memref<1x1x64xbf16, #tpu.memory_space<vmem>>, %arg21: memref<1x2x64xf32, #tpu.memory_space<vmem>>, %arg22: memref<19x64xf32, #tpu.memory_space<vmem>>) attributes {dimension_semantics = [#tpu.dimension_semantics<parallel>, #tpu.dimension_semantics<arbitrary>], iteration_bounds = array<i64: 2, 2>, scalar_prefetch = 0 : i64, scratch_operands = 1 : i64, tpu.core_type = #tpu.core_type<tc>, window_params = [{transform_indices = @transform_0, window_bounds = array<i64: 1, 19, 64>}, {pipeline_mode = #tpu.pipeline_mode<synchronous>, transform_indices = @transform_1, window_bounds = array<i64: 1, 64>}, {pipeline_mode = #tpu.pipeline_mode<synchronous>, transform_indices = @transform_2, window_bounds = array<i64: 1, 64>}, {transform_indices = @transform_3, window_bounds = array<i64: 1, 1, 64>}, {transform_indices = @transform_4, window_bounds = array<i64: 1, 1, 64>}, {transform_indices = @transform_5, window_bounds = array<i64: 1, 4, 64, 16>}, {transform_indices = @transform_6, window_bounds = array<i64: 1, 4, 64, 16>}, {transform_indices = @transform_7, window_bounds = array<i64: 1, 4, 64, 16>}, {transform_indices = @transform_8, window_bounds = array<i64: 1, 4, 1, 16>}, {transform_indices = @transform_9, window_bounds = array<i64: 1, 4, 1, 16>}, {transform_indices = @transform_10, window_bounds = array<i64: 1, 4, 1, 16>}, {transform_indices = @transform_11, window_bounds = array<i64: 1, 4, 16, 64>}, {transform_indices = @transform_12, window_bounds = array<i64: 1, 1, 64>}, {transform_indices = @transform_13, window_bounds = array<i64: 1, 1, 64>}, {transform_indices = @transform_14, window_bounds = array<i64: 1, 1, 64>}, {transform_indices = @transform_15, window_bounds = array<i64: 1, 64, 256>}, {transform_indices = @transform_16, window_bounds = array<i64: 1, 1, 256>}, {transform_indices = @transform_17, window_bounds = array<i64: 1, 256, 64>}, {transform_indices = @transform_18, window_bounds = array<i64: 1, 1, 64>}, {transform_indices = @transform_19, window_bounds = array<i64: 1, 2, 64>}]} {
    %c0_i32 = arith.constant 0 : i32
    %0 = arith.cmpi eq, %arg1, %c0_i32 : i32
    %1 = arith.extui %0 : i1 to i32
    %c0_i32_0 = arith.constant 0 : i32
    %2 = arith.cmpi ne, %1, %c0_i32_0 : i32
    scf.if %2 {
      %c0_203 = arith.constant 0 : index
      %c0_204 = arith.constant 0 : index
      %c0_205 = arith.constant 0 : index
      %310 = vector.load %arg2[%c0_203, %c0_204, %c0_205] : memref<1x19x64xbf16, #tpu.memory_space<vmem>>, vector<1x19x64xbf16>
      %311 = vector.shape_cast %310 : vector<1x19x64xbf16> to vector<19x64xbf16>
      %312 = arith.extf %311 : vector<19x64xbf16> to vector<19x64xf32>
      %c0_206 = arith.constant 0 : index
      %c0_207 = arith.constant 0 : index
      %313 = vector.load %arg3[%c0_206, %c0_207] : memref<1x64xf32, #tpu.memory_space<vmem>>, vector<1x64xf32>
      %c0_208 = arith.constant 0 : index
      %c0_209 = arith.constant 0 : index
      %314 = vector.load %arg4[%c0_208, %c0_209] : memref<1x64xf32, #tpu.memory_space<vmem>>, vector<1x64xf32>
      %cst_210 = arith.constant dense<0.000000e+00> : vector<19xf32>
      %315 = vector.multi_reduction <add>, %312, %cst_210 [1] : vector<19x64xf32> to vector<19xf32>
      %316 = vector.shape_cast %315 : vector<19xf32> to vector<19x1xf32>
      %cst_211 = arith.constant 6.400000e+01 : f32
      %317 = vector.broadcast %cst_211 : f32 to vector<19x1xf32>
      %318 = arith.divf %316, %317 : vector<19x1xf32>
      %319 = vector.broadcast %318 : vector<19x1xf32> to vector<19x64xf32>
      %320 = arith.subf %312, %319 : vector<19x64xf32>
      %321 = arith.mulf %320, %320 : vector<19x64xf32>
      %cst_212 = arith.constant dense<0.000000e+00> : vector<19xf32>
      %322 = vector.multi_reduction <add>, %321, %cst_212 [1] : vector<19x64xf32> to vector<19xf32>
      %323 = vector.shape_cast %322 : vector<19xf32> to vector<19x1xf32>
      %cst_213 = arith.constant 6.400000e+01 : f32
      %324 = vector.broadcast %cst_213 : f32 to vector<19x1xf32>
      %325 = arith.divf %323, %324 : vector<19x1xf32>
      %326 = vector.broadcast %318 : vector<19x1xf32> to vector<19x64xf32>
      %327 = arith.subf %312, %326 : vector<19x64xf32>
      %cst_214 = arith.constant 9.99999974E-6 : f32
      %328 = vector.broadcast %cst_214 : f32 to vector<19x1xf32>
      %329 = arith.addf %325, %328 : vector<19x1xf32>
      %330 = math.rsqrt %329 : vector<19x1xf32>
      %331 = vector.broadcast %330 : vector<19x1xf32> to vector<19x64xf32>
      %332 = arith.mulf %327, %331 : vector<19x64xf32>
      %333 = vector.broadcast %313 : vector<1x64xf32> to vector<19x64xf32>
      %334 = arith.mulf %332, %333 : vector<19x64xf32>
      %335 = vector.broadcast %314 : vector<1x64xf32> to vector<19x64xf32>
      %336 = arith.addf %334, %335 : vector<19x64xf32>
      %c0_215 = arith.constant 0 : index
      %c0_216 = arith.constant 0 : index
      %337 = vector.load %arg22[%c0_215, %c0_216] : memref<19x64xf32, #tpu.memory_space<vmem>>, vector<19x64xf32>
      tpu.vector_store %arg22[%c0_215, %c0_216], %336 {strides = array<i32>} : memref<19x64xf32, #tpu.memory_space<vmem>>, vector<19x64xf32>,
    } else {
    }
    %c0 = arith.constant 0 : index
    %c0_1 = arith.constant 0 : index
    %3 = vector.load %arg22[%c0, %c0_1] : memref<19x64xf32, #tpu.memory_space<vmem>>, vector<19x64xf32>
    %4 = tpu.iota {dimensions = array<i32: 1>} : vector<19x19xi32>
    %c17_i32 = arith.constant 17 : i32
    %5 = vector.broadcast %c17_i32 : i32 to vector<19x19xi32>
    %6 = arith.cmpi slt, %4, %5 : vector<19x19xi32>
    %c0_2 = arith.constant 0 : index
    %c0_3 = arith.constant 0 : index
    %c0_4 = arith.constant 0 : index
    %7 = vector.load %arg5[%c0_2, %c0_3, %c0_4] : memref<1x1x64xf32, #tpu.memory_space<vmem>>, vector<1x1x64xf32>
    %8 = vector.shape_cast %7 : vector<1x1x64xf32> to vector<1x64xf32>
    %c0_5 = arith.constant 0 : index
    %c0_6 = arith.constant 0 : index
    %c0_7 = arith.constant 0 : index
    %9 = vector.load %arg6[%c0_5, %c0_6, %c0_7] : memref<1x1x64xf32, #tpu.memory_space<vmem>>, vector<1x1x64xf32>
    %10 = vector.shape_cast %9 : vector<1x1x64xf32> to vector<1x64xf32>
    %cst = arith.constant dense<0.000000e+00> : vector<19xf32>
    %11 = vector.multi_reduction <add>, %3, %cst [1] : vector<19x64xf32> to vector<19xf32>
    %12 = vector.shape_cast %11 : vector<19xf32> to vector<19x1xf32>
    %cst_8 = arith.constant 6.400000e+01 : f32
    %13 = vector.broadcast %cst_8 : f32 to vector<19x1xf32>
    %14 = arith.divf %12, %13 : vector<19x1xf32>
    %15 = vector.broadcast %14 : vector<19x1xf32> to vector<19x64xf32>
    %16 = arith.subf %3, %15 : vector<19x64xf32>
    %17 = arith.mulf %16, %16 : vector<19x64xf32>
    %cst_9 = arith.constant dense<0.000000e+00> : vector<19xf32>
    %18 = vector.multi_reduction <add>, %17, %cst_9 [1] : vector<19x64xf32> to vector<19xf32>
    %19 = vector.shape_cast %18 : vector<19xf32> to vector<19x1xf32>
    %cst_10 = arith.constant 6.400000e+01 : f32
    %20 = vector.broadcast %cst_10 : f32 to vector<19x1xf32>
    %21 = arith.divf %19, %20 : vector<19x1xf32>
    %22 = vector.broadcast %14 : vector<19x1xf32> to vector<19x64xf32>
    %23 = arith.subf %3, %22 : vector<19x64xf32>
    %cst_11 = arith.constant 9.99999974E-6 : f32
    %24 = vector.broadcast %cst_11 : f32 to vector<19x1xf32>
    %25 = arith.addf %21, %24 : vector<19x1xf32>
    %26 = math.rsqrt %25 : vector<19x1xf32>
    %27 = vector.broadcast %26 : vector<19x1xf32> to vector<19x64xf32>
    %28 = arith.mulf %23, %27 : vector<19x64xf32>
    %29 = vector.broadcast %8 : vector<1x64xf32> to vector<19x64xf32>
    %30 = arith.mulf %28, %29 : vector<19x64xf32>
    %31 = vector.broadcast %10 : vector<1x64xf32> to vector<19x64xf32>
    %32 = arith.addf %30, %31 : vector<19x64xf32>
    %33 = arith.truncf %32 : vector<19x64xf32> to vector<19x64xbf16>
    %cst_12 = arith.constant 0.000000e+00 : f32
    %34 = vector.broadcast %cst_12 : f32 to vector<19x64xf32>
    %c0_13 = arith.constant 0 : index
    %c0_14 = arith.constant 0 : index
    %c0_15 = arith.constant 0 : index
    %c0_16 = arith.constant 0 : index
    %35 = vector.load %arg7[%c0_13, %c0_14, %c0_15, %c0_16] : memref<1x4x64x16xbf16, #tpu.memory_space<vmem>>, vector<1x1x64x16xbf16>
    %36 = vector.shape_cast %35 : vector<1x1x64x16xbf16> to vector<64x16xbf16>
    %cst_17 = arith.constant dense<0.000000e+00> : vector<19x16xf32>
    %37 = tpu.matmul %33, %36, %cst_17 {dimension_numbers = #tpu.dot_dimension_numbers<[1], [0], [0], [1], [0, 0, 1, 1], [], []>} : vector<19x64xbf16>, vector<64x16xbf16>, vector<19x16xf32> -> vector<19x16xf32>
    %c0_18 = arith.constant 0 : index
    %c0_19 = arith.constant 0 : index
    %c0_20 = arith.constant 0 : index
    %c0_21 = arith.constant 0 : index
    %38 = vector.load %arg10[%c0_18, %c0_19, %c0_20, %c0_21] : memref<1x4x1x16xbf16, #tpu.memory_space<vmem>>, vector<1x1x1x16xbf16>
    %39 = vector.shape_cast %38 : vector<1x1x1x16xbf16> to vector<1x16xbf16>
    %40 = arith.extf %39 : vector<1x16xbf16> to vector<1x16xf32>
    %41 = vector.broadcast %40 : vector<1x16xf32> to vector<19x16xf32>
    %42 = arith.addf %37, %41 : vector<19x16xf32>
    %cst_22 = arith.constant 2.500000e-01 : f32
    %43 = vector.broadcast %cst_22 : f32 to vector<19x16xf32>
    %44 = arith.mulf %42, %43 : vector<19x16xf32>
    %c0_23 = arith.constant 0 : index
    %c0_24 = arith.constant 0 : index
    %c0_25 = arith.constant 0 : index
    %c0_26 = arith.constant 0 : index
    %45 = vector.load %arg8[%c0_23, %c0_24, %c0_25, %c0_26] : memref<1x4x64x16xbf16, #tpu.memory_space<vmem>>, vector<1x1x64x16xbf16>
    %46 = vector.shape_cast %45 : vector<1x1x64x16xbf16> to vector<64x16xbf16>
    %cst_27 = arith.constant dense<0.000000e+00> : vector<19x16xf32>
    %47 = tpu.matmul %33, %46, %cst_27 {dimension_numbers = #tpu.dot_dimension_numbers<[1], [0], [0], [1], [0, 0, 1, 1], [], []>} : vector<19x64xbf16>, vector<64x16xbf16>, vector<19x16xf32> -> vector<19x16xf32>
    %c0_28 = arith.constant 0 : index
    %c0_29 = arith.constant 0 : index
    %c0_30 = arith.constant 0 : index
    %c0_31 = arith.constant 0 : index
    %48 = vector.load %arg11[%c0_28, %c0_29, %c0_30, %c0_31] : memref<1x4x1x16xbf16, #tpu.memory_space<vmem>>, vector<1x1x1x16xbf16>
    %49 = vector.shape_cast %48 : vector<1x1x1x16xbf16> to vector<1x16xbf16>
    %50 = arith.extf %49 : vector<1x16xbf16> to vector<1x16xf32>
    %51 = vector.broadcast %50 : vector<1x16xf32> to vector<19x16xf32>
    %52 = arith.addf %47, %51 : vector<19x16xf32>
    %c0_32 = arith.constant 0 : index
    %c0_33 = arith.constant 0 : index
    %c0_34 = arith.constant 0 : index
    %c0_35 = arith.constant 0 : index
    %53 = vector.load %arg9[%c0_32, %c0_33, %c0_34, %c0_35] : memref<1x4x64x16xbf16, #tpu.memory_space<vmem>>, vector<1x1x64x16xbf16>
    %54 = vector.shape_cast %53 : vector<1x1x64x16xbf16> to vector<64x16xbf16>
    %cst_36 = arith.constant dense<0.000000e+00> : vector<19x16xf32>
    %55 = tpu.matmul %33, %54, %cst_36 {dimension_numbers = #tpu.dot_dimension_numbers<[1], [0], [0], [1], [0, 0, 1, 1], [], []>} : vector<19x64xbf16>, vector<64x16xbf16>, vector<19x16xf32> -> vector<19x16xf32>
    %c0_37 = arith.constant 0 : index
    %c0_38 = arith.constant 0 : index
    %c0_39 = arith.constant 0 : index
    %c0_40 = arith.constant 0 : index
    %56 = vector.load %arg12[%c0_37, %c0_38, %c0_39, %c0_40] : memref<1x4x1x16xbf16, #tpu.memory_space<vmem>>, vector<1x1x1x16xbf16>
    %57 = vector.shape_cast %56 : vector<1x1x1x16xbf16> to vector<1x16xbf16>
    %58 = arith.extf %57 : vector<1x16xbf16> to vector<1x16xf32>
    %59 = vector.broadcast %58 : vector<1x16xf32> to vector<19x16xf32>
    %60 = arith.addf %55, %59 : vector<19x16xf32>
    %61 = arith.truncf %44 : vector<19x16xf32> to vector<19x16xbf16>
    %62 = arith.truncf %52 : vector<19x16xf32> to vector<19x16xbf16>
    %cst_41 = arith.constant dense<0.000000e+00> : vector<19x19xf32>
    %63 = tpu.matmul %61, %62, %cst_41 {dimension_numbers = #tpu.dot_dimension_numbers<[1], [1], [0], [0], [0, 0, 1, 0], [], []>} : vector<19x16xbf16>, vector<19x16xbf16>, vector<19x19xf32> -> vector<19x19xf32>
    %cst_42 = arith.constant -1.000000e+30 : f32
    %64 = vector.broadcast %cst_42 : f32 to vector<19x19xf32>
    %65 = arith.select %6, %63, %64 : vector<19x19xi1>, vector<19x19xf32>
    %cst_43 = arith.constant dense<0xFF800000> : vector<19xf32>
    %66 = vector.multi_reduction <maximumf>, %65, %cst_43 [1] : vector<19x19xf32> to vector<19xf32>
    %67 = vector.shape_cast %66 : vector<19xf32> to vector<19x1xf32>
    %cst_44 = arith.constant -1.000000e+30 : f32
    %68 = vector.broadcast %cst_44 : f32 to vector<19x1xf32>
    %69 = arith.maximumf %67, %68 : vector<19x1xf32>
    %70 = vector.broadcast %69 : vector<19x1xf32> to vector<19x19xf32>
    %71 = arith.subf %65, %70 : vector<19x19xf32>
    %72 = math.exp %71 : vector<19x19xf32>
    %cst_45 = arith.constant dense<0.000000e+00> : vector<19xf32>
    %73 = vector.multi_reduction <add>, %72, %cst_45 [1] : vector<19x19xf32> to vector<19xf32>
    %74 = vector.shape_cast %73 : vector<19xf32> to vector<19x1xf32>
    %cst_46 = arith.constant 1.000000e-30 : f32
    %75 = vector.broadcast %cst_46 : f32 to vector<19x1xf32>
    %76 = arith.maximumf %74, %75 : vector<19x1xf32>
    %77 = tpu.reciprocal %76 {approx = true} : vector<19x1xf32> -> vector<19x1xf32>
    %78 = vector.broadcast %77 : vector<19x1xf32> to vector<19x19xf32>
    %79 = arith.mulf %72, %78 : vector<19x19xf32>
    %80 = arith.truncf %79 : vector<19x19xf32> to vector<19x19xbf16>
    %81 = arith.truncf %60 : vector<19x16xf32> to vector<19x16xbf16>
    %cst_47 = arith.constant dense<0.000000e+00> : vector<19x16xf32>
    %82 = tpu.matmul %80, %81, %cst_47 {dimension_numbers = #tpu.dot_dimension_numbers<[1], [0], [0], [1], [0, 0, 1, 1], [], []>} : vector<19x19xbf16>, vector<19x16xbf16>, vector<19x16xf32> -> vector<19x16xf32>
    %83 = arith.truncf %82 : vector<19x16xf32> to vector<19x16xbf16>
    %c0_48 = arith.constant 0 : index
    %c0_49 = arith.constant 0 : index
    %c0_50 = arith.constant 0 : index
    %c0_51 = arith.constant 0 : index
    %84 = vector.load %arg13[%c0_48, %c0_49, %c0_50, %c0_51] : memref<1x4x16x64xbf16, #tpu.memory_space<vmem>>, vector<1x1x16x64xbf16>
    %85 = vector.shape_cast %84 : vector<1x1x16x64xbf16> to vector<16x64xbf16>
    %cst_52 = arith.constant dense<0.000000e+00> : vector<19x64xf32>
    %86 = tpu.matmul %83, %85, %cst_52 {dimension_numbers = #tpu.dot_dimension_numbers<[1], [0], [0], [1], [0, 0, 1, 1], [], []>} : vector<19x16xbf16>, vector<16x64xbf16>, vector<19x64xf32> -> vector<19x64xf32>
    %87 = arith.addf %34, %86 : vector<19x64xf32>
    %c0_53 = arith.constant 0 : index
    %c1 = arith.constant 1 : index
    %c0_54 = arith.constant 0 : index
    %c0_55 = arith.constant 0 : index
    %88 = vector.load %arg7[%c0_53, %c1, %c0_54, %c0_55] : memref<1x4x64x16xbf16, #tpu.memory_space<vmem>>, vector<1x1x64x16xbf16>
    %89 = vector.shape_cast %88 : vector<1x1x64x16xbf16> to vector<64x16xbf16>
    %cst_56 = arith.constant dense<0.000000e+00> : vector<19x16xf32>
    %90 = tpu.matmul %33, %89, %cst_56 {dimension_numbers = #tpu.dot_dimension_numbers<[1], [0], [0], [1], [0, 0, 1, 1], [], []>} : vector<19x64xbf16>, vector<64x16xbf16>, vector<19x16xf32> -> vector<19x16xf32>
    %c0_57 = arith.constant 0 : index
    %c1_58 = arith.constant 1 : index
    %c0_59 = arith.constant 0 : index
    %c0_60 = arith.constant 0 : index
    %91 = vector.load %arg10[%c0_57, %c1_58, %c0_59, %c0_60] : memref<1x4x1x16xbf16, #tpu.memory_space<vmem>>, vector<1x1x1x16xbf16>
    %92 = vector.shape_cast %91 : vector<1x1x1x16xbf16> to vector<1x16xbf16>
    %93 = arith.extf %92 : vector<1x16xbf16> to vector<1x16xf32>
    %94 = vector.broadcast %93 : vector<1x16xf32> to vector<19x16xf32>
    %95 = arith.addf %90, %94 : vector<19x16xf32>
    %cst_61 = arith.constant 2.500000e-01 : f32
    %96 = vector.broadcast %cst_61 : f32 to vector<19x16xf32>
    %97 = arith.mulf %95, %96 : vector<19x16xf32>
    %c0_62 = arith.constant 0 : index
    %c1_63 = arith.constant 1 : index
    %c0_64 = arith.constant 0 : index
    %c0_65 = arith.constant 0 : index
    %98 = vector.load %arg8[%c0_62, %c1_63, %c0_64, %c0_65] : memref<1x4x64x16xbf16, #tpu.memory_space<vmem>>, vector<1x1x64x16xbf16>
    %99 = vector.shape_cast %98 : vector<1x1x64x16xbf16> to vector<64x16xbf16>
    %cst_66 = arith.constant dense<0.000000e+00> : vector<19x16xf32>
    %100 = tpu.matmul %33, %99, %cst_66 {dimension_numbers = #tpu.dot_dimension_numbers<[1], [0], [0], [1], [0, 0, 1, 1], [], []>} : vector<19x64xbf16>, vector<64x16xbf16>, vector<19x16xf32> -> vector<19x16xf32>
    %c0_67 = arith.constant 0 : index
    %c1_68 = arith.constant 1 : index
    %c0_69 = arith.constant 0 : index
    %c0_70 = arith.constant 0 : index
    %101 = vector.load %arg11[%c0_67, %c1_68, %c0_69, %c0_70] : memref<1x4x1x16xbf16, #tpu.memory_space<vmem>>, vector<1x1x1x16xbf16>
    %102 = vector.shape_cast %101 : vector<1x1x1x16xbf16> to vector<1x16xbf16>
    %103 = arith.extf %102 : vector<1x16xbf16> to vector<1x16xf32>
    %104 = vector.broadcast %103 : vector<1x16xf32> to vector<19x16xf32>
    %105 = arith.addf %100, %104 : vector<19x16xf32>
    %c0_71 = arith.constant 0 : index
    %c1_72 = arith.constant 1 : index
    %c0_73 = arith.constant 0 : index
    %c0_74 = arith.constant 0 : index
    %106 = vector.load %arg9[%c0_71, %c1_72, %c0_73, %c0_74] : memref<1x4x64x16xbf16, #tpu.memory_space<vmem>>, vector<1x1x64x16xbf16>
    %107 = vector.shape_cast %106 : vector<1x1x64x16xbf16> to vector<64x16xbf16>
    %cst_75 = arith.constant dense<0.000000e+00> : vector<19x16xf32>
    %108 = tpu.matmul %33, %107, %cst_75 {dimension_numbers = #tpu.dot_dimension_numbers<[1], [0], [0], [1], [0, 0, 1, 1], [], []>} : vector<19x64xbf16>, vector<64x16xbf16>, vector<19x16xf32> -> vector<19x16xf32>
    %c0_76 = arith.constant 0 : index
    %c1_77 = arith.constant 1 : index
    %c0_78 = arith.constant 0 : index
    %c0_79 = arith.constant 0 : index
    %109 = vector.load %arg12[%c0_76, %c1_77, %c0_78, %c0_79] : memref<1x4x1x16xbf16, #tpu.memory_space<vmem>>, vector<1x1x1x16xbf16>
    %110 = vector.shape_cast %109 : vector<1x1x1x16xbf16> to vector<1x16xbf16>
    %111 = arith.extf %110 : vector<1x16xbf16> to vector<1x16xf32>
    %112 = vector.broadcast %111 : vector<1x16xf32> to vector<19x16xf32>
    %113 = arith.addf %108, %112 : vector<19x16xf32>
    %114 = arith.truncf %97 : vector<19x16xf32> to vector<19x16xbf16>
    %115 = arith.truncf %105 : vector<19x16xf32> to vector<19x16xbf16>
    %cst_80 = arith.constant dense<0.000000e+00> : vector<19x19xf32>
    %116 = tpu.matmul %114, %115, %cst_80 {dimension_numbers = #tpu.dot_dimension_numbers<[1], [1], [0], [0], [0, 0, 1, 0], [], []>} : vector<19x16xbf16>, vector<19x16xbf16>, vector<19x19xf32> -> vector<19x19xf32>
    %cst_81 = arith.constant -1.000000e+30 : f32
    %117 = vector.broadcast %cst_81 : f32 to vector<19x19xf32>
    %118 = arith.select %6, %116, %117 : vector<19x19xi1>, vector<19x19xf32>
    %cst_82 = arith.constant dense<0xFF800000> : vector<19xf32>
    %119 = vector.multi_reduction <maximumf>, %118, %cst_82 [1] : vector<19x19xf32> to vector<19xf32>
    %120 = vector.shape_cast %119 : vector<19xf32> to vector<19x1xf32>
    %cst_83 = arith.constant -1.000000e+30 : f32
    %121 = vector.broadcast %cst_83 : f32 to vector<19x1xf32>
    %122 = arith.maximumf %120, %121 : vector<19x1xf32>
    %123 = vector.broadcast %122 : vector<19x1xf32> to vector<19x19xf32>
    %124 = arith.subf %118, %123 : vector<19x19xf32>
    %125 = math.exp %124 : vector<19x19xf32>
    %cst_84 = arith.constant dense<0.000000e+00> : vector<19xf32>
    %126 = vector.multi_reduction <add>, %125, %cst_84 [1] : vector<19x19xf32> to vector<19xf32>
    %127 = vector.shape_cast %126 : vector<19xf32> to vector<19x1xf32>
    %cst_85 = arith.constant 1.000000e-30 : f32
    %128 = vector.broadcast %cst_85 : f32 to vector<19x1xf32>
    %129 = arith.maximumf %127, %128 : vector<19x1xf32>
    %130 = tpu.reciprocal %129 {approx = true} : vector<19x1xf32> -> vector<19x1xf32>
    %131 = vector.broadcast %130 : vector<19x1xf32> to vector<19x19xf32>
    %132 = arith.mulf %125, %131 : vector<19x19xf32>
    %133 = arith.truncf %132 : vector<19x19xf32> to vector<19x19xbf16>
    %134 = arith.truncf %113 : vector<19x16xf32> to vector<19x16xbf16>
    %cst_86 = arith.constant dense<0.000000e+00> : vector<19x16xf32>
    %135 = tpu.matmul %133, %134, %cst_86 {dimension_numbers = #tpu.dot_dimension_numbers<[1], [0], [0], [1], [0, 0, 1, 1], [], []>} : vector<19x19xbf16>, vector<19x16xbf16>, vector<19x16xf32> -> vector<19x16xf32>
    %136 = arith.truncf %135 : vector<19x16xf32> to vector<19x16xbf16>
    %c0_87 = arith.constant 0 : index
    %c1_88 = arith.constant 1 : index
    %c0_89 = arith.constant 0 : index
    %c0_90 = arith.constant 0 : index
    %137 = vector.load %arg13[%c0_87, %c1_88, %c0_89, %c0_90] : memref<1x4x16x64xbf16, #tpu.memory_space<vmem>>, vector<1x1x16x64xbf16>
    %138 = vector.shape_cast %137 : vector<1x1x16x64xbf16> to vector<16x64xbf16>
    %cst_91 = arith.constant dense<0.000000e+00> : vector<19x64xf32>
    %139 = tpu.matmul %136, %138, %cst_91 {dimension_numbers = #tpu.dot_dimension_numbers<[1], [0], [0], [1], [0, 0, 1, 1], [], []>} : vector<19x16xbf16>, vector<16x64xbf16>, vector<19x64xf32> -> vector<19x64xf32>
    %140 = arith.addf %87, %139 : vector<19x64xf32>
    %c0_92 = arith.constant 0 : index
    %c2 = arith.constant 2 : index
    %c0_93 = arith.constant 0 : index
    %c0_94 = arith.constant 0 : index
    %141 = vector.load %arg7[%c0_92, %c2, %c0_93, %c0_94] : memref<1x4x64x16xbf16, #tpu.memory_space<vmem>>, vector<1x1x64x16xbf16>
    %142 = vector.shape_cast %141 : vector<1x1x64x16xbf16> to vector<64x16xbf16>
    %cst_95 = arith.constant dense<0.000000e+00> : vector<19x16xf32>
    %143 = tpu.matmul %33, %142, %cst_95 {dimension_numbers = #tpu.dot_dimension_numbers<[1], [0], [0], [1], [0, 0, 1, 1], [], []>} : vector<19x64xbf16>, vector<64x16xbf16>, vector<19x16xf32> -> vector<19x16xf32>
    %c0_96 = arith.constant 0 : index
    %c2_97 = arith.constant 2 : index
    %c0_98 = arith.constant 0 : index
    %c0_99 = arith.constant 0 : index
    %144 = vector.load %arg10[%c0_96, %c2_97, %c0_98, %c0_99] : memref<1x4x1x16xbf16, #tpu.memory_space<vmem>>, vector<1x1x1x16xbf16>
    %145 = vector.shape_cast %144 : vector<1x1x1x16xbf16> to vector<1x16xbf16>
    %146 = arith.extf %145 : vector<1x16xbf16> to vector<1x16xf32>
    %147 = vector.broadcast %146 : vector<1x16xf32> to vector<19x16xf32>
    %148 = arith.addf %143, %147 : vector<19x16xf32>
    %cst_100 = arith.constant 2.500000e-01 : f32
    %149 = vector.broadcast %cst_100 : f32 to vector<19x16xf32>
    %150 = arith.mulf %148, %149 : vector<19x16xf32>
    %c0_101 = arith.constant 0 : index
    %c2_102 = arith.constant 2 : index
    %c0_103 = arith.constant 0 : index
    %c0_104 = arith.constant 0 : index
    %151 = vector.load %arg8[%c0_101, %c2_102, %c0_103, %c0_104] : memref<1x4x64x16xbf16, #tpu.memory_space<vmem>>, vector<1x1x64x16xbf16>
    %152 = vector.shape_cast %151 : vector<1x1x64x16xbf16> to vector<64x16xbf16>
    %cst_105 = arith.constant dense<0.000000e+00> : vector<19x16xf32>
    %153 = tpu.matmul %33, %152, %cst_105 {dimension_numbers = #tpu.dot_dimension_numbers<[1], [0], [0], [1], [0, 0, 1, 1], [], []>} : vector<19x64xbf16>, vector<64x16xbf16>, vector<19x16xf32> -> vector<19x16xf32>
    %c0_106 = arith.constant 0 : index
    %c2_107 = arith.constant 2 : index
    %c0_108 = arith.constant 0 : index
    %c0_109 = arith.constant 0 : index
    %154 = vector.load %arg11[%c0_106, %c2_107, %c0_108, %c0_109] : memref<1x4x1x16xbf16, #tpu.memory_space<vmem>>, vector<1x1x1x16xbf16>
    %155 = vector.shape_cast %154 : vector<1x1x1x16xbf16> to vector<1x16xbf16>
    %156 = arith.extf %155 : vector<1x16xbf16> to vector<1x16xf32>
    %157 = vector.broadcast %156 : vector<1x16xf32> to vector<19x16xf32>
    %158 = arith.addf %153, %157 : vector<19x16xf32>
    %c0_110 = arith.constant 0 : index
    %c2_111 = arith.constant 2 : index
    %c0_112 = arith.constant 0 : index
    %c0_113 = arith.constant 0 : index
    %159 = vector.load %arg9[%c0_110, %c2_111, %c0_112, %c0_113] : memref<1x4x64x16xbf16, #tpu.memory_space<vmem>>, vector<1x1x64x16xbf16>
    %160 = vector.shape_cast %159 : vector<1x1x64x16xbf16> to vector<64x16xbf16>
    %cst_114 = arith.constant dense<0.000000e+00> : vector<19x16xf32>
    %161 = tpu.matmul %33, %160, %cst_114 {dimension_numbers = #tpu.dot_dimension_numbers<[1], [0], [0], [1], [0, 0, 1, 1], [], []>} : vector<19x64xbf16>, vector<64x16xbf16>, vector<19x16xf32> -> vector<19x16xf32>
    %c0_115 = arith.constant 0 : index
    %c2_116 = arith.constant 2 : index
    %c0_117 = arith.constant 0 : index
    %c0_118 = arith.constant 0 : index
    %162 = vector.load %arg12[%c0_115, %c2_116, %c0_117, %c0_118] : memref<1x4x1x16xbf16, #tpu.memory_space<vmem>>, vector<1x1x1x16xbf16>
    %163 = vector.shape_cast %162 : vector<1x1x1x16xbf16> to vector<1x16xbf16>
    %164 = arith.extf %163 : vector<1x16xbf16> to vector<1x16xf32>
    %165 = vector.broadcast %164 : vector<1x16xf32> to vector<19x16xf32>
    %166 = arith.addf %161, %165 : vector<19x16xf32>
    %167 = arith.truncf %150 : vector<19x16xf32> to vector<19x16xbf16>
    %168 = arith.truncf %158 : vector<19x16xf32> to vector<19x16xbf16>
    %cst_119 = arith.constant dense<0.000000e+00> : vector<19x19xf32>
    %169 = tpu.matmul %167, %168, %cst_119 {dimension_numbers = #tpu.dot_dimension_numbers<[1], [1], [0], [0], [0, 0, 1, 0], [], []>} : vector<19x16xbf16>, vector<19x16xbf16>, vector<19x19xf32> -> vector<19x19xf32>
    %cst_120 = arith.constant -1.000000e+30 : f32
    %170 = vector.broadcast %cst_120 : f32 to vector<19x19xf32>
    %171 = arith.select %6, %169, %170 : vector<19x19xi1>, vector<19x19xf32>
    %cst_121 = arith.constant dense<0xFF800000> : vector<19xf32>
    %172 = vector.multi_reduction <maximumf>, %171, %cst_121 [1] : vector<19x19xf32> to vector<19xf32>
    %173 = vector.shape_cast %172 : vector<19xf32> to vector<19x1xf32>
    %cst_122 = arith.constant -1.000000e+30 : f32
    %174 = vector.broadcast %cst_122 : f32 to vector<19x1xf32>
    %175 = arith.maximumf %173, %174 : vector<19x1xf32>
    %176 = vector.broadcast %175 : vector<19x1xf32> to vector<19x19xf32>
    %177 = arith.subf %171, %176 : vector<19x19xf32>
    %178 = math.exp %177 : vector<19x19xf32>
    %cst_123 = arith.constant dense<0.000000e+00> : vector<19xf32>
    %179 = vector.multi_reduction <add>, %178, %cst_123 [1] : vector<19x19xf32> to vector<19xf32>
    %180 = vector.shape_cast %179 : vector<19xf32> to vector<19x1xf32>
    %cst_124 = arith.constant 1.000000e-30 : f32
    %181 = vector.broadcast %cst_124 : f32 to vector<19x1xf32>
    %182 = arith.maximumf %180, %181 : vector<19x1xf32>
    %183 = tpu.reciprocal %182 {approx = true} : vector<19x1xf32> -> vector<19x1xf32>
    %184 = vector.broadcast %183 : vector<19x1xf32> to vector<19x19xf32>
    %185 = arith.mulf %178, %184 : vector<19x19xf32>
    %186 = arith.truncf %185 : vector<19x19xf32> to vector<19x19xbf16>
    %187 = arith.truncf %166 : vector<19x16xf32> to vector<19x16xbf16>
    %cst_125 = arith.constant dense<0.000000e+00> : vector<19x16xf32>
    %188 = tpu.matmul %186, %187, %cst_125 {dimension_numbers = #tpu.dot_dimension_numbers<[1], [0], [0], [1], [0, 0, 1, 1], [], []>} : vector<19x19xbf16>, vector<19x16xbf16>, vector<19x16xf32> -> vector<19x16xf32>
    %189 = arith.truncf %188 : vector<19x16xf32> to vector<19x16xbf16>
    %c0_126 = arith.constant 0 : index
    %c2_127 = arith.constant 2 : index
    %c0_128 = arith.constant 0 : index
    %c0_129 = arith.constant 0 : index
    %190 = vector.load %arg13[%c0_126, %c2_127, %c0_128, %c0_129] : memref<1x4x16x64xbf16, #tpu.memory_space<vmem>>, vector<1x1x16x64xbf16>
    %191 = vector.shape_cast %190 : vector<1x1x16x64xbf16> to vector<16x64xbf16>
    %cst_130 = arith.constant dense<0.000000e+00> : vector<19x64xf32>
    %192 = tpu.matmul %189, %191, %cst_130 {dimension_numbers = #tpu.dot_dimension_numbers<[1], [0], [0], [1], [0, 0, 1, 1], [], []>} : vector<19x16xbf16>, vector<16x64xbf16>, vector<19x64xf32> -> vector<19x64xf32>
    %193 = arith.addf %140, %192 : vector<19x64xf32>
    %c0_131 = arith.constant 0 : index
    %c3 = arith.constant 3 : index
    %c0_132 = arith.constant 0 : index
    %c0_133 = arith.constant 0 : index
    %194 = vector.load %arg7[%c0_131, %c3, %c0_132, %c0_133] : memref<1x4x64x16xbf16, #tpu.memory_space<vmem>>, vector<1x1x64x16xbf16>
    %195 = vector.shape_cast %194 : vector<1x1x64x16xbf16> to vector<64x16xbf16>
    %cst_134 = arith.constant dense<0.000000e+00> : vector<19x16xf32>
    %196 = tpu.matmul %33, %195, %cst_134 {dimension_numbers = #tpu.dot_dimension_numbers<[1], [0], [0], [1], [0, 0, 1, 1], [], []>} : vector<19x64xbf16>, vector<64x16xbf16>, vector<19x16xf32> -> vector<19x16xf32>
    %c0_135 = arith.constant 0 : index
    %c3_136 = arith.constant 3 : index
    %c0_137 = arith.constant 0 : index
    %c0_138 = arith.constant 0 : index
    %197 = vector.load %arg10[%c0_135, %c3_136, %c0_137, %c0_138] : memref<1x4x1x16xbf16, #tpu.memory_space<vmem>>, vector<1x1x1x16xbf16>
    %198 = vector.shape_cast %197 : vector<1x1x1x16xbf16> to vector<1x16xbf16>
    %199 = arith.extf %198 : vector<1x16xbf16> to vector<1x16xf32>
    %200 = vector.broadcast %199 : vector<1x16xf32> to vector<19x16xf32>
    %201 = arith.addf %196, %200 : vector<19x16xf32>
    %cst_139 = arith.constant 2.500000e-01 : f32
    %202 = vector.broadcast %cst_139 : f32 to vector<19x16xf32>
    %203 = arith.mulf %201, %202 : vector<19x16xf32>
    %c0_140 = arith.constant 0 : index
    %c3_141 = arith.constant 3 : index
    %c0_142 = arith.constant 0 : index
    %c0_143 = arith.constant 0 : index
    %204 = vector.load %arg8[%c0_140, %c3_141, %c0_142, %c0_143] : memref<1x4x64x16xbf16, #tpu.memory_space<vmem>>, vector<1x1x64x16xbf16>
    %205 = vector.shape_cast %204 : vector<1x1x64x16xbf16> to vector<64x16xbf16>
    %cst_144 = arith.constant dense<0.000000e+00> : vector<19x16xf32>
    %206 = tpu.matmul %33, %205, %cst_144 {dimension_numbers = #tpu.dot_dimension_numbers<[1], [0], [0], [1], [0, 0, 1, 1], [], []>} : vector<19x64xbf16>, vector<64x16xbf16>, vector<19x16xf32> -> vector<19x16xf32>
    %c0_145 = arith.constant 0 : index
    %c3_146 = arith.constant 3 : index
    %c0_147 = arith.constant 0 : index
    %c0_148 = arith.constant 0 : index
    %207 = vector.load %arg11[%c0_145, %c3_146, %c0_147, %c0_148] : memref<1x4x1x16xbf16, #tpu.memory_space<vmem>>, vector<1x1x1x16xbf16>
    %208 = vector.shape_cast %207 : vector<1x1x1x16xbf16> to vector<1x16xbf16>
    %209 = arith.extf %208 : vector<1x16xbf16> to vector<1x16xf32>
    %210 = vector.broadcast %209 : vector<1x16xf32> to vector<19x16xf32>
    %211 = arith.addf %206, %210 : vector<19x16xf32>
    %c0_149 = arith.constant 0 : index
    %c3_150 = arith.constant 3 : index
    %c0_151 = arith.constant 0 : index
    %c0_152 = arith.constant 0 : index
    %212 = vector.load %arg9[%c0_149, %c3_150, %c0_151, %c0_152] : memref<1x4x64x16xbf16, #tpu.memory_space<vmem>>, vector<1x1x64x16xbf16>
    %213 = vector.shape_cast %212 : vector<1x1x64x16xbf16> to vector<64x16xbf16>
    %cst_153 = arith.constant dense<0.000000e+00> : vector<19x16xf32>
    %214 = tpu.matmul %33, %213, %cst_153 {dimension_numbers = #tpu.dot_dimension_numbers<[1], [0], [0], [1], [0, 0, 1, 1], [], []>} : vector<19x64xbf16>, vector<64x16xbf16>, vector<19x16xf32> -> vector<19x16xf32>
    %c0_154 = arith.constant 0 : index
    %c3_155 = arith.constant 3 : index
    %c0_156 = arith.constant 0 : index
    %c0_157 = arith.constant 0 : index
    %215 = vector.load %arg12[%c0_154, %c3_155, %c0_156, %c0_157] : memref<1x4x1x16xbf16, #tpu.memory_space<vmem>>, vector<1x1x1x16xbf16>
    %216 = vector.shape_cast %215 : vector<1x1x1x16xbf16> to vector<1x16xbf16>
    %217 = arith.extf %216 : vector<1x16xbf16> to vector<1x16xf32>
    %218 = vector.broadcast %217 : vector<1x16xf32> to vector<19x16xf32>
    %219 = arith.addf %214, %218 : vector<19x16xf32>
    %220 = arith.truncf %203 : vector<19x16xf32> to vector<19x16xbf16>
    %221 = arith.truncf %211 : vector<19x16xf32> to vector<19x16xbf16>
    %cst_158 = arith.constant dense<0.000000e+00> : vector<19x19xf32>
    %222 = tpu.matmul %220, %221, %cst_158 {dimension_numbers = #tpu.dot_dimension_numbers<[1], [1], [0], [0], [0, 0, 1, 0], [], []>} : vector<19x16xbf16>, vector<19x16xbf16>, vector<19x19xf32> -> vector<19x19xf32>
    %cst_159 = arith.constant -1.000000e+30 : f32
    %223 = vector.broadcast %cst_159 : f32 to vector<19x19xf32>
    %224 = arith.select %6, %222, %223 : vector<19x19xi1>, vector<19x19xf32>
    %cst_160 = arith.constant dense<0xFF800000> : vector<19xf32>
    %225 = vector.multi_reduction <maximumf>, %224, %cst_160 [1] : vector<19x19xf32> to vector<19xf32>
    %226 = vector.shape_cast %225 : vector<19xf32> to vector<19x1xf32>
    %cst_161 = arith.constant -1.000000e+30 : f32
    %227 = vector.broadcast %cst_161 : f32 to vector<19x1xf32>
    %228 = arith.maximumf %226, %227 : vector<19x1xf32>
    %229 = vector.broadcast %228 : vector<19x1xf32> to vector<19x19xf32>
    %230 = arith.subf %224, %229 : vector<19x19xf32>
    %231 = math.exp %230 : vector<19x19xf32>
    %cst_162 = arith.constant dense<0.000000e+00> : vector<19xf32>
    %232 = vector.multi_reduction <add>, %231, %cst_162 [1] : vector<19x19xf32> to vector<19xf32>
    %233 = vector.shape_cast %232 : vector<19xf32> to vector<19x1xf32>
    %cst_163 = arith.constant 1.000000e-30 : f32
    %234 = vector.broadcast %cst_163 : f32 to vector<19x1xf32>
    %235 = arith.maximumf %233, %234 : vector<19x1xf32>
    %236 = tpu.reciprocal %235 {approx = true} : vector<19x1xf32> -> vector<19x1xf32>
    %237 = vector.broadcast %236 : vector<19x1xf32> to vector<19x19xf32>
    %238 = arith.mulf %231, %237 : vector<19x19xf32>
    %239 = arith.truncf %238 : vector<19x19xf32> to vector<19x19xbf16>
    %240 = arith.truncf %219 : vector<19x16xf32> to vector<19x16xbf16>
    %cst_164 = arith.constant dense<0.000000e+00> : vector<19x16xf32>
    %241 = tpu.matmul %239, %240, %cst_164 {dimension_numbers = #tpu.dot_dimension_numbers<[1], [0], [0], [1], [0, 0, 1, 1], [], []>} : vector<19x19xbf16>, vector<19x16xbf16>, vector<19x16xf32> -> vector<19x16xf32>
    %242 = arith.truncf %241 : vector<19x16xf32> to vector<19x16xbf16>
    %c0_165 = arith.constant 0 : index
    %c3_166 = arith.constant 3 : index
    %c0_167 = arith.constant 0 : index
    %c0_168 = arith.constant 0 : index
    %243 = vector.load %arg13[%c0_165, %c3_166, %c0_167, %c0_168] : memref<1x4x16x64xbf16, #tpu.memory_space<vmem>>, vector<1x1x16x64xbf16>
    %244 = vector.shape_cast %243 : vector<1x1x16x64xbf16> to vector<16x64xbf16>
    %cst_169 = arith.constant dense<0.000000e+00> : vector<19x64xf32>
    %245 = tpu.matmul %242, %244, %cst_169 {dimension_numbers = #tpu.dot_dimension_numbers<[1], [0], [0], [1], [0, 0, 1, 1], [], []>} : vector<19x16xbf16>, vector<16x64xbf16>, vector<19x64xf32> -> vector<19x64xf32>
    %246 = arith.addf %193, %245 : vector<19x64xf32>
    %247 = arith.addf %3, %246 : vector<19x64xf32>
    %c0_170 = arith.constant 0 : index
    %c0_171 = arith.constant 0 : index
    %c0_172 = arith.constant 0 : index
    %248 = vector.load %arg14[%c0_170, %c0_171, %c0_172] : memref<1x1x64xbf16, #tpu.memory_space<vmem>>, vector<1x1x64xbf16>
    %249 = vector.shape_cast %248 : vector<1x1x64xbf16> to vector<1x64xbf16>
    %250 = arith.extf %249 : vector<1x64xbf16> to vector<1x64xf32>
    %251 = vector.broadcast %250 : vector<1x64xf32> to vector<19x64xf32>
    %252 = arith.addf %247, %251 : vector<19x64xf32>
    %c0_173 = arith.constant 0 : index
    %c0_174 = arith.constant 0 : index
    %c0_175 = arith.constant 0 : index
    %253 = vector.load %arg15[%c0_173, %c0_174, %c0_175] : memref<1x1x64xf32, #tpu.memory_space<vmem>>, vector<1x1x64xf32>
    %254 = vector.shape_cast %253 : vector<1x1x64xf32> to vector<1x64xf32>
    %c0_176 = arith.constant 0 : index
    %c0_177 = arith.constant 0 : index
    %c0_178 = arith.constant 0 : index
    %255 = vector.load %arg16[%c0_176, %c0_177, %c0_178] : memref<1x1x64xf32, #tpu.memory_space<vmem>>, vector<1x1x64xf32>
    %256 = vector.shape_cast %255 : vector<1x1x64xf32> to vector<1x64xf32>
    %cst_179 = arith.constant dense<0.000000e+00> : vector<19xf32>
    %257 = vector.multi_reduction <add>, %252, %cst_179 [1] : vector<19x64xf32> to vector<19xf32>
    %258 = vector.shape_cast %257 : vector<19xf32> to vector<19x1xf32>
    %cst_180 = arith.constant 6.400000e+01 : f32
    %259 = vector.broadcast %cst_180 : f32 to vector<19x1xf32>
    %260 = arith.divf %258, %259 : vector<19x1xf32>
    %261 = vector.broadcast %260 : vector<19x1xf32> to vector<19x64xf32>
    %262 = arith.subf %252, %261 : vector<19x64xf32>
    %263 = arith.mulf %262, %262 : vector<19x64xf32>
    %cst_181 = arith.constant dense<0.000000e+00> : vector<19xf32>
    %264 = vector.multi_reduction <add>, %263, %cst_181 [1] : vector<19x64xf32> to vector<19xf32>
    %265 = vector.shape_cast %264 : vector<19xf32> to vector<19x1xf32>
    %cst_182 = arith.constant 6.400000e+01 : f32
    %266 = vector.broadcast %cst_182 : f32 to vector<19x1xf32>
    %267 = arith.divf %265, %266 : vector<19x1xf32>
    %268 = vector.broadcast %260 : vector<19x1xf32> to vector<19x64xf32>
    %269 = arith.subf %252, %268 : vector<19x64xf32>
    %cst_183 = arith.constant 9.99999974E-6 : f32
    %270 = vector.broadcast %cst_183 : f32 to vector<19x1xf32>
    %271 = arith.addf %267, %270 : vector<19x1xf32>
    %272 = math.rsqrt %271 : vector<19x1xf32>
    %273 = vector.broadcast %272 : vector<19x1xf32> to vector<19x64xf32>
    %274 = arith.mulf %269, %273 : vector<19x64xf32>
    %275 = vector.broadcast %254 : vector<1x64xf32> to vector<19x64xf32>
    %276 = arith.mulf %274, %275 : vector<19x64xf32>
    %277 = vector.broadcast %256 : vector<1x64xf32> to vector<19x64xf32>
    %278 = arith.addf %276, %277 : vector<19x64xf32>
    %279 = arith.truncf %278 : vector<19x64xf32> to vector<19x64xbf16>
    %c0_184 = arith.constant 0 : index
    %c0_185 = arith.constant 0 : index
    %c0_186 = arith.constant 0 : index
    %280 = vector.load %arg17[%c0_184, %c0_185, %c0_186] : memref<1x64x256xbf16, #tpu.memory_space<vmem>>, vector<1x64x256xbf16>
    %281 = vector.shape_cast %280 : vector<1x64x256xbf16> to vector<64x256xbf16>
    %cst_187 = arith.constant dense<0.000000e+00> : vector<19x256xf32>
    %282 = tpu.matmul %279, %281, %cst_187 {dimension_numbers = #tpu.dot_dimension_numbers<[1], [0], [0], [1], [0, 0, 1, 1], [], []>} : vector<19x64xbf16>, vector<64x256xbf16>, vector<19x256xf32> -> vector<19x256xf32>
    %c0_188 = arith.constant 0 : index
    %c0_189 = arith.constant 0 : index
    %c0_190 = arith.constant 0 : index
    %283 = vector.load %arg18[%c0_188, %c0_189, %c0_190] : memref<1x1x256xbf16, #tpu.memory_space<vmem>>, vector<1x1x256xbf16>
    %284 = vector.shape_cast %283 : vector<1x1x256xbf16> to vector<1x256xbf16>
    %285 = arith.extf %284 : vector<1x256xbf16> to vector<1x256xf32>
    %286 = vector.broadcast %285 : vector<1x256xf32> to vector<19x256xf32>
    %287 = arith.addf %282, %286 : vector<19x256xf32>
    %cst_191 = arith.constant 1.702000e+00 : f32
    %288 = vector.broadcast %cst_191 : f32 to vector<19x256xf32>
    %289 = arith.mulf %288, %287 : vector<19x256xf32>
    %290 = arith.negf %289 : vector<19x256xf32>
    %291 = math.exp %290 : vector<19x256xf32>
    %cst_192 = arith.constant 1.000000e+00 : f32
    %292 = vector.broadcast %cst_192 : f32 to vector<19x256xf32>
    %293 = arith.addf %292, %291 : vector<19x256xf32>
    %294 = arith.divf %292, %293 : vector<19x256xf32>
    %295 = arith.mulf %287, %294 : vector<19x256xf32>
    %296 = arith.truncf %295 : vector<19x256xf32> to vector<19x256xbf16>
    %c0_193 = arith.constant 0 : index
    %c0_194 = arith.constant 0 : index
    %c0_195 = arith.constant 0 : index
    %297 = vector.load %arg19[%c0_193, %c0_194, %c0_195] : memref<1x256x64xbf16, #tpu.memory_space<vmem>>, vector<1x256x64xbf16>
    %298 = vector.shape_cast %297 : vector<1x256x64xbf16> to vector<256x64xbf16>
    %cst_196 = arith.constant dense<0.000000e+00> : vector<19x64xf32>
    %299 = tpu.matmul %296, %298, %cst_196 {dimension_numbers = #tpu.dot_dimension_numbers<[1], [0], [0], [1], [0, 0, 1, 1], [], []>} : vector<19x256xbf16>, vector<256x64xbf16>, vector<19x64xf32> -> vector<19x64xf32>
    %300 = arith.addf %252, %299 : vector<19x64xf32>
    %c0_197 = arith.constant 0 : index
    %c0_198 = arith.constant 0 : index
    %c0_199 = arith.constant 0 : index
    %301 = vector.load %arg20[%c0_197, %c0_198, %c0_199] : memref<1x1x64xbf16, #tpu.memory_space<vmem>>, vector<1x1x64xbf16>
    %302 = vector.shape_cast %301 : vector<1x1x64xbf16> to vector<1x64xbf16>
    %303 = arith.extf %302 : vector<1x64xbf16> to vector<1x64xf32>
    %304 = vector.broadcast %303 : vector<1x64xf32> to vector<19x64xf32>
    %305 = arith.addf %300, %304 : vector<19x64xf32>
    %c0_200 = arith.constant 0 : index
    %c0_201 = arith.constant 0 : index
    %306 = vector.load %arg22[%c0_200, %c0_201] : memref<19x64xf32, #tpu.memory_space<vmem>>, vector<19x64xf32>
    tpu.vector_store %arg22[%c0_200, %c0_201], %305 {strides = array<i32>} : memref<19x64xf32, #tpu.memory_space<vmem>>, vector<19x64xf32>,
    %c1_i32 = arith.constant 1 : i32
    %307 = arith.cmpi eq, %arg1, %c1_i32 : i32
    %308 = arith.extui %307 : i1 to i32
    %c0_i32_202 = arith.constant 0 : i32
    %309 = arith.cmpi ne, %308, %c0_i32_202 : i32
    scf.if %309 {
      %c17 = arith.constant 17 : index
      %c0_203 = arith.constant 0 : index
      %310 = vector.load %arg22[%c17, %c0_203] : memref<19x64xf32, #tpu.memory_space<vmem>>, vector<2x64xf32>
      %c0_204 = arith.constant 0 : index
      %c0_205 = arith.constant 0 : index
      %c0_206 = arith.constant 0 : index
      %311 = vector.load %arg21[%c0_204, %c0_205, %c0_206] : memref<1x2x64xf32, #tpu.memory_space<vmem>>, vector<1x2x64xf32>
      %312 = vector.shape_cast %311 : vector<1x2x64xf32> to vector<2x64xf32>
      %313 = vector.shape_cast %310 : vector<2x64xf32> to vector<1x2x64xf32>
      tpu.vector_store %arg21[%c0_204, %c0_205, %c0_206], %313 {strides = array<i32>} : memref<1x2x64xf32, #tpu.memory_space<vmem>>, vector<1x2x64xf32>,
    } else {
    }
    return
  }
  func.func @transform_0(%arg0: i32, %arg1: i32) -> (i32, i32, i32) {
    %c0_i32 = arith.constant 0 : i32
    %c0_i32_0 = arith.constant 0 : i32
    %c0_i32_1 = arith.constant 0 : i32
    return %arg0, %c0_i32, %c0_i32_0 : i32, i32, i32
  }
  func.func @transform_1(%arg0: i32, %arg1: i32) -> (i32, i32) {
    %c0_i32 = arith.constant 0 : i32
    %c0_i32_0 = arith.constant 0 : i32
    %c0_i32_1 = arith.constant 0 : i32
    return %c0_i32, %c0_i32_0 : i32, i32
  }
  func.func @transform_2(%arg0: i32, %arg1: i32) -> (i32, i32) {
    %c0_i32 = arith.constant 0 : i32
    %c0_i32_0 = arith.constant 0 : i32
    %c0_i32_1 = arith.constant 0 : i32
    return %c0_i32, %c0_i32_0 : i32, i32
  }
  func.func @transform_3(%arg0: i32, %arg1: i32) -> (i32, i32, i32) {
    %c0_i32 = arith.constant 0 : i32
    %c0_i32_0 = arith.constant 0 : i32
    %c0_i32_1 = arith.constant 0 : i32
    return %arg1, %c0_i32, %c0_i32_0 : i32, i32, i32
  }
  func.func @transform_4(%arg0: i32, %arg1: i32) -> (i32, i32, i32) {
    %c0_i32 = arith.constant 0 : i32
    %c0_i32_0 = arith.constant 0 : i32
    %c0_i32_1 = arith.constant 0 : i32
    return %arg1, %c0_i32, %c0_i32_0 : i32, i32, i32
  }
  func.func @transform_5(%arg0: i32, %arg1: i32) -> (i32, i32, i32, i32) {
    %c0_i32 = arith.constant 0 : i32
    %c0_i32_0 = arith.constant 0 : i32
    %c0_i32_1 = arith.constant 0 : i32
    %c0_i32_2 = arith.constant 0 : i32
    return %arg1, %c0_i32, %c0_i32_0, %c0_i32_1 : i32, i32, i32, i32
  }
  func.func @transform_6(%arg0: i32, %arg1: i32) -> (i32, i32, i32, i32) {
    %c0_i32 = arith.constant 0 : i32
    %c0_i32_0 = arith.constant 0 : i32
    %c0_i32_1 = arith.constant 0 : i32
    %c0_i32_2 = arith.constant 0 : i32
    return %arg1, %c0_i32, %c0_i32_0, %c0_i32_1 : i32, i32, i32, i32
  }
  func.func @transform_7(%arg0: i32, %arg1: i32) -> (i32, i32, i32, i32) {
    %c0_i32 = arith.constant 0 : i32
    %c0_i32_0 = arith.constant 0 : i32
    %c0_i32_1 = arith.constant 0 : i32
    %c0_i32_2 = arith.constant 0 : i32
    return %arg1, %c0_i32, %c0_i32_0, %c0_i32_1 : i32, i32, i32, i32
  }
  func.func @transform_8(%arg0: i32, %arg1: i32) -> (i32, i32, i32, i32) {
    %c0_i32 = arith.constant 0 : i32
    %c0_i32_0 = arith.constant 0 : i32
    %c0_i32_1 = arith.constant 0 : i32
    %c0_i32_2 = arith.constant 0 : i32
    return %arg1, %c0_i32, %c0_i32_0, %c0_i32_1 : i32, i32, i32, i32
  }
  func.func @transform_9(%arg0: i32, %arg1: i32) -> (i32, i32, i32, i32) {
    %c0_i32 = arith.constant 0 : i32
    %c0_i32_0 = arith.constant 0 : i32
    %c0_i32_1 = arith.constant 0 : i32
    %c0_i32_2 = arith.constant 0 : i32
    return %arg1, %c0_i32, %c0_i32_0, %c0_i32_1 : i32, i32, i32, i32
  }
  func.func @transform_10(%arg0: i32, %arg1: i32) -> (i32, i32, i32, i32) {
    %c0_i32 = arith.constant 0 : i32
    %c0_i32_0 = arith.constant 0 : i32
    %c0_i32_1 = arith.constant 0 : i32
    %c0_i32_2 = arith.constant 0 : i32
    return %arg1, %c0_i32, %c0_i32_0, %c0_i32_1 : i32, i32, i32, i32
  }
  func.func @transform_11(%arg0: i32, %arg1: i32) -> (i32, i32, i32, i32) {
    %c0_i32 = arith.constant 0 : i32
    %c0_i32_0 = arith.constant 0 : i32
    %c0_i32_1 = arith.constant 0 : i32
    %c0_i32_2 = arith.constant 0 : i32
    return %arg1, %c0_i32, %c0_i32_0, %c0_i32_1 : i32, i32, i32, i32
  }
  func.func @transform_12(%arg0: i32, %arg1: i32) -> (i32, i32, i32) {
    %c0_i32 = arith.constant 0 : i32
    %c0_i32_0 = arith.constant 0 : i32
    %c0_i32_1 = arith.constant 0 : i32
    return %arg1, %c0_i32, %c0_i32_0 : i32, i32, i32
  }
  func.func @transform_13(%arg0: i32, %arg1: i32) -> (i32, i32, i32) {
    %c0_i32 = arith.constant 0 : i32
    %c0_i32_0 = arith.constant 0 : i32
    %c0_i32_1 = arith.constant 0 : i32
    return %arg1, %c0_i32, %c0_i32_0 : i32, i32, i32
  }
  func.func @transform_14(%arg0: i32, %arg1: i32) -> (i32, i32, i32) {
    %c0_i32 = arith.constant 0 : i32
    %c0_i32_0 = arith.constant 0 : i32
    %c0_i32_1 = arith.constant 0 : i32
    return %arg1, %c0_i32, %c0_i32_0 : i32, i32, i32
  }
  func.func @transform_15(%arg0: i32, %arg1: i32) -> (i32, i32, i32) {
    %c0_i32 = arith.constant 0 : i32
    %c0_i32_0 = arith.constant 0 : i32
    %c0_i32_1 = arith.constant 0 : i32
    return %arg1, %c0_i32, %c0_i32_0 : i32, i32, i32
  }
  func.func @transform_16(%arg0: i32, %arg1: i32) -> (i32, i32, i32) {
    %c0_i32 = arith.constant 0 : i32
    %c0_i32_0 = arith.constant 0 : i32
    %c0_i32_1 = arith.constant 0 : i32
    return %arg1, %c0_i32, %c0_i32_0 : i32, i32, i32
  }
  func.func @transform_17(%arg0: i32, %arg1: i32) -> (i32, i32, i32) {
    %c0_i32 = arith.constant 0 : i32
    %c0_i32_0 = arith.constant 0 : i32
    %c0_i32_1 = arith.constant 0 : i32
    return %arg1, %c0_i32, %c0_i32_0 : i32, i32, i32
  }
  func.func @transform_18(%arg0: i32, %arg1: i32) -> (i32, i32, i32) {
    %c0_i32 = arith.constant 0 : i32
    %c0_i32_0 = arith.constant 0 : i32
    %c0_i32_1 = arith.constant 0 : i32
    return %arg1, %c0_i32, %c0_i32_0 : i32, i32, i32
  }
  func.func @transform_19(%arg0: i32, %arg1: i32) -> (i32, i32, i32) {
    %c0_i32 = arith.constant 0 : i32
    %c0_i32_0 = arith.constant 0 : i32
    %c0_i32_1 = arith.constant 0 : i32
    return %arg0, %c0_i32, %c0_i32_0 : i32, i32, i32
  }
}

module attributes {stable_mosaic.version = 11 : i64} {
  func.func @_ln_mm_kernel(%arg0: i32, %arg1: memref<4x64xf32, #tpu.memory_space<vmem>>, %arg2: memref<1x64xf32, #tpu.memory_space<vmem>>, %arg3: memref<1x64xf32, #tpu.memory_space<vmem>>, %arg4: memref<64x32xbf16, #tpu.memory_space<vmem>>, %arg5: memref<4x32xf32, #tpu.memory_space<vmem>>) attributes {dimension_semantics = [#tpu.dimension_semantics<arbitrary>], iteration_bounds = array<i64: 1>, scalar_prefetch = 0 : i64, scratch_operands = 0 : i64, tpu.core_type = #tpu.core_type<tc>, window_params = [{pipeline_mode = #tpu.pipeline_mode<synchronous>, transform_indices = @transform_0, window_bounds = array<i64: 4, 64>}, {pipeline_mode = #tpu.pipeline_mode<synchronous>, transform_indices = @transform_1, window_bounds = array<i64: 1, 64>}, {pipeline_mode = #tpu.pipeline_mode<synchronous>, transform_indices = @transform_2, window_bounds = array<i64: 1, 64>}, {pipeline_mode = #tpu.pipeline_mode<synchronous>, transform_indices = @transform_3, window_bounds = array<i64: 64, 32>}, {pipeline_mode = #tpu.pipeline_mode<synchronous>, transform_indices = @transform_4, window_bounds = array<i64: 4, 32>}]} {
    %c0 = arith.constant 0 : index
    %c0_0 = arith.constant 0 : index
    %0 = vector.load %arg1[%c0, %c0_0] : memref<4x64xf32, #tpu.memory_space<vmem>>, vector<4x64xf32>
    %c0_1 = arith.constant 0 : index
    %c0_2 = arith.constant 0 : index
    %1 = vector.load %arg2[%c0_1, %c0_2] : memref<1x64xf32, #tpu.memory_space<vmem>>, vector<1x64xf32>
    %c0_3 = arith.constant 0 : index
    %c0_4 = arith.constant 0 : index
    %2 = vector.load %arg3[%c0_3, %c0_4] : memref<1x64xf32, #tpu.memory_space<vmem>>, vector<1x64xf32>
    %cst = arith.constant dense<0.000000e+00> : vector<4xf32>
    %3 = vector.multi_reduction <add>, %0, %cst [1] : vector<4x64xf32> to vector<4xf32>
    %4 = vector.shape_cast %3 : vector<4xf32> to vector<4x1xf32>
    %cst_5 = arith.constant 6.400000e+01 : f32
    %5 = vector.broadcast %cst_5 : f32 to vector<4x1xf32>
    %6 = arith.divf %4, %5 : vector<4x1xf32>
    %7 = vector.broadcast %6 : vector<4x1xf32> to vector<4x64xf32>
    %8 = arith.subf %0, %7 : vector<4x64xf32>
    %9 = arith.mulf %8, %8 : vector<4x64xf32>
    %cst_6 = arith.constant dense<0.000000e+00> : vector<4xf32>
    %10 = vector.multi_reduction <add>, %9, %cst_6 [1] : vector<4x64xf32> to vector<4xf32>
    %11 = vector.shape_cast %10 : vector<4xf32> to vector<4x1xf32>
    %cst_7 = arith.constant 6.400000e+01 : f32
    %12 = vector.broadcast %cst_7 : f32 to vector<4x1xf32>
    %13 = arith.divf %11, %12 : vector<4x1xf32>
    %14 = vector.broadcast %6 : vector<4x1xf32> to vector<4x64xf32>
    %15 = arith.subf %0, %14 : vector<4x64xf32>
    %cst_8 = arith.constant 9.99999974E-6 : f32
    %16 = vector.broadcast %cst_8 : f32 to vector<4x1xf32>
    %17 = arith.addf %13, %16 : vector<4x1xf32>
    %18 = math.rsqrt %17 : vector<4x1xf32>
    %19 = vector.broadcast %18 : vector<4x1xf32> to vector<4x64xf32>
    %20 = arith.mulf %15, %19 : vector<4x64xf32>
    %21 = vector.broadcast %1 : vector<1x64xf32> to vector<4x64xf32>
    %22 = arith.mulf %20, %21 : vector<4x64xf32>
    %23 = vector.broadcast %2 : vector<1x64xf32> to vector<4x64xf32>
    %24 = arith.addf %22, %23 : vector<4x64xf32>
    %25 = arith.truncf %24 : vector<4x64xf32> to vector<4x64xbf16>
    %c0_9 = arith.constant 0 : index
    %c0_10 = arith.constant 0 : index
    %26 = vector.load %arg4[%c0_9, %c0_10] : memref<64x32xbf16, #tpu.memory_space<vmem>>, vector<64x32xbf16>
    %cst_11 = arith.constant dense<0.000000e+00> : vector<4x32xf32>
    %27 = tpu.matmul %25, %26, %cst_11 {dimension_numbers = #tpu.dot_dimension_numbers<[1], [0], [0], [1], [0, 0, 1, 1], [], []>} : vector<4x64xbf16>, vector<64x32xbf16>, vector<4x32xf32> -> vector<4x32xf32>
    %c0_12 = arith.constant 0 : index
    %c0_13 = arith.constant 0 : index
    %28 = vector.load %arg5[%c0_12, %c0_13] : memref<4x32xf32, #tpu.memory_space<vmem>>, vector<4x32xf32>
    tpu.vector_store %arg5[%c0_12, %c0_13], %27 {strides = array<i32>} : memref<4x32xf32, #tpu.memory_space<vmem>>, vector<4x32xf32>,
    return
  }
  func.func @transform_0(%arg0: i32) -> (i32, i32) {
    %c0_i32 = arith.constant 0 : i32
    %c0_i32_0 = arith.constant 0 : i32
    %c0_i32_1 = arith.constant 0 : i32
    return %c0_i32, %c0_i32_0 : i32, i32
  }
  func.func @transform_1(%arg0: i32) -> (i32, i32) {
    %c0_i32 = arith.constant 0 : i32
    %c0_i32_0 = arith.constant 0 : i32
    %c0_i32_1 = arith.constant 0 : i32
    return %c0_i32, %c0_i32_0 : i32, i32
  }
  func.func @transform_2(%arg0: i32) -> (i32, i32) {
    %c0_i32 = arith.constant 0 : i32
    %c0_i32_0 = arith.constant 0 : i32
    %c0_i32_1 = arith.constant 0 : i32
    return %c0_i32, %c0_i32_0 : i32, i32
  }
  func.func @transform_3(%arg0: i32) -> (i32, i32) {
    %c0_i32 = arith.constant 0 : i32
    %c0_i32_0 = arith.constant 0 : i32
    %c0_i32_1 = arith.constant 0 : i32
    return %c0_i32, %c0_i32_0 : i32, i32
  }
  func.func @transform_4(%arg0: i32) -> (i32, i32) {
    %c0_i32 = arith.constant 0 : i32
    %c0_i32_0 = arith.constant 0 : i32
    %c0_i32_1 = arith.constant 0 : i32
    return %c0_i32, %c0_i32_0 : i32, i32
  }
}

module attributes {stable_mosaic.version = 11 : i64} {
  func.func @_ln_mm_kernel(%arg0: i32, %arg1: memref<6x32xf32, #tpu.memory_space<vmem>>, %arg2: memref<1x32xf32, #tpu.memory_space<vmem>>, %arg3: memref<1x32xf32, #tpu.memory_space<vmem>>, %arg4: memref<32x32xbf16, #tpu.memory_space<vmem>>, %arg5: memref<6x32xf32, #tpu.memory_space<vmem>>) attributes {dimension_semantics = [#tpu.dimension_semantics<arbitrary>], iteration_bounds = array<i64: 1>, scalar_prefetch = 0 : i64, scratch_operands = 0 : i64, tpu.core_type = #tpu.core_type<tc>, window_params = [{pipeline_mode = #tpu.pipeline_mode<synchronous>, transform_indices = @transform_0, window_bounds = array<i64: 6, 32>}, {pipeline_mode = #tpu.pipeline_mode<synchronous>, transform_indices = @transform_1, window_bounds = array<i64: 1, 32>}, {pipeline_mode = #tpu.pipeline_mode<synchronous>, transform_indices = @transform_2, window_bounds = array<i64: 1, 32>}, {pipeline_mode = #tpu.pipeline_mode<synchronous>, transform_indices = @transform_3, window_bounds = array<i64: 32, 32>}, {pipeline_mode = #tpu.pipeline_mode<synchronous>, transform_indices = @transform_4, window_bounds = array<i64: 6, 32>}]} {
    %c0 = arith.constant 0 : index
    %c0_0 = arith.constant 0 : index
    %0 = vector.load %arg1[%c0, %c0_0] : memref<6x32xf32, #tpu.memory_space<vmem>>, vector<6x32xf32>
    %c0_1 = arith.constant 0 : index
    %c0_2 = arith.constant 0 : index
    %1 = vector.load %arg2[%c0_1, %c0_2] : memref<1x32xf32, #tpu.memory_space<vmem>>, vector<1x32xf32>
    %c0_3 = arith.constant 0 : index
    %c0_4 = arith.constant 0 : index
    %2 = vector.load %arg3[%c0_3, %c0_4] : memref<1x32xf32, #tpu.memory_space<vmem>>, vector<1x32xf32>
    %cst = arith.constant dense<0.000000e+00> : vector<6xf32>
    %3 = vector.multi_reduction <add>, %0, %cst [1] : vector<6x32xf32> to vector<6xf32>
    %4 = vector.shape_cast %3 : vector<6xf32> to vector<6x1xf32>
    %cst_5 = arith.constant 3.200000e+01 : f32
    %5 = vector.broadcast %cst_5 : f32 to vector<6x1xf32>
    %6 = arith.divf %4, %5 : vector<6x1xf32>
    %7 = vector.broadcast %6 : vector<6x1xf32> to vector<6x32xf32>
    %8 = arith.subf %0, %7 : vector<6x32xf32>
    %9 = arith.mulf %8, %8 : vector<6x32xf32>
    %cst_6 = arith.constant dense<0.000000e+00> : vector<6xf32>
    %10 = vector.multi_reduction <add>, %9, %cst_6 [1] : vector<6x32xf32> to vector<6xf32>
    %11 = vector.shape_cast %10 : vector<6xf32> to vector<6x1xf32>
    %cst_7 = arith.constant 3.200000e+01 : f32
    %12 = vector.broadcast %cst_7 : f32 to vector<6x1xf32>
    %13 = arith.divf %11, %12 : vector<6x1xf32>
    %14 = vector.broadcast %6 : vector<6x1xf32> to vector<6x32xf32>
    %15 = arith.subf %0, %14 : vector<6x32xf32>
    %cst_8 = arith.constant 9.99999974E-6 : f32
    %16 = vector.broadcast %cst_8 : f32 to vector<6x1xf32>
    %17 = arith.addf %13, %16 : vector<6x1xf32>
    %18 = math.rsqrt %17 : vector<6x1xf32>
    %19 = vector.broadcast %18 : vector<6x1xf32> to vector<6x32xf32>
    %20 = arith.mulf %15, %19 : vector<6x32xf32>
    %21 = vector.broadcast %1 : vector<1x32xf32> to vector<6x32xf32>
    %22 = arith.mulf %20, %21 : vector<6x32xf32>
    %23 = vector.broadcast %2 : vector<1x32xf32> to vector<6x32xf32>
    %24 = arith.addf %22, %23 : vector<6x32xf32>
    %25 = arith.truncf %24 : vector<6x32xf32> to vector<6x32xbf16>
    %c0_9 = arith.constant 0 : index
    %c0_10 = arith.constant 0 : index
    %26 = vector.load %arg4[%c0_9, %c0_10] : memref<32x32xbf16, #tpu.memory_space<vmem>>, vector<32x32xbf16>
    %cst_11 = arith.constant dense<0.000000e+00> : vector<6x32xf32>
    %27 = tpu.matmul %25, %26, %cst_11 {dimension_numbers = #tpu.dot_dimension_numbers<[1], [0], [0], [1], [0, 0, 1, 1], [], []>} : vector<6x32xbf16>, vector<32x32xbf16>, vector<6x32xf32> -> vector<6x32xf32>
    %c0_12 = arith.constant 0 : index
    %c0_13 = arith.constant 0 : index
    %28 = vector.load %arg5[%c0_12, %c0_13] : memref<6x32xf32, #tpu.memory_space<vmem>>, vector<6x32xf32>
    tpu.vector_store %arg5[%c0_12, %c0_13], %27 {strides = array<i32>} : memref<6x32xf32, #tpu.memory_space<vmem>>, vector<6x32xf32>,
    return
  }
  func.func @transform_0(%arg0: i32) -> (i32, i32) {
    %c0_i32 = arith.constant 0 : i32
    %c0_i32_0 = arith.constant 0 : i32
    %c0_i32_1 = arith.constant 0 : i32
    return %c0_i32, %c0_i32_0 : i32, i32
  }
  func.func @transform_1(%arg0: i32) -> (i32, i32) {
    %c0_i32 = arith.constant 0 : i32
    %c0_i32_0 = arith.constant 0 : i32
    %c0_i32_1 = arith.constant 0 : i32
    return %c0_i32, %c0_i32_0 : i32, i32
  }
  func.func @transform_2(%arg0: i32) -> (i32, i32) {
    %c0_i32 = arith.constant 0 : i32
    %c0_i32_0 = arith.constant 0 : i32
    %c0_i32_1 = arith.constant 0 : i32
    return %c0_i32, %c0_i32_0 : i32, i32
  }
  func.func @transform_3(%arg0: i32) -> (i32, i32) {
    %c0_i32 = arith.constant 0 : i32
    %c0_i32_0 = arith.constant 0 : i32
    %c0_i32_1 = arith.constant 0 : i32
    return %c0_i32, %c0_i32_0 : i32, i32
  }
  func.func @transform_4(%arg0: i32) -> (i32, i32) {
    %c0_i32 = arith.constant 0 : i32
    %c0_i32_0 = arith.constant 0 : i32
    %c0_i32_1 = arith.constant 0 : i32
    return %c0_i32, %c0_i32_0 : i32, i32
  }
}

module attributes {stable_mosaic.version = 11 : i64} {
  func.func @_branch_kernel(%arg0: i32, %arg1: i32, %arg2: memref<3xi32, #tpu.memory_space<smem>>, %arg3: memref<1x16x32xbf16, #tpu.memory_space<vmem>>, %arg4: memref<2x32xbf16, #tpu.memory_space<vmem>>, %arg5: memref<1x1x32xf32, #tpu.memory_space<vmem>>, %arg6: memref<1x1x32xf32, #tpu.memory_space<vmem>>, %arg7: memref<1x4x32x8xbf16, #tpu.memory_space<vmem>>, %arg8: memref<1x4x32x8xbf16, #tpu.memory_space<vmem>>, %arg9: memref<1x4x32x8xbf16, #tpu.memory_space<vmem>>, %arg10: memref<1x4x1x8xbf16, #tpu.memory_space<vmem>>, %arg11: memref<1x4x1x8xbf16, #tpu.memory_space<vmem>>, %arg12: memref<1x4x1x8xbf16, #tpu.memory_space<vmem>>, %arg13: memref<1x4x8x32xbf16, #tpu.memory_space<vmem>>, %arg14: memref<1x1x32xbf16, #tpu.memory_space<vmem>>, %arg15: memref<1x1x32xf32, #tpu.memory_space<vmem>>, %arg16: memref<1x1x32xf32, #tpu.memory_space<vmem>>, %arg17: memref<1x32x128xbf16, #tpu.memory_space<vmem>>, %arg18: memref<1x1x128xbf16, #tpu.memory_space<vmem>>, %arg19: memref<1x128x32xbf16, #tpu.memory_space<vmem>>, %arg20: memref<1x1x32xbf16, #tpu.memory_space<vmem>>, %arg21: memref<1x2x32xf32, #tpu.memory_space<vmem>>, %arg22: memref<16x32xf32, #tpu.memory_space<vmem>>) attributes {dimension_semantics = [#tpu.dimension_semantics<parallel>, #tpu.dimension_semantics<arbitrary>], iteration_bounds = array<i64: 3, 2>, scalar_prefetch = 1 : i64, scratch_operands = 1 : i64, tpu.core_type = #tpu.core_type<tc>, window_params = [{transform_indices = @transform_0, window_bounds = array<i64: 1, 16, 32>}, {pipeline_mode = #tpu.pipeline_mode<synchronous>, transform_indices = @transform_1, window_bounds = array<i64: 2, 32>}, {transform_indices = @transform_2, window_bounds = array<i64: 1, 1, 32>}, {transform_indices = @transform_3, window_bounds = array<i64: 1, 1, 32>}, {transform_indices = @transform_4, window_bounds = array<i64: 1, 4, 32, 8>}, {transform_indices = @transform_5, window_bounds = array<i64: 1, 4, 32, 8>}, {transform_indices = @transform_6, window_bounds = array<i64: 1, 4, 32, 8>}, {transform_indices = @transform_7, window_bounds = array<i64: 1, 4, 1, 8>}, {transform_indices = @transform_8, window_bounds = array<i64: 1, 4, 1, 8>}, {transform_indices = @transform_9, window_bounds = array<i64: 1, 4, 1, 8>}, {transform_indices = @transform_10, window_bounds = array<i64: 1, 4, 8, 32>}, {transform_indices = @transform_11, window_bounds = array<i64: 1, 1, 32>}, {transform_indices = @transform_12, window_bounds = array<i64: 1, 1, 32>}, {transform_indices = @transform_13, window_bounds = array<i64: 1, 1, 32>}, {transform_indices = @transform_14, window_bounds = array<i64: 1, 32, 128>}, {transform_indices = @transform_15, window_bounds = array<i64: 1, 1, 128>}, {transform_indices = @transform_16, window_bounds = array<i64: 1, 128, 32>}, {transform_indices = @transform_17, window_bounds = array<i64: 1, 1, 32>}, {transform_indices = @transform_18, window_bounds = array<i64: 1, 2, 32>}]} {
    %0 = arith.index_cast %arg0 : i32 to index
    %1 = memref.load %arg2[%0] : memref<3xi32, #tpu.memory_space<smem>>
    %c0_i32 = arith.constant 0 : i32
    %2 = arith.cmpi eq, %arg1, %c0_i32 : i32
    %3 = arith.extui %2 : i1 to i32
    %c0_i32_0 = arith.constant 0 : i32
    %4 = arith.cmpi ne, %3, %c0_i32_0 : i32
    scf.if %4 {
      %c0_203 = arith.constant 0 : index
      %c0_204 = arith.constant 0 : index
      %c0_205 = arith.constant 0 : index
      %315 = vector.load %arg3[%c0_203, %c0_204, %c0_205] : memref<1x16x32xbf16, #tpu.memory_space<vmem>>, vector<1x16x32xbf16>
      %316 = vector.shape_cast %315 : vector<1x16x32xbf16> to vector<16x32xbf16>
      %317 = arith.extf %316 : vector<16x32xbf16> to vector<16x32xf32>
      %318 = tpu.iota {dimensions = array<i32: 0>} : vector<16x1xi32>
      %c0_206 = arith.constant 0 : index
      %c0_207 = arith.constant 0 : index
      %319 = vector.load %arg4[%c0_206, %c0_207] : memref<2x32xbf16, #tpu.memory_space<vmem>>, vector<1x32xbf16>
      %320 = arith.extf %319 : vector<1x32xbf16> to vector<1x32xf32>
      %c0_i32_208 = arith.constant 0 : i32
      %321 = arith.addi %1, %c0_i32_208 : i32
      %322 = vector.broadcast %321 : i32 to vector<16x1xi32>
      %323 = arith.cmpi eq, %318, %322 : vector<16x1xi32>
      %324 = vector.shape_cast %323 : vector<16x1xi1> to vector<16x1xi1>
      %325 = vector.broadcast %324 : vector<16x1xi1> to vector<16x32xi1>
      %326 = vector.shape_cast %320 : vector<1x32xf32> to vector<1x32xf32>
      %327 = vector.broadcast %326 : vector<1x32xf32> to vector<16x32xf32>
      %328 = arith.select %325, %327, %317 : vector<16x32xi1>, vector<16x32xf32>
      %c1_209 = arith.constant 1 : index
      %c0_210 = arith.constant 0 : index
      %329 = vector.load %arg4[%c1_209, %c0_210] : memref<2x32xbf16, #tpu.memory_space<vmem>>, vector<1x32xbf16>
      %330 = arith.extf %329 : vector<1x32xbf16> to vector<1x32xf32>
      %c1_i32_211 = arith.constant 1 : i32
      %331 = arith.addi %1, %c1_i32_211 : i32
      %332 = vector.broadcast %331 : i32 to vector<16x1xi32>
      %333 = arith.cmpi eq, %318, %332 : vector<16x1xi32>
      %334 = vector.shape_cast %333 : vector<16x1xi1> to vector<16x1xi1>
      %335 = vector.broadcast %334 : vector<16x1xi1> to vector<16x32xi1>
      %336 = vector.shape_cast %330 : vector<1x32xf32> to vector<1x32xf32>
      %337 = vector.broadcast %336 : vector<1x32xf32> to vector<16x32xf32>
      %338 = arith.select %335, %337, %328 : vector<16x32xi1>, vector<16x32xf32>
      %c0_212 = arith.constant 0 : index
      %c0_213 = arith.constant 0 : index
      %339 = vector.load %arg22[%c0_212, %c0_213] : memref<16x32xf32, #tpu.memory_space<vmem>>, vector<16x32xf32>
      tpu.vector_store %arg22[%c0_212, %c0_213], %338 {strides = array<i32>} : memref<16x32xf32, #tpu.memory_space<vmem>>, vector<16x32xf32>,
    } else {
    }
    %c0 = arith.constant 0 : index
    %c0_1 = arith.constant 0 : index
    %5 = vector.load %arg22[%c0, %c0_1] : memref<16x32xf32, #tpu.memory_space<vmem>>, vector<16x32xf32>
    %6 = tpu.iota {dimensions = array<i32: 1>} : vector<16x16xi32>
    %7 = tpu.iota {dimensions = array<i32: 0>} : vector<16x16xi32>
    %8 = arith.cmpi sle, %6, %7 : vector<16x16xi32>
    %9 = vector.broadcast %1 : i32 to vector<16x16xi32>
    %10 = arith.cmpi slt, %6, %9 : vector<16x16xi32>
    %11 = arith.andi %8, %10 : vector<16x16xi1>
    %c0_2 = arith.constant 0 : index
    %c0_3 = arith.constant 0 : index
    %c0_4 = arith.constant 0 : index
    %12 = vector.load %arg5[%c0_2, %c0_3, %c0_4] : memref<1x1x32xf32, #tpu.memory_space<vmem>>, vector<1x1x32xf32>
    %13 = vector.shape_cast %12 : vector<1x1x32xf32> to vector<1x32xf32>
    %c0_5 = arith.constant 0 : index
    %c0_6 = arith.constant 0 : index
    %c0_7 = arith.constant 0 : index
    %14 = vector.load %arg6[%c0_5, %c0_6, %c0_7] : memref<1x1x32xf32, #tpu.memory_space<vmem>>, vector<1x1x32xf32>
    %15 = vector.shape_cast %14 : vector<1x1x32xf32> to vector<1x32xf32>
    %cst = arith.constant dense<0.000000e+00> : vector<16xf32>
    %16 = vector.multi_reduction <add>, %5, %cst [1] : vector<16x32xf32> to vector<16xf32>
    %17 = vector.shape_cast %16 : vector<16xf32> to vector<16x1xf32>
    %cst_8 = arith.constant 3.200000e+01 : f32
    %18 = vector.broadcast %cst_8 : f32 to vector<16x1xf32>
    %19 = arith.divf %17, %18 : vector<16x1xf32>
    %20 = vector.broadcast %19 : vector<16x1xf32> to vector<16x32xf32>
    %21 = arith.subf %5, %20 : vector<16x32xf32>
    %22 = arith.mulf %21, %21 : vector<16x32xf32>
    %cst_9 = arith.constant dense<0.000000e+00> : vector<16xf32>
    %23 = vector.multi_reduction <add>, %22, %cst_9 [1] : vector<16x32xf32> to vector<16xf32>
    %24 = vector.shape_cast %23 : vector<16xf32> to vector<16x1xf32>
    %cst_10 = arith.constant 3.200000e+01 : f32
    %25 = vector.broadcast %cst_10 : f32 to vector<16x1xf32>
    %26 = arith.divf %24, %25 : vector<16x1xf32>
    %27 = vector.broadcast %19 : vector<16x1xf32> to vector<16x32xf32>
    %28 = arith.subf %5, %27 : vector<16x32xf32>
    %cst_11 = arith.constant 9.99999974E-6 : f32
    %29 = vector.broadcast %cst_11 : f32 to vector<16x1xf32>
    %30 = arith.addf %26, %29 : vector<16x1xf32>
    %31 = math.rsqrt %30 : vector<16x1xf32>
    %32 = vector.broadcast %31 : vector<16x1xf32> to vector<16x32xf32>
    %33 = arith.mulf %28, %32 : vector<16x32xf32>
    %34 = vector.broadcast %13 : vector<1x32xf32> to vector<16x32xf32>
    %35 = arith.mulf %33, %34 : vector<16x32xf32>
    %36 = vector.broadcast %15 : vector<1x32xf32> to vector<16x32xf32>
    %37 = arith.addf %35, %36 : vector<16x32xf32>
    %38 = arith.truncf %37 : vector<16x32xf32> to vector<16x32xbf16>
    %cst_12 = arith.constant 0.000000e+00 : f32
    %39 = vector.broadcast %cst_12 : f32 to vector<16x32xf32>
    %c0_13 = arith.constant 0 : index
    %c0_14 = arith.constant 0 : index
    %c0_15 = arith.constant 0 : index
    %c0_16 = arith.constant 0 : index
    %40 = vector.load %arg7[%c0_13, %c0_14, %c0_15, %c0_16] : memref<1x4x32x8xbf16, #tpu.memory_space<vmem>>, vector<1x1x32x8xbf16>
    %41 = vector.shape_cast %40 : vector<1x1x32x8xbf16> to vector<32x8xbf16>
    %cst_17 = arith.constant dense<0.000000e+00> : vector<16x8xf32>
    %42 = tpu.matmul %38, %41, %cst_17 {dimension_numbers = #tpu.dot_dimension_numbers<[1], [0], [0], [1], [0, 0, 1, 1], [], []>} : vector<16x32xbf16>, vector<32x8xbf16>, vector<16x8xf32> -> vector<16x8xf32>
    %c0_18 = arith.constant 0 : index
    %c0_19 = arith.constant 0 : index
    %c0_20 = arith.constant 0 : index
    %c0_21 = arith.constant 0 : index
    %43 = vector.load %arg10[%c0_18, %c0_19, %c0_20, %c0_21] : memref<1x4x1x8xbf16, #tpu.memory_space<vmem>>, vector<1x1x1x8xbf16>
    %44 = vector.shape_cast %43 : vector<1x1x1x8xbf16> to vector<1x8xbf16>
    %45 = arith.extf %44 : vector<1x8xbf16> to vector<1x8xf32>
    %46 = vector.broadcast %45 : vector<1x8xf32> to vector<16x8xf32>
    %47 = arith.addf %42, %46 : vector<16x8xf32>
    %cst_22 = arith.constant 0.353553385 : f32
    %48 = vector.broadcast %cst_22 : f32 to vector<16x8xf32>
    %49 = arith.mulf %47, %48 : vector<16x8xf32>
    %c0_23 = arith.constant 0 : index
    %c0_24 = arith.constant 0 : index
    %c0_25 = arith.constant 0 : index
    %c0_26 = arith.constant 0 : index
    %50 = vector.load %arg8[%c0_23, %c0_24, %c0_25, %c0_26] : memref<1x4x32x8xbf16, #tpu.memory_space<vmem>>, vector<1x1x32x8xbf16>
    %51 = vector.shape_cast %50 : vector<1x1x32x8xbf16> to vector<32x8xbf16>
    %cst_27 = arith.constant dense<0.000000e+00> : vector<16x8xf32>
    %52 = tpu.matmul %38, %51, %cst_27 {dimension_numbers = #tpu.dot_dimension_numbers<[1], [0], [0], [1], [0, 0, 1, 1], [], []>} : vector<16x32xbf16>, vector<32x8xbf16>, vector<16x8xf32> -> vector<16x8xf32>
    %c0_28 = arith.constant 0 : index
    %c0_29 = arith.constant 0 : index
    %c0_30 = arith.constant 0 : index
    %c0_31 = arith.constant 0 : index
    %53 = vector.load %arg11[%c0_28, %c0_29, %c0_30, %c0_31] : memref<1x4x1x8xbf16, #tpu.memory_space<vmem>>, vector<1x1x1x8xbf16>
    %54 = vector.shape_cast %53 : vector<1x1x1x8xbf16> to vector<1x8xbf16>
    %55 = arith.extf %54 : vector<1x8xbf16> to vector<1x8xf32>
    %56 = vector.broadcast %55 : vector<1x8xf32> to vector<16x8xf32>
    %57 = arith.addf %52, %56 : vector<16x8xf32>
    %c0_32 = arith.constant 0 : index
    %c0_33 = arith.constant 0 : index
    %c0_34 = arith.constant 0 : index
    %c0_35 = arith.constant 0 : index
    %58 = vector.load %arg9[%c0_32, %c0_33, %c0_34, %c0_35] : memref<1x4x32x8xbf16, #tpu.memory_space<vmem>>, vector<1x1x32x8xbf16>
    %59 = vector.shape_cast %58 : vector<1x1x32x8xbf16> to vector<32x8xbf16>
    %cst_36 = arith.constant dense<0.000000e+00> : vector<16x8xf32>
    %60 = tpu.matmul %38, %59, %cst_36 {dimension_numbers = #tpu.dot_dimension_numbers<[1], [0], [0], [1], [0, 0, 1, 1], [], []>} : vector<16x32xbf16>, vector<32x8xbf16>, vector<16x8xf32> -> vector<16x8xf32>
    %c0_37 = arith.constant 0 : index
    %c0_38 = arith.constant 0 : index
    %c0_39 = arith.constant 0 : index
    %c0_40 = arith.constant 0 : index
    %61 = vector.load %arg12[%c0_37, %c0_38, %c0_39, %c0_40] : memref<1x4x1x8xbf16, #tpu.memory_space<vmem>>, vector<1x1x1x8xbf16>
    %62 = vector.shape_cast %61 : vector<1x1x1x8xbf16> to vector<1x8xbf16>
    %63 = arith.extf %62 : vector<1x8xbf16> to vector<1x8xf32>
    %64 = vector.broadcast %63 : vector<1x8xf32> to vector<16x8xf32>
    %65 = arith.addf %60, %64 : vector<16x8xf32>
    %66 = arith.truncf %49 : vector<16x8xf32> to vector<16x8xbf16>
    %67 = arith.truncf %57 : vector<16x8xf32> to vector<16x8xbf16>
    %cst_41 = arith.constant dense<0.000000e+00> : vector<16x16xf32>
    %68 = tpu.matmul %66, %67, %cst_41 {dimension_numbers = #tpu.dot_dimension_numbers<[1], [1], [0], [0], [0, 0, 1, 0], [], []>} : vector<16x8xbf16>, vector<16x8xbf16>, vector<16x16xf32> -> vector<16x16xf32>
    %cst_42 = arith.constant -1.000000e+30 : f32
    %69 = vector.broadcast %cst_42 : f32 to vector<16x16xf32>
    %70 = arith.select %11, %68, %69 : vector<16x16xi1>, vector<16x16xf32>
    %cst_43 = arith.constant dense<0xFF800000> : vector<16xf32>
    %71 = vector.multi_reduction <maximumf>, %70, %cst_43 [1] : vector<16x16xf32> to vector<16xf32>
    %72 = vector.shape_cast %71 : vector<16xf32> to vector<16x1xf32>
    %cst_44 = arith.constant -1.000000e+30 : f32
    %73 = vector.broadcast %cst_44 : f32 to vector<16x1xf32>
    %74 = arith.maximumf %72, %73 : vector<16x1xf32>
    %75 = vector.broadcast %74 : vector<16x1xf32> to vector<16x16xf32>
    %76 = arith.subf %70, %75 : vector<16x16xf32>
    %77 = math.exp %76 : vector<16x16xf32>
    %cst_45 = arith.constant dense<0.000000e+00> : vector<16xf32>
    %78 = vector.multi_reduction <add>, %77, %cst_45 [1] : vector<16x16xf32> to vector<16xf32>
    %79 = vector.shape_cast %78 : vector<16xf32> to vector<16x1xf32>
    %cst_46 = arith.constant 1.000000e-30 : f32
    %80 = vector.broadcast %cst_46 : f32 to vector<16x1xf32>
    %81 = arith.maximumf %79, %80 : vector<16x1xf32>
    %82 = tpu.reciprocal %81 {approx = true} : vector<16x1xf32> -> vector<16x1xf32>
    %83 = vector.broadcast %82 : vector<16x1xf32> to vector<16x16xf32>
    %84 = arith.mulf %77, %83 : vector<16x16xf32>
    %85 = arith.truncf %84 : vector<16x16xf32> to vector<16x16xbf16>
    %86 = arith.truncf %65 : vector<16x8xf32> to vector<16x8xbf16>
    %cst_47 = arith.constant dense<0.000000e+00> : vector<16x8xf32>
    %87 = tpu.matmul %85, %86, %cst_47 {dimension_numbers = #tpu.dot_dimension_numbers<[1], [0], [0], [1], [0, 0, 1, 1], [], []>} : vector<16x16xbf16>, vector<16x8xbf16>, vector<16x8xf32> -> vector<16x8xf32>
    %88 = arith.truncf %87 : vector<16x8xf32> to vector<16x8xbf16>
    %c0_48 = arith.constant 0 : index
    %c0_49 = arith.constant 0 : index
    %c0_50 = arith.constant 0 : index
    %c0_51 = arith.constant 0 : index
    %89 = vector.load %arg13[%c0_48, %c0_49, %c0_50, %c0_51] : memref<1x4x8x32xbf16, #tpu.memory_space<vmem>>, vector<1x1x8x32xbf16>
    %90 = vector.shape_cast %89 : vector<1x1x8x32xbf16> to vector<8x32xbf16>
    %cst_52 = arith.constant dense<0.000000e+00> : vector<16x32xf32>
    %91 = tpu.matmul %88, %90, %cst_52 {dimension_numbers = #tpu.dot_dimension_numbers<[1], [0], [0], [1], [0, 0, 1, 1], [], []>} : vector<16x8xbf16>, vector<8x32xbf16>, vector<16x32xf32> -> vector<16x32xf32>
    %92 = arith.addf %39, %91 : vector<16x32xf32>
    %c0_53 = arith.constant 0 : index
    %c1 = arith.constant 1 : index
    %c0_54 = arith.constant 0 : index
    %c0_55 = arith.constant 0 : index
    %93 = vector.load %arg7[%c0_53, %c1, %c0_54, %c0_55] : memref<1x4x32x8xbf16, #tpu.memory_space<vmem>>, vector<1x1x32x8xbf16>
    %94 = vector.shape_cast %93 : vector<1x1x32x8xbf16> to vector<32x8xbf16>
    %cst_56 = arith.constant dense<0.000000e+00> : vector<16x8xf32>
    %95 = tpu.matmul %38, %94, %cst_56 {dimension_numbers = #tpu.dot_dimension_numbers<[1], [0], [0], [1], [0, 0, 1, 1], [], []>} : vector<16x32xbf16>, vector<32x8xbf16>, vector<16x8xf32> -> vector<16x8xf32>
    %c0_57 = arith.constant 0 : index
    %c1_58 = arith.constant 1 : index
    %c0_59 = arith.constant 0 : index
    %c0_60 = arith.constant 0 : index
    %96 = vector.load %arg10[%c0_57, %c1_58, %c0_59, %c0_60] : memref<1x4x1x8xbf16, #tpu.memory_space<vmem>>, vector<1x1x1x8xbf16>
    %97 = vector.shape_cast %96 : vector<1x1x1x8xbf16> to vector<1x8xbf16>
    %98 = arith.extf %97 : vector<1x8xbf16> to vector<1x8xf32>
    %99 = vector.broadcast %98 : vector<1x8xf32> to vector<16x8xf32>
    %100 = arith.addf %95, %99 : vector<16x8xf32>
    %cst_61 = arith.constant 0.353553385 : f32
    %101 = vector.broadcast %cst_61 : f32 to vector<16x8xf32>
    %102 = arith.mulf %100, %101 : vector<16x8xf32>
    %c0_62 = arith.constant 0 : index
    %c1_63 = arith.constant 1 : index
    %c0_64 = arith.constant 0 : index
    %c0_65 = arith.constant 0 : index
    %103 = vector.load %arg8[%c0_62, %c1_63, %c0_64, %c0_65] : memref<1x4x32x8xbf16, #tpu.memory_space<vmem>>, vector<1x1x32x8xbf16>
    %104 = vector.shape_cast %103 : vector<1x1x32x8xbf16> to vector<32x8xbf16>
    %cst_66 = arith.constant dense<0.000000e+00> : vector<16x8xf32>
    %105 = tpu.matmul %38, %104, %cst_66 {dimension_numbers = #tpu.dot_dimension_numbers<[1], [0], [0], [1], [0, 0, 1, 1], [], []>} : vector<16x32xbf16>, vector<32x8xbf16>, vector<16x8xf32> -> vector<16x8xf32>
    %c0_67 = arith.constant 0 : index
    %c1_68 = arith.constant 1 : index
    %c0_69 = arith.constant 0 : index
    %c0_70 = arith.constant 0 : index
    %106 = vector.load %arg11[%c0_67, %c1_68, %c0_69, %c0_70] : memref<1x4x1x8xbf16, #tpu.memory_space<vmem>>, vector<1x1x1x8xbf16>
    %107 = vector.shape_cast %106 : vector<1x1x1x8xbf16> to vector<1x8xbf16>
    %108 = arith.extf %107 : vector<1x8xbf16> to vector<1x8xf32>
    %109 = vector.broadcast %108 : vector<1x8xf32> to vector<16x8xf32>
    %110 = arith.addf %105, %109 : vector<16x8xf32>
    %c0_71 = arith.constant 0 : index
    %c1_72 = arith.constant 1 : index
    %c0_73 = arith.constant 0 : index
    %c0_74 = arith.constant 0 : index
    %111 = vector.load %arg9[%c0_71, %c1_72, %c0_73, %c0_74] : memref<1x4x32x8xbf16, #tpu.memory_space<vmem>>, vector<1x1x32x8xbf16>
    %112 = vector.shape_cast %111 : vector<1x1x32x8xbf16> to vector<32x8xbf16>
    %cst_75 = arith.constant dense<0.000000e+00> : vector<16x8xf32>
    %113 = tpu.matmul %38, %112, %cst_75 {dimension_numbers = #tpu.dot_dimension_numbers<[1], [0], [0], [1], [0, 0, 1, 1], [], []>} : vector<16x32xbf16>, vector<32x8xbf16>, vector<16x8xf32> -> vector<16x8xf32>
    %c0_76 = arith.constant 0 : index
    %c1_77 = arith.constant 1 : index
    %c0_78 = arith.constant 0 : index
    %c0_79 = arith.constant 0 : index
    %114 = vector.load %arg12[%c0_76, %c1_77, %c0_78, %c0_79] : memref<1x4x1x8xbf16, #tpu.memory_space<vmem>>, vector<1x1x1x8xbf16>
    %115 = vector.shape_cast %114 : vector<1x1x1x8xbf16> to vector<1x8xbf16>
    %116 = arith.extf %115 : vector<1x8xbf16> to vector<1x8xf32>
    %117 = vector.broadcast %116 : vector<1x8xf32> to vector<16x8xf32>
    %118 = arith.addf %113, %117 : vector<16x8xf32>
    %119 = arith.truncf %102 : vector<16x8xf32> to vector<16x8xbf16>
    %120 = arith.truncf %110 : vector<16x8xf32> to vector<16x8xbf16>
    %cst_80 = arith.constant dense<0.000000e+00> : vector<16x16xf32>
    %121 = tpu.matmul %119, %120, %cst_80 {dimension_numbers = #tpu.dot_dimension_numbers<[1], [1], [0], [0], [0, 0, 1, 0], [], []>} : vector<16x8xbf16>, vector<16x8xbf16>, vector<16x16xf32> -> vector<16x16xf32>
    %cst_81 = arith.constant -1.000000e+30 : f32
    %122 = vector.broadcast %cst_81 : f32 to vector<16x16xf32>
    %123 = arith.select %11, %121, %122 : vector<16x16xi1>, vector<16x16xf32>
    %cst_82 = arith.constant dense<0xFF800000> : vector<16xf32>
    %124 = vector.multi_reduction <maximumf>, %123, %cst_82 [1] : vector<16x16xf32> to vector<16xf32>
    %125 = vector.shape_cast %124 : vector<16xf32> to vector<16x1xf32>
    %cst_83 = arith.constant -1.000000e+30 : f32
    %126 = vector.broadcast %cst_83 : f32 to vector<16x1xf32>
    %127 = arith.maximumf %125, %126 : vector<16x1xf32>
    %128 = vector.broadcast %127 : vector<16x1xf32> to vector<16x16xf32>
    %129 = arith.subf %123, %128 : vector<16x16xf32>
    %130 = math.exp %129 : vector<16x16xf32>
    %cst_84 = arith.constant dense<0.000000e+00> : vector<16xf32>
    %131 = vector.multi_reduction <add>, %130, %cst_84 [1] : vector<16x16xf32> to vector<16xf32>
    %132 = vector.shape_cast %131 : vector<16xf32> to vector<16x1xf32>
    %cst_85 = arith.constant 1.000000e-30 : f32
    %133 = vector.broadcast %cst_85 : f32 to vector<16x1xf32>
    %134 = arith.maximumf %132, %133 : vector<16x1xf32>
    %135 = tpu.reciprocal %134 {approx = true} : vector<16x1xf32> -> vector<16x1xf32>
    %136 = vector.broadcast %135 : vector<16x1xf32> to vector<16x16xf32>
    %137 = arith.mulf %130, %136 : vector<16x16xf32>
    %138 = arith.truncf %137 : vector<16x16xf32> to vector<16x16xbf16>
    %139 = arith.truncf %118 : vector<16x8xf32> to vector<16x8xbf16>
    %cst_86 = arith.constant dense<0.000000e+00> : vector<16x8xf32>
    %140 = tpu.matmul %138, %139, %cst_86 {dimension_numbers = #tpu.dot_dimension_numbers<[1], [0], [0], [1], [0, 0, 1, 1], [], []>} : vector<16x16xbf16>, vector<16x8xbf16>, vector<16x8xf32> -> vector<16x8xf32>
    %141 = arith.truncf %140 : vector<16x8xf32> to vector<16x8xbf16>
    %c0_87 = arith.constant 0 : index
    %c1_88 = arith.constant 1 : index
    %c0_89 = arith.constant 0 : index
    %c0_90 = arith.constant 0 : index
    %142 = vector.load %arg13[%c0_87, %c1_88, %c0_89, %c0_90] : memref<1x4x8x32xbf16, #tpu.memory_space<vmem>>, vector<1x1x8x32xbf16>
    %143 = vector.shape_cast %142 : vector<1x1x8x32xbf16> to vector<8x32xbf16>
    %cst_91 = arith.constant dense<0.000000e+00> : vector<16x32xf32>
    %144 = tpu.matmul %141, %143, %cst_91 {dimension_numbers = #tpu.dot_dimension_numbers<[1], [0], [0], [1], [0, 0, 1, 1], [], []>} : vector<16x8xbf16>, vector<8x32xbf16>, vector<16x32xf32> -> vector<16x32xf32>
    %145 = arith.addf %92, %144 : vector<16x32xf32>
    %c0_92 = arith.constant 0 : index
    %c2 = arith.constant 2 : index
    %c0_93 = arith.constant 0 : index
    %c0_94 = arith.constant 0 : index
    %146 = vector.load %arg7[%c0_92, %c2, %c0_93, %c0_94] : memref<1x4x32x8xbf16, #tpu.memory_space<vmem>>, vector<1x1x32x8xbf16>
    %147 = vector.shape_cast %146 : vector<1x1x32x8xbf16> to vector<32x8xbf16>
    %cst_95 = arith.constant dense<0.000000e+00> : vector<16x8xf32>
    %148 = tpu.matmul %38, %147, %cst_95 {dimension_numbers = #tpu.dot_dimension_numbers<[1], [0], [0], [1], [0, 0, 1, 1], [], []>} : vector<16x32xbf16>, vector<32x8xbf16>, vector<16x8xf32> -> vector<16x8xf32>
    %c0_96 = arith.constant 0 : index
    %c2_97 = arith.constant 2 : index
    %c0_98 = arith.constant 0 : index
    %c0_99 = arith.constant 0 : index
    %149 = vector.load %arg10[%c0_96, %c2_97, %c0_98, %c0_99] : memref<1x4x1x8xbf16, #tpu.memory_space<vmem>>, vector<1x1x1x8xbf16>
    %150 = vector.shape_cast %149 : vector<1x1x1x8xbf16> to vector<1x8xbf16>
    %151 = arith.extf %150 : vector<1x8xbf16> to vector<1x8xf32>
    %152 = vector.broadcast %151 : vector<1x8xf32> to vector<16x8xf32>
    %153 = arith.addf %148, %152 : vector<16x8xf32>
    %cst_100 = arith.constant 0.353553385 : f32
    %154 = vector.broadcast %cst_100 : f32 to vector<16x8xf32>
    %155 = arith.mulf %153, %154 : vector<16x8xf32>
    %c0_101 = arith.constant 0 : index
    %c2_102 = arith.constant 2 : index
    %c0_103 = arith.constant 0 : index
    %c0_104 = arith.constant 0 : index
    %156 = vector.load %arg8[%c0_101, %c2_102, %c0_103, %c0_104] : memref<1x4x32x8xbf16, #tpu.memory_space<vmem>>, vector<1x1x32x8xbf16>
    %157 = vector.shape_cast %156 : vector<1x1x32x8xbf16> to vector<32x8xbf16>
    %cst_105 = arith.constant dense<0.000000e+00> : vector<16x8xf32>
    %158 = tpu.matmul %38, %157, %cst_105 {dimension_numbers = #tpu.dot_dimension_numbers<[1], [0], [0], [1], [0, 0, 1, 1], [], []>} : vector<16x32xbf16>, vector<32x8xbf16>, vector<16x8xf32> -> vector<16x8xf32>
    %c0_106 = arith.constant 0 : index
    %c2_107 = arith.constant 2 : index
    %c0_108 = arith.constant 0 : index
    %c0_109 = arith.constant 0 : index
    %159 = vector.load %arg11[%c0_106, %c2_107, %c0_108, %c0_109] : memref<1x4x1x8xbf16, #tpu.memory_space<vmem>>, vector<1x1x1x8xbf16>
    %160 = vector.shape_cast %159 : vector<1x1x1x8xbf16> to vector<1x8xbf16>
    %161 = arith.extf %160 : vector<1x8xbf16> to vector<1x8xf32>
    %162 = vector.broadcast %161 : vector<1x8xf32> to vector<16x8xf32>
    %163 = arith.addf %158, %162 : vector<16x8xf32>
    %c0_110 = arith.constant 0 : index
    %c2_111 = arith.constant 2 : index
    %c0_112 = arith.constant 0 : index
    %c0_113 = arith.constant 0 : index
    %164 = vector.load %arg9[%c0_110, %c2_111, %c0_112, %c0_113] : memref<1x4x32x8xbf16, #tpu.memory_space<vmem>>, vector<1x1x32x8xbf16>
    %165 = vector.shape_cast %164 : vector<1x1x32x8xbf16> to vector<32x8xbf16>
    %cst_114 = arith.constant dense<0.000000e+00> : vector<16x8xf32>
    %166 = tpu.matmul %38, %165, %cst_114 {dimension_numbers = #tpu.dot_dimension_numbers<[1], [0], [0], [1], [0, 0, 1, 1], [], []>} : vector<16x32xbf16>, vector<32x8xbf16>, vector<16x8xf32> -> vector<16x8xf32>
    %c0_115 = arith.constant 0 : index
    %c2_116 = arith.constant 2 : index
    %c0_117 = arith.constant 0 : index
    %c0_118 = arith.constant 0 : index
    %167 = vector.load %arg12[%c0_115, %c2_116, %c0_117, %c0_118] : memref<1x4x1x8xbf16, #tpu.memory_space<vmem>>, vector<1x1x1x8xbf16>
    %168 = vector.shape_cast %167 : vector<1x1x1x8xbf16> to vector<1x8xbf16>
    %169 = arith.extf %168 : vector<1x8xbf16> to vector<1x8xf32>
    %170 = vector.broadcast %169 : vector<1x8xf32> to vector<16x8xf32>
    %171 = arith.addf %166, %170 : vector<16x8xf32>
    %172 = arith.truncf %155 : vector<16x8xf32> to vector<16x8xbf16>
    %173 = arith.truncf %163 : vector<16x8xf32> to vector<16x8xbf16>
    %cst_119 = arith.constant dense<0.000000e+00> : vector<16x16xf32>
    %174 = tpu.matmul %172, %173, %cst_119 {dimension_numbers = #tpu.dot_dimension_numbers<[1], [1], [0], [0], [0, 0, 1, 0], [], []>} : vector<16x8xbf16>, vector<16x8xbf16>, vector<16x16xf32> -> vector<16x16xf32>
    %cst_120 = arith.constant -1.000000e+30 : f32
    %175 = vector.broadcast %cst_120 : f32 to vector<16x16xf32>
    %176 = arith.select %11, %174, %175 : vector<16x16xi1>, vector<16x16xf32>
    %cst_121 = arith.constant dense<0xFF800000> : vector<16xf32>
    %177 = vector.multi_reduction <maximumf>, %176, %cst_121 [1] : vector<16x16xf32> to vector<16xf32>
    %178 = vector.shape_cast %177 : vector<16xf32> to vector<16x1xf32>
    %cst_122 = arith.constant -1.000000e+30 : f32
    %179 = vector.broadcast %cst_122 : f32 to vector<16x1xf32>
    %180 = arith.maximumf %178, %179 : vector<16x1xf32>
    %181 = vector.broadcast %180 : vector<16x1xf32> to vector<16x16xf32>
    %182 = arith.subf %176, %181 : vector<16x16xf32>
    %183 = math.exp %182 : vector<16x16xf32>
    %cst_123 = arith.constant dense<0.000000e+00> : vector<16xf32>
    %184 = vector.multi_reduction <add>, %183, %cst_123 [1] : vector<16x16xf32> to vector<16xf32>
    %185 = vector.shape_cast %184 : vector<16xf32> to vector<16x1xf32>
    %cst_124 = arith.constant 1.000000e-30 : f32
    %186 = vector.broadcast %cst_124 : f32 to vector<16x1xf32>
    %187 = arith.maximumf %185, %186 : vector<16x1xf32>
    %188 = tpu.reciprocal %187 {approx = true} : vector<16x1xf32> -> vector<16x1xf32>
    %189 = vector.broadcast %188 : vector<16x1xf32> to vector<16x16xf32>
    %190 = arith.mulf %183, %189 : vector<16x16xf32>
    %191 = arith.truncf %190 : vector<16x16xf32> to vector<16x16xbf16>
    %192 = arith.truncf %171 : vector<16x8xf32> to vector<16x8xbf16>
    %cst_125 = arith.constant dense<0.000000e+00> : vector<16x8xf32>
    %193 = tpu.matmul %191, %192, %cst_125 {dimension_numbers = #tpu.dot_dimension_numbers<[1], [0], [0], [1], [0, 0, 1, 1], [], []>} : vector<16x16xbf16>, vector<16x8xbf16>, vector<16x8xf32> -> vector<16x8xf32>
    %194 = arith.truncf %193 : vector<16x8xf32> to vector<16x8xbf16>
    %c0_126 = arith.constant 0 : index
    %c2_127 = arith.constant 2 : index
    %c0_128 = arith.constant 0 : index
    %c0_129 = arith.constant 0 : index
    %195 = vector.load %arg13[%c0_126, %c2_127, %c0_128, %c0_129] : memref<1x4x8x32xbf16, #tpu.memory_space<vmem>>, vector<1x1x8x32xbf16>
    %196 = vector.shape_cast %195 : vector<1x1x8x32xbf16> to vector<8x32xbf16>
    %cst_130 = arith.constant dense<0.000000e+00> : vector<16x32xf32>
    %197 = tpu.matmul %194, %196, %cst_130 {dimension_numbers = #tpu.dot_dimension_numbers<[1], [0], [0], [1], [0, 0, 1, 1], [], []>} : vector<16x8xbf16>, vector<8x32xbf16>, vector<16x32xf32> -> vector<16x32xf32>
    %198 = arith.addf %145, %197 : vector<16x32xf32>
    %c0_131 = arith.constant 0 : index
    %c3 = arith.constant 3 : index
    %c0_132 = arith.constant 0 : index
    %c0_133 = arith.constant 0 : index
    %199 = vector.load %arg7[%c0_131, %c3, %c0_132, %c0_133] : memref<1x4x32x8xbf16, #tpu.memory_space<vmem>>, vector<1x1x32x8xbf16>
    %200 = vector.shape_cast %199 : vector<1x1x32x8xbf16> to vector<32x8xbf16>
    %cst_134 = arith.constant dense<0.000000e+00> : vector<16x8xf32>
    %201 = tpu.matmul %38, %200, %cst_134 {dimension_numbers = #tpu.dot_dimension_numbers<[1], [0], [0], [1], [0, 0, 1, 1], [], []>} : vector<16x32xbf16>, vector<32x8xbf16>, vector<16x8xf32> -> vector<16x8xf32>
    %c0_135 = arith.constant 0 : index
    %c3_136 = arith.constant 3 : index
    %c0_137 = arith.constant 0 : index
    %c0_138 = arith.constant 0 : index
    %202 = vector.load %arg10[%c0_135, %c3_136, %c0_137, %c0_138] : memref<1x4x1x8xbf16, #tpu.memory_space<vmem>>, vector<1x1x1x8xbf16>
    %203 = vector.shape_cast %202 : vector<1x1x1x8xbf16> to vector<1x8xbf16>
    %204 = arith.extf %203 : vector<1x8xbf16> to vector<1x8xf32>
    %205 = vector.broadcast %204 : vector<1x8xf32> to vector<16x8xf32>
    %206 = arith.addf %201, %205 : vector<16x8xf32>
    %cst_139 = arith.constant 0.353553385 : f32
    %207 = vector.broadcast %cst_139 : f32 to vector<16x8xf32>
    %208 = arith.mulf %206, %207 : vector<16x8xf32>
    %c0_140 = arith.constant 0 : index
    %c3_141 = arith.constant 3 : index
    %c0_142 = arith.constant 0 : index
    %c0_143 = arith.constant 0 : index
    %209 = vector.load %arg8[%c0_140, %c3_141, %c0_142, %c0_143] : memref<1x4x32x8xbf16, #tpu.memory_space<vmem>>, vector<1x1x32x8xbf16>
    %210 = vector.shape_cast %209 : vector<1x1x32x8xbf16> to vector<32x8xbf16>
    %cst_144 = arith.constant dense<0.000000e+00> : vector<16x8xf32>
    %211 = tpu.matmul %38, %210, %cst_144 {dimension_numbers = #tpu.dot_dimension_numbers<[1], [0], [0], [1], [0, 0, 1, 1], [], []>} : vector<16x32xbf16>, vector<32x8xbf16>, vector<16x8xf32> -> vector<16x8xf32>
    %c0_145 = arith.constant 0 : index
    %c3_146 = arith.constant 3 : index
    %c0_147 = arith.constant 0 : index
    %c0_148 = arith.constant 0 : index
    %212 = vector.load %arg11[%c0_145, %c3_146, %c0_147, %c0_148] : memref<1x4x1x8xbf16, #tpu.memory_space<vmem>>, vector<1x1x1x8xbf16>
    %213 = vector.shape_cast %212 : vector<1x1x1x8xbf16> to vector<1x8xbf16>
    %214 = arith.extf %213 : vector<1x8xbf16> to vector<1x8xf32>
    %215 = vector.broadcast %214 : vector<1x8xf32> to vector<16x8xf32>
    %216 = arith.addf %211, %215 : vector<16x8xf32>
    %c0_149 = arith.constant 0 : index
    %c3_150 = arith.constant 3 : index
    %c0_151 = arith.constant 0 : index
    %c0_152 = arith.constant 0 : index
    %217 = vector.load %arg9[%c0_149, %c3_150, %c0_151, %c0_152] : memref<1x4x32x8xbf16, #tpu.memory_space<vmem>>, vector<1x1x32x8xbf16>
    %218 = vector.shape_cast %217 : vector<1x1x32x8xbf16> to vector<32x8xbf16>
    %cst_153 = arith.constant dense<0.000000e+00> : vector<16x8xf32>
    %219 = tpu.matmul %38, %218, %cst_153 {dimension_numbers = #tpu.dot_dimension_numbers<[1], [0], [0], [1], [0, 0, 1, 1], [], []>} : vector<16x32xbf16>, vector<32x8xbf16>, vector<16x8xf32> -> vector<16x8xf32>
    %c0_154 = arith.constant 0 : index
    %c3_155 = arith.constant 3 : index
    %c0_156 = arith.constant 0 : index
    %c0_157 = arith.constant 0 : index
    %220 = vector.load %arg12[%c0_154, %c3_155, %c0_156, %c0_157] : memref<1x4x1x8xbf16, #tpu.memory_space<vmem>>, vector<1x1x1x8xbf16>
    %221 = vector.shape_cast %220 : vector<1x1x1x8xbf16> to vector<1x8xbf16>
    %222 = arith.extf %221 : vector<1x8xbf16> to vector<1x8xf32>
    %223 = vector.broadcast %222 : vector<1x8xf32> to vector<16x8xf32>
    %224 = arith.addf %219, %223 : vector<16x8xf32>
    %225 = arith.truncf %208 : vector<16x8xf32> to vector<16x8xbf16>
    %226 = arith.truncf %216 : vector<16x8xf32> to vector<16x8xbf16>
    %cst_158 = arith.constant dense<0.000000e+00> : vector<16x16xf32>
    %227 = tpu.matmul %225, %226, %cst_158 {dimension_numbers = #tpu.dot_dimension_numbers<[1], [1], [0], [0], [0, 0, 1, 0], [], []>} : vector<16x8xbf16>, vector<16x8xbf16>, vector<16x16xf32> -> vector<16x16xf32>
    %cst_159 = arith.constant -1.000000e+30 : f32
    %228 = vector.broadcast %cst_159 : f32 to vector<16x16xf32>
    %229 = arith.select %11, %227, %228 : vector<16x16xi1>, vector<16x16xf32>
    %cst_160 = arith.constant dense<0xFF800000> : vector<16xf32>
    %230 = vector.multi_reduction <maximumf>, %229, %cst_160 [1] : vector<16x16xf32> to vector<16xf32>
    %231 = vector.shape_cast %230 : vector<16xf32> to vector<16x1xf32>
    %cst_161 = arith.constant -1.000000e+30 : f32
    %232 = vector.broadcast %cst_161 : f32 to vector<16x1xf32>
    %233 = arith.maximumf %231, %232 : vector<16x1xf32>
    %234 = vector.broadcast %233 : vector<16x1xf32> to vector<16x16xf32>
    %235 = arith.subf %229, %234 : vector<16x16xf32>
    %236 = math.exp %235 : vector<16x16xf32>
    %cst_162 = arith.constant dense<0.000000e+00> : vector<16xf32>
    %237 = vector.multi_reduction <add>, %236, %cst_162 [1] : vector<16x16xf32> to vector<16xf32>
    %238 = vector.shape_cast %237 : vector<16xf32> to vector<16x1xf32>
    %cst_163 = arith.constant 1.000000e-30 : f32
    %239 = vector.broadcast %cst_163 : f32 to vector<16x1xf32>
    %240 = arith.maximumf %238, %239 : vector<16x1xf32>
    %241 = tpu.reciprocal %240 {approx = true} : vector<16x1xf32> -> vector<16x1xf32>
    %242 = vector.broadcast %241 : vector<16x1xf32> to vector<16x16xf32>
    %243 = arith.mulf %236, %242 : vector<16x16xf32>
    %244 = arith.truncf %243 : vector<16x16xf32> to vector<16x16xbf16>
    %245 = arith.truncf %224 : vector<16x8xf32> to vector<16x8xbf16>
    %cst_164 = arith.constant dense<0.000000e+00> : vector<16x8xf32>
    %246 = tpu.matmul %244, %245, %cst_164 {dimension_numbers = #tpu.dot_dimension_numbers<[1], [0], [0], [1], [0, 0, 1, 1], [], []>} : vector<16x16xbf16>, vector<16x8xbf16>, vector<16x8xf32> -> vector<16x8xf32>
    %247 = arith.truncf %246 : vector<16x8xf32> to vector<16x8xbf16>
    %c0_165 = arith.constant 0 : index
    %c3_166 = arith.constant 3 : index
    %c0_167 = arith.constant 0 : index
    %c0_168 = arith.constant 0 : index
    %248 = vector.load %arg13[%c0_165, %c3_166, %c0_167, %c0_168] : memref<1x4x8x32xbf16, #tpu.memory_space<vmem>>, vector<1x1x8x32xbf16>
    %249 = vector.shape_cast %248 : vector<1x1x8x32xbf16> to vector<8x32xbf16>
    %cst_169 = arith.constant dense<0.000000e+00> : vector<16x32xf32>
    %250 = tpu.matmul %247, %249, %cst_169 {dimension_numbers = #tpu.dot_dimension_numbers<[1], [0], [0], [1], [0, 0, 1, 1], [], []>} : vector<16x8xbf16>, vector<8x32xbf16>, vector<16x32xf32> -> vector<16x32xf32>
    %251 = arith.addf %198, %250 : vector<16x32xf32>
    %252 = arith.addf %5, %251 : vector<16x32xf32>
    %c0_170 = arith.constant 0 : index
    %c0_171 = arith.constant 0 : index
    %c0_172 = arith.constant 0 : index
    %253 = vector.load %arg14[%c0_170, %c0_171, %c0_172] : memref<1x1x32xbf16, #tpu.memory_space<vmem>>, vector<1x1x32xbf16>
    %254 = vector.shape_cast %253 : vector<1x1x32xbf16> to vector<1x32xbf16>
    %255 = arith.extf %254 : vector<1x32xbf16> to vector<1x32xf32>
    %256 = vector.broadcast %255 : vector<1x32xf32> to vector<16x32xf32>
    %257 = arith.addf %252, %256 : vector<16x32xf32>
    %c0_173 = arith.constant 0 : index
    %c0_174 = arith.constant 0 : index
    %c0_175 = arith.constant 0 : index
    %258 = vector.load %arg15[%c0_173, %c0_174, %c0_175] : memref<1x1x32xf32, #tpu.memory_space<vmem>>, vector<1x1x32xf32>
    %259 = vector.shape_cast %258 : vector<1x1x32xf32> to vector<1x32xf32>
    %c0_176 = arith.constant 0 : index
    %c0_177 = arith.constant 0 : index
    %c0_178 = arith.constant 0 : index
    %260 = vector.load %arg16[%c0_176, %c0_177, %c0_178] : memref<1x1x32xf32, #tpu.memory_space<vmem>>, vector<1x1x32xf32>
    %261 = vector.shape_cast %260 : vector<1x1x32xf32> to vector<1x32xf32>
    %cst_179 = arith.constant dense<0.000000e+00> : vector<16xf32>
    %262 = vector.multi_reduction <add>, %257, %cst_179 [1] : vector<16x32xf32> to vector<16xf32>
    %263 = vector.shape_cast %262 : vector<16xf32> to vector<16x1xf32>
    %cst_180 = arith.constant 3.200000e+01 : f32
    %264 = vector.broadcast %cst_180 : f32 to vector<16x1xf32>
    %265 = arith.divf %263, %264 : vector<16x1xf32>
    %266 = vector.broadcast %265 : vector<16x1xf32> to vector<16x32xf32>
    %267 = arith.subf %257, %266 : vector<16x32xf32>
    %268 = arith.mulf %267, %267 : vector<16x32xf32>
    %cst_181 = arith.constant dense<0.000000e+00> : vector<16xf32>
    %269 = vector.multi_reduction <add>, %268, %cst_181 [1] : vector<16x32xf32> to vector<16xf32>
    %270 = vector.shape_cast %269 : vector<16xf32> to vector<16x1xf32>
    %cst_182 = arith.constant 3.200000e+01 : f32
    %271 = vector.broadcast %cst_182 : f32 to vector<16x1xf32>
    %272 = arith.divf %270, %271 : vector<16x1xf32>
    %273 = vector.broadcast %265 : vector<16x1xf32> to vector<16x32xf32>
    %274 = arith.subf %257, %273 : vector<16x32xf32>
    %cst_183 = arith.constant 9.99999974E-6 : f32
    %275 = vector.broadcast %cst_183 : f32 to vector<16x1xf32>
    %276 = arith.addf %272, %275 : vector<16x1xf32>
    %277 = math.rsqrt %276 : vector<16x1xf32>
    %278 = vector.broadcast %277 : vector<16x1xf32> to vector<16x32xf32>
    %279 = arith.mulf %274, %278 : vector<16x32xf32>
    %280 = vector.broadcast %259 : vector<1x32xf32> to vector<16x32xf32>
    %281 = arith.mulf %279, %280 : vector<16x32xf32>
    %282 = vector.broadcast %261 : vector<1x32xf32> to vector<16x32xf32>
    %283 = arith.addf %281, %282 : vector<16x32xf32>
    %284 = arith.truncf %283 : vector<16x32xf32> to vector<16x32xbf16>
    %c0_184 = arith.constant 0 : index
    %c0_185 = arith.constant 0 : index
    %c0_186 = arith.constant 0 : index
    %285 = vector.load %arg17[%c0_184, %c0_185, %c0_186] : memref<1x32x128xbf16, #tpu.memory_space<vmem>>, vector<1x32x128xbf16>
    %286 = vector.shape_cast %285 : vector<1x32x128xbf16> to vector<32x128xbf16>
    %cst_187 = arith.constant dense<0.000000e+00> : vector<16x128xf32>
    %287 = tpu.matmul %284, %286, %cst_187 {dimension_numbers = #tpu.dot_dimension_numbers<[1], [0], [0], [1], [0, 0, 1, 1], [], []>} : vector<16x32xbf16>, vector<32x128xbf16>, vector<16x128xf32> -> vector<16x128xf32>
    %c0_188 = arith.constant 0 : index
    %c0_189 = arith.constant 0 : index
    %c0_190 = arith.constant 0 : index
    %288 = vector.load %arg18[%c0_188, %c0_189, %c0_190] : memref<1x1x128xbf16, #tpu.memory_space<vmem>>, vector<1x1x128xbf16>
    %289 = vector.shape_cast %288 : vector<1x1x128xbf16> to vector<1x128xbf16>
    %290 = arith.extf %289 : vector<1x128xbf16> to vector<1x128xf32>
    %291 = vector.broadcast %290 : vector<1x128xf32> to vector<16x128xf32>
    %292 = arith.addf %287, %291 : vector<16x128xf32>
    %cst_191 = arith.constant 1.702000e+00 : f32
    %293 = vector.broadcast %cst_191 : f32 to vector<16x128xf32>
    %294 = arith.mulf %293, %292 : vector<16x128xf32>
    %295 = arith.negf %294 : vector<16x128xf32>
    %296 = math.exp %295 : vector<16x128xf32>
    %cst_192 = arith.constant 1.000000e+00 : f32
    %297 = vector.broadcast %cst_192 : f32 to vector<16x128xf32>
    %298 = arith.addf %297, %296 : vector<16x128xf32>
    %299 = arith.divf %297, %298 : vector<16x128xf32>
    %300 = arith.mulf %292, %299 : vector<16x128xf32>
    %301 = arith.truncf %300 : vector<16x128xf32> to vector<16x128xbf16>
    %c0_193 = arith.constant 0 : index
    %c0_194 = arith.constant 0 : index
    %c0_195 = arith.constant 0 : index
    %302 = vector.load %arg19[%c0_193, %c0_194, %c0_195] : memref<1x128x32xbf16, #tpu.memory_space<vmem>>, vector<1x128x32xbf16>
    %303 = vector.shape_cast %302 : vector<1x128x32xbf16> to vector<128x32xbf16>
    %cst_196 = arith.constant dense<0.000000e+00> : vector<16x32xf32>
    %304 = tpu.matmul %301, %303, %cst_196 {dimension_numbers = #tpu.dot_dimension_numbers<[1], [0], [0], [1], [0, 0, 1, 1], [], []>} : vector<16x128xbf16>, vector<128x32xbf16>, vector<16x32xf32> -> vector<16x32xf32>
    %305 = arith.addf %257, %304 : vector<16x32xf32>
    %c0_197 = arith.constant 0 : index
    %c0_198 = arith.constant 0 : index
    %c0_199 = arith.constant 0 : index
    %306 = vector.load %arg20[%c0_197, %c0_198, %c0_199] : memref<1x1x32xbf16, #tpu.memory_space<vmem>>, vector<1x1x32xbf16>
    %307 = vector.shape_cast %306 : vector<1x1x32xbf16> to vector<1x32xbf16>
    %308 = arith.extf %307 : vector<1x32xbf16> to vector<1x32xf32>
    %309 = vector.broadcast %308 : vector<1x32xf32> to vector<16x32xf32>
    %310 = arith.addf %305, %309 : vector<16x32xf32>
    %c0_200 = arith.constant 0 : index
    %c0_201 = arith.constant 0 : index
    %311 = vector.load %arg22[%c0_200, %c0_201] : memref<16x32xf32, #tpu.memory_space<vmem>>, vector<16x32xf32>
    tpu.vector_store %arg22[%c0_200, %c0_201], %310 {strides = array<i32>} : memref<16x32xf32, #tpu.memory_space<vmem>>, vector<16x32xf32>,
    %c1_i32 = arith.constant 1 : i32
    %312 = arith.cmpi eq, %arg1, %c1_i32 : i32
    %313 = arith.extui %312 : i1 to i32
    %c0_i32_202 = arith.constant 0 : i32
    %314 = arith.cmpi ne, %313, %c0_i32_202 : i32
    scf.if %314 {
      %c0_i32_203 = arith.constant 0 : i32
      %315 = arith.addi %1, %c0_i32_203 : i32
      %316 = arith.index_cast %315 : i32 to index
      %c0_204 = arith.constant 0 : index
      %317 = vector.load %arg22[%316, %c0_204] : memref<16x32xf32, #tpu.memory_space<vmem>>, vector<1x32xf32>
      %c1_i32_205 = arith.constant 1 : i32
      %318 = arith.addi %1, %c1_i32_205 : i32
      %319 = arith.index_cast %318 : i32 to index
      %c0_206 = arith.constant 0 : index
      %320 = vector.load %arg22[%319, %c0_206] : memref<16x32xf32, #tpu.memory_space<vmem>>, vector<1x32xf32>
      %321 = tpu.concatenate %317, %320 in 0 : vector<1x32xf32>, vector<1x32xf32> -> vector<2x32xf32>
      %c0_207 = arith.constant 0 : index
      %c0_208 = arith.constant 0 : index
      %c0_209 = arith.constant 0 : index
      %322 = vector.load %arg21[%c0_207, %c0_208, %c0_209] : memref<1x2x32xf32, #tpu.memory_space<vmem>>, vector<1x2x32xf32>
      %323 = vector.shape_cast %322 : vector<1x2x32xf32> to vector<2x32xf32>
      %324 = vector.shape_cast %321 : vector<2x32xf32> to vector<1x2x32xf32>
      tpu.vector_store %arg21[%c0_207, %c0_208, %c0_209], %324 {strides = array<i32>} : memref<1x2x32xf32, #tpu.memory_space<vmem>>, vector<1x2x32xf32>,
    } else {
    }
    return
  }
  func.func @transform_0(%arg0: i32, %arg1: i32, %arg2: memref<3xi32, #tpu.memory_space<smem>>) -> (i32, i32, i32) {
    %c0_i32 = arith.constant 0 : i32
    %c0_i32_0 = arith.constant 0 : i32
    %c0_i32_1 = arith.constant 0 : i32
    return %arg0, %c0_i32, %c0_i32_0 : i32, i32, i32
  }
  func.func @transform_1(%arg0: i32, %arg1: i32, %arg2: memref<3xi32, #tpu.memory_space<smem>>) -> (i32, i32) {
    %c0_i32 = arith.constant 0 : i32
    %c0_i32_0 = arith.constant 0 : i32
    %c0_i32_1 = arith.constant 0 : i32
    return %c0_i32, %c0_i32_0 : i32, i32
  }
  func.func @transform_2(%arg0: i32, %arg1: i32, %arg2: memref<3xi32, #tpu.memory_space<smem>>) -> (i32, i32, i32) {
    %c0_i32 = arith.constant 0 : i32
    %c0_i32_0 = arith.constant 0 : i32
    %c0_i32_1 = arith.constant 0 : i32
    return %arg1, %c0_i32, %c0_i32_0 : i32, i32, i32
  }
  func.func @transform_3(%arg0: i32, %arg1: i32, %arg2: memref<3xi32, #tpu.memory_space<smem>>) -> (i32, i32, i32) {
    %c0_i32 = arith.constant 0 : i32
    %c0_i32_0 = arith.constant 0 : i32
    %c0_i32_1 = arith.constant 0 : i32
    return %arg1, %c0_i32, %c0_i32_0 : i32, i32, i32
  }
  func.func @transform_4(%arg0: i32, %arg1: i32, %arg2: memref<3xi32, #tpu.memory_space<smem>>) -> (i32, i32, i32, i32) {
    %c0_i32 = arith.constant 0 : i32
    %c0_i32_0 = arith.constant 0 : i32
    %c0_i32_1 = arith.constant 0 : i32
    %c0_i32_2 = arith.constant 0 : i32
    return %arg1, %c0_i32, %c0_i32_0, %c0_i32_1 : i32, i32, i32, i32
  }
  func.func @transform_5(%arg0: i32, %arg1: i32, %arg2: memref<3xi32, #tpu.memory_space<smem>>) -> (i32, i32, i32, i32) {
    %c0_i32 = arith.constant 0 : i32
    %c0_i32_0 = arith.constant 0 : i32
    %c0_i32_1 = arith.constant 0 : i32
    %c0_i32_2 = arith.constant 0 : i32
    return %arg1, %c0_i32, %c0_i32_0, %c0_i32_1 : i32, i32, i32, i32
  }
  func.func @transform_6(%arg0: i32, %arg1: i32, %arg2: memref<3xi32, #tpu.memory_space<smem>>) -> (i32, i32, i32, i32) {
    %c0_i32 = arith.constant 0 : i32
    %c0_i32_0 = arith.constant 0 : i32
    %c0_i32_1 = arith.constant 0 : i32
    %c0_i32_2 = arith.constant 0 : i32
    return %arg1, %c0_i32, %c0_i32_0, %c0_i32_1 : i32, i32, i32, i32
  }
  func.func @transform_7(%arg0: i32, %arg1: i32, %arg2: memref<3xi32, #tpu.memory_space<smem>>) -> (i32, i32, i32, i32) {
    %c0_i32 = arith.constant 0 : i32
    %c0_i32_0 = arith.constant 0 : i32
    %c0_i32_1 = arith.constant 0 : i32
    %c0_i32_2 = arith.constant 0 : i32
    return %arg1, %c0_i32, %c0_i32_0, %c0_i32_1 : i32, i32, i32, i32
  }
  func.func @transform_8(%arg0: i32, %arg1: i32, %arg2: memref<3xi32, #tpu.memory_space<smem>>) -> (i32, i32, i32, i32) {
    %c0_i32 = arith.constant 0 : i32
    %c0_i32_0 = arith.constant 0 : i32
    %c0_i32_1 = arith.constant 0 : i32
    %c0_i32_2 = arith.constant 0 : i32
    return %arg1, %c0_i32, %c0_i32_0, %c0_i32_1 : i32, i32, i32, i32
  }
  func.func @transform_9(%arg0: i32, %arg1: i32, %arg2: memref<3xi32, #tpu.memory_space<smem>>) -> (i32, i32, i32, i32) {
    %c0_i32 = arith.constant 0 : i32
    %c0_i32_0 = arith.constant 0 : i32
    %c0_i32_1 = arith.constant 0 : i32
    %c0_i32_2 = arith.constant 0 : i32
    return %arg1, %c0_i32, %c0_i32_0, %c0_i32_1 : i32, i32, i32, i32
  }
  func.func @transform_10(%arg0: i32, %arg1: i32, %arg2: memref<3xi32, #tpu.memory_space<smem>>) -> (i32, i32, i32, i32) {
    %c0_i32 = arith.constant 0 : i32
    %c0_i32_0 = arith.constant 0 : i32
    %c0_i32_1 = arith.constant 0 : i32
    %c0_i32_2 = arith.constant 0 : i32
    return %arg1, %c0_i32, %c0_i32_0, %c0_i32_1 : i32, i32, i32, i32
  }
  func.func @transform_11(%arg0: i32, %arg1: i32, %arg2: memref<3xi32, #tpu.memory_space<smem>>) -> (i32, i32, i32) {
    %c0_i32 = arith.constant 0 : i32
    %c0_i32_0 = arith.constant 0 : i32
    %c0_i32_1 = arith.constant 0 : i32
    return %arg1, %c0_i32, %c0_i32_0 : i32, i32, i32
  }
  func.func @transform_12(%arg0: i32, %arg1: i32, %arg2: memref<3xi32, #tpu.memory_space<smem>>) -> (i32, i32, i32) {
    %c0_i32 = arith.constant 0 : i32
    %c0_i32_0 = arith.constant 0 : i32
    %c0_i32_1 = arith.constant 0 : i32
    return %arg1, %c0_i32, %c0_i32_0 : i32, i32, i32
  }
  func.func @transform_13(%arg0: i32, %arg1: i32, %arg2: memref<3xi32, #tpu.memory_space<smem>>) -> (i32, i32, i32) {
    %c0_i32 = arith.constant 0 : i32
    %c0_i32_0 = arith.constant 0 : i32
    %c0_i32_1 = arith.constant 0 : i32
    return %arg1, %c0_i32, %c0_i32_0 : i32, i32, i32
  }
  func.func @transform_14(%arg0: i32, %arg1: i32, %arg2: memref<3xi32, #tpu.memory_space<smem>>) -> (i32, i32, i32) {
    %c0_i32 = arith.constant 0 : i32
    %c0_i32_0 = arith.constant 0 : i32
    %c0_i32_1 = arith.constant 0 : i32
    return %arg1, %c0_i32, %c0_i32_0 : i32, i32, i32
  }
  func.func @transform_15(%arg0: i32, %arg1: i32, %arg2: memref<3xi32, #tpu.memory_space<smem>>) -> (i32, i32, i32) {
    %c0_i32 = arith.constant 0 : i32
    %c0_i32_0 = arith.constant 0 : i32
    %c0_i32_1 = arith.constant 0 : i32
    return %arg1, %c0_i32, %c0_i32_0 : i32, i32, i32
  }
  func.func @transform_16(%arg0: i32, %arg1: i32, %arg2: memref<3xi32, #tpu.memory_space<smem>>) -> (i32, i32, i32) {
    %c0_i32 = arith.constant 0 : i32
    %c0_i32_0 = arith.constant 0 : i32
    %c0_i32_1 = arith.constant 0 : i32
    return %arg1, %c0_i32, %c0_i32_0 : i32, i32, i32
  }
  func.func @transform_17(%arg0: i32, %arg1: i32, %arg2: memref<3xi32, #tpu.memory_space<smem>>) -> (i32, i32, i32) {
    %c0_i32 = arith.constant 0 : i32
    %c0_i32_0 = arith.constant 0 : i32
    %c0_i32_1 = arith.constant 0 : i32
    return %arg1, %c0_i32, %c0_i32_0 : i32, i32, i32
  }
  func.func @transform_18(%arg0: i32, %arg1: i32, %arg2: memref<3xi32, #tpu.memory_space<smem>>) -> (i32, i32, i32) {
    %c0_i32 = arith.constant 0 : i32
    %c0_i32_0 = arith.constant 0 : i32
    %c0_i32_1 = arith.constant 0 : i32
    return %arg0, %c0_i32, %c0_i32_0 : i32, i32, i32
  }
}

module attributes {stable_mosaic.version = 11 : i64} {
  func.func @_logits_kernel(%arg0: i32, %arg1: memref<2x2x32xf32, #tpu.memory_space<vmem>>, %arg2: memref<3x2x32xf32, #tpu.memory_space<vmem>>, %arg3: memref<1x1xf32, #tpu.memory_space<vmem>>, %arg4: memref<2x3xf32, #tpu.memory_space<vmem>>) attributes {dimension_semantics = [#tpu.dimension_semantics<arbitrary>], iteration_bounds = array<i64: 1>, scalar_prefetch = 0 : i64, scratch_operands = 0 : i64, tpu.core_type = #tpu.core_type<tc>, window_params = [{pipeline_mode = #tpu.pipeline_mode<synchronous>, transform_indices = @transform_0, window_bounds = array<i64: 2, 2, 32>}, {pipeline_mode = #tpu.pipeline_mode<synchronous>, transform_indices = @transform_1, window_bounds = array<i64: 3, 2, 32>}, {pipeline_mode = #tpu.pipeline_mode<synchronous>, transform_indices = @transform_2, window_bounds = array<i64: 1, 1>}, {pipeline_mode = #tpu.pipeline_mode<synchronous>, transform_indices = @transform_3, window_bounds = array<i64: 2, 3>}]} {
    %c0 = arith.constant 0 : index
    %c0_0 = arith.constant 0 : index
    %c0_1 = arith.constant 0 : index
    %0 = vector.load %arg1[%c0, %c0_0, %c0_1] : memref<2x2x32xf32, #tpu.memory_space<vmem>>, vector<2x2x32xf32>
    %c0_2 = arith.constant 0 : index
    %c0_3 = arith.constant 0 : index
    %c0_4 = arith.constant 0 : index
    %1 = vector.load %arg2[%c0_2, %c0_3, %c0_4] : memref<3x2x32xf32, #tpu.memory_space<vmem>>, vector<3x2x32xf32>
    %2 = arith.mulf %0, %0 : vector<2x2x32xf32>
    %cst = arith.constant dense<0.000000e+00> : vector<2x2xf32>
    %3 = vector.multi_reduction <add>, %2, %cst [2] : vector<2x2x32xf32> to vector<2x2xf32>
    %4 = vector.shape_cast %3 : vector<2x2xf32> to vector<2x2x1xf32>
    %5 = math.rsqrt %4 : vector<2x2x1xf32>
    %6 = vector.broadcast %5 : vector<2x2x1xf32> to vector<2x2x32xf32>
    %7 = arith.mulf %0, %6 : vector<2x2x32xf32>
    %8 = arith.mulf %1, %1 : vector<3x2x32xf32>
    %cst_5 = arith.constant dense<0.000000e+00> : vector<3x2xf32>
    %9 = vector.multi_reduction <add>, %8, %cst_5 [2] : vector<3x2x32xf32> to vector<3x2xf32>
    %10 = vector.shape_cast %9 : vector<3x2xf32> to vector<3x2x1xf32>
    %11 = math.rsqrt %10 : vector<3x2x1xf32>
    %12 = vector.broadcast %11 : vector<3x2x1xf32> to vector<3x2x32xf32>
    %13 = arith.mulf %1, %12 : vector<3x2x32xf32>
    %c0_6 = arith.constant 0 : index
    %c0_7 = arith.constant 0 : index
    %14 = vector.load %arg3[%c0_6, %c0_7] : memref<1x1xf32, #tpu.memory_space<vmem>>, vector<1x1xf32>
    %15 = vector.extract %14[0, 0] : f32 from vector<1x1xf32>
    %cst_8 = arith.constant 0.000000e+00 : f32
    %16 = vector.broadcast %cst_8 : f32 to vector<2x3xf32>
    %17 = vector.extract_strided_slice %7 {offsets = [0, 0, 0], sizes = [2, 1, 32], strides = [1, 1, 1]} : vector<2x2x32xf32> to vector<2x1x32xf32>
    %18 = vector.shape_cast %17 : vector<2x1x32xf32> to vector<2x32xf32>
    %19 = vector.extract_strided_slice %13 {offsets = [0, 0, 0], sizes = [3, 1, 32], strides = [1, 1, 1]} : vector<3x2x32xf32> to vector<3x1x32xf32>
    %20 = vector.shape_cast %19 : vector<3x1x32xf32> to vector<3x32xf32>
    %cst_9 = arith.constant dense<0.000000e+00> : vector<2x3xf32>
    %21 = tpu.matmul %18, %20, %cst_9 {dimension_numbers = #tpu.dot_dimension_numbers<[1], [1], [0], [0], [0, 0, 1, 0], [], []>} : vector<2x32xf32>, vector<3x32xf32>, vector<2x3xf32> -> vector<2x3xf32>
    %22 = arith.addf %16, %21 : vector<2x3xf32>
    %23 = vector.extract_strided_slice %7 {offsets = [0, 1, 0], sizes = [2, 1, 32], strides = [1, 1, 1]} : vector<2x2x32xf32> to vector<2x1x32xf32>
    %24 = vector.shape_cast %23 : vector<2x1x32xf32> to vector<2x32xf32>
    %25 = vector.extract_strided_slice %13 {offsets = [0, 1, 0], sizes = [3, 1, 32], strides = [1, 1, 1]} : vector<3x2x32xf32> to vector<3x1x32xf32>
    %26 = vector.shape_cast %25 : vector<3x1x32xf32> to vector<3x32xf32>
    %cst_10 = arith.constant dense<0.000000e+00> : vector<2x3xf32>
    %27 = tpu.matmul %24, %26, %cst_10 {dimension_numbers = #tpu.dot_dimension_numbers<[1], [1], [0], [0], [0, 0, 1, 0], [], []>} : vector<2x32xf32>, vector<3x32xf32>, vector<2x3xf32> -> vector<2x3xf32>
    %28 = arith.addf %22, %27 : vector<2x3xf32>
    %29 = vector.broadcast %15 : f32 to vector<2x3xf32>
    %30 = arith.mulf %29, %28 : vector<2x3xf32>
    %cst_11 = arith.constant 5.000000e-01 : f32
    %31 = vector.broadcast %cst_11 : f32 to vector<2x3xf32>
    %32 = arith.mulf %30, %31 : vector<2x3xf32>
    %c0_12 = arith.constant 0 : index
    %c0_13 = arith.constant 0 : index
    %33 = vector.load %arg4[%c0_12, %c0_13] : memref<2x3xf32, #tpu.memory_space<vmem>>, vector<2x3xf32>
    tpu.vector_store %arg4[%c0_12, %c0_13], %32 {strides = array<i32>} : memref<2x3xf32, #tpu.memory_space<vmem>>, vector<2x3xf32>,
    return
  }
  func.func @transform_0(%arg0: i32) -> (i32, i32, i32) {
    %c0_i32 = arith.constant 0 : i32
    %c0_i32_0 = arith.constant 0 : i32
    %c0_i32_1 = arith.constant 0 : i32
    %c0_i32_2 = arith.constant 0 : i32
    return %c0_i32, %c0_i32_0, %c0_i32_1 : i32, i32, i32
  }
  func.func @transform_1(%arg0: i32) -> (i32, i32, i32) {
    %c0_i32 = arith.constant 0 : i32
    %c0_i32_0 = arith.constant 0 : i32
    %c0_i32_1 = arith.constant 0 : i32
    %c0_i32_2 = arith.constant 0 : i32
    return %c0_i32, %c0_i32_0, %c0_i32_1 : i32, i32, i32
  }
  func.func @transform_2(%arg0: i32) -> (i32, i32) {
    %c0_i32 = arith.constant 0 : i32
    %c0_i32_0 = arith.constant 0 : i32
    %c0_i32_1 = arith.constant 0 : i32
    return %c0_i32, %c0_i32_0 : i32, i32
  }
  func.func @transform_3(%arg0: i32) -> (i32, i32) {
    %c0_i32 = arith.constant 0 : i32
    %c0_i32_0 = arith.constant 0 : i32
    %c0_i32_1 = arith.constant 0 : i32
    return %c0_i32, %c0_i32_0 : i32, i32
  }
}

</mosaic_0001>

<bundles_post_ra>
// kernel: custom_clip_forward.8
= control target key start
LH: loop header
LB: loop body
LE: loop exit
PB: predicated region body
PF: predicated region fallthrough
CT: control target
= control target key end

     0   :  { %vm50_vm0 = vcmask 392192   ;;  %vm122_vm1 = vcmask 519168   ;;  %s208_s1 = inlined_call_operand.vmem [shape: bf16[48,64], index: 1, kind: input, shape index: {}]   ;;  %s209_s0 = inlined_call_operand.vmem [shape: bf16[32,48], index: 0, kind: input, shape index: {}]   ;;  %s210_s2 = inlined_call_operand.vmem [shape: bf16[32,64], index: 2, kind: output, shape index: {}]  }
   0x1   :  { %v161_v0 = vld [vmem:[%s208_s1] sm:$0xff]   ;;  %v162_v1 = vld [vmem:[%s208_s1 + $0x8] sm:$0xff]   ;;  %v163_v3 = vld [vmem:[%s208_s1 + $0x10] sm:$0xff]  }
   0x2   :  { %151 = vmatprep.subr.bf16.mxu0 %v161_v0  ;;  %v164_v2 = vld [vmem:[%s209_s0] sm:$0xff]   ;;  %v165_v4 = vld [vmem:[%s209_s0 + $0x8] sm:$0xff]  }
   0x3   :  { %152 = vmatpush3.bf16.msra.mxu0 %v161_v0  ;;  %157 = vmatprep.mubr.msk.bf16.mxu0 %vm50_vm0, %v164_v2 }
   0x4   :  { %153 = vmatprep.subr.bf16.mxu0 %v162_v1 }
   0x7   :  { %154 = vmatpush3.bf16.msra.mxu0 %v162_v1 }
   0x8   :  { %155 = vmatprep.subr.bf16.mxu0 %v163_v3 }
   0xb   :  { %156 = vmatpush3.bf16.msra.mxu0 %v163_v3 }
   0xe   :  { %158 = vmatmul.mubr.msk.bf16.vlgmr.msra.gmra.mrb[0].mxu0 %vm50_vm0, %v165_v4 }
  0xe1   :  { %v159_v5 = vpop.f32.mrb[0].mxu0 }
  0xe2   :  { %v144_v6 = vpack.c.bf16 %v159_v5, %v159_v5  ;;  %v91_v7 = vpop.f32.mrb[1].mxu0 }
  0xe3   :  { %v142_v8 = vpack.c.bf16 %v91_v7, %v91_v7  ;;  %v160_v9 = vpop.f32.mrb[2].mxu0 }
  0xe4   :  { %125 = vst.msk [vmem:[%s210_s2 + $0x8] sm:$0xf] %vm122_vm1, %v144_v6  ;;  %v145_v10 = vpack.c.bf16 %v160_v9, %v160_v9  ;;  %v94_v11 = vpop.f32.mrb[3].mxu0 }
  0xe5   :  { %123 = vst.msk [vmem:[%s210_s2] sm:$0xf] %vm122_vm1, %v142_v8  ;;  %v143_v12 = vpack.c.bf16 %v94_v11, %v94_v11 }
  0xe6   :  { %126 = vst.msk [vmem:[%s210_s2 + $0xc] sm:$0xf] %vm122_vm1, %v145_v10 }
  0xe7   :  { %124 = vst.msk [vmem:[%s210_s2 + $0x4] sm:$0xf] %vm122_vm1, %v143_v12 }

// kernel: custom_clip_forward.10
= control target key start
LH: loop header
LB: loop body
LE: loop exit
PB: predicated region body
PF: predicated region fallthrough
CT: control target
= control target key end

     0   :  { %vm22_vm0 = vcmask 519168   ;;  %s262_s0 = inlined_call_operand.vmem [shape: f32[4,64], index: 0, kind: input, shape index: {}]   ;;  %s263_s1 = inlined_call_operand.vmem [shape: f32[1,64], index: 1, kind: input, shape index: {}]   ;;  %s264_s2 = inlined_call_operand.vmem [shape: f32[1,64], index: 2, kind: input, shape index: {}]   ;;  %s265_s3 = inlined_call_operand.vmem [shape: bf16[64,32], index: 3, kind: input, shape index: {}]   ;;  %s266_s4 = inlined_call_operand.hbm [shape: f32[4,32], index: 4, kind: output, shape index: {}]  }
   0x1   :  { %v19_v0 = vld [vmem:[%s262_s0] sm:$0xf] }
   0x2   :  { %v23_v1 = vsel %vm22_vm0, %v19_v0, 0.0 }
   0x3   :  { %24 = vadd.xlane.f32.xlu0 %v23_v1 }
   0x4   :  { %9 = vsyncpa [#allocation3], 0  ;;  %v171_v7 = vld [vmem:[%s265_s3] sm:$0xff]   ;;  %v201_v8 = vmov 0.0   ;;  %v172_v9 = vld [vmem:[%s265_s3 + $0x8] sm:$0xff]   ;;  %vm202_vm1 = vmmov 0  }
   0x5   :  { %156 = vmatprep.subr.bf16.mxu0 %v201_v8  ;;  %v173_v10 = vld [vmem:[%s265_s3 + $0x10] sm:$0xff]   ;;  %v174_v11 = vld [vmem:[%s265_s3 + $0x18] sm:$0xff]   ;;  %164 = vmatprep.mubr.msk.bf16.mxu0 %vm202_vm1, %v201_v8  ;;  %v144_v16 = vld [vmem:[%s263_s1] ss:$0 sm:$0xff]  ;;  %vm84_vm2 = vcmask 523264   ;;  %s203_s3 = smov [#allocation2]  }
   0x6   :  { %157 = vmatpush3.bf16.msra.mxu0 %v171_v7  ;;  %v145_v18 = vld [vmem:[%s264_s2] ss:$0 sm:$0xff]  ;;  %s136_s28 = sshll.u32 %s203_s3, 4  ;;  %vm128_vm3 = vcmask 257024   ;;  %s137_s28 = int_to_ptr.vmem [resolvable:$true] %s136_s28 }
   0x7   :  { %158 = vmatprep.subr.bf16.mxu0 %v201_v8  ;;  %s177_s29 = scalar_lea.vmem %s137_s28, 64  ;;  %p182_p1 = scmp.lt.s32.totalorder %s137_s28, %s137_s28 }
   0x8   :  { %p178_p0 = scmp.ne.s32.totalorder %s137_s28, %s177_s29  ;;  %p183_p2 = scmp.lt.s32.totalorder %s177_s29, %s177_s29 }
   0xa   :  { %159 = vmatpush3.bf16.msra.mxu0 %v172_v9  ;;  %p184_p3 = por %p183_p2, %p182_p1 }
   0xb   :  { %160 = vmatprep.subr.bf16.mxu0 %v201_v8 }
   0xc   :  { %p185_p4 = pnand %p184_p3, %p178_p0 }
   0xe   :  { %161 = vmatpush3.bf16.msra.mxu0 %v173_v10 }
   0xf   :  { %162 = vmatprep.subr.bf16.mxu0 %v201_v8 }
  0x12   :  { %163 = vmatpush3.bf16.msra.mxu0 %v174_v11 }
  0x90   :  { %v25_v2 = vpop.xlane.xlu0 %24 }
  0x91   :  { %v27_v3 = vmul.f32 0.015625, %v25_v2 }
  0x93   :  { %v28_v4 = vsub.f32 %v19_v0, %v27_v3 }
  0x95   :  { %v29_v5 = vmul.f32 %v28_v4, %v28_v4 }
  0x97   :  { %v30_v6 = vsel %vm22_vm0, %v29_v5, 0.0 }
  0x98   :  { %31 = vadd.xlane.f32.xlu0 %v30_v6 }
 0x125   :  { %v32_v12 = vpop.xlane.xlu0 %31 }
 0x126   :  { %v33_v13 = vmul.f32 0.015625, %v32_v12 }
 0x128   :  { %v34_v14 = vadd.f32 1e-05, %v33_v13 }
 0x12a   :  { %175 = vrsqrt.f32 %v34_v14 }
 0x134   :  { %v176_v15 = vpop.eup %175 }
 0x135   :  { %v36_v17 = vmul.f32 %v176_v15, %v28_v4 }
 0x137   :  { %v43_v19 = vmul.f32 %v144_v16, %v36_v17 }
 0x139   :  { %v50_v20 = vadd.f32 %v145_v18, %v43_v19 }
 0x13b   :  { %v51_v21 = vpack.c.bf16 %v50_v20, %v50_v20 }
 0x13d   :  { %165 = vmatmul.mubr.msk.bf16.vlgmr.msra.gmra.mrb[0].mxu0 %vm84_vm2, %v51_v21 }
 0x210   :  { %v122_v22 = vpop.f32.mrb[0].mxu0 }
 0x211   :  { %129 = vst.msk [vmem:[#allocation2] sm:$0xf] %vm128_vm3, %v122_v22  ;;  %v166_v23 = vpop.f32.mrb[1].mxu0 }
 0x212   :  { %v125_v24 = vpop.f32.mrb[2].mxu0 }
 0x213   :  { %188 = shalt.err (!%p185_p4)
}
 0x214   :  { %s189_s30 = scalar_lea.hbm %s266_s4, 64 }
 0x215   :  { %p190_p5 = scmp.ne.s32.totalorder %s266_s4, %s189_s30  ;;  %p193_p6 = scmp.lt.u32.totalorder %s189_s30, %s266_s4 }
 0x217   :  { %p195_p7 = pnand %p193_p6, %p190_p5 }
 0x219   :  { %198 = shalt.err (!%p195_p7)
}
 0x21a   :  { %139 = dma.vmem_to_hbm [thread:$0]  %s137_s28, 64, %s266_s4, [#allocation3]   ;;  %v167_v25 = vpop.f32.mrb[3].mxu0 }
 0x21b   :  { %199 = dma.done.wait [#allocation3], 64  }
 0x21c   :  { %200 = vsyncadd [#allocation3], 4294967232 }
 0x21d   :  { %143 = vsyncpa [#allocation3], 1 }

// kernel: custom_clip_forward.7
= control target key start
LH: loop header
LB: loop body
LE: loop exit
PB: predicated region body
PF: predicated region fallthrough
CT: control target
= control target key end

     0   :  { %9 = vsyncpa [#allocation3], 0  ;;  %s180_s15 = smov [#allocation2]   ;;  %s237_s0 = inlined_call_operand.vmem [shape: f32[6,32], index: 0, kind: input, shape index: {}]   ;;  %s238_s1 = inlined_call_operand.vmem [shape: f32[1,32], index: 1, kind: input, shape index: {}]   ;;  %s239_s2 = inlined_call_operand.vmem [shape: f32[1,32], index: 2, kind: input, shape index: {}]   ;;  %s240_s3 = inlined_call_operand.hbm [shape: bf16[32,32], index: 3, kind: input, shape index: {}]   ;;  %s241_s4 = inlined_call_operand.vmem [shape: f32[6,32], index: 4, kind: output, shape index: {}]  }
   0x1   :  { %s21_s16 = sshll.u32 %s180_s15, 4  ;;  %s156_s19 = scalar_lea.hbm %s240_s3, 256  ;;  %s22_s16 = int_to_ptr.vmem [resolvable:$true] %s21_s16 }
   0x2   :  { %p157_p0 = scmp.ne.s32.totalorder %s240_s3, %s156_s19  ;;  %p160_p1 = scmp.lt.u32.totalorder %s156_s19, %s240_s3 }
   0x4   :  { %p162_p2 = pnand %p160_p1, %p157_p0 }
   0x6   :  { %165 = shalt.err (!%p162_p2)
}
   0x7   :  { %s166_s24 = scalar_lea.vmem %s22_s16, 256  ;;  %p171_p4 = scmp.lt.s32.totalorder %s22_s16, %s22_s16 }
   0x8   :  { %p167_p3 = scmp.ne.s32.totalorder %s22_s16, %s166_s24  ;;  %p172_p5 = scmp.lt.s32.totalorder %s166_s24, %s166_s24 }
   0xa   :  { %p173_p6 = por %p172_p5, %p171_p4 }
   0xc   :  { %p174_p7 = pnand %p173_p6, %p167_p3 }
   0xe   :  { %177 = shalt.err (!%p174_p7)
}
   0xf   :  { %s181_s25 = smov 64   ;;  %s182_s26 = smov 4  }
  0x10   :  { %27 = dma.hbm_to_vmem [thread:$0]  %s240_s3, 256, %s22_s16, [#allocation3], %s181_s25, %s181_s25, %s182_s26  }
  0x11   :  { %178 = dma.done.wait [#allocation3], 256  }
  0x12   :  { %179 = vsyncadd [#allocation3], 4294967040  ;;  %vm35_vm0 = vcmask 259072   ;;  %v32_v0 = vld [vmem:[%s237_s0] sm:$0x3f]  ;;  %v183_v8 = vmov 0.0  }
  0x13   :  { %v36_v1 = vsel %vm35_vm0, %v32_v0, 0.0  ;;  %v152_v7 = vld [vmem:[#allocation2] sm:$0xff]   ;;  %139 = vmatprep.subr.bf16.mxu0 %v183_v8  ;;  %v153_v9 = vld [vmem:[#allocation2 + $0x8] sm:$0xff]   ;;  %vm184_vm1 = vmmov 0   ;;  %vm81_vm2 = vcmask 261120  }
  0x14   :  { %37 = vadd.xlane.f32.xlu0 %v36_v1  ;;  %140 = vmatpush3.bf16.msra.mxu0 %v152_v7  ;;  %v131_v14 = vld [vmem:[%s238_s1] ss:$0 sm:$0xff] }
  0x15   :  { %143 = vmatprep.mubr.msk.bf16.mxu0 %vm184_vm1, %v183_v8  ;;  %141 = vmatprep.subr.bf16.mxu0 %v183_v8  ;;  %v132_v16 = vld [vmem:[%s239_s2] ss:$0 sm:$0xff] }
  0x18   :  { %142 = vmatpush3.bf16.msra.mxu0 %v153_v9 }
  0xa1   :  { %v38_v2 = vpop.xlane.xlu0 %37 }
  0xa2   :  { %v40_v3 = vmul.f32 0.03125, %v38_v2 }
  0xa4   :  { %v41_v4 = vsub.f32 %v32_v0, %v40_v3 }
  0xa6   :  { %v42_v5 = vmul.f32 %v41_v4, %v41_v4 }
  0xa8   :  { %v43_v6 = vsel %vm35_vm0, %v42_v5, 0.0 }
  0xa9   :  { %44 = vadd.xlane.f32.xlu0 %v43_v6 }
 0x136   :  { %v45_v10 = vpop.xlane.xlu0 %44 }
 0x137   :  { %v46_v11 = vmul.f32 0.03125, %v45_v10 }
 0x139   :  { %v47_v12 = vadd.f32 1e-05, %v46_v11 }
 0x13b   :  { %154 = vrsqrt.f32 %v47_v12 }
 0x145   :  { %v155_v13 = vpop.eup %154 }
 0x146   :  { %v49_v15 = vmul.f32 %v155_v13, %v41_v4 }
 0x148   :  { %v56_v17 = vmul.f32 %v131_v14, %v49_v15 }
 0x14a   :  { %v63_v18 = vadd.f32 %v132_v16, %v56_v17 }
 0x14c   :  { %v64_v19 = vpack.c.bf16 %v63_v18, %v63_v18 }
 0x14e   :  { %144 = vmatmul.mubr.msk.bf16.vlgmr.msra.gmra.mrb[0].mxu0 %vm81_vm2, %v64_v19 }
 0x221   :  { %v119_v20 = vpop.f32.mrb[0].mxu0 }
 0x222   :  { %125 = vst.msk [vmem:[%s241_s4] sm:$0x3f] %vm35_vm0, %v119_v20  ;;  %v145_v21 = vpop.f32.mrb[1].mxu0 }
 0x223   :  { %v122_v22 = vpop.f32.mrb[2].mxu0 }
 0x224   :  { %v146_v23 = vpop.f32.mrb[3].mxu0 }
 0x225   :  { %130 = vsyncpa [#allocation3], 1 }

// kernel: custom_clip_forward.11
= control target key start
LH: loop header
LB: loop body
LE: loop exit
PB: predicated region body
PF: predicated region fallthrough
CT: control target
= control target key end

     0   :  { %s366_s0 = inlined_call_operand.vmem [shape: f32[2,2,32], index: 0, kind: input, shape index: {}]   ;;  %s367_s1 = inlined_call_operand.vmem [shape: f32[3,2,32], index: 1, kind: input, shape index: {}]   ;;  %s368_s2 = inlined_call_operand.<no memory space> [shape: f32[1,1], index: 2, kind: input, shape index: {}]   ;;  %s369_s3 = inlined_call_operand.hbm [shape: f32[2,3], index: 3, kind: output, shape index: {}]  }
   0x1   :  { %v8_v0 = vstv %s368_s2 }
   0x2   :  { %9 = vst [vmem:[#allocation2] sm:$0x1] %v8_v0 }
   0x3   :  { %v19_v1 = vld [vmem:[%s367_s1] sm:$0x3]  ;;  %vm24_vm0 = vcmask 254976   ;;  %v21_v2 = vld [vmem:[%s367_s1 + $0x4] sm:$0x3] }
   0x4   :  { %v35_v3 = vmul.f32 %v19_v1, %v19_v1  ;;  %v37_v4 = vmul.f32 %v21_v2, %v21_v2  ;;  %v20_v5 = vld [vmem:[%s367_s1 + $0x2] sm:$0x3]  ;;  %v17_v6 = vld [vmem:[%s366_s0] sm:$0x3] }
   0x5   :  { %v36_v7 = vmul.f32 %v20_v5, %v20_v5  ;;  %v22_v8 = vmul.f32 %v17_v6, %v17_v6  ;;  %v18_v9 = vld [vmem:[%s366_s0 + $0x2] sm:$0x3] }
   0x6   :  { %10 = vsyncpa [#allocation4], 0  ;;  %v38_v10 = vsel %vm24_vm0, %v35_v3, 0.0  ;;  %v44_v11 = vsel %vm24_vm0, %v37_v4, 0.0  ;;  %v23_v14 = vmul.f32 %v18_v9, %v18_v9  ;;  %v300_v16 = vmov 0.0   ;;  %s302_s1 = smov [#allocation3]  }
   0x7   :  { %39 = vadd.xlane.f32.xlu0 %v38_v10  ;;  %45 = vadd.xlane.f32.xlu1 %v44_v11  ;;  %v41_v12 = vsel %vm24_vm0, %v36_v7, 0.0  ;;  %v25_v13 = vsel %vm24_vm0, %v22_v8, 0.0  ;;  %vm301_vm1 = vmmov 0   ;;  %vm58_vm2 = vcmask 1041409   ;;  %s234_s23 = sshll.u32 %s302_s1, 4  ;;  %s235_s23 = int_to_ptr.vmem [resolvable:$true] %s234_s23 }
   0x8   :  { %v28_v15 = vsel %vm24_vm0, %v23_v14, 0.0  ;;  %250 = vmatprep.subr.mxu1 %v300_v16  ;;  %255 = vmatprep.subr.mxu0 %v300_v16  ;;  %vm66_vm3 = vcmask 1042434   ;;  %vm68_vm4 = vcmask 261120   ;;  %vm226_vm5 = vcmask 17408   ;;  %s276_s24 = scalar_lea.vmem %s235_s23, 32  ;;  %p281_p1 = scmp.lt.s32.totalorder %s235_s23, %s235_s23 }
   0x9   :  { %252 = vmatprep.mubr.msk.f32.mxu1 %vm301_vm1, %v300_v16  ;;  %257 = vmatprep.mubr.msk.f32.mxu0 %vm301_vm1, %v300_v16  ;;  %v53_v17 = vld [vmem:[#allocation2] sm:$0x1]  ;;  %p277_p0 = scmp.ne.s32.totalorder %s235_s23, %s276_s24  ;;  %p282_p2 = scmp.lt.s32.totalorder %s276_s24, %s276_s24 }
   0xa   :  { %261 = vpush %v53_v17 }
   0xb   :  { %42 = vadd.xlane.f32.xlu0 %v41_v12  ;;  %26 = vadd.xlane.f32.xlu1 %v25_v13  ;;  %p283_p3 = por %p282_p2, %p281_p1 }
   0xd   :  { %p284_p4 = pnand %p283_p3, %p277_p0 }
   0xf   :  { %29 = vadd.xlane.f32.xlu0 %v28_v15 }
  0x3b   :  { %s262_s0 = spop %261 }
  0x3c   :  { %v223_v48 = vstv %s262_s0 }
  0x94   :  { %v40_v18 = vpop.xlane.xlu0 %39  ;;  %v46_v19 = vpop.xlane.xlu1 %45 }
  0x95   :  { %266 = vrsqrt.f32 %v40_v18 }
  0x96   :  { %268 = vrsqrt.f32 %v46_v19 }
  0x98   :  { %v43_v20 = vpop.xlane.xlu0 %42  ;;  %v27_v21 = vpop.xlane.xlu1 %26 }
  0x99   :  { %270 = vrsqrt.f32 %v43_v20 }
  0x9a   :  { %272 = vrsqrt.f32 %v27_v21 }
  0x9c   :  { %v30_v22 = vpop.xlane.xlu0 %29 }
  0x9d   :  { %274 = vrsqrt.f32 %v30_v22 }
  0x9f   :  { %v267_v23 = vpop.eup %266 }
  0xa0   :  { %v269_v24 = vpop.eup %268  ;;  %v50_v25 = vmul.f32 %v267_v23, %v19_v1 }
  0xa1   :  { %v52_v26 = vmul.f32 %v269_v24, %v21_v2 }
  0xa2   :  { %v63_v31 = vrot.slane %v50_v25, 1 }
  0xa3   :  { %v271_v27 = vpop.eup %270  ;;  %v65_v28 = vrot.slane %v52_v26, 7  ;;  %v147_v32 = vrot.slane %v52_v26, 6 }
  0xa4   :  { %v273_v29 = vpop.eup %272  ;;  %v51_v30 = vmul.f32 %v271_v27, %v20_v5 }
  0xa5   :  { %v33_v33 = vmul.f32 %v273_v29, %v17_v6 }
  0xa6   :  { %v64_v34 = vsel %vm58_vm2, %v51_v30, %v63_v31  ;;  %v145_v35 = vrot.slane %v51_v30, 7 }
  0xa7   :  { %v275_v36 = vpop.eup %274  ;;  %v67_v37 = vsel %vm66_vm3, %v65_v28, %v64_v34  ;;  %v57_v38 = vrot.slane %v33_v33, 1 }
  0xa8   :  { %251 = vmatpush3.xpose.msk.msra.mxu1 %vm68_vm4, %v67_v37  ;;  %v146_v39 = vsel %vm58_vm2, %v145_v35, %v50_v25  ;;  %v34_v40 = vmul.f32 %v275_v36, %v18_v9 }
  0xa9   :  { %v148_v41 = vsel %vm66_vm3, %v147_v32, %v146_v39 }
  0xaa   :  { %256 = vmatpush3.xpose.msk.msra.mxu0 %vm68_vm4, %v148_v41  ;;  %v59_v42 = vsel %vm58_vm2, %v34_v40, %v57_v38  ;;  %v143_v43 = vrot.slane %v34_v40, 7 }
  0xab   :  { %253 = vmatmul.mubr.msk.f32.vlgmr.msra.gmra.mrb[0].mxu1 %vm68_vm4, %v59_v42 }
  0xac   :  { %v144_v44 = vsel %vm58_vm2, %v143_v43, %v33_v33 }
  0xad   :  { %258 = vmatmul.mubr.msk.f32.vlgmr.msra.gmra.mrb[0].mxu0 %vm68_vm4, %v144_v44 }
 0x17e   :  { %v139_v45 = vpop.f32.mrb[0].mxu1 }
 0x17f   :  { %v254_v46 = vpop.f32.mrb[1].mxu1 }
 0x180   :  { %v219_v47 = vpop.f32.mrb[0].mxu0 }
 0x181   :  { %v220_v49 = vadd.f32 %v219_v47, %v139_v45  ;;  %v259_v50 = vpop.f32.mrb[1].mxu0 }
 0x183   :  { %v224_v51 = vmul.f32 %v223_v48, %v220_v49 }
 0x185   :  { %v225_v52 = vmul.f32 0.5, %v224_v51 }
 0x187   :  { %227 = vst.msk [vmem:[#allocation3] sm:$0x3] %vm226_vm5, %v225_v52 }
 0x188   :  { %287 = shalt.err (!%p284_p4)
}
 0x189   :  { %s288_s27 = scalar_lea.hbm %s369_s3, 32 }
 0x18a   :  { %p289_p5 = scmp.ne.s32.totalorder %s369_s3, %s288_s27  ;;  %p292_p6 = scmp.lt.u32.totalorder %s288_s27, %s369_s3 }
 0x18c   :  { %p294_p7 = pnand %p292_p6, %p289_p5 }
 0x18e   :  { %297 = shalt.err (!%p294_p7)
}
 0x18f   :  { %237 = dma.vmem_to_hbm [thread:$0]  %s235_s23, 32, %s369_s3, [#allocation4]  }
 0x190   :  { %298 = dma.done.wait [#allocation4], 32  }
 0x191   :  { %299 = vsyncadd [#allocation4], 4294967264 }
 0x192   :  { %241 = vsyncpa [#allocation4], 1 }

// kernel: custom_clip_forward.9
= control target key start
LH: loop header
LB: loop body
LE: loop exit
PB: predicated region body
PF: predicated region fallthrough
CT: control target
= control target key end

     0   :  { %s7422_s0 = inlined_call_operand.hbm [shape: bf16[2,19,64], index: 0, kind: input, shape index: {}]   ;;  %s7423_s1 = inlined_call_operand.hbm [shape: f32[1,64], index: 1, kind: input, shape index: {}]   ;;  %s7424_s2 = inlined_call_operand.hbm [shape: f32[1,64], index: 2, kind: input, shape index: {}]   ;;  %s7425_s3 = inlined_call_operand.hbm [shape: f32[2,1,64], index: 3, kind: input, shape index: {}]   ;;  %s7426_s4 = inlined_call_operand.hbm [shape: f32[2,1,64], index: 4, kind: input, shape index: {}]   ;;  %s7427_s5 = inlined_call_operand.hbm [shape: bf16[2,4,64,16], index: 5, kind: input, shape index: {}]   ;;  %s7428_s6 = inlined_call_operand.hbm [shape: bf16[2,4,64,16], index: 6, kind: input, shape index: {}]   ;;  %s7429_s7 = inlined_call_operand.hbm [shape: bf16[2,4,64,16], index: 7, kind: input, shape index: {}]   ;;  %s7430_s8 = inlined_call_operand.hbm [shape: bf16[2,4,1,16], index: 8, kind: input, shape index: {}]   ;;  %s7431_s9 = inlined_call_operand.hbm [shape: bf16[2,4,1,16], index: 9, kind: input, shape index: {}]   ;;  %s7432_s10 = inlined_call_operand.hbm [shape: bf16[2,4,1,16], index: 10, kind: input, shape index: {}]   ;;  %s7433_s11 = inlined_call_operand.hbm [shape: bf16[2,4,16,64], index: 11, kind: input, shape index: {}]   ;;  %s7434_s12 = inlined_call_operand.hbm [shape: bf16[2,1,64], index: 12, kind: input, shape index: {}]   ;;  %s7435_s13 = inlined_call_operand.hbm [shape: f32[2,1,64], index: 13, kind: input, shape index: {}]   ;;  %s7436_s14 = inlined_call_operand.hbm [shape: f32[2,1,64], index: 14, kind: input, shape index: {}]   ;;  %s7437_s15 = inlined_call_operand.hbm [shape: bf16[2,64,256], index: 15, kind: input, shape index: {}]   ;;  %s7438_s16 = inlined_call_operand.hbm [shape: bf16[2,1,256], index: 16, kind: input, shape index: {}]   ;;  %s7439_s17 = inlined_call_operand.hbm [shape: bf16[2,256,64], index: 17, kind: input, shape index: {}]   ;;  %s7440_s18 = inlined_call_operand.hbm [shape: bf16[2,1,64], index: 18, kind: input, shape index: {}]   ;;  %s7441_s19 = inlined_call_operand.hbm [shape: f32[2,2,64], index: 19, kind: output, shape index: {}]  }
   0x1   :  { %7502 = sst [smem:[#allocation62_spill]] %s7422_s0 }
   0x2   :  { %7503 = sst [smem:[#allocation63_spill]] %s7423_s1 }
   0x3   :  { %7504 = sst [smem:[#allocation64_spill]] %s7424_s2 }
   0x4   :  { %7505 = sst [smem:[#allocation65_spill]] %s7425_s3 }
   0x5   :  { %7506 = sst [smem:[#allocation66_spill]] %s7426_s4 }
   0x6   :  { %7507 = sst [smem:[#allocation67_spill]] %s7427_s5 }
   0x7   :  { %7508 = sst [smem:[#allocation68_spill]] %s7428_s6 }
   0x8   :  { %7509 = sst [smem:[#allocation69_spill]] %s7429_s7 }
   0x9   :  { %7510 = sst [smem:[#allocation70_spill]] %s7430_s8 }
   0xa   :  { %7511 = sst [smem:[#allocation71_spill]] %s7431_s9 }
   0xb   :  { %7512 = sst [smem:[#allocation72_spill]] %s7432_s10 }
   0xc   :  { %7513 = sst [smem:[#allocation73_spill]] %s7433_s11 }
   0xd   :  { %7514 = sst [smem:[#allocation74_spill]] %s7434_s12 }
   0xe   :  { %7515 = sst [smem:[#allocation75_spill]] %s7435_s13 }
   0xf   :  { %7516 = sst [smem:[#allocation76_spill]] %s7436_s14 }
  0x10   :  { %7517 = sst [smem:[#allocation77_spill]] %s7437_s15 }
  0x11   :  { %7518 = sst [smem:[#allocation78_spill]] %s7438_s16 }
  0x12   :  { %7519 = sst [smem:[#allocation79_spill]] %s7440_s18 }
  0x13   :  { %7520 = sst [smem:[#allocation80_spill]] %s7441_s19 }
  0x14   :  { %24 = vsyncpa [#allocation4], 0 }
  0x15   :  { %26 = vsyncpa [#allocation4 + $0x1], 0 }
  0x16   :  { %27 = vsyncpa [#allocation7], 0 }
  0x17   :  { %28 = vsyncpa [#allocation10], 0 }
  0x18   :  { %30 = vsyncpa [#allocation10 + $0x1], 0 }
  0x19   :  { %31 = vsyncpa [#allocation13], 0 }
  0x1a   :  { %33 = vsyncpa [#allocation13 + $0x1], 0 }
  0x1b   :  { %34 = vsyncpa [#allocation16], 0 }
  0x1c   :  { %36 = vsyncpa [#allocation16 + $0x1], 0 }
  0x1d   :  { %37 = vsyncpa [#allocation19], 0 }
  0x1e   :  { %39 = vsyncpa [#allocation19 + $0x1], 0 }
  0x1f   :  { %40 = vsyncpa [#allocation22], 0 }
  0x20   :  { %42 = vsyncpa [#allocation22 + $0x1], 0 }
  0x21   :  { %43 = vsyncpa [#allocation25], 0 }
  0x22   :  { %45 = vsyncpa [#allocation25 + $0x1], 0 }
  0x23   :  { %46 = vsyncpa [#allocation28], 0 }
  0x24   :  { %48 = vsyncpa [#allocation28 + $0x1], 0 }
  0x25   :  { %49 = vsyncpa [#allocation31], 0 }
  0x26   :  { %51 = vsyncpa [#allocation31 + $0x1], 0 }
  0x27   :  { %52 = vsyncpa [#allocation5], 0 }
  0x28   :  { %54 = vsyncpa [#allocation5 + $0x1], 0  ;;  %s6119_s0 = smov 0   ;;  %s6121_s30 = smov 0  }
  0x29   :  { %s6123_s20 = smov 0   ;;  %s6125_s21 = smov 0  }
  0x2a   :  { %s6127_s1 = smov 0   ;;  %s6129_s22 = smov 0  }
  0x2b   :  { %s6131_s2 = smov 0   ;;  %s6133_s23 = smov 0  }
  0x2c   :  { %s6135_s24 = smov 0   ;;  %s6137_s25 = smov 0  }
  0x2d   :  { %s6139_s3 = smov 0  }
  0x2e LB: > { %7521 = sst [smem:[#allocation45_spill]] %s5953_s30  ;;  %s6175_s26 = sadd.s32 4294967295, %s5989_s3   ;;  %s5989_s3 = sphi %s6139_s3, %s60_s3   ;;  %s5985_s25 = sphi %s6137_s25, %s7626_s25   ;;  %s5981_s24 = sphi %s6135_s24, %s7625_s24   ;;  %s5977_s23 = sphi %s6133_s23, %s7624_s23   ;;  %s5973_s2 = sphi %s6131_s2, %s7623_s2   ;;  %s5969_s22 = sphi %s6129_s22, %s7622_s22   ;;  %s5965_s1 = sphi %s6127_s1, %s7621_s1   ;;  %s5961_s21 = sphi %s6125_s21, %s7617_s21   ;;  %s5957_s20 = sphi %s6123_s20, %s7616_s20   ;;  %s5953_s30 = sphi %s6121_s30, %s7615_s30   ;;  %s5949_s0 = sphi %s6119_s0, %s7614_s0  }
  0x2f   : > { %7522 = sst [smem:[#allocation46_spill]] %s5957_s20  ;;  %s4280_s27 = sadd.s32 4294967294, %s5989_s3  }
  0x30   : > { %7523 = sst [smem:[#allocation47_spill]] %s5961_s21  ;;  %s69_s28 = sadd.s32 1, %s5981_s24 }
  0x31   : > { %7524 = sst [smem:[#allocation48_spill]] %s5965_s1  ;;  %s72_s29 = sadd.s32 1, %s5985_s25 }
  0x32   : > { %7525 = sst [smem:[#allocation49_spill]] %s5973_s2  ;;  %p70_p0 = scmp.ge.s32.totalorder %s69_s28, 2 }
  0x33   : > { %7526 = sst [smem:[#allocation50_spill]] %s5977_s23  ;;  %s79_s19 = sadd.s32 1, %s5969_s22 }
  0x34   : > { %7527 = sst [smem:[#allocation51_spill]] %s5989_s3  ;;  %p7455_p1 = scmp.ne.s32.totalorder %s5969_s22, %s5965_s1 }
  0x35   : > { %7528 = sst [smem:[#allocation52_spill]] %s6175_s26  ;;  %p87_p2 = scmp.eq.s32.totalorder %s5989_s3, 0 }
  0x36   : > { %s7628_s28 = smov (%p70_p0, %s69_s28), 0  ;;  %s7630_s29 = smov (!%p70_p0, %s72_s29), %s5985_s25 }
  0x37   : > { %7529 = sst [smem:[#allocation53_spill]] %s7628_s28  ;;  %p6192_p3 = por %p87_p2, %p7455_p1 }
  0x38   : > { %p7454_p4 = scmp.ne.s32.totalorder %s5965_s1, %s5961_s21  ;;  %p74_p5 = scmp.ge.s32.totalorder %s7630_s29, 2 }
  0x39   : > { %s7530_s23 = scalar_select %p6192_p3, 1, 0 }
  0x3a   : > { %p7470_p6 = scmp.eq.s32.totalorder %s6175_s26, 0  ;;  %s144_s2 = ssub.s32 %s5981_s24, %s7628_s28 }
  0x3b   : > { %s147_s18 = sadd.s32 1, %s5957_s20  ;;  %s7632_s29 = smov (%p74_p5, %s7630_s29), 0 }
  0x3c   : > { %7531 = sst [smem:[#allocation54_spill]] %s7632_s29  ;;  %p6209_p7 = por %p7470_p6, %p7454_p4 }
  0x3d   : > { %p145_p8 = scmp.eq.s32.totalorder %s144_s2, 0  ;;  %s76_s14 = ssub.s32 %s5985_s25, %s7632_s29 }
  0x3e   : > { %s7532_s16 = scalar_select %p6209_p7, 1, 0 }
  0x3f   : > { %p154_p9 = scmp.ne.s32.totalorder %s5957_s20, %s5953_s30  ;;  %p77_p10 = scmp.eq.s32.totalorder %s76_s14, 0 }
  0x40   : > { %7533 = sst [smem:[#allocation55_spill]] %s7532_s16  ;;  %p160_p11 = scmp.ne.s32.totalorder %s5953_s30, %s5949_s0 }
  0x41   : > { %s6220_s28 = scalar_select %p145_p8, %s5957_s20, %s147_s18  }
  0x42   : > { %s6223_s12 = scalar_select %p77_p10, %s5969_s22, %s79_s19  }
  0x43   : > { %7534 = sst [smem:[#allocation56_spill]] %s6220_s28  ;;  %p6227_p12 = por %p154_p9, %p87_p2 }
  0x44   : > { %7535 = sst [smem:[#allocation57_spill]] %s6223_s12  ;;  %p6233_p13 = por %p160_p11, %p7470_p6 }
  0x45   : > { %s7536_s10 = scalar_select %p6227_p12, 1, 0 }
  0x46   : > { %s7537_s8 = scalar_select %p6233_p13, 1, 0 }
  0x47   : > { %p574_p0 = scmp.eq.s32.totalorder %s6175_s26, 3  ;;  %p580_p5 = scmp.eq.s32.totalorder %s4280_s27, 3 }
  0x48   : > { %7538 = sst [smem:[#allocation58_spill]] %s7537_s8  ;;  %p4281_p4 = scmp.ge.s32.totalorder %s5989_s3, 1 }
  0x49   : > { %p587_p1 = scmp.lt.s32.totalorder %s5989_s3, 5  ;;  %p7539_p7 = scmp.ne.s32.totalorder %s5969_s22, %s5965_s1 }
  0x4a   : > { %p7542_p10 = scmp.ne.s32.totalorder %s5965_s1, %s5961_s21  ;;  %s5991_s0 = smov [#allocation6]  }
  0x4b   : > { %p6243_p8 = por %p574_p0, %p7539_p7  ;;  %p6254_p2 = pnand %p4281_p4, %p587_p1 }
  0x4c   : > { %p6250_p3 = por %p580_p5, %p7542_p10  ;;  %s600_s2 = sshll.u32 %s5991_s0, 4  ;;  %s601_s2 = int_to_ptr.vmem [resolvable:$true] %s600_s2 }
  0x4d   : > { %s7540_s14 = scalar_select %p6243_p8, 1, 0 }
  0x4e   : > { %s7543_s18 = scalar_select %p6250_p3, 1, 0 }
  0x4f   : > { %7541 = sst [smem:[#allocation59_spill]] %s7540_s14  ;;  %p5012_p9 = pneg %p6254_p2 }
  0x50   : > { %7544 = sst [smem:[#allocation60_spill]] %s7543_s18  ;;  %s5992_s27 = smov [#allocation8]  }
  0x51   : > { %s7545_s19 = scalar_select %p6254_p2, 1, 0 }
  0x52   : > { %s611_s29 = sshll.u32 %s5992_s27, 4  ;;  %p6262_p7 = pnand %p5012_p9, %p7470_p6  ;;  %s6266_s29 = int_to_ptr.vmem [resolvable:$true] %s611_s29 }
  0x53   : > { %7546 = sst [smem:[#allocation61_spill]] %s7545_s19  ;;  %s7548_s21 = sld [smem:[#allocation63_spill]] }
  0x54   : > { %p5301_p4 = pneg %p6262_p7 }
  0x59   : > { %s7549_s14 = smov %s7548_s21  ;;  %s5299_s8 = scalar_lea.hbm %s7548_s21, 16 }
  0x5a   : > { %p5300_p1 = scmp.ne.s32.totalorder %s7549_s14, %s5299_s8  ;;  %p5306_p5 = scmp.lt.u32.totalorder %s5299_s8, %s7549_s14 }
  0x5c   : > { %p5302_p11 = pnand %p5301_p4, %p5300_p1 }
  0x5e   : > { %p5303_p0 = pneg %p5302_p11 }
  0x60   : > { %p5308_p10 = pnand %p5306_p5, %p5303_p0 }
  0x62   : > { %5311 = shalt.err (!%p5308_p10)
}
  0x63   : > { %s5312_s26 = scalar_lea.vmem %s601_s2, 16  ;;  %s5319_s16 = scalar_lea.vmem %s601_s2, 32 }
  0x64   : > { %p5313_p9 = scmp.ne.s32.totalorder %s601_s2, %s5312_s26  ;;  %p5320_p8 = scmp.lt.s32.totalorder %s601_s2, %s601_s2 }
  0x65   : > { %p5321_p13 = scmp.lt.s32.totalorder %s5319_s16, %s5312_s26 }
  0x66   : > { %p5315_p6 = pnand %p5313_p9, %p5301_p4 }
  0x67   : > { %p5322_p2 = por %p5321_p13, %p5320_p8 }
  0x68   : > { %p5316_p3 = pneg %p5315_p6 }
  0x6a   : > { %p5323_p12 = pnand %p5322_p2, %p5316_p3 }
  0x6c   : > { %5326 = shalt.err (!%p5323_p12)
}
  0x6d   : > { %5015 = dma.hbm_to_vmem [thread:$0]  (!%p6262_p7), %s7549_s14, 16, %s601_s2, [#allocation7]  }
  0x6e   : > { %s7550_s18 = sld [smem:[#allocation64_spill]] }
  0x74   : > { %s5327_s0 = scalar_lea.hbm %s7550_s18, 16 }
  0x75   : > { %p5328_p6 = scmp.ne.s32.totalorder %s7550_s18, %s5327_s0  ;;  %p5334_p12 = scmp.lt.u32.totalorder %s5327_s0, %s7550_s18 }
  0x77   : > { %p5330_p13 = pnand %p5328_p6, %p5301_p4 }
  0x79   : > { %p5331_p3 = pneg %p5330_p13 }
  0x7b   : > { %p5336_p8 = pnand %p5334_p12, %p5331_p3 }
  0x7d   : > { %5339 = shalt.err (!%p5336_p8)
}
  0x7e   : > { %s5340_s2 = scalar_lea.vmem %s6266_s29, 16  ;;  %s5347_s1 = scalar_lea.vmem %s6266_s29, 32 }
  0x7f   : > { %p5341_p2 = scmp.ne.s32.totalorder %s6266_s29, %s5340_s2  ;;  %p5348_p0 = scmp.lt.s32.totalorder %s6266_s29, %s6266_s29 }
  0x80   : > { %p5349_p5 = scmp.lt.s32.totalorder %s5347_s1, %s5340_s2 }
  0x81   : > { %p5343_p1 = pnand %p5341_p2, %p5301_p4 }
  0x82   : > { %p5350_p10 = por %p5349_p5, %p5348_p0 }
  0x83   : > { %p5344_p11 = pneg %p5343_p1 }
  0x85   : > { %p5351_p9 = pnand %p5350_p10, %p5344_p11 }
  0x87   : > { %5354 = shalt.err (!%p5351_p9)
}
  0x88   : > { %5018 = dma.hbm_to_vmem [thread:$0]  (!%p6262_p7), %s7550_s18, 16, %s6266_s29, [#allocation7]  }
  0x89   : > { %p4284_p6 = scmp.ge.s32.totalorder %s5989_s3, 4 }
  0x8a   : > { %s6318_s8 = sand.u32 (!%p4284_p6), 1, %s5989_s3   ;;  %s6321_s28 = sand.u32 (!%p4284_p6), 1, %s5957_s20  }
  0x8b   : > { %618 = sbr.rel (%p4284_p6) target bundleno = 616 (0x268), region = 24  ;;  %s6324_s0 = sshll.u32 (!%p4284_p6), %s5981_s24, 4 }
  0x8c   : > { %s646_s12 = scalar_lea.vmem (!%p4284_p6), [#allocation9], %s6321_s28  ;;  %s7551_s16 = sld [smem:[#allocation65_spill]] (!%p4284_p6) }
  0x8d   : > { %s653_s27 = sshll.u32 (!%p4284_p6), %s646_s12, 4  ;;  %p7552_p4 = scmp.ne.s32.totalorder (!%p4284_p6), %s7536_s10, 0  ;;  %s654_s27 = int_to_ptr.vmem [resolvable:$true] %s653_s27 }
  0x92   : > { %s6331_s2 = scalar_lea.hbm %s7551_s16, %s6324_s0  ;;  %s5359_s12 = scalar_lea.hbm %s7551_s16, 32 }
  0x93   : > { %s5355_s30 = scalar_lea.hbm %s6331_s2, 16  ;;  %p5360_p12 = scmp.lt.u32.totalorder %s6331_s2, %s7551_s16 }
  0x94   : > { %p5356_p7 = scmp.ne.s32.totalorder %s6331_s2, %s5355_s30  ;;  %p5361_p8 = scmp.lt.u32.totalorder %s5359_s12, %s5355_s30 }
  0x95   : > { %p5363_p1 = scmp.lt.u32.totalorder %s5355_s30, %s6331_s2 }
  0x96   : > { %p5357_p13 = pnand %p5356_p7, %p7552_p4  ;;  %p5362_p2 = por %p5361_p8, %p5360_p12 }
  0x98   : > { %p5358_p3 = pneg %p5357_p13  ;;  %p5364_p11 = por %p5363_p1, %p5362_p2 }
  0x9a   : > { %p5365_p0 = pnand %p5364_p11, %p5358_p3 }
  0x9c   : > { %5368 = shalt.err (!%p5365_p0)
}
  0x9d   : > { %s5369_s26 = scalar_lea.vmem %s654_s27, 16  ;;  %s5993_s29 = smov [#allocation9]  }
  0x9e   : > { %p5370_p5 = scmp.ne.s32.totalorder %s654_s27, %s5369_s26  ;;  %s5373_s1 = sshll.u32 %s5993_s29, 4  ;;  %s5374_s1 = int_to_ptr.vmem [resolvable:$false] %s5373_s1 }
  0x9f   : > { %s5375_s14 = scalar_lea.vmem %s5374_s1, 32  ;;  %p5376_p6 = scmp.lt.s32.totalorder %s654_s27, %s5374_s1 }
  0xa0   : > { %p5371_p10 = pnand %p5370_p5, %p7552_p4  ;;  %p5377_p7 = scmp.lt.s32.totalorder %s5375_s14, %s5369_s26 }
  0xa2   : > { %p5372_p9 = pneg %p5371_p10  ;;  %p5378_p13 = por %p5377_p7, %p5376_p6 }
  0xa4   : > { %p5379_p8 = pnand %p5378_p13, %p5372_p9 }
  0xa6   : > { %5382 = shalt.err (!%p5379_p8)
}
  0xa7   : > { %s7553_s20 = scalar_lea.sflag [#allocation10], %s6318_s8  ;;  %s6354_s18 = sshll.u32 %s6321_s28, 7 }
  0xa8   : > { %4973 = dma.hbm_to_vmem [thread:$0]  (%p7552_p4), %s6331_s2, 16, %s654_s27, %s7553_s20  }
  0xa9   : > { %s6357_s30 = sshll.u32 %s5981_s24, 11  ;;  %s7554_s5 = sld [smem:[#allocation67_spill]] }
  0xaa   : > { %s681_s26 = scalar_lea.vmem [#allocation12], %s6354_s18  ;;  %s7484_s27 = scalar_lea.sflag [#allocation13], %s6318_s8 }
  0xab   : > { %s688_s29 = sshll.u32 %s681_s26, 4  ;;  %s6366_s29 = int_to_ptr.vmem [resolvable:$true] %s688_s29 }
  0xaf   : > { %s6363_s12 = scalar_lea.hbm %s7554_s5, %s6357_s30  ;;  %s5387_s1 = scalar_lea.hbm %s7554_s5, 4096 }
  0xb0   : > { %s5383_s2 = scalar_lea.hbm %s6363_s12, 2048  ;;  %p5388_p1 = scmp.lt.u32.totalorder %s6363_s12, %s7554_s5 }
  0xb1   : > { %p5384_p3 = scmp.ne.s32.totalorder %s6363_s12, %s5383_s2  ;;  %p5389_p11 = scmp.lt.u32.totalorder %s5387_s1, %s5383_s2 }
  0xb2   : > { %p5391_p5 = scmp.lt.u32.totalorder %s5383_s2, %s6363_s12 }
  0xb3   : > { %p5385_p12 = pnand %p5384_p3, %p7552_p4  ;;  %p5390_p0 = por %p5389_p11, %p5388_p1 }
  0xb5   : > { %p5386_p2 = pneg %p5385_p12  ;;  %p5392_p10 = por %p5391_p5, %p5390_p0 }
  0xb7   : > { %p5393_p9 = pnand %p5392_p10, %p5386_p2 }
  0xb9   : > { %5396 = shalt.err (!%p5393_p9)
}
  0xba   : > { %s5397_s26 = scalar_lea.vmem %s6366_s29, 2048  ;;  %s5994_s14 = smov [#allocation12]  }
  0xbb   : > { %p5398_p6 = scmp.ne.s32.totalorder %s6366_s29, %s5397_s26  ;;  %s5401_s20 = sshll.u32 %s5994_s14, 4  ;;  %s5402_s20 = int_to_ptr.vmem [resolvable:$false] %s5401_s20 }
  0xbc   : > { %s5403_s16 = scalar_lea.vmem %s5402_s20, 4096  ;;  %p5404_p8 = scmp.lt.s32.totalorder %s6366_s29, %s5402_s20 }
  0xbd   : > { %p5399_p7 = pnand %p5398_p6, %p7552_p4  ;;  %p5405_p3 = scmp.lt.s32.totalorder %s5403_s16, %s5397_s26 }
  0xbf   : > { %p5400_p13 = pneg %p5399_p7  ;;  %p5406_p12 = por %p5405_p3, %p5404_p8 }
  0xc1   : > { %p5407_p1 = pnand %p5406_p12, %p5400_p13 }
  0xc3   : > { %5410 = shalt.err (!%p5407_p1)
}
  0xc4   : > { %s7486_s2 = smov 64   ;;  %s7488_s1 = smov 4  }
  0xc5   : > { %4975 = dma.hbm_to_vmem [thread:$0]  (%p7552_p4), %s6363_s12, 2048, %s6366_s29, %s7484_s27, %s7486_s2, %s7486_s2, %s7488_s1  }
  0xc6   : > { %s7555_s7 = sld [smem:[#allocation69_spill]]  ;;  %s723_s20 = scalar_lea.vmem [#allocation15], %s6354_s18 }
  0xc7   : > { %s730_s16 = sshll.u32 %s723_s20, 4  ;;  %s6403_s5 = sshll.u32 %s6321_s28, 2  ;;  %s6405_s16 = int_to_ptr.vmem [resolvable:$true] %s730_s16 }
  0xc8   : > { %s6408_s3 = sshll.u32 %s5981_s24, 6  ;;  %s7485_s19 = scalar_lea.sflag [#allocation16], %s6318_s8 }
  0xcc   : > { %s6399_s14 = scalar_lea.hbm %s7555_s7, %s6357_s30  ;;  %s5415_s21 = scalar_lea.hbm %s7555_s7, 4096 }
  0xcd   : > { %s5411_s6 = scalar_lea.hbm %s6399_s14, 2048  ;;  %p5416_p5 = scmp.lt.u32.totalorder %s6399_s14, %s7555_s7 }
  0xce   : > { %p5412_p2 = scmp.ne.s32.totalorder %s6399_s14, %s5411_s6  ;;  %p5417_p10 = scmp.lt.u32.totalorder %s5415_s21, %s5411_s6 }
  0xcf   : > { %p5419_p6 = scmp.lt.u32.totalorder %s5411_s6, %s6399_s14 }
  0xd0   : > { %p5413_p11 = pnand %p5412_p2, %p7552_p4  ;;  %p5418_p9 = por %p5417_p10, %p5416_p5 }
  0xd2   : > { %p5414_p0 = pneg %p5413_p11  ;;  %p5420_p7 = por %p5419_p6, %p5418_p9 }
  0xd4   : > { %p5421_p13 = pnand %p5420_p7, %p5414_p0 }
  0xd6   : > { %5424 = shalt.err (!%p5421_p13)
}
  0xd7   : > { %s5425_s20 = scalar_lea.vmem %s6405_s16, 2048  ;;  %s5997_s12 = smov [#allocation15]  }
  0xd8   : > { %p5426_p8 = scmp.ne.s32.totalorder %s6405_s16, %s5425_s20  ;;  %s5429_s29 = sshll.u32 %s5997_s12, 4  ;;  %s5430_s29 = int_to_ptr.vmem [resolvable:$false] %s5429_s29 }
  0xd9   : > { %s5431_s27 = scalar_lea.vmem %s5430_s29, 4096  ;;  %p5432_p1 = scmp.lt.s32.totalorder %s6405_s16, %s5430_s29 }
  0xda   : > { %p5427_p3 = pnand %p5426_p8, %p7552_p4  ;;  %p5433_p2 = scmp.lt.s32.totalorder %s5431_s27, %s5425_s20 }
  0xdc   : > { %p5428_p12 = pneg %p5427_p3  ;;  %p5434_p11 = por %p5433_p2, %p5432_p1 }
  0xde   : > { %p5435_p5 = pnand %p5434_p11, %p5428_p12 }
  0xe0   : > { %5438 = shalt.err (!%p5435_p5)
}
  0xe1   : > { %4977 = dma.hbm_to_vmem [thread:$0]  (%p7552_p4), %s6399_s14, 2048, %s6405_s16, %s7485_s19, %s7486_s2, %s7486_s2, %s7488_s1  }
  0xe2   : > { %s7556_s9 = sld [smem:[#allocation71_spill]]  ;;  %s765_s20 = scalar_lea.vmem [#allocation18], %s6403_s5 }
  0xe3   : > { %s772_s12 = sshll.u32 %s765_s20, 4  ;;  %s7490_s29 = scalar_lea.sflag [#allocation19], %s6318_s8  ;;  %s6444_s12 = int_to_ptr.vmem [resolvable:$true] %s772_s12 }
  0xe8   : > { %s6441_s26 = scalar_lea.hbm %s7556_s9, %s6408_s3  ;;  %s5443_s6 = scalar_lea.hbm %s7556_s9, 128 }
  0xe9   : > { %s5439_s27 = scalar_lea.hbm %s6441_s26, 64  ;;  %p5444_p6 = scmp.lt.u32.totalorder %s6441_s26, %s7556_s9 }
  0xea   : > { %p5440_p0 = scmp.ne.s32.totalorder %s6441_s26, %s5439_s27  ;;  %p5445_p7 = scmp.lt.u32.totalorder %s5443_s6, %s5439_s27 }
  0xeb   : > { %p5447_p8 = scmp.lt.u32.totalorder %s5439_s27, %s6441_s26 }
  0xec   : > { %p5441_p10 = pnand %p5440_p0, %p7552_p4  ;;  %p5446_p13 = por %p5445_p7, %p5444_p6 }
  0xee   : > { %p5442_p9 = pneg %p5441_p10  ;;  %p5448_p3 = por %p5447_p8, %p5446_p13 }
  0xf0   : > { %p5449_p12 = pnand %p5448_p3, %p5442_p9 }
  0xf2   : > { %5452 = shalt.err (!%p5449_p12)
}
  0xf3   : > { %s5453_s20 = scalar_lea.vmem %s6444_s12, 64  ;;  %s5998_s14 = smov [#allocation18]  }
  0xf4   : > { %p5454_p1 = scmp.ne.s32.totalorder %s6444_s12, %s5453_s20  ;;  %s5457_s16 = sshll.u32 %s5998_s14, 4  ;;  %s5458_s16 = int_to_ptr.vmem [resolvable:$false] %s5457_s16 }
  0xf5   : > { %s5459_s19 = scalar_lea.vmem %s5458_s16, 128  ;;  %p5460_p5 = scmp.lt.s32.totalorder %s6444_s12, %s5458_s16 }
  0xf6   : > { %p5455_p2 = pnand %p5454_p1, %p7552_p4  ;;  %p5461_p0 = scmp.lt.s32.totalorder %s5459_s19, %s5453_s20 }
  0xf8   : > { %p5456_p11 = pneg %p5455_p2  ;;  %p5462_p10 = por %p5461_p0, %p5460_p5 }
  0xfa   : > { %p5463_p6 = pnand %p5462_p10, %p5456_p11 }
  0xfc   : > { %5466 = shalt.err (!%p5463_p6)
}
  0xfd   : > { %s7491_s27 = smov 16   ;;  %s7494_s6 = smov 1  }
  0xfe   : > { %4979 = dma.hbm_to_vmem [thread:$0]  (%p7552_p4), %s6441_s26, 64, %s6444_s12, %s7490_s29, %s7491_s27, %s7491_s27, %s7494_s6  }
  0xff   : > { %s4306_s21 = sshll.u32 %s6321_s28, 5  ;;  %s4573_s20 = sshll.u32 %s5981_s24, 9 }
 0x100   : > { %s7557_s11 = sld [smem:[#allocation73_spill]]  ;;  %s807_s2 = scalar_lea.vmem [#allocation21], %s4306_s21 }
 0x101   : > { %s814_s1 = sshll.u32 %s807_s2, 4  ;;  %s7493_s7 = scalar_lea.sflag [#allocation22], %s6318_s8  ;;  %s6480_s1 = int_to_ptr.vmem [resolvable:$true] %s814_s1 }
 0x106   : > { %s6478_s19 = scalar_lea.hbm %s7557_s11, %s4573_s20  ;;  %s5471_s14 = scalar_lea.hbm %s7557_s11, 1024 }
 0x107   : > { %s5467_s9 = scalar_lea.hbm %s6478_s19, 512  ;;  %p5472_p8 = scmp.lt.u32.totalorder %s6478_s19, %s7557_s11 }
 0x108   : > { %p5468_p9 = scmp.ne.s32.totalorder %s6478_s19, %s5467_s9  ;;  %p5473_p3 = scmp.lt.u32.totalorder %s5471_s14, %s5467_s9 }
 0x109   : > { %p5475_p1 = scmp.lt.u32.totalorder %s5467_s9, %s6478_s19 }
 0x10a   : > { %p5469_p7 = pnand %p5468_p9, %p7552_p4  ;;  %p5474_p12 = por %p5473_p3, %p5472_p8 }
 0x10c   : > { %p5470_p13 = pneg %p5469_p7  ;;  %p5476_p2 = por %p5475_p1, %p5474_p12 }
 0x10e   : > { %p5477_p11 = pnand %p5476_p2, %p5470_p13 }
 0x110   : > { %5480 = shalt.err (!%p5477_p11)
}
 0x111   : > { %s5481_s2 = scalar_lea.vmem %s6480_s1, 512  ;;  %s6001_s21 = smov [#allocation21]  }
 0x112   : > { %p5482_p5 = scmp.ne.s32.totalorder %s6480_s1, %s5481_s2  ;;  %s5485_s26 = sshll.u32 %s6001_s21, 4  ;;  %s5486_s26 = int_to_ptr.vmem [resolvable:$false] %s5485_s26 }
 0x113   : > { %s5487_s12 = scalar_lea.vmem %s5486_s26, 1024  ;;  %p5488_p6 = scmp.lt.s32.totalorder %s6480_s1, %s5486_s26 }
 0x114   : > { %p5483_p0 = pnand %p5482_p5, %p7552_p4  ;;  %p5489_p9 = scmp.lt.s32.totalorder %s5487_s12, %s5481_s2 }
 0x116   : > { %p5484_p10 = pneg %p5483_p0  ;;  %p5490_p7 = por %p5489_p9, %p5488_p6 }
 0x118   : > { %p5491_p8 = pnand %p5490_p7, %p5484_p10 }
 0x11a   : > { %5494 = shalt.err (!%p5491_p8)
}
 0x11b   : > { %s7558_s9 = smov 4   ;;  %s7559_s14 = smov 64  }
 0x11c   : > { %4981 = dma.hbm_to_vmem [thread:$0]  (%p7552_p4), %s6478_s19, 512, %s6480_s1, %s7493_s7, %s7559_s14, %s7559_s14, %s7558_s9  }
 0x11d   : > { %s7560_s13 = sld [smem:[#allocation75_spill]]  ;;  %s844_s21 = scalar_lea.vmem [#allocation24], %s6321_s28 }
 0x11e   : > { %s851_s26 = sshll.u32 %s844_s21, 4  ;;  %s7496_s12 = scalar_lea.sflag [#allocation25], %s6318_s8  ;;  %s852_s26 = int_to_ptr.vmem [resolvable:$true] %s851_s26 }
 0x123   : > { %s6513_s2 = scalar_lea.hbm %s7560_s13, %s6324_s0  ;;  %s5499_s19 = scalar_lea.hbm %s7560_s13, 32 }
 0x124   : > { %s5495_s29 = scalar_lea.hbm %s6513_s2, 16  ;;  %p5500_p1 = scmp.lt.u32.totalorder %s6513_s2, %s7560_s13 }
 0x125   : > { %p5496_p13 = scmp.ne.s32.totalorder %s6513_s2, %s5495_s29  ;;  %p5501_p2 = scmp.lt.u32.totalorder %s5499_s19, %s5495_s29 }
 0x126   : > { %p5503_p5 = scmp.lt.u32.totalorder %s5495_s29, %s6513_s2 }
 0x127   : > { %p5497_p3 = pnand %p5496_p13, %p7552_p4  ;;  %p5502_p11 = por %p5501_p2, %p5500_p1 }
 0x129   : > { %p5498_p12 = pneg %p5497_p3  ;;  %p5504_p0 = por %p5503_p5, %p5502_p11 }
 0x12b   : > { %p5505_p10 = pnand %p5504_p0, %p5498_p12 }
 0x12d   : > { %5508 = shalt.err (!%p5505_p10)
}
 0x12e   : > { %s5509_s21 = scalar_lea.vmem %s852_s26, 16  ;;  %s6002_s7 = smov [#allocation24]  }
 0x12f   : > { %p5510_p6 = scmp.ne.s32.totalorder %s852_s26, %s5509_s21  ;;  %s5513_s6 = sshll.u32 %s6002_s7, 4  ;;  %s5514_s6 = int_to_ptr.vmem [resolvable:$false] %s5513_s6 }
 0x130   : > { %s5515_s27 = scalar_lea.vmem %s5514_s6, 32  ;;  %p5516_p8 = scmp.lt.s32.totalorder %s852_s26, %s5514_s6 }
 0x131   : > { %p5511_p9 = pnand %p5510_p6, %p7552_p4  ;;  %p5517_p13 = scmp.lt.s32.totalorder %s5515_s27, %s5509_s21 }
 0x133   : > { %p5512_p7 = pneg %p5511_p9  ;;  %p5518_p3 = por %p5517_p13, %p5516_p8 }
 0x135   : > { %p5519_p1 = pnand %p5518_p3, %p5512_p7 }
 0x137   : > { %5522 = shalt.err (!%p5519_p1)
}
 0x138   : > { %4983 = dma.hbm_to_vmem [thread:$0]  (%p7552_p4), %s6513_s2, 16, %s852_s26, %s7496_s12  }
 0x139   : > { %s4312_s29 = sshll.u32 %s6321_s28, 6  ;;  %s4574_s1 = sshll.u32 %s5981_s24, 10 }
 0x13a   : > { %s7561_s15 = sld [smem:[#allocation77_spill]]  ;;  %s879_s20 = scalar_lea.vmem [#allocation27], %s4312_s29 }
 0x13b   : > { %s886_s16 = sshll.u32 %s879_s20, 4  ;;  %s7497_s21 = scalar_lea.sflag [#allocation28], %s6318_s8  ;;  %s6543_s16 = int_to_ptr.vmem [resolvable:$true] %s886_s16 }
 0x140   : > { %s6541_s6 = scalar_lea.hbm %s7561_s15, %s4574_s1  ;;  %s5527_s7 = scalar_lea.hbm %s7561_s15, 2048 }
 0x141   : > { %s5523_s27 = scalar_lea.hbm %s6541_s6, 1024  ;;  %p5528_p5 = scmp.lt.u32.totalorder %s6541_s6, %s7561_s15 }
 0x142   : > { %p5524_p12 = scmp.ne.s32.totalorder %s6541_s6, %s5523_s27  ;;  %p5529_p0 = scmp.lt.u32.totalorder %s5527_s7, %s5523_s27 }
 0x143   : > { %p5531_p6 = scmp.lt.u32.totalorder %s5523_s27, %s6541_s6 }
 0x144   : > { %p5525_p2 = pnand %p5524_p12, %p7552_p4  ;;  %p5530_p10 = por %p5529_p0, %p5528_p5 }
 0x146   : > { %p5526_p11 = pneg %p5525_p2  ;;  %p5532_p9 = por %p5531_p6, %p5530_p10 }
 0x148   : > { %p5533_p7 = pnand %p5532_p9, %p5526_p11 }
 0x14a   : > { %5536 = shalt.err (!%p5533_p7)
}
 0x14b   : > { %s5537_s29 = scalar_lea.vmem %s6543_s16, 1024  ;;  %s6003_s20 = smov [#allocation27]  }
 0x14c   : > { %p5538_p8 = scmp.ne.s32.totalorder %s6543_s16, %s5537_s29  ;;  %s5541_s2 = sshll.u32 %s6003_s20, 4  ;;  %s5542_s2 = int_to_ptr.vmem [resolvable:$false] %s5541_s2 }
 0x14d   : > { %s5543_s26 = scalar_lea.vmem %s5542_s2, 2048  ;;  %p5544_p1 = scmp.lt.s32.totalorder %s6543_s16, %s5542_s2 }
 0x14e   : > { %p5539_p13 = pnand %p5538_p8, %p7552_p4  ;;  %p5545_p12 = scmp.lt.s32.totalorder %s5543_s26, %s5537_s29 }
 0x150   : > { %p5540_p3 = pneg %p5539_p13  ;;  %p5546_p2 = por %p5545_p12, %p5544_p1 }
 0x152   : > { %p5547_p5 = pnand %p5546_p2, %p5540_p3 }
 0x154   : > { %5550 = shalt.err (!%p5547_p5)
}
 0x155   : > { %s6004_s27 = smov 128   ;;  %s6005_s7 = smov 8  }
 0x156   : > { %4985 = dma.hbm_to_vmem [thread:$0]  (%p7552_p4), %s6541_s6, 1024, %s6543_s16, %s7497_s21, %s6004_s27, %s6004_s27, %s6005_s7  }
 0x157   : > { %s6573_s29 = scalar_lea.hbm %s7439_s17, %s6357_s30  ;;  %s919_s20 = scalar_lea.vmem [#allocation30], %s6354_s18 }
 0x158   : > { %s926_s2 = sshll.u32 %s919_s20, 4  ;;  %s622_s26 = sand.u32 1, %s5969_s22   ;;  %s6576_s2 = int_to_ptr.vmem [resolvable:$true] %s926_s2 }
 0x159   : > { %s7498_s12 = scalar_lea.sflag [#allocation31], %s6318_s8  ;;  %s5551_s11 = scalar_lea.hbm %s6573_s29, 2048 }
 0x15a   : > { %p5552_p11 = scmp.ne.s32.totalorder %s6573_s29, %s5551_s11  ;;  %s5555_s27 = scalar_lea.hbm %s7439_s17, 4096 }
 0x15b   : > { %p5556_p6 = scmp.lt.u32.totalorder %s6573_s29, %s7439_s17  ;;  %p5557_p9 = scmp.lt.u32.totalorder %s5555_s27, %s5551_s11 }
 0x15c   : > { %p5553_p0 = pnand %p5552_p11, %p7552_p4  ;;  %p5559_p8 = scmp.lt.u32.totalorder %s5551_s11, %s6573_s29 }
 0x15d   : > { %p5558_p7 = por %p5557_p9, %p5556_p6 }
 0x15e   : > { %p5554_p10 = pneg %p5553_p0 }
 0x15f   : > { %p5560_p13 = por %p5559_p8, %p5558_p7 }
 0x161   : > { %p5561_p3 = pnand %p5560_p13, %p5554_p10 }
 0x163   : > { %5564 = shalt.err (!%p5561_p3)
}
 0x164   : > { %s5565_s19 = scalar_lea.vmem %s6576_s2, 2048  ;;  %s6006_s20 = smov [#allocation30]  }
 0x165   : > { %p5566_p1 = scmp.ne.s32.totalorder %s6576_s2, %s5565_s19  ;;  %s5569_s6 = sshll.u32 %s6006_s20, 4  ;;  %s5570_s6 = int_to_ptr.vmem [resolvable:$false] %s5569_s6 }
 0x166   : > { %s5571_s16 = scalar_lea.vmem %s5570_s6, 4096  ;;  %p5572_p5 = scmp.lt.s32.totalorder %s6576_s2, %s5570_s6 }
 0x167   : > { %p5567_p12 = pnand %p5566_p1, %p7552_p4  ;;  %p5573_p11 = scmp.lt.s32.totalorder %s5571_s16, %s5565_s19 }
 0x169   : > { %p5568_p2 = pneg %p5567_p12  ;;  %p5574_p0 = por %p5573_p11, %p5572_p5 }
 0x16b   : > { %p5575_p6 = pnand %p5574_p0, %p5568_p2 }
 0x16d   : > { %5578 = shalt.err (!%p5575_p6)
}
 0x16e   : > { %4987 = dma.hbm_to_vmem [thread:$0]  (%p7552_p4), %s6573_s29, 2048, %s6576_s2, %s7498_s12, %s7559_s14, %s7559_s14, %s7558_s9  }
 0x16f   : > { %s4965_s11 = smul.u32 12, %s622_s26  ;;  %s7562_s4 = sld [smem:[#allocation66_spill]] }
 0x170   : > { %s4966_s27 = smul.u32 192, %s5985_s25  ;;  %s7563_s16 = sld [smem:[#allocation62_spill]] }
 0x171   : > { %s626_s13 = scalar_lea.vmem [#allocation3], %s4965_s11  ;;  %s663_s29 = scalar_lea.vmem [#allocation11], %s6321_s28 }
 0x172   : > { %s633_s15 = sshll.u32 %s626_s13, 4  ;;  %s6623_s2 = sshll.u32 %s663_s29, 4  ;;  %s6620_s15 = int_to_ptr.vmem [resolvable:$true] %s633_s15  ;;  %s671_s2 = int_to_ptr.vmem [resolvable:$true] %s6623_s2 }
 0x173   : > { %s6627_s7 = scalar_lea.sflag [#allocation4], %s622_s26  ;;  %p7564_p9 = scmp.ne.s32.totalorder %s7530_s23, 0 }
 0x175   : > { %s6613_s19 = scalar_lea.hbm %s7562_s4, %s6324_s0 }
 0x176   : > { %s6618_s21 = scalar_lea.hbm %s7563_s16, %s4966_s27  ;;  %s5583_s6 = scalar_lea.hbm %s7563_s16, 384 }
 0x177   : > { %s5579_s1 = scalar_lea.hbm %s6618_s21, 192  ;;  %p5584_p13 = scmp.lt.u32.totalorder %s6618_s21, %s7563_s16 }
 0x178   : > { %p5580_p10 = scmp.ne.s32.totalorder %s6618_s21, %s5579_s1  ;;  %p5585_p3 = scmp.lt.u32.totalorder %s5583_s6, %s5579_s1 }
 0x179   : > { %p5587_p12 = scmp.lt.u32.totalorder %s5579_s1, %s6618_s21 }
 0x17a   : > { %p5581_p7 = pnand %p5580_p10, %p7564_p9  ;;  %p5586_p1 = por %p5585_p3, %p5584_p13 }
 0x17c   : > { %p5582_p8 = pneg %p5581_p7  ;;  %p5588_p2 = por %p5587_p12, %p5586_p1 }
 0x17e   : > { %p5589_p5 = pnand %p5588_p2, %p5582_p8 }
 0x180   : > { %5592 = shalt.err (!%p5589_p5)
}
 0x181   : > { %s5593_s13 = scalar_lea.vmem %s6620_s15, 192  ;;  %s6007_s26 = smov [#allocation3]  }
 0x182   : > { %p5594_p11 = scmp.ne.s32.totalorder %s6620_s15, %s5593_s13  ;;  %s5597_s29 = sshll.u32 %s6007_s26, 4  ;;  %s5598_s29 = int_to_ptr.vmem [resolvable:$false] %s5597_s29 }
 0x183   : > { %s5599_s12 = scalar_lea.vmem %s5598_s29, 384  ;;  %p5600_p10 = scmp.lt.s32.totalorder %s6620_s15, %s5598_s29 }
 0x184   : > { %p5595_p0 = pnand %p5594_p11, %p7564_p9  ;;  %p5601_p7 = scmp.lt.s32.totalorder %s5599_s12, %s5593_s13 }
 0x186   : > { %p5596_p6 = pneg %p5595_p0  ;;  %p5602_p13 = por %p5601_p7, %p5600_p10 }
 0x188   : > { %p5603_p3 = pnand %p5602_p13, %p5596_p6 }
 0x18a   : > { %5606 = shalt.err (!%p5603_p3)
}
 0x18b   : > { %4972 = dma.hbm_to_vmem [thread:$0]  (%p7564_p9), %s6618_s21, 192, %s6620_s15, %s6627_s7, %s7559_s14, %s7559_s14, %s7558_s9  }
 0x18c   : > { %s5607_s1 = scalar_lea.hbm %s6613_s19, 16  ;;  %s5611_s20 = scalar_lea.hbm %s7562_s4, 32 }
 0x18d   : > { %p5608_p8 = scmp.ne.s32.totalorder %s6613_s19, %s5607_s1  ;;  %p5612_p2 = scmp.lt.u32.totalorder %s6613_s19, %s7562_s4 }
 0x18e   : > { %p5613_p5 = scmp.lt.u32.totalorder %s5611_s20, %s5607_s1  ;;  %p5615_p0 = scmp.lt.u32.totalorder %s5607_s1, %s6613_s19 }
 0x18f   : > { %p5609_p1 = pnand %p5608_p8, %p7552_p4 }
 0x190   : > { %p5614_p11 = por %p5613_p5, %p5612_p2 }
 0x191   : > { %p5610_p12 = pneg %p5609_p1 }
 0x192   : > { %p5616_p6 = por %p5615_p0, %p5614_p11 }
 0x194   : > { %p5617_p10 = pnand %p5616_p6, %p5610_p12 }
 0x196   : > { %5620 = shalt.err (!%p5617_p10)
}
 0x197   : > { %s5621_s15 = scalar_lea.vmem %s671_s2, 16  ;;  %s6008_s21 = smov [#allocation11]  }
 0x198   : > { %p5622_p9 = scmp.ne.s32.totalorder %s671_s2, %s5621_s15  ;;  %s5625_s7 = sshll.u32 %s6008_s21, 4  ;;  %s5626_s7 = int_to_ptr.vmem [resolvable:$false] %s5625_s7 }
 0x199   : > { %s5627_s13 = scalar_lea.vmem %s5626_s7, 32  ;;  %p5628_p3 = scmp.lt.s32.totalorder %s671_s2, %s5626_s7 }
 0x19a   : > { %p5623_p7 = pnand %p5622_p9, %p7552_p4  ;;  %p5629_p8 = scmp.lt.s32.totalorder %s5627_s13, %s5621_s15 }
 0x19c   : > { %p5624_p13 = pneg %p5623_p7  ;;  %p5630_p1 = por %p5629_p8, %p5628_p3 }
 0x19e   : > { %p5631_p2 = pnand %p5630_p1, %p5624_p13 }
 0x1a0   : > { %5634 = shalt.err (!%p5631_p2)
}
 0x1a1   : > { %s7565_s26 = scalar_lea.sflag [#allocation10], %s6318_s8  ;;  %s7566_s1 = sld [smem:[#allocation68_spill]] }
 0x1a2   : > { %4974 = dma.hbm_to_vmem [thread:$0]  (%p7552_p4), %s6613_s19, 16, %s671_s2, %s7565_s26  }
 0x1a3   : > { %s702_s20 = scalar_lea.vmem [#allocation14], %s6354_s18 }
 0x1a4   : > { %s709_s6 = sshll.u32 %s702_s20, 4  ;;  %s6681_s6 = int_to_ptr.vmem [resolvable:$true] %s709_s6 }
 0x1a7   : > { %s7567_s27 = smov %s7566_s1  ;;  %s6678_s23 = scalar_lea.hbm %s7566_s1, %s6357_s30 }
 0x1a8   : > { %s5635_s11 = scalar_lea.hbm %s6678_s23, 2048  ;;  %s5639_s2 = scalar_lea.hbm %s7567_s27, 4096 }
 0x1a9   : > { %p5636_p12 = scmp.ne.s32.totalorder %s6678_s23, %s5635_s11  ;;  %p5640_p0 = scmp.lt.u32.totalorder %s6678_s23, %s7567_s27 }
 0x1aa   : > { %p5641_p6 = scmp.lt.u32.totalorder %s5639_s2, %s5635_s11  ;;  %p5643_p9 = scmp.lt.u32.totalorder %s5635_s11, %s6678_s23 }
 0x1ab   : > { %p5637_p5 = pnand %p5636_p12, %p7552_p4 }
 0x1ac   : > { %p5642_p10 = por %p5641_p6, %p5640_p0 }
 0x1ad   : > { %p5638_p11 = pneg %p5637_p5 }
 0x1ae   : > { %p5644_p7 = por %p5643_p9, %p5642_p10 }
 0x1b0   : > { %p5645_p13 = pnand %p5644_p7, %p5638_p11 }
 0x1b2   : > { %5648 = shalt.err (!%p5645_p13)
}
 0x1b3   : > { %s5649_s18 = scalar_lea.vmem %s6681_s6, 2048  ;;  %s6009_s7 = smov [#allocation14]  }
 0x1b4   : > { %p5650_p3 = scmp.ne.s32.totalorder %s6681_s6, %s5649_s18  ;;  %s5653_s13 = sshll.u32 %s6009_s7, 4  ;;  %s5654_s13 = int_to_ptr.vmem [resolvable:$false] %s5653_s13 }
 0x1b5   : > { %s5655_s26 = scalar_lea.vmem %s5654_s13, 4096  ;;  %p5656_p2 = scmp.lt.s32.totalorder %s6681_s6, %s5654_s13 }
 0x1b6   : > { %p5651_p8 = pnand %p5650_p3, %p7552_p4  ;;  %p5657_p12 = scmp.lt.s32.totalorder %s5655_s26, %s5649_s18 }
 0x1b8   : > { %p5652_p1 = pneg %p5651_p8  ;;  %p5658_p5 = por %p5657_p12, %p5656_p2 }
 0x1ba   : > { %p5659_p0 = pnand %p5658_p5, %p5652_p1 }
 0x1bc   : > { %5662 = shalt.err (!%p5659_p0)
}
 0x1bd   : > { %s7568_s29 = scalar_lea.sflag [#allocation13], %s6318_s8  ;;  %s7569_s20 = sld [smem:[#allocation70_spill]] }
 0x1be   : > { %4976 = dma.hbm_to_vmem [thread:$0]  (%p7552_p4), %s6678_s23, 2048, %s6681_s6, %s7568_s29, %s7559_s14, %s7559_s14, %s7558_s9  }
 0x1bf   : > { %s744_s19 = scalar_lea.vmem [#allocation17], %s6403_s5 }
 0x1c0   : > { %s751_s2 = sshll.u32 %s744_s19, 4  ;;  %s6716_s2 = int_to_ptr.vmem [resolvable:$true] %s751_s2 }
 0x1c3   : > { %s7570_s11 = smov %s7569_s20  ;;  %s6713_s15 = scalar_lea.hbm %s7569_s20, %s6408_s3 }
 0x1c4   : > { %s5663_s21 = scalar_lea.hbm %s6713_s15, 64  ;;  %s5667_s14 = scalar_lea.hbm %s7570_s11, 128 }
 0x1c5   : > { %p5664_p11 = scmp.ne.s32.totalorder %s6713_s15, %s5663_s21  ;;  %p5668_p9 = scmp.lt.u32.totalorder %s6713_s15, %s7570_s11 }
 0x1c6   : > { %p5669_p7 = scmp.lt.u32.totalorder %s5667_s14, %s5663_s21  ;;  %p5671_p3 = scmp.lt.u32.totalorder %s5663_s21, %s6713_s15 }
 0x1c7   : > { %p5665_p6 = pnand %p5664_p11, %p7552_p4 }
 0x1c8   : > { %p5670_p13 = por %p5669_p7, %p5668_p9 }
 0x1c9   : > { %p5666_p10 = pneg %p5665_p6 }
 0x1ca   : > { %p5672_p8 = por %p5671_p3, %p5670_p13 }
 0x1cc   : > { %p5673_p1 = pnand %p5672_p8, %p5666_p10 }
 0x1ce   : > { %5676 = shalt.err (!%p5673_p1)
}
 0x1cf   : > { %s5677_s18 = scalar_lea.vmem %s6716_s2, 64  ;;  %s6010_s7 = smov [#allocation17]  }
 0x1d0   : > { %p5678_p2 = scmp.ne.s32.totalorder %s6716_s2, %s5677_s18  ;;  %s5681_s13 = sshll.u32 %s6010_s7, 4  ;;  %s5682_s13 = int_to_ptr.vmem [resolvable:$false] %s5681_s13 }
 0x1d1   : > { %s5683_s26 = scalar_lea.vmem %s5682_s13, 128  ;;  %p5684_p0 = scmp.lt.s32.totalorder %s6716_s2, %s5682_s13 }
 0x1d2   : > { %p5679_p12 = pnand %p5678_p2, %p7552_p4  ;;  %p5685_p11 = scmp.lt.s32.totalorder %s5683_s26, %s5677_s18 }
 0x1d4   : > { %p5680_p5 = pneg %p5679_p12  ;;  %p5686_p6 = por %p5685_p11, %p5684_p0 }
 0x1d6   : > { %p5687_p9 = pnand %p5686_p6, %p5680_p5 }
 0x1d8   : > { %5690 = shalt.err (!%p5687_p9)
}
 0x1d9   : > { %s7571_s29 = smov 1   ;;  %s7572_s12 = smov 16  }
 0x1da   : > { %s7573_s1 = scalar_lea.sflag [#allocation16], %s6318_s8  ;;  %s7574_s21 = sld [smem:[#allocation72_spill]] }
 0x1db   : > { %4978 = dma.hbm_to_vmem [thread:$0]  (%p7552_p4), %s6713_s15, 64, %s6716_s2, %s7573_s1, %s7572_s12, %s7572_s12, %s7571_s29  }
 0x1dc   : > { %s786_s14 = scalar_lea.vmem [#allocation20], %s6403_s5 }
 0x1dd   : > { %s793_s23 = sshll.u32 %s786_s14, 4  ;;  %s6751_s23 = int_to_ptr.vmem [resolvable:$true] %s793_s23 }
 0x1e0   : > { %s7575_s9 = smov %s7574_s21  ;;  %s6748_s30 = scalar_lea.hbm %s7574_s21, %s6408_s3 }
 0x1e1   : > { %s5691_s6 = scalar_lea.hbm %s6748_s30, 64  ;;  %s5695_s2 = scalar_lea.hbm %s7575_s9, 128 }
 0x1e2   : > { %p5692_p10 = scmp.ne.s32.totalorder %s6748_s30, %s5691_s6  ;;  %p5696_p3 = scmp.lt.u32.totalorder %s6748_s30, %s7575_s9 }
 0x1e3   : > { %p5697_p8 = scmp.lt.u32.totalorder %s5695_s2, %s5691_s6  ;;  %p5699_p2 = scmp.lt.u32.totalorder %s5691_s6, %s6748_s30 }
 0x1e4   : > { %p5693_p7 = pnand %p5692_p10, %p7552_p4 }
 0x1e5   : > { %p5698_p1 = por %p5697_p8, %p5696_p3 }
 0x1e6   : > { %p5694_p13 = pneg %p5693_p7 }
 0x1e7   : > { %p5700_p12 = por %p5699_p2, %p5698_p1 }
 0x1e9   : > { %p5701_p5 = pnand %p5700_p12, %p5694_p13 }
 0x1eb   : > { %5704 = shalt.err (!%p5701_p5)
}
 0x1ec   : > { %s5705_s5 = scalar_lea.vmem %s6751_s23, 64  ;;  %s6011_s13 = smov [#allocation20]  }
 0x1ed   : > { %p5706_p0 = scmp.ne.s32.totalorder %s6751_s23, %s5705_s5  ;;  %s5709_s26 = sshll.u32 %s6011_s13, 4  ;;  %s5710_s26 = int_to_ptr.vmem [resolvable:$false] %s5709_s26 }
 0x1ee   : > { %s5711_s1 = scalar_lea.vmem %s5710_s26, 128  ;;  %p5712_p9 = scmp.lt.s32.totalorder %s6751_s23, %s5710_s26 }
 0x1ef   : > { %p5707_p11 = pnand %p5706_p0, %p7552_p4  ;;  %p5713_p10 = scmp.lt.s32.totalorder %s5711_s1, %s5705_s5 }
 0x1f1   : > { %p5708_p6 = pneg %p5707_p11  ;;  %p5714_p7 = por %p5713_p10, %p5712_p9 }
 0x1f3   : > { %p5715_p3 = pnand %p5714_p7, %p5708_p6 }
 0x1f5   : > { %5718 = shalt.err (!%p5715_p3)
}
 0x1f6   : > { %s7576_s20 = scalar_lea.sflag [#allocation19], %s6318_s8  ;;  %s7577_s14 = sld [smem:[#allocation74_spill]] }
 0x1f7   : > { %4980 = dma.hbm_to_vmem [thread:$0]  (%p7552_p4), %s6748_s30, 64, %s6751_s23, %s7576_s20, %s7572_s12, %s7572_s12, %s7571_s29  }
 0x1f8   : > { %s827_s18 = scalar_lea.vmem [#allocation23], %s6321_s28 }
 0x1f9   : > { %s834_s15 = sshll.u32 %s827_s18, 4  ;;  %s835_s15 = int_to_ptr.vmem [resolvable:$true] %s834_s15 }
 0x1fc   : > { %s6783_s6 = scalar_lea.hbm %s7577_s14, %s6324_s0  ;;  %s5723_s29 = scalar_lea.hbm %s7577_s14, 32 }
 0x1fd   : > { %s5719_s2 = scalar_lea.hbm %s6783_s6, 16  ;;  %p5724_p2 = scmp.lt.u32.totalorder %s6783_s6, %s7577_s14 }
 0x1fe   : > { %p5720_p13 = scmp.ne.s32.totalorder %s6783_s6, %s5719_s2  ;;  %p5725_p12 = scmp.lt.u32.totalorder %s5723_s29, %s5719_s2 }
 0x1ff   : > { %p5727_p0 = scmp.lt.u32.totalorder %s5719_s2, %s6783_s6 }
 0x200   : > { %p5721_p8 = pnand %p5720_p13, %p7552_p4  ;;  %p5726_p5 = por %p5725_p12, %p5724_p2 }
 0x202   : > { %p5722_p1 = pneg %p5721_p8  ;;  %p5728_p11 = por %p5727_p0, %p5726_p5 }
 0x204   : > { %p5729_p6 = pnand %p5728_p11, %p5722_p1 }
 0x206   : > { %5732 = shalt.err (!%p5729_p6)
}
 0x207   : > { %s5733_s23 = scalar_lea.vmem %s835_s15, 16  ;;  %s6012_s5 = smov [#allocation23]  }
 0x208   : > { %p5734_p9 = scmp.ne.s32.totalorder %s835_s15, %s5733_s23  ;;  %s5737_s13 = sshll.u32 %s6012_s5, 4  ;;  %s5738_s13 = int_to_ptr.vmem [resolvable:$false] %s5737_s13 }
 0x209   : > { %s5739_s26 = scalar_lea.vmem %s5738_s13, 32  ;;  %p5740_p3 = scmp.lt.s32.totalorder %s835_s15, %s5738_s13 }
 0x20a   : > { %p5735_p10 = pnand %p5734_p9, %p7552_p4  ;;  %p5741_p13 = scmp.lt.s32.totalorder %s5739_s26, %s5733_s23 }
 0x20c   : > { %p5736_p7 = pneg %p5735_p10  ;;  %p5742_p8 = por %p5741_p13, %p5740_p3 }
 0x20e   : > { %p5743_p2 = pnand %p5742_p8, %p5736_p7 }
 0x210   : > { %5746 = shalt.err (!%p5743_p2)
}
 0x211   : > { %s7578_s1 = scalar_lea.sflag [#allocation22], %s6318_s8  ;;  %s7579_s21 = sld [smem:[#allocation76_spill]] }
 0x212   : > { %4982 = dma.hbm_to_vmem [thread:$0]  (%p7552_p4), %s6783_s6, 16, %s835_s15, %s7578_s1  }
 0x213   : > { %s861_s7 = scalar_lea.vmem [#allocation26], %s6321_s28  ;;  %s4315_s29 = sshll.u32 %s6321_s28, 1 }
 0x214   : > { %s868_s3 = sshll.u32 %s861_s7, 4  ;;  %s869_s3 = int_to_ptr.vmem [resolvable:$true] %s868_s3 }
 0x217   : > { %s7580_s18 = smov %s7579_s21  ;;  %s6809_s2 = scalar_lea.hbm %s7579_s21, %s6324_s0 }
 0x218   : > { %s5747_s12 = scalar_lea.hbm %s6809_s2, 16  ;;  %s5751_s15 = scalar_lea.hbm %s7580_s18, 32 }
 0x219   : > { %p5748_p1 = scmp.ne.s32.totalorder %s6809_s2, %s5747_s12  ;;  %p5752_p0 = scmp.lt.u32.totalorder %s6809_s2, %s7580_s18 }
 0x21a   : > { %p5753_p11 = scmp.lt.u32.totalorder %s5751_s15, %s5747_s12  ;;  %p5755_p9 = scmp.lt.u32.totalorder %s5747_s12, %s6809_s2 }
 0x21b   : > { %p5749_p12 = pnand %p5748_p1, %p7552_p4 }
 0x21c   : > { %p5754_p6 = por %p5753_p11, %p5752_p0 }
 0x21d   : > { %p5750_p5 = pneg %p5749_p12 }
 0x21e   : > { %p5756_p10 = por %p5755_p9, %p5754_p6 }
 0x220   : > { %p5757_p7 = pnand %p5756_p10, %p5750_p5 }
 0x222   : > { %5760 = shalt.err (!%p5757_p7)
}
 0x223   : > { %s5761_s13 = scalar_lea.vmem %s869_s3, 16  ;;  %s6013_s26 = smov [#allocation26]  }
 0x224   : > { %p5762_p3 = scmp.ne.s32.totalorder %s869_s3, %s5761_s13  ;;  %s5765_s1 = sshll.u32 %s6013_s26, 4  ;;  %s5766_s1 = int_to_ptr.vmem [resolvable:$false] %s5765_s1 }
 0x225   : > { %s5767_s20 = scalar_lea.vmem %s5766_s1, 32  ;;  %p5768_p2 = scmp.lt.s32.totalorder %s869_s3, %s5766_s1 }
 0x226   : > { %p5763_p13 = pnand %p5762_p3, %p7552_p4  ;;  %p5769_p1 = scmp.lt.s32.totalorder %s5767_s20, %s5761_s13 }
 0x228   : > { %p5764_p8 = pneg %p5763_p13  ;;  %p5770_p12 = por %p5769_p1, %p5768_p2 }
 0x22a   : > { %p5771_p0 = pnand %p5770_p12, %p5764_p8 }
 0x22c   : > { %5774 = shalt.err (!%p5771_p0)
}
 0x22d   : > { %s7581_s19 = scalar_lea.sflag [#allocation25], %s6318_s8  ;;  %s4575_s21 = sshll.u32 %s5981_s24, 5 }
 0x22e   : > { %4984 = dma.hbm_to_vmem [thread:$0]  (%p7552_p4), %s6809_s2, 16, %s869_s3, %s7581_s19  }
 0x22f   : > { %s7582_s30 = sld [smem:[#allocation78_spill]]  ;;  %s900_s23 = scalar_lea.vmem [#allocation29], %s4315_s29 }
 0x230   : > { %s908_s5 = sshll.u32 %s900_s23, 4  ;;  %s909_s5 = int_to_ptr.vmem [resolvable:$true] %s908_s5 }
 0x235   : > { %s7583_s6 = smov %s7582_s30  ;;  %s6836_s15 = scalar_lea.hbm %s7582_s30, %s4575_s21 }
 0x236   : > { %s5775_s13 = scalar_lea.hbm %s6836_s15, 32  ;;  %s5779_s26 = scalar_lea.hbm %s7583_s6, 64 }
 0x237   : > { %p5776_p5 = scmp.ne.s32.totalorder %s6836_s15, %s5775_s13  ;;  %p5780_p9 = scmp.lt.u32.totalorder %s6836_s15, %s7583_s6 }
 0x238   : > { %p5781_p10 = scmp.lt.u32.totalorder %s5779_s26, %s5775_s13  ;;  %p5783_p3 = scmp.lt.u32.totalorder %s5775_s13, %s6836_s15 }
 0x239   : > { %p5777_p11 = pnand %p5776_p5, %p7552_p4 }
 0x23a   : > { %p5782_p7 = por %p5781_p10, %p5780_p9 }
 0x23b   : > { %p5778_p6 = pneg %p5777_p11 }
 0x23c   : > { %p5784_p13 = por %p5783_p3, %p5782_p7 }
 0x23e   : > { %p5785_p8 = pnand %p5784_p13, %p5778_p6 }
 0x240   : > { %5788 = shalt.err (!%p5785_p8)
}
 0x241   : > { %s5789_s29 = scalar_lea.vmem %s909_s5, 32  ;;  %s6014_s19 = smov [#allocation29]  }
 0x242   : > { %p5790_p2 = scmp.ne.s32.totalorder %s909_s5, %s5789_s29  ;;  %s5793_s21 = sshll.u32 %s6014_s19, 4  ;;  %s5794_s21 = int_to_ptr.vmem [resolvable:$false] %s5793_s21 }
 0x243   : > { %s5795_s7 = scalar_lea.vmem %s5794_s21, 64  ;;  %p5796_p0 = scmp.lt.s32.totalorder %s909_s5, %s5794_s21 }
 0x244   : > { %p5791_p1 = pnand %p5790_p2, %p7552_p4  ;;  %p5797_p5 = scmp.lt.s32.totalorder %s5795_s7, %s5789_s29 }
 0x246   : > { %p5792_p12 = pneg %p5791_p1  ;;  %p5798_p11 = por %p5797_p5, %p5796_p0 }
 0x248   : > { %p5799_p9 = pnand %p5798_p11, %p5792_p12 }
 0x24a   : > { %5802 = shalt.err (!%p5799_p9)
}
 0x24b   : > { %s7584_s12 = scalar_lea.sflag [#allocation28], %s6318_s8  ;;  %s7585_s13 = sld [smem:[#allocation79_spill]] }
 0x24c   : > { %4986 = dma.hbm_to_vmem [thread:$0]  (%p7552_p4), %s6836_s15, 32, %s909_s5, %s7584_s12  }
 0x24d   : > { %s939_s3 = scalar_lea.vmem [#allocation32], %s6321_s28 }
 0x24e   : > { %s946_s26 = sshll.u32 %s939_s3, 4  ;;  %s947_s26 = int_to_ptr.vmem [resolvable:$true] %s946_s26 }
 0x251   : > { %s6863_s2 = scalar_lea.hbm %s7585_s13, %s6324_s0  ;;  %s5807_s15 = scalar_lea.hbm %s7585_s13, 32 }
 0x252   : > { %s5803_s1 = scalar_lea.hbm %s6863_s2, 16  ;;  %p5808_p3 = scmp.lt.u32.totalorder %s6863_s2, %s7585_s13 }
 0x253   : > { %p5804_p6 = scmp.ne.s32.totalorder %s6863_s2, %s5803_s1  ;;  %p5809_p13 = scmp.lt.u32.totalorder %s5807_s15, %s5803_s1 }
 0x254   : > { %p5811_p2 = scmp.lt.u32.totalorder %s5803_s1, %s6863_s2 }
 0x255   : > { %p5805_p10 = pnand %p5804_p6, %p7552_p4  ;;  %p5810_p8 = por %p5809_p13, %p5808_p3 }
 0x257   : > { %p5806_p7 = pneg %p5805_p10  ;;  %p5812_p1 = por %p5811_p2, %p5810_p8 }
 0x259   : > { %p5813_p12 = pnand %p5812_p1, %p5806_p7 }
 0x25b   : > { %5816 = shalt.err (!%p5813_p12)
}
 0x25c   : > { %s5817_s28 = scalar_lea.vmem %s947_s26, 16  ;;  %s6015_s0 = smov [#allocation32]  }
 0x25d   : > { %p5818_p0 = scmp.ne.s32.totalorder %s947_s26, %s5817_s28  ;;  %s5821_s21 = sshll.u32 %s6015_s0, 4  ;;  %s5822_s21 = int_to_ptr.vmem [resolvable:$false] %s5821_s21 }
 0x25e   : > { %s5823_s7 = scalar_lea.vmem %s5822_s21, 32  ;;  %p5824_p9 = scmp.lt.s32.totalorder %s947_s26, %s5822_s21 }
 0x25f   : > { %p5819_p5 = pnand %p5818_p0, %p7552_p4  ;;  %p5825_p6 = scmp.lt.s32.totalorder %s5823_s7, %s5817_s28 }
 0x261   : > { %p5820_p11 = pneg %p5819_p5  ;;  %p5826_p10 = por %p5825_p6, %p5824_p9 }
 0x263   : > { %p5827_p3 = pnand %p5826_p10, %p5820_p11 }
 0x265   : > { %5830 = shalt.err (!%p5827_p3)
}
 0x266   : > { %s7586_s12 = scalar_lea.sflag [#allocation31], %s6318_s8 }
 0x267   : > { %4988 = dma.hbm_to_vmem [thread:$0]  (%p7552_p4), %s6863_s2, 16, %s947_s26, %s7586_s12  }
 0x268 PF: > { %s7587_s30 = sld [smem:[#allocation61_spill]] }
 0x26e   : > { %p7588_p7 = scmp.ne.s32.totalorder %s7587_s30, 0 }
 0x26f   : > { %s7589_s23 = sld [smem:[#allocation48_spill]] (!%p7588_p7)  ;;  %s7590_s3 = sld [smem:[#allocation55_spill]] (!%p7588_p7) }
 0x270   : > { %955 = sbr.rel (%p7588_p7) target bundleno = 6155 (0x180b), region = 96 }
 0x275   : > { %s6888_s1 = sand.u32 (!%p7588_p7), 1, %s7589_s23   ;;  %p7591_p13 = scmp.ne.s32.totalorder (!%p7588_p7), %s7590_s3, 0 }
 0x276   : > { %s4967_s20 = smul.u32 (!%p7588_p7), 12, %s6888_s1  ;;  %s958_s29 = scalar_lea.sflag (!%p7588_p7), [#allocation4], %s6888_s1 }
 0x278   : > { %s6892_s15 = scalar_lea.vmem [#allocation3], %s4967_s20 }
 0x279   : > { %5904 = dma.done.wait (%p7591_p13), %s958_s29, 192  }
 0x27a   : > { %5906 = vsyncadd (%p7591_p13), %s958_s29, 4294967104  ;;  %s7592_s10 = sld [smem:[#allocation52_spill]] }
 0x280   : > { %p7593_p4 = scmp.eq.s32.totalorder %s7592_s10, 0 }
 0x282   : > { %5908 = dma.done.wait (%p7593_p4), [#allocation7], 32   ;;  %p7594_p8 = pmov %p7593_p4 }
 0x283   : > { %s7595_s8 = sld [smem:[#allocation45_spill]]  ;;  %s7596_s2 = sld [smem:[#allocation58_spill]] }
 0x284   : > { %5910 = vsyncadd (%p7594_p8), [#allocation7], 4294967264  ;;  %s6903_s26 = sand.u32 1, %s7592_s10  }
 0x285   : > { %s975_s19 = scalar_lea.sflag [#allocation10], %s6903_s26 }
 0x289   : > { %s6906_s5 = sand.u32 1, %s7595_s8   ;;  %p7597_p2 = scmp.ne.s32.totalorder %s7596_s2, 0 }
 0x28b   : > { %5912 = dma.done.wait (%p7597_p2), %s975_s19, 32  }
 0x28c   : > { %5914 = vsyncadd (%p7597_p2), %s975_s19, 4294967264  ;;  %s6915_s0 = sshll.u32 %s6906_s5, 7  ;;  %s991_s7 = scalar_lea.sflag [#allocation13], %s6903_s26 }
 0x28d   : > { %s6920_s12 = scalar_lea.vmem [#allocation12], %s6915_s0 }
 0x28e   : > { %5916 = dma.done.wait (%p7597_p2), %s991_s7, 4096  }
 0x28f   : > { %5918 = vsyncadd (%p7597_p2), %s991_s7, 4294963200  ;;  %s6927_s30 = scalar_lea.vmem [#allocation14], %s6915_s0  ;;  %s1009_s23 = scalar_lea.sflag [#allocation16], %s6903_s26 }
 0x290   : > { %s6931_s3 = scalar_lea.vmem [#allocation15], %s6915_s0 }
 0x291   : > { %5920 = dma.done.wait (%p7597_p2), %s1009_s23, 2112  }
 0x292   : > { %5922 = vsyncadd (%p7597_p2), %s1009_s23, 4294965184  ;;  %s4328_s20 = sshll.u32 %s6906_s5, 2  ;;  %s1027_s10 = scalar_lea.sflag [#allocation19], %s6903_s26 }
 0x293   : > { %s6938_s29 = scalar_lea.vmem [#allocation17], %s4328_s20  ;;  %s6941_s8 = scalar_lea.vmem [#allocation18], %s4328_s20 }
 0x294   : > { %5924 = dma.done.wait (%p7597_p2), %s1027_s10, 128  }
 0x295   : > { %5926 = vsyncadd (%p7597_p2), %s1027_s10, 4294967168  ;;  %s4331_s19 = sshll.u32 %s6906_s5, 5  ;;  %s6948_s7 = scalar_lea.vmem [#allocation20], %s4328_s20 }
 0x296   : > { %s1045_s23 = scalar_lea.sflag [#allocation22], %s6903_s26  ;;  %s6951_s21 = scalar_lea.vmem [#allocation21], %s4331_s19 }
 0x297   : > { %5928 = dma.done.wait (%p7597_p2), %s1045_s23, 528  }
 0x298   : > { %5930 = vsyncadd (%p7597_p2), %s1045_s23, 4294966768  ;;  %s1062_s10 = scalar_lea.sflag [#allocation25], %s6903_s26 }
 0x299   : > { %5932 = dma.done.wait (%p7597_p2), %s1062_s10, 32  }
 0x29a   : > { %5934 = vsyncadd (%p7597_p2), %s1062_s10, 4294967264  ;;  %s4332_s20 = sshll.u32 %s6906_s5, 6  ;;  %s1078_s6 = scalar_lea.sflag [#allocation28], %s6903_s26 }
 0x29b   : > { %s6967_s23 = scalar_lea.vmem [#allocation27], %s4332_s20 }
 0x29c   : > { %5936 = dma.done.wait (%p7597_p2), %s1078_s6, 1056  }
 0x29d   : > { %5938 = vsyncadd (%p7597_p2), %s1078_s6, 4294966240  ;;  %s4333_s4 = sshll.u32 %s6906_s5, 1  ;;  %s1096_s28 = scalar_lea.sflag [#allocation31], %s6903_s26 }
 0x29e   : > { %s6974_s10 = scalar_lea.vmem [#allocation29], %s4333_s4  ;;  %s6978_s9 = scalar_lea.vmem [#allocation30], %s6915_s0 }
 0x29f   : > { %5940 = dma.done.wait (%p7597_p2), %s1096_s28, 2064  }
 0x2a0   : > { %5942 = vsyncadd (%p7597_p2), %s1096_s28, 4294965232  ;;  %s4335_s20 = sshll.u32 %s6888_s1, 1  ;;  %s1107_s19 = scalar_lea.vmem [#allocation32], %s6906_s5 }
 0x2a1   : > { %s6986_s6 = scalar_lea.vmem [#allocation33], %s4335_s20  ;;  %s7598_s11 = sld [smem:[#allocation49_spill]] }
 0x2a7   : > { %p4336_p1 = scmp.ne.s32.totalorder %s7598_s11, 0 }
 0x2a8   : > { %v4578_v0 = vld [vmem:[%s6892_s15] sm:$0xff] (!%p4336_p1)   ;;  %vm1249_vm0 = vcmask (!%p4336_p1), 523264   ;;  %v1243_v1 = vld [vmem:[%s6892_s15 + $0x8] sm:$0x3] (!%p4336_p1)  ;;  %vm1256_vm1 = vcmask (!%p4336_p1), 518144  }
 0x2a9   : > { %1240 = sbr.rel (%p4336_p1) target bundleno = 1002 (0x3ea), region = 176  ;;  %v4579_v2 = vunpack.c.l.bf16 (!%p4336_p1), %v4578_v0  ;;  %v1246_v3 = vunpack.c.l.bf16 (!%p4336_p1), %v1243_v1  ;;  %v4580_v4 = vunpack.c.h.bf16 (!%p4336_p1), %v4578_v0  ;;  %v4337_v33 = vld [vmem:[#allocation6] ss:$0 sm:$0xff] (!%p4336_p1)  ;;  %v4338_v35 = vld [vmem:[#allocation8] ss:$0 sm:$0xff] (!%p4336_p1) }
 0x2ab   : > { %v1250_v5 = vsel (!%p4336_p1), %vm1249_vm0, %v4579_v2, 0.0  ;;  %v1257_v6 = vsel (!%p4336_p1), %vm1256_vm1, %v1246_v3, 0.0  ;;  %v1253_v7 = vsel (!%p4336_p1), %vm1249_vm0, %v4580_v4, 0.0 }
 0x2ac   : > { %1251 = vadd.xlane.f32.xlu0 (!%p4336_p1), %v1250_v5  ;;  %1258 = vadd.xlane.f32.xlu1 (!%p4336_p1), %v1257_v6 }
 0x2b0   : > { %1254 = vadd.xlane.f32.xlu0 %v1253_v7 }
 0x339   : > { %v1252_v8 = vpop.xlane.xlu0 %1251  ;;  %v1259_v9 = vpop.xlane.xlu1 %1258 }
 0x33a   : > { %v1261_v10 = vmul.f32 0.015625, %v1252_v8  ;;  %v1263_v11 = vmul.f32 0.015625, %v1259_v9 }
 0x33c   : > { %v1264_v12 = vsub.f32 %v4579_v2, %v1261_v10  ;;  %v1266_v13 = vsub.f32 %v1246_v3, %v1263_v11 }
 0x33d   : > { %v1255_v14 = vpop.xlane.xlu0 %1254 }
 0x33e   : > { %v1262_v15 = vmul.f32 0.015625, %v1255_v14  ;;  %v1267_v16 = vmul.f32 %v1264_v12, %v1264_v12  ;;  %v1269_v17 = vmul.f32 %v1266_v13, %v1266_v13 }
 0x340   : > { %v1265_v18 = vsub.f32 %v4580_v4, %v1262_v15  ;;  %v1270_v19 = vsel %vm1249_vm0, %v1267_v16, 0.0  ;;  %v1276_v20 = vsel %vm1256_vm1, %v1269_v17, 0.0 }
 0x341   : > { %1271 = vadd.xlane.f32.xlu1 %v1270_v19 }
 0x342   : > { %v1268_v21 = vmul.f32 %v1265_v18, %v1265_v18 }
 0x344   : > { %v1273_v22 = vsel %vm1249_vm0, %v1268_v21, 0.0 }
 0x345   : > { %1277 = vadd.xlane.f32.xlu1 %v1276_v20  ;;  %1274 = vadd.xlane.f32.xlu0 %v1273_v22 }
 0x3ce   : > { %v1272_v23 = vpop.xlane.xlu1 %1271 }
 0x3cf   : > { %v1279_v24 = vmul.f32 0.015625, %v1272_v23 }
 0x3d1   : > { %v1282_v25 = vadd.f32 1e-05, %v1279_v24 }
 0x3d2   : > { %v1278_v26 = vpop.xlane.xlu1 %1277  ;;  %v1275_v27 = vpop.xlane.xlu0 %1274 }
 0x3d3   : > { %5126 = vrsqrt.f32 %v1282_v25  ;;  %v1281_v28 = vmul.f32 0.015625, %v1278_v26  ;;  %v1280_v29 = vmul.f32 0.015625, %v1275_v27 }
 0x3d5   : > { %v1284_v30 = vadd.f32 1e-05, %v1281_v28  ;;  %v1283_v31 = vadd.f32 1e-05, %v1280_v29 }
 0x3d7   : > { %5128 = vrsqrt.f32 %v1284_v30 }
 0x3d8   : > { %5130 = vrsqrt.f32 %v1283_v31 }
 0x3dd   : > { %v5127_v32 = vpop.eup %5126 }
 0x3de   : > { %v1288_v34 = vmul.f32 %v5127_v32, %v1264_v12 }
 0x3e0   : > { %v1297_v36 = vmul.f32 %v4337_v33, %v1288_v34 }
 0x3e1   : > { %v5129_v37 = vpop.eup %5128 }
 0x3e2   : > { %v5131_v38 = vpop.eup %5130  ;;  %v1306_v39 = vadd.f32 %v4338_v35, %v1297_v36  ;;  %v1290_v40 = vmul.f32 %v5129_v37, %v1266_v13 }
 0x3e3   : > { %v1289_v41 = vmul.f32 %v5131_v38, %v1265_v18 }
 0x3e4   : > { %1309 = vst.msk [vmem:[#allocation2] sm:$0xff] %vm1249_vm0, %v1306_v39  ;;  %v1299_v42 = vmul.f32 %v4337_v33, %v1290_v40 }
 0x3e5   : > { %v1298_v43 = vmul.f32 %v4337_v33, %v1289_v41 }
 0x3e6   : > { %v1308_v44 = vadd.f32 %v4338_v35, %v1299_v42 }
 0x3e7   : > { %v1307_v45 = vadd.f32 %v4338_v35, %v1298_v43 }
 0x3e8   : > { %1311 = vst.msk [vmem:[#allocation2 + $0x10] sm:$0x7] %vm1256_vm1, %v1308_v44 }
 0x3e9   : > { %1310 = vst.msk [vmem:[#allocation2 + $0x8] sm:$0xff] %vm1249_vm0, %v1307_v45 }
 0x3ea PF: > { %vm1320_vm2 = vcmask 523264   ;;  %vm1327_vm3 = vcmask 518144   ;;  %v5132_v3 = vld [vmem:[%s6920_s12] sm:$0xff]   ;;  %v5134_v5 = vld [vmem:[%s6920_s12 + $0x8] sm:$0xff]   ;;  %v5136_v7 = vld [vmem:[%s6920_s12 + $0x10] sm:$0xff]   ;;  %s7599_s4 = scalar_lea.vmem [#allocation9], %s6906_s5  ;;  %v1315_v40 = vlaneseq }
 0x3eb   : > { %v1312_v46 = vld [vmem:[#allocation2] sm:$0xff]  ;;  %v5133_v4 = vld [vmem:[%s6927_s30] sm:$0xff]   ;;  %4725 = vmatprep.subr.bf16.mxu0 %v5132_v3  ;;  %v5137_v8 = vld [vmem:[%s6927_s30 + $0x10] sm:$0xff]   ;;  %s7600_s11 = scalar_lea.vmem [#allocation11], %s6906_s5  ;;  %vm1653_vm4 = vcmask 130048   ;;  %vm1768_vm5 = vcmask 1040384  }
 0x3ec   : > { %v1321_v49 = vsel %vm1320_vm2, %v1312_v46, 0.0  ;;  %4726 = vmatpush3.bf16.msra.mxu0 %v5132_v3  ;;  %4737 = vmatprep.subr.bf16.mxu1 %v5133_v4  ;;  %v5135_v6 = vld [vmem:[%s6927_s30 + $0x8] sm:$0xff]   ;;  %v5138_v9 = vld [vmem:[%s6920_s12 + $0x18] sm:$0xff]   ;;  %v5140_v11 = vld [vmem:[%s6931_s3] sm:$0xff]   ;;  %v7039_v41 = vshrl.u32 %v1315_v40, 7  ;;  %vm1769_vm6 = vcmask 1041408  }
 0x3ed   : > { %1322 = vadd.xlane.f32.xlu0 %v1321_v49  ;;  %4738 = vmatpush3.bf16.msra.mxu1 %v5133_v4  ;;  %v5139_v10 = vld [vmem:[%s6927_s30 + $0x18] sm:$0xff]   ;;  %v4339_v23 = vld [vmem:[%s7599_s4] ss:$0 sm:$0xff]  ;;  %v5142_v38 = vld [vmem:[%s6931_s3 + $0x10] sm:$0xff]   ;;  %vm1717_vm8 = vcmask 154624   ;;  %vm1724_vm9 = vcmask 149504  }
 0x3ee   : > { %4727 = vmatprep.subr.bf16.mxu0 %v5134_v5  ;;  %4739 = vmatprep.subr.bf16.mxu1 %v5135_v6  ;;  %v4340_v29 = vld [vmem:[%s7600_s11] ss:$0 sm:$0xff]  ;;  %v5143_v39 = vld [vmem:[%s6931_s3 + $0x18] sm:$0xff]   ;;  %v1390_v42 = vld [vmem:[%s6938_s29] sm:$0x1]  ;;  %v7044_v45 = vsub.s32 0, %v7039_v41 }
 0x3ef   : > { %v1314_v47 = vld [vmem:[#allocation2 + $0x10] sm:$0x7]  ;;  %v5141_v37 = vld [vmem:[%s6931_s3 + $0x8] sm:$0xff]   ;;  %v1391_v44 = vunpack.c.l.bf16 %v1390_v42  ;;  %s7601_s15 = scalar_lea.vmem [#allocation23], %s6906_s5  ;;  %s7602_s2 = scalar_lea.vmem [#allocation24], %s6906_s5 }
 0x3f0   : > { %v1313_v48 = vld [vmem:[#allocation2 + $0x8] sm:$0xff]  ;;  %v1328_v50 = vsel %vm1327_vm3, %v1314_v47, 0.0  ;;  %4728 = vmatpush3.bf16.msra.mxu0 %v5134_v5  ;;  %v1485_v43 = vld [vmem:[%s6941_s8] sm:$0x1]  ;;  %s7603_s26 = scalar_lea.vmem [#allocation26], %s6906_s5 }
 0x3f1   : > { %v1324_v51 = vsel %vm1320_vm2, %v1313_v48, 0.0  ;;  %1329 = vadd.xlane.f32.xlu1 %v1328_v50  ;;  %4740 = vmatpush3.bf16.msra.mxu1 %v5135_v6 }
 0x3f2   : > { %1325 = vadd.xlane.f32.xlu0 %v1324_v51  ;;  %4729 = vmatprep.subr.bf16.mxu0 %v5136_v7 }
 0x3f3   : > { %4741 = vmatprep.subr.bf16.mxu1 %v5137_v8 }
 0x3f4   : > { %4730 = vmatpush3.bf16.msra.mxu0 %v5136_v7 }
 0x3f5   : > { %4742 = vmatpush3.bf16.msra.mxu1 %v5137_v8  ;;  %4731 = vmatprep.subr.bf16.mxu0 %v5138_v9  ;;  %v5144_v8 = vld [vmem:[%s6920_s12 + $0x20] sm:$0xff]  }
 0x3f6   : > { %4743 = vmatprep.subr.bf16.mxu1 %v5139_v10 }
 0x3f8   : > { %4732 = vmatpush3.bf16.msra.mxu0 %v5138_v9 }
 0x3f9   : > { %4744 = vmatpush3.bf16.msra.mxu1 %v5139_v10  ;;  %4749 = vmatprep.subr.bf16.mxu0 %v5140_v11 }
 0x47a   : > { %v1323_v52 = vpop.xlane.xlu0 %1322 }
 0x47b   : > { %v1332_v54 = vmul.f32 0.015625, %v1323_v52 }
 0x47d   : > { %v1335_v56 = vsub.f32 %v1312_v46, %v1332_v54  ;;  %v1486_v46 = vunpack.c.l.bf16 %v1485_v43 }
 0x47e   : > { %v1330_v53 = vpop.xlane.xlu1 %1329 }
 0x47f   : > { %v1334_v55 = vmul.f32 0.015625, %v1330_v53  ;;  %v1326_v58 = vpop.xlane.xlu0 %1325  ;;  %v1338_v60 = vmul.f32 %v1335_v56, %v1335_v56  ;;  %v1490_v49 = vrot.slane %v1486_v46, %v7044_v45  ;;  %v4371_v46 = vld [vmem:[%s6938_s29 + $0x1] sm:$0x1] }
 0x480   : > { %v1333_v59 = vmul.f32 0.015625, %v1326_v58 }
 0x481   : > { %v1337_v57 = vsub.f32 %v1314_v47, %v1334_v55  ;;  %v1341_v63 = vsel %vm1320_vm2, %v1338_v60, 0.0  ;;  %v1395_v47 = vrot.slane %v1391_v44, %v7044_v45 }
 0x482   : > { %v1336_v62 = vsub.f32 %v1313_v48, %v1333_v59  ;;  %1342 = vadd.xlane.f32.xlu1 %v1341_v63 }
 0x483   : > { %v1340_v61 = vmul.f32 %v1337_v57, %v1337_v57 }
 0x484   : > { %v1339_v1 = vmul.f32 %v1336_v62, %v1336_v62 }
 0x485   : > { %v1347_v0 = vsel %vm1327_vm3, %v1340_v61, 0.0 }
 0x486   : > { %v1344_v2 = vsel %vm1320_vm2, %v1339_v1, 0.0  ;;  %1348 = vadd.xlane.f32.xlu1 %v1347_v0  ;;  %v1571_v1 = vld [vmem:[%s6948_s7] sm:$0x1] }
 0x487   : > { %1345 = vadd.xlane.f32.xlu0 %v1344_v2  ;;  %v1572_v5 = vunpack.c.l.bf16 %v1571_v1 }
 0x489   : > { %v1576_v6 = vrot.slane %v1572_v5, %v7044_v45 }
 0x50f   : > { %v1343_v12 = vpop.xlane.xlu1 %1342 }
 0x510   : > { %v1350_v13 = vmul.f32 0.015625, %v1343_v12 }
 0x512   : > { %v1353_v14 = vadd.f32 1e-05, %v1350_v13 }
 0x513   : > { %v1349_v15 = vpop.xlane.xlu1 %1348 }
 0x514   : > { %v1346_v16 = vpop.xlane.xlu0 %1345  ;;  %5212 = vrsqrt.f32 %v1353_v14  ;;  %v1352_v17 = vmul.f32 0.015625, %v1349_v15  ;;  %v6016_v14 = vmov 65535  }
 0x515   : > { %v1351_v18 = vmul.f32 0.015625, %v1346_v16  ;;  %v1770_v15 = vsel %vm1768_vm5, 4294967295, %v6016_v14 }
 0x516   : > { %v1355_v19 = vadd.f32 1e-05, %v1352_v17 }
 0x517   : > { %v1354_v20 = vadd.f32 1e-05, %v1351_v18 }
 0x518   : > { %5214 = vrsqrt.f32 %v1355_v19 }
 0x519   : > { %5216 = vrsqrt.f32 %v1354_v20 }
 0x51e   : > { %v5213_v21 = vpop.eup %5212 }
 0x51f   : > { %v1359_v22 = vmul.f32 %v5213_v21, %v1335_v56  ;;  %v7056_v21 = vsel %vm1769_vm6, %v1770_v15, 0 }
 0x521   : > { %v1368_v27 = vmul.f32 %v4339_v23, %v1359_v22 }
 0x522   : > { %v5215_v24 = vpop.eup %5214 }
 0x523   : > { %v5217_v25 = vpop.eup %5216  ;;  %v1361_v26 = vmul.f32 %v5215_v24, %v1337_v57  ;;  %v1377_v33 = vadd.f32 %v4340_v29, %v1368_v27  ;;  %v5145_v24 = vld [vmem:[%s6920_s12 + $0x28] sm:$0xff]   ;;  %v5147_v27 = vld [vmem:[%s6920_s12 + $0x38] sm:$0xff]  }
 0x524   : > { %v1360_v28 = vmul.f32 %v5217_v25, %v1336_v62 }
 0x525   : > { %v1370_v30 = vmul.f32 %v4339_v23, %v1361_v26  ;;  %v5146_v26 = vld [vmem:[%s6920_s12 + $0x30] sm:$0xff]  }
 0x526   : > { %v1369_v31 = vmul.f32 %v4339_v23, %v1360_v28  ;;  %v5148_v28 = vld [vmem:[%s6931_s3 + $0x20] sm:$0xff]  }
 0x527   : > { %v1379_v32 = vadd.f32 %v4340_v29, %v1370_v30  ;;  %v5150_v30 = vld [vmem:[%s6931_s3 + $0x30] sm:$0xff]  }
 0x528   : > { %v1378_v34 = vadd.f32 %v4340_v29, %v1369_v31  ;;  %v5149_v29 = vld [vmem:[%s6931_s3 + $0x28] sm:$0xff]   ;;  %v5151_v31 = vld [vmem:[%s6931_s3 + $0x38] sm:$0xff]  }
 0x529   : > { %v7019_v35 = vpack.c.bf16 %v1379_v32, %v1379_v32  ;;  %v7076_v32 = vand.u32 127, %v1315_v40 }
 0x52a   : > { %v7021_v36 = vpack.c.bf16 %v1378_v34, %v1377_v33 }
 0x52b   : > { %vm1317_vm7 = vcmp.lt.s32.totalorder %v7076_v32, 17 }
 0x52c   : > { %4733 = vmatprep.mubr.msk.bf16.mxu0 %vm1320_vm2, %v7021_v36  ;;  %4745 = vmatprep.mubr.msk.bf16.mxu1 %vm1320_vm2, %v7021_v36 }
 0x52d   : > { %4734 = vmatmul.mubr.msk.bf16.vlgmr.msra.gmra.mrb[0].mxu0 %vm1320_vm2, %v7019_v35  ;;  %4746 = vmatmul.mubr.msk.bf16.vlgmr.msra.gmra.mrb[0].mxu1 %vm1320_vm2, %v7019_v35 }
 0x52e   : > { %4750 = vmatpush3.bf16.msra.mxu0 %v5140_v11  ;;  %4757 = vmatprep.mubr.msk.bf16.mxu0 %vm1320_vm2, %v7021_v36 }
 0x52f   : > { %4751 = vmatprep.subr.bf16.mxu0 %v5141_v37 }
 0x532   : > { %4752 = vmatpush3.bf16.msra.mxu0 %v5141_v37 }
 0x533   : > { %4753 = vmatprep.subr.bf16.mxu0 %v5142_v38 }
 0x536   : > { %4754 = vmatpush3.bf16.msra.mxu0 %v5142_v38 }
 0x537   : > { %4755 = vmatprep.subr.bf16.mxu0 %v5143_v39 }
 0x53a   : > { %4756 = vmatpush3.bf16.msra.mxu0 %v5143_v39 }
 0x53d   : > { %4758 = vmatmul.mubr.msk.bf16.vlgmr.msra.gmra.mrb[4].mxu0 %vm1320_vm2, %v7019_v35 }
 0x600   : > { %v4735_v48 = vpop.f32.mrb[0].mxu0  ;;  %v4747_v50 = vpop.f32.mrb[0].mxu1 }
 0x601   : > { %v1460_v51 = vpop.f32.mrb[1].mxu0  ;;  %v1549_v52 = vpop.f32.mrb[1].mxu1  ;;  %v1558_v58 = vadd.f32 %v4747_v50, %v1490_v49  ;;  %v1469_v7 = vadd.f32 %v4735_v48, %v1395_v47  ;;  %v1838_v48 = vunpack.c.l.bf16 %v4371_v46  ;;  %v5154_v46 = vld [vmem:[%s6927_s30 + $0x30] sm:$0xff]  }
 0x602   : > { %v1461_v53 = vadd.f32 %v1460_v51, %v1395_v47  ;;  %v4736_v54 = vpop.f32.mrb[2].mxu0  ;;  %v4748_v55 = vpop.f32.mrb[2].mxu1  ;;  %v1550_v59 = vadd.f32 %v1549_v52, %v1490_v49 }
 0x603   : > { %v1463_v56 = vpop.f32.mrb[3].mxu0  ;;  %v1552_v57 = vpop.f32.mrb[3].mxu1  ;;  %v1652_v2 = vpack.c.bf16 %v1558_v58, %v1558_v58  ;;  %v1476_v13 = vmul.f32 0.25, %v1469_v7 }
 0x604   : > { %v1464_v60 = vadd.f32 %v1463_v56, %v1395_v47  ;;  %v1553_v61 = vadd.f32 %v1552_v57, %v1490_v49  ;;  %v1474_v62 = vmul.f32 0.25, %v1461_v53  ;;  %v1842_v49 = vrot.slane %v1838_v48, %v7044_v45  ;;  %v5156_v48 = vld [vmem:[%s6951_s21] sm:$0xff]  }
 0x605   : > { %v1664_v9 = vsel %vm1653_vm4, %v1652_v2, 0  ;;  %v1650_v22 = vpack.c.bf16 %v1476_v13, %v1476_v13 }
 0x606   : > { %v1475_v63 = vmul.f32 0.25, %v1464_v60  ;;  %v1651_v0 = vpack.c.bf16 %v1553_v61, %v1550_v59  ;;  %v4401_v60 = vld [vmem:[%s6948_s7 + $0x1] sm:$0x1] }
 0x607   : > { %v2017_v61 = vunpack.c.l.bf16 %v4401_v60  ;;  %v5158_v60 = vld [vmem:[%s6927_s30 + $0x48] sm:$0xff]  }
 0x608   : > { %v1649_v3 = vpack.c.bf16 %v1475_v63, %v1474_v62  ;;  %4957 = vmatprep.subr.msk.bf16.mxu1 %vm1653_vm4, %v1651_v0  ;;  %v1661_v4 = vsel %vm1653_vm4, %v1651_v0, 0 }
 0x609   : > { %4762 = vmatpush3.bf16.xpose.msra.mxu1 %v1661_v4  ;;  %v7100_v62 = vrot.slane %v2017_v61, %v7044_v45  ;;  %v5160_v61 = vld [vmem:[%s6927_s30 + $0x58] sm:$0xff]  }
 0x60a   : > { %4958 = vmatprep.subr.msk.bf16.mxu1 %vm1653_vm4, %v1652_v2  ;;  %4765 = vmatprep.mubr.msk.bf16.mxu1 %vm1653_vm4, %v1649_v3 }
 0x610   : > { %v4759_v10 = vpop.f32.mrb[4].mxu0 }
 0x611   : > { %v1644_v11 = vadd.f32 %v4759_v10, %v1576_v6  ;;  %v1635_v12 = vpop.f32.mrb[5].mxu0  ;;  %4764 = vmatpush3.bf16.xpose.msra.mxu1 %v1664_v9 }
 0x612   : > { %v4760_v16 = vpop.f32.mrb[6].mxu0  ;;  %4777 = vmatprep.subr.bf16.mxu1 %v5144_v8  ;;  %v1636_v19 = vadd.f32 %v1635_v12, %v1576_v6 }
 0x613   : > { %v1638_v17 = vpop.f32.mrb[7].mxu0  ;;  %v1761_v18 = vpack.c.bf16 %v1644_v11, %v1644_v11 }
 0x614   : > { %v1639_v20 = vadd.f32 %v1638_v17, %v1576_v6 }
 0x615   : > { %v1773_v25 = vand.u32 %v7056_v21, %v1761_v18 }
 0x616   : > { %v1760_v23 = vpack.c.bf16 %v1639_v20, %v1636_v19 }
 0x618   : > { %4769 = vmatprep.subr.bf16.mxu0 %v1760_v23  ;;  %4766 = vmatmul.mubr.msk.bf16.vlgmr.msra.gmra.mrb[4].mxu1 %vm1653_vm4, %v1650_v22 }
 0x619   : > { %4770 = vmatpush3.bf16.msra.mxu0 %v1760_v23  ;;  %4778 = vmatpush3.bf16.msra.mxu1 %v5144_v8 }
 0x61a   : > { %4771 = vmatprep.subr.bf16.mxu0 %v1773_v25  ;;  %4785 = vmatprep.mubr.msk.bf16.mxu1 %vm1320_vm2, %v7021_v36 }
 0x61b   : > { %4779 = vmatprep.subr.bf16.mxu1 %v5145_v24 }
 0x61d   : > { %4772 = vmatpush3.bf16.msra.mxu0 %v1773_v25  ;;  %4780 = vmatpush3.bf16.msra.mxu1 %v5145_v24  ;;  %v5152_v25 = vld [vmem:[%s6927_s30 + $0x20] sm:$0xff]  }
 0x61e   : > { %4781 = vmatprep.subr.bf16.mxu1 %v5146_v26  ;;  %4789 = vmatprep.subr.bf16.mxu0 %v5152_v25 }
 0x621   : > { %4782 = vmatpush3.bf16.msra.mxu1 %v5146_v26 }
 0x622   : > { %4783 = vmatprep.subr.bf16.mxu1 %v5147_v27 }
 0x625   : > { %4784 = vmatpush3.bf16.msra.mxu1 %v5147_v27 }
 0x626   : > { %4801 = vmatprep.subr.bf16.mxu1 %v5148_v28 }
 0x628   : > { %4786 = vmatmul.mubr.msk.bf16.vlgmr.msra.gmra.mrb[8].mxu1 %vm1320_vm2, %v7019_v35 }
 0x629   : > { %4802 = vmatpush3.bf16.msra.mxu1 %v5148_v28  ;;  %4809 = vmatprep.mubr.msk.bf16.mxu1 %vm1320_vm2, %v7021_v36 }
 0x62a   : > { %4803 = vmatprep.subr.bf16.mxu1 %v5149_v29 }
 0x62d   : > { %4804 = vmatpush3.bf16.msra.mxu1 %v5149_v29 }
 0x62e   : > { %4805 = vmatprep.subr.bf16.mxu1 %v5150_v30 }
 0x631   : > { %4806 = vmatpush3.bf16.msra.mxu1 %v5150_v30 }
 0x632   : > { %4807 = vmatprep.subr.bf16.mxu1 %v5151_v31 }
 0x635   : > { %4808 = vmatpush3.bf16.msra.mxu1 %v5151_v31 }
 0x636   : > { %4835 = vmatprep.subr.bf16.mxu1 %v5156_v48 }
 0x638   : > { %4810 = vmatmul.mubr.msk.bf16.vlgmr.msra.gmra.mrb[12].mxu1 %vm1320_vm2, %v7019_v35 }
 0x639   : > { %4836 = vmatpush3.bf16.msra.mxu1 %v5156_v48 }
 0x6eb   : > { %v4767_v33 = vpop.f32.mrb[4].mxu1 }
 0x6ec   : > { %v1700_v34 = vpop.f32.mrb[5].mxu1  ;;  %v1716_v43 = vsel %vm1317_vm7, %v4767_v33, -1e+30 }
 0x6ed   : > { %v1714_v37 = vsel %vm1317_vm7, %v1700_v34, -1e+30  ;;  %v4768_v38 = vpop.f32.mrb[6].mxu1  ;;  %v1725_v47 = vsel %vm1724_vm9, %v1716_v43, -inf }
 0x6ee   : > { %v1703_v39 = vpop.f32.mrb[7].mxu1  ;;  %v1718_v42 = vsel %vm1717_vm8, %v1714_v37, -inf }
 0x6ef   : > { %v1715_v44 = vsel %vm1317_vm7, %v1703_v39, -1e+30  ;;  %1719 = vmax.xlane.f32.xlu0 %v1718_v42 }
 0x6f0   : > { %v1721_v40 = vsel %vm1717_vm8, %v1715_v44, -inf }
 0x6f1   : > { %1722 = vmax.xlane.f32.xlu1 %v1721_v40  ;;  %v5153_v40 = vld [vmem:[%s6927_s30 + $0x28] sm:$0xff]  }
 0x6f3   : > { %1726 = vmax.xlane.f32.xlu0 %v1725_v47  ;;  %v5155_v47 = vld [vmem:[%s6927_s30 + $0x38] sm:$0xff]  }
 0x6fb   : > { %v4787_v50 = vpop.f32.mrb[8].mxu1 }
 0x6fc   : > { %v7090_v51 = vadd.f32 %v4787_v50, %v1842_v49  ;;  %v1901_v52 = vpop.f32.mrb[9].mxu1 }
 0x6fd   : > { %v1902_v53 = vadd.f32 %v1901_v52, %v1842_v49  ;;  %v4788_v54 = vpop.f32.mrb[10].mxu1 }
 0x6fe   : > { %v1904_v55 = vpop.f32.mrb[11].mxu1 }
 0x6ff   : > { %v1905_v56 = vadd.f32 %v1904_v55, %v1842_v49  ;;  %v7092_v57 = vmul.f32 0.25, %v1902_v53  ;;  %v5157_v49 = vld [vmem:[%s6927_s30 + $0x40] sm:$0xff]  }
 0x700   : > { %4853 = vmatprep.subr.bf16.mxu1 %v5157_v49 }
 0x701   : > { %v7094_v58 = vmul.f32 0.25, %v1905_v56 }
 0x703   : > { %v2094_v59 = vpack.c.bf16 %v7094_v58, %v7092_v57  ;;  %v5159_v57 = vld [vmem:[%s6927_s30 + $0x50] sm:$0xff]   ;;  %v4386_v58 = vld [vmem:[%s6941_s8 + $0x1] sm:$0x1] }
 0x70b   : > { %v7102_v63 = vpop.f32.mrb[12].mxu1 }
 0x70c   : > { %v2080_v0 = vpop.f32.mrb[13].mxu1 }
 0x70d   : > { %v4812_v1 = vpop.f32.mrb[14].mxu1  ;;  %v2081_v3 = vadd.f32 %v2080_v0, %v7100_v62 }
 0x70e   : > { %v2083_v2 = vpop.f32.mrb[15].mxu1 }
 0x70f   : > { %v2084_v4 = vadd.f32 %v2083_v2, %v7100_v62 }
 0x711   : > { %v7106_v5 = vpack.c.bf16 %v2084_v4, %v2081_v3 }
 0x77c   : > { %v1720_v6 = vpop.xlane.xlu0 %1719 }
 0x77d   : > { %v1728_v7 = vmax.f32 %v1720_v6, -1e+30 }
 0x77e   : > { %v1723_v8 = vpop.xlane.xlu1 %1722 }
 0x77f   : > { %v1731_v9 = vsub.f32 %v1714_v37, %v1728_v7  ;;  %v1729_v10 = vmax.f32 %v1723_v8, -1e+30 }
 0x780   : > { %v1727_v11 = vpop.xlane.xlu0 %1726 }
 0x781   : > { %v1734_v12 = vmul.f32 1.442695, %v1731_v9  ;;  %v1732_v13 = vsub.f32 %v1715_v44, %v1729_v10  ;;  %v1730_v14 = vmax.f32 %v1727_v11, -1e+30 }
 0x783   : > { %5218 = vpow2.f32 %v1734_v12  ;;  %v1736_v15 = vmul.f32 1.442695, %v1732_v13  ;;  %v1733_v16 = vsub.f32 %v1716_v43, %v1730_v14  ;;  %v2089_v12 = vadd.f32 %v7102_v63, %v7100_v62 }
 0x784   : > { %v1917_v14 = vmul.f32 0.25, %v7090_v51  ;;  %v4443_v51 = vld [vmem:[%s6941_s8 + $0x2] sm:$0x1] }
 0x785   : > { %5220 = vpow2.f32 %v1736_v15  ;;  %v1738_v17 = vmul.f32 1.442695, %v1733_v16  ;;  %v2203_v15 = vpack.c.bf16 %v2089_v12, %v2089_v12 }
 0x786   : > { %v2095_v16 = vpack.c.bf16 %v1917_v14, %v1917_v14 }
 0x787   : > { %5222 = vpow2.f32 %v1738_v17  ;;  %v2211_v17 = vand.u32 %v2203_v15, %v7056_v21 }
 0x78d   : > { %v5219_v18 = vpop.eup %5218 }
 0x78e   : > { %v1740_v19 = vsel %vm1717_vm8, %v5219_v18, 0.0 }
 0x78f   : > { %v5221_v20 = vpop.eup %5220  ;;  %1741 = vadd.xlane.f32.xlu1 %v1740_v19 }
 0x790   : > { %v1743_v22 = vsel %vm1717_vm8, %v5221_v20, 0.0 }
 0x791   : > { %v5223_v23 = vpop.eup %5222  ;;  %1744 = vadd.xlane.f32.xlu0 %v1743_v22 }
 0x792   : > { %v1746_v24 = vsel %vm1724_vm9, %v5223_v23, 0.0 }
 0x793   : > { %1747 = vadd.xlane.f32.xlu1 %v1746_v24 }
 0x81c   : > { %v1742_v26 = vpop.xlane.xlu1 %1741 }
 0x81d   : > { %v1749_v27 = vmax.f32 %v1742_v26, 1e-30 }
 0x81e   : > { %v1745_v28 = vpop.xlane.xlu0 %1744 }
 0x81f   : > { %5224 = vrcp.f32 %v1749_v27  ;;  %v1750_v29 = vmax.f32 %v1745_v28, 1e-30 }
 0x820   : > { %v1748_v30 = vpop.xlane.xlu1 %1747 }
 0x821   : > { %5226 = vrcp.f32 %v1750_v29  ;;  %v1751_v31 = vmax.f32 %v1748_v30, 1e-30 }
 0x823   : > { %5228 = vrcp.f32 %v1751_v31 }
 0x829   : > { %v5225_v33 = vpop.eup %5224 }
 0x82a   : > { %v1755_v37 = vmul.f32 %v5225_v33, %v5219_v18 }
 0x82b   : > { %v5227_v34 = vpop.eup %5226 }
 0x82c   : > { %v1756_v38 = vmul.f32 %v5227_v34, %v5221_v20  ;;  %v2488_v20 = vunpack.c.l.bf16 %v4443_v51 }
 0x82d   : > { %v5229_v39 = vpop.eup %5228 }
 0x82e   : > { %v1757_v42 = vmul.f32 %v5229_v39, %v5223_v23  ;;  %v1758_v43 = vpack.c.bf16 %v1756_v38, %v1755_v37  ;;  %v2492_v22 = vrot.slane %v2488_v20, %v7044_v45 }
 0x830   : > { %4773 = vmatprep.mubr.msk.bf16.mxu0 %vm1717_vm8, %v1758_v43  ;;  %v1759_v44 = vpack.c.bf16 %v1757_v42, %v1757_v42 }
 0x832   : > { %4774 = vmatmul.mubr.msk.bf16.vlgmr.msra.gmra.mrb[8].mxu0 %vm1717_vm8, %v1759_v44 }
 0x833   : > { %4790 = vmatpush3.bf16.msra.mxu0 %v5152_v25  ;;  %4797 = vmatprep.mubr.msk.bf16.mxu0 %vm1320_vm2, %v7021_v36 }
 0x834   : > { %4791 = vmatprep.subr.bf16.mxu0 %v5153_v40 }
 0x837   : > { %4792 = vmatpush3.bf16.msra.mxu0 %v5153_v40 }
 0x838   : > { %4793 = vmatprep.subr.bf16.mxu0 %v5154_v46 }
 0x83b   : > { %4794 = vmatpush3.bf16.msra.mxu0 %v5154_v46 }
 0x83c   : > { %4795 = vmatprep.subr.bf16.mxu0 %v5155_v47 }
 0x83f   : > { %4796 = vmatpush3.bf16.msra.mxu0 %v5155_v47 }
 0x842   : > { %4798 = vmatmul.mubr.msk.bf16.vlgmr.msra.gmra.mrb[12].mxu0 %vm1320_vm2, %v7019_v35 }
 0x843   : > { %4817 = vmatprep.mubr.msk.bf16.mxu0 %vm1653_vm4, %v2094_v59  ;;  %v1929_v59 = vunpack.c.l.bf16 %v4386_v58 }
 0x845   : > { %v1933_v0 = vrot.slane %v1929_v59, %v7044_v45 }
 0x905   : > { %v4775_v50 = vpop.f32.mrb[8].mxu0 }
 0x906   : > { %v1809_v52 = vpop.f32.mrb[9].mxu0  ;;  %v1824_v56 = vpack.c.bf16 %v4775_v50, %v4775_v50 }
 0x907   : > { %v4776_v53 = vpop.f32.mrb[10].mxu0 }
 0x908   : > { %v1812_v54 = vpop.f32.mrb[11].mxu0 }
 0x909   : > { %v1823_v55 = vpack.c.bf16 %v1812_v54, %v1809_v52 }
 0x90b   : > { %4837 = vmatprep.mubr.msk.bf16.mxu1 %vm1653_vm4, %v1823_v55 }
 0x90c   : > { %4838 = vmatmul.mubr.msk.bf16.vlgmr.msra.gmra.mrb[16].mxu1 %vm1653_vm4, %v1824_v56 }
 0x90d   : > { %4854 = vmatpush3.bf16.msra.mxu1 %v5157_v49  ;;  %4861 = vmatprep.mubr.msk.bf16.mxu1 %vm1320_vm2, %v7021_v36 }
 0x90e   : > { %4855 = vmatprep.subr.bf16.mxu1 %v5158_v60 }
 0x911   : > { %4856 = vmatpush3.bf16.msra.mxu1 %v5158_v60 }
 0x912   : > { %4857 = vmatprep.subr.bf16.mxu1 %v5159_v57 }
 0x915   : > { %v4799_v1 = vpop.f32.mrb[12].mxu0  ;;  %4858 = vmatpush3.bf16.msra.mxu1 %v5159_v57 }
 0x916   : > { %v1992_v2 = vpop.f32.mrb[13].mxu0  ;;  %4859 = vmatprep.subr.bf16.mxu1 %v5160_v61  ;;  %v2001_v6 = vadd.f32 %v4799_v1, %v1933_v0 }
 0x917   : > { %v4800_v3 = vpop.f32.mrb[14].mxu0  ;;  %v1993_v7 = vadd.f32 %v1992_v2, %v1933_v0 }
 0x918   : > { %v1995_v4 = vpop.f32.mrb[15].mxu0  ;;  %v2097_v10 = vpack.c.bf16 %v2001_v6, %v2001_v6  ;;  %v5161_v6 = vld [vmem:[%s6951_s21 + $0x8] sm:$0xff]  }
 0x919   : > { %v1996_v8 = vadd.f32 %v1995_v4, %v1933_v0  ;;  %4860 = vmatpush3.bf16.msra.mxu1 %v5160_v61 }
 0x91a   : > { %v2108_v13 = vsel %vm1653_vm4, %v2097_v10, 0 }
 0x91b   : > { %v2096_v9 = vpack.c.bf16 %v1996_v8, %v1993_v7 }
 0x91c   : > { %4862 = vmatmul.mubr.msk.bf16.vlgmr.msra.gmra.mrb[20].mxu1 %vm1320_vm2, %v7019_v35 }
 0x91d   : > { %4959 = vmatprep.subr.msk.bf16.mxu0 %vm1653_vm4, %v2096_v9  ;;  %v2105_v11 = vsel %vm1653_vm4, %v2096_v9, 0 }
 0x91e   : > { %4814 = vmatpush3.bf16.xpose.msra.mxu0 %v2105_v11 }
 0x91f   : > { %4960 = vmatprep.subr.msk.bf16.mxu0 %vm1653_vm4, %v2097_v10 }
 0x926   : > { %4816 = vmatpush3.bf16.xpose.msra.mxu0 %v2108_v13 }
 0x927   : > { %4821 = vmatprep.subr.bf16.mxu0 %v7106_v5 }
 0x92d   : > { %4818 = vmatmul.mubr.msk.bf16.vlgmr.msra.gmra.mrb[16].mxu0 %vm1653_vm4, %v2095_v16 }
 0x92e   : > { %4822 = vmatpush3.bf16.msra.mxu0 %v7106_v5 }
 0x92f   : > { %4823 = vmatprep.subr.bf16.mxu0 %v2211_v17 }
 0x932   : > { %4824 = vmatpush3.bf16.msra.mxu0 %v2211_v17 }
 0x933   : > { %4829 = vmatprep.subr.bf16.mxu0 %v5161_v6 }
 0x9df   : > { %v7149_v18 = vpop.f32.mrb[16].mxu1 }
 0x9e0   : > { %v7151_v62 = vpop.f32.mrb[17].mxu1 }
 0x9e1   : > { %v4840_v63 = vpop.f32.mrb[18].mxu1 }
 0x9e2   : > { %v7153_v19 = vpop.f32.mrb[19].mxu1 }
 0x9ef   : > { %v4863_v23 = vpop.f32.mrb[20].mxu1 }
 0x9f0   : > { %v2551_v24 = vpop.f32.mrb[21].mxu1  ;;  %v2560_v27 = vadd.f32 %v4863_v23, %v2492_v22 }
 0x9f1   : > { %v4864_v25 = vpop.f32.mrb[22].mxu1  ;;  %v2552_v28 = vadd.f32 %v2551_v24, %v2492_v22 }
 0x9f2   : > { %v2554_v26 = vpop.f32.mrb[23].mxu1  ;;  %v2656_v30 = vpack.c.bf16 %v2560_v27, %v2560_v27 }
 0x9f3   : > { %v2555_v5 = vadd.f32 %v2554_v26, %v2492_v22  ;;  %v5162_v22 = vld [vmem:[%s6920_s12 + $0x40] sm:$0xff]  }
 0x9f4   : > { %v2667_v33 = vsel %vm1653_vm4, %v2656_v30, 0 }
 0x9f5   : > { %v2655_v29 = vpack.c.bf16 %v2555_v5, %v2552_v28  ;;  %v5163_v5 = vld [vmem:[%s6920_s12 + $0x48] sm:$0xff]  }
 0x9f7   : > { %4961 = vmatprep.subr.msk.bf16.mxu1 %vm1653_vm4, %v2655_v29  ;;  %v2664_v31 = vsel %vm1653_vm4, %v2655_v29, 0  ;;  %v5164_v29 = vld [vmem:[%s6920_s12 + $0x50] sm:$0xff]  }
 0x9f8   : > { %4878 = vmatpush3.bf16.xpose.msra.mxu1 %v2664_v31  ;;  %v5166_v31 = vld [vmem:[%s6931_s3 + $0x40] sm:$0xff]  }
 0x9f9   : > { %4962 = vmatprep.subr.msk.bf16.mxu1 %vm1653_vm4, %v2656_v30  ;;  %v5165_v30 = vld [vmem:[%s6920_s12 + $0x58] sm:$0xff]  }
 0xa00   : > { %v4819_v34 = vpop.f32.mrb[16].mxu0  ;;  %4880 = vmatpush3.bf16.xpose.msra.mxu1 %v2667_v33  ;;  %v5167_v33 = vld [vmem:[%s6931_s3 + $0x48] sm:$0xff]  }
 0xa01   : > { %v2144_v37 = vpop.f32.mrb[17].mxu0  ;;  %v2160_v44 = vsel %vm1317_vm7, %v4819_v34, -1e+30  ;;  %v5168_v34 = vld [vmem:[%s6931_s3 + $0x50] sm:$0xff]  }
 0xa02   : > { %v2158_v38 = vsel %vm1317_vm7, %v2144_v37, -1e+30  ;;  %v4820_v39 = vpop.f32.mrb[18].mxu0  ;;  %v2167_v47 = vsel %vm1724_vm9, %v2160_v44, -inf  ;;  %v5169_v37 = vld [vmem:[%s6931_s3 + $0x58] sm:$0xff]  }
 0xa03   : > { %v2147_v42 = vpop.f32.mrb[19].mxu0  ;;  %v2161_v43 = vsel %vm1717_vm8, %v2158_v38, -inf }
 0xa04   : > { %v2159_v40 = vsel %vm1317_vm7, %v2147_v42, -1e+30  ;;  %2162 = vmax.xlane.f32.xlu0 %v2161_v43 }
 0xa05   : > { %v2164_v46 = vsel %vm1717_vm8, %v2159_v40, -inf }
 0xa06   : > { %2165 = vmax.xlane.f32.xlu1 %v2164_v46 }
 0xa08   : > { %2168 = vmax.xlane.f32.xlu0 %v2167_v47  ;;  %v4428_v47 = vld [vmem:[%s6938_s29 + $0x2] sm:$0x1] }
 0xa91   : > { %v2163_v48 = vpop.xlane.xlu0 %2162 }
 0xa92   : > { %v2170_v49 = vmax.f32 %v2163_v48, -1e+30  ;;  %v2397_v48 = vunpack.c.l.bf16 %v4428_v47 }
 0xa93   : > { %v2166_v50 = vpop.xlane.xlu1 %2165 }
 0xa94   : > { %v2173_v52 = vsub.f32 %v2158_v38, %v2170_v49  ;;  %v2171_v53 = vmax.f32 %v2166_v50, -1e+30  ;;  %v2401_v49 = vrot.slane %v2397_v48, %v7044_v45  ;;  %v5170_v48 = vld [vmem:[%s6920_s12 + $0x60] sm:$0xff]  }
 0xa95   : > { %v2169_v54 = vpop.xlane.xlu0 %2168 }
 0xa96   : > { %v2176_v55 = vmul.f32 1.442695, %v2173_v52  ;;  %v2174_v56 = vsub.f32 %v2159_v40, %v2171_v53  ;;  %v2172_v60 = vmax.f32 %v2169_v54, -1e+30 }
 0xa98   : > { %5230 = vpow2.f32 %v2176_v55  ;;  %v2178_v57 = vmul.f32 1.442695, %v2174_v56  ;;  %v2175_v58 = vsub.f32 %v2160_v44, %v2172_v60 }
 0xa9a   : > { %5232 = vpow2.f32 %v2178_v57  ;;  %v2180_v59 = vmul.f32 1.442695, %v2175_v58  ;;  %v4458_v58 = vld [vmem:[%s6948_s7 + $0x2] sm:$0x1] }
 0xa9c   : > { %5234 = vpow2.f32 %v2180_v59 }
 0xaa2   : > { %v5231_v61 = vpop.eup %5230 }
 0xaa3   : > { %v2182_v0 = vsel %vm1717_vm8, %v5231_v61, 0.0 }
 0xaa4   : > { %v5233_v1 = vpop.eup %5232  ;;  %2183 = vadd.xlane.f32.xlu1 %v2182_v0  ;;  %v2576_v0 = vunpack.c.l.bf16 %v4458_v58 }
 0xaa5   : > { %v2185_v2 = vsel %vm1717_vm8, %v5233_v1, 0.0 }
 0xaa6   : > { %v5235_v3 = vpop.eup %5234  ;;  %2186 = vadd.xlane.f32.xlu0 %v2185_v2 }
 0xaa7   : > { %v2188_v4 = vsel %vm1724_vm9, %v5235_v3, 0.0 }
 0xaa8   : > { %2189 = vadd.xlane.f32.xlu1 %v2188_v4 }
 0xb31   : > { %v2184_v7 = vpop.xlane.xlu1 %2183 }
 0xb32   : > { %v2191_v8 = vmax.f32 %v2184_v7, 1e-30 }
 0xb33   : > { %v2187_v9 = vpop.xlane.xlu0 %2186 }
 0xb34   : > { %5236 = vrcp.f32 %v2191_v8  ;;  %v2192_v10 = vmax.f32 %v2187_v9, 1e-30 }
 0xb35   : > { %v2190_v11 = vpop.xlane.xlu1 %2189 }
 0xb36   : > { %5238 = vrcp.f32 %v2192_v10  ;;  %v2193_v12 = vmax.f32 %v2190_v11, 1e-30 }
 0xb38   : > { %5240 = vrcp.f32 %v2193_v12 }
 0xb3e   : > { %v5237_v13 = vpop.eup %5236 }
 0xb3f   : > { %v2197_v15 = vmul.f32 %v5237_v13, %v5231_v61 }
 0xb40   : > { %v5239_v14 = vpop.eup %5238 }
 0xb41   : > { %v2198_v16 = vmul.f32 %v5239_v14, %v5233_v1 }
 0xb42   : > { %v5241_v17 = vpop.eup %5240 }
 0xb43   : > { %v2199_v63 = vmul.f32 %v5241_v17, %v5235_v3  ;;  %v2200_v51 = vpack.c.bf16 %v2198_v16, %v2197_v15 }
 0xb45   : > { %4825 = vmatprep.mubr.msk.bf16.mxu0 %vm1717_vm8, %v2200_v51  ;;  %v2201_v20 = vpack.c.bf16 %v2199_v63, %v2199_v63 }
 0xb47   : > { %4826 = vmatmul.mubr.msk.bf16.vlgmr.msra.gmra.mrb[20].mxu0 %vm1717_vm8, %v2201_v20 }
 0xb48   : > { %4830 = vmatpush3.bf16.msra.mxu0 %v5161_v6 }
 0xb49   : > { %4841 = vmatprep.subr.bf16.mxu0 %v5162_v22 }
 0xc1a   : > { %v4827_v23 = vpop.f32.mrb[20].mxu0 }
 0xc1b   : > { %v2247_v24 = vpop.f32.mrb[21].mxu0  ;;  %v2262_v28 = vpack.c.bf16 %v4827_v23, %v4827_v23 }
 0xc1c   : > { %v4828_v25 = vpop.f32.mrb[22].mxu0 }
 0xc1d   : > { %v2250_v26 = vpop.f32.mrb[23].mxu0 }
 0xc1e   : > { %v2261_v27 = vpack.c.bf16 %v2250_v26, %v2247_v24 }
 0xc20   : > { %4831 = vmatprep.mubr.msk.bf16.mxu0 %vm1653_vm4, %v2261_v27 }
 0xc21   : > { %4832 = vmatmul.mubr.msk.bf16.vlgmr.msra.gmra.mrb[24].mxu0 %vm1653_vm4, %v2262_v28 }
 0xc22   : > { %4842 = vmatpush3.bf16.msra.mxu0 %v5162_v22  ;;  %4849 = vmatprep.mubr.msk.bf16.mxu0 %vm1320_vm2, %v7021_v36 }
 0xc23   : > { %4843 = vmatprep.subr.bf16.mxu0 %v5163_v5 }
 0xc26   : > { %4844 = vmatpush3.bf16.msra.mxu0 %v5163_v5 }
 0xc27   : > { %4845 = vmatprep.subr.bf16.mxu0 %v5164_v29 }
 0xc2a   : > { %4846 = vmatpush3.bf16.msra.mxu0 %v5164_v29 }
 0xc2b   : > { %4847 = vmatprep.subr.bf16.mxu0 %v5165_v30 }
 0xc2e   : > { %4848 = vmatpush3.bf16.msra.mxu0 %v5165_v30 }
 0xc2f   : > { %4865 = vmatprep.subr.bf16.mxu0 %v5166_v31 }
 0xc31   : > { %4850 = vmatmul.mubr.msk.bf16.vlgmr.msra.gmra.mrb[28].mxu0 %vm1320_vm2, %v7019_v35 }
 0xc32   : > { %4866 = vmatpush3.bf16.msra.mxu0 %v5166_v31  ;;  %4873 = vmatprep.mubr.msk.bf16.mxu0 %vm1320_vm2, %v7021_v36 }
 0xc33   : > { %4867 = vmatprep.subr.bf16.mxu0 %v5167_v33 }
 0xc36   : > { %4868 = vmatpush3.bf16.msra.mxu0 %v5167_v33 }
 0xc37   : > { %4869 = vmatprep.subr.bf16.mxu0 %v5168_v34 }
 0xc3a   : > { %4870 = vmatpush3.bf16.msra.mxu0 %v5168_v34 }
 0xc3b   : > { %4871 = vmatprep.subr.bf16.mxu0 %v5169_v37 }
 0xc3e   : > { %4872 = vmatpush3.bf16.msra.mxu0 %v5169_v37 }
 0xc41   : > { %4874 = vmatmul.mubr.msk.bf16.vlgmr.msra.gmra.mrb[32].mxu0 %vm1320_vm2, %v7019_v35 }
 0xcf4   : > { %v4833_v38 = vpop.f32.mrb[24].mxu0 }
 0xcf5   : > { %v7195_v39 = vadd.f32 %v7149_v18, %v4833_v38  ;;  %v2312_v42 = vpop.f32.mrb[25].mxu0 }
 0xcf6   : > { %v7198_v43 = vadd.f32 %v7151_v62, %v2312_v42  ;;  %v4834_v44 = vpop.f32.mrb[26].mxu0 }
 0xcf7   : > { %v2315_v40 = vpop.f32.mrb[27].mxu0 }
 0xcf8   : > { %v7201_v46 = vadd.f32 %v7153_v19, %v2315_v40  ;;  %v2580_v19 = vrot.slane %v2576_v0, %v7044_v45 }
 0xd04   : > { %v4851_v50 = vpop.f32.mrb[28].mxu0 }
 0xd05   : > { %v2469_v52 = vadd.f32 %v4851_v50, %v2401_v49  ;;  %v2460_v53 = vpop.f32.mrb[29].mxu0 }
 0xd06   : > { %v2461_v54 = vadd.f32 %v2460_v53, %v2401_v49  ;;  %v4852_v18 = vpop.f32.mrb[30].mxu0 }
 0xd07   : > { %v2463_v55 = vpop.f32.mrb[31].mxu0  ;;  %v2476_v60 = vmul.f32 0.25, %v2469_v52 }
 0xd08   : > { %v2464_v56 = vadd.f32 %v2463_v55, %v2401_v49  ;;  %v2474_v62 = vmul.f32 0.25, %v2461_v54  ;;  %v5178_v49 = vld [vmem:[%s6951_s21 + $0x10] sm:$0xff]  }
 0xd09   : > { %v2654_v61 = vpack.c.bf16 %v2476_v60, %v2476_v60  ;;  %4893 = vmatprep.subr.bf16.mxu1 %v5178_v49 }
 0xd0a   : > { %v2475_v57 = vmul.f32 0.25, %v2464_v56 }
 0xd0c   : > { %v2653_v59 = vpack.c.bf16 %v2475_v57, %v2474_v62 }
 0xd0e   : > { %4881 = vmatprep.mubr.msk.bf16.mxu1 %vm1653_vm4, %v2653_v59 }
 0xd0f   : > { %4882 = vmatmul.mubr.msk.bf16.vlgmr.msra.gmra.mrb[24].mxu1 %vm1653_vm4, %v2654_v61 }
 0xd10   : > { %4894 = vmatpush3.bf16.msra.mxu1 %v5178_v49 }
 0xd14   : > { %v4875_v1 = vpop.f32.mrb[32].mxu0 }
 0xd15   : > { %v2648_v2 = vadd.f32 %v4875_v1, %v2580_v19  ;;  %v2639_v3 = vpop.f32.mrb[33].mxu0  ;;  %v5172_v1 = vld [vmem:[%s6920_s12 + $0x70] sm:$0xff]  }
 0xd16   : > { %v4876_v4 = vpop.f32.mrb[34].mxu0  ;;  %v2640_v8 = vadd.f32 %v2639_v3, %v2580_v19  ;;  %v5174_v3 = vld [vmem:[%s6931_s3 + $0x60] sm:$0xff]  }
 0xd17   : > { %v2642_v6 = vpop.f32.mrb[35].mxu0  ;;  %v2762_v7 = vpack.c.bf16 %v2648_v2, %v2648_v2  ;;  %v5173_v2 = vld [vmem:[%s6920_s12 + $0x78] sm:$0xff]   ;;  %v5175_v4 = vld [vmem:[%s6931_s3 + $0x68] sm:$0xff]  }
 0xd18   : > { %v2643_v9 = vadd.f32 %v2642_v6, %v2580_v19  ;;  %v5171_v19 = vld [vmem:[%s6920_s12 + $0x68] sm:$0xff]   ;;  %v5176_v6 = vld [vmem:[%s6931_s3 + $0x70] sm:$0xff]  }
 0xd19   : > { %v2770_v11 = vand.u32 %v2762_v7, %v7056_v21  ;;  %v5177_v7 = vld [vmem:[%s6931_s3 + $0x78] sm:$0xff]  }
 0xd1a   : > { %v2761_v10 = vpack.c.bf16 %v2643_v9, %v2640_v8  ;;  %v5179_v8 = vld [vmem:[%s6927_s30 + $0x60] sm:$0xff]  }
 0xd1b   : > { %4911 = vmatprep.subr.bf16.mxu1 %v5179_v8 }
 0xd1c   : > { %4885 = vmatprep.subr.bf16.mxu0 %v2761_v10 }
 0xd1d   : > { %4886 = vmatpush3.bf16.msra.mxu0 %v2761_v10 }
 0xd1e   : > { %4887 = vmatprep.subr.bf16.mxu0 %v2770_v11 }
 0xd21   : > { %4888 = vmatpush3.bf16.msra.mxu0 %v2770_v11 }
 0xd22   : > { %4899 = vmatprep.subr.bf16.mxu0 %v5170_v48 }
 0xde2   : > { %v4883_v12 = vpop.f32.mrb[24].mxu1 }
 0xde3   : > { %v2703_v13 = vpop.f32.mrb[25].mxu1  ;;  %v2719_v63 = vsel %vm1317_vm7, %v4883_v12, -1e+30 }
 0xde4   : > { %v2717_v14 = vsel %vm1317_vm7, %v2703_v13, -1e+30  ;;  %v4884_v15 = vpop.f32.mrb[26].mxu1  ;;  %v2726_v22 = vsel %vm1724_vm9, %v2719_v63, -inf }
 0xde5   : > { %v2706_v16 = vpop.f32.mrb[27].mxu1  ;;  %v2720_v17 = vsel %vm1717_vm8, %v2717_v14, -inf  ;;  %v5180_v15 = vld [vmem:[%s6927_s30 + $0x68] sm:$0xff]  }
 0xde6   : > { %v2718_v51 = vsel %vm1317_vm7, %v2706_v16, -1e+30  ;;  %2721 = vmax.xlane.f32.xlu0 %v2720_v17  ;;  %v4482_v16 = vld [vmem:[%s6938_s29 + $0x3] sm:$0x1]  ;;  %v5181_v17 = vld [vmem:[%s6927_s30 + $0x70] sm:$0xff]  }
 0xde7   : > { %v2723_v20 = vsel %vm1717_vm8, %v2718_v51, -inf }
 0xde8   : > { %2724 = vmax.xlane.f32.xlu1 %v2723_v20  ;;  %v5182_v20 = vld [vmem:[%s6927_s30 + $0x78] sm:$0xff]  }
 0xdea   : > { %2727 = vmax.xlane.f32.xlu0 %v2726_v22 }
 0xe73   : > { %v2722_v23 = vpop.xlane.xlu0 %2721 }
 0xe74   : > { %v2729_v24 = vmax.f32 %v2722_v23, -1e+30 }
 0xe75   : > { %v2725_v25 = vpop.xlane.xlu1 %2724 }
 0xe76   : > { %v2732_v26 = vsub.f32 %v2717_v14, %v2729_v24  ;;  %v2730_v27 = vmax.f32 %v2725_v25, -1e+30 }
 0xe77   : > { %v2728_v28 = vpop.xlane.xlu0 %2727 }
 0xe78   : > { %v2735_v5 = vmul.f32 1.442695, %v2732_v26  ;;  %v2733_v29 = vsub.f32 %v2718_v51, %v2730_v27  ;;  %v2731_v30 = vmax.f32 %v2728_v28, -1e+30 }
 0xe7a   : > { %5242 = vpow2.f32 %v2735_v5  ;;  %v2737_v31 = vmul.f32 1.442695, %v2733_v29  ;;  %v2734_v33 = vsub.f32 %v2719_v63, %v2731_v30  ;;  %v2899_v63 = vunpack.c.l.bf16 %v4482_v16  ;;  %v4512_v29 = vld [vmem:[%s6948_s7 + $0x3] sm:$0x1] }
 0xe7c   : > { %5244 = vpow2.f32 %v2737_v31  ;;  %v2739_v34 = vmul.f32 1.442695, %v2734_v33  ;;  %v2903_v51 = vrot.slane %v2899_v63, %v7044_v45  ;;  %v3078_v31 = vunpack.c.l.bf16 %v4512_v29 }
 0xe7e   : > { %5246 = vpow2.f32 %v2739_v34  ;;  %v3082_v33 = vrot.slane %v3078_v31, %v7044_v45 }
 0xe84   : > { %v5243_v37 = vpop.eup %5242 }
 0xe85   : > { %v2741_v38 = vsel %vm1717_vm8, %v5243_v37, 0.0 }
 0xe86   : > { %v5245_v42 = vpop.eup %5244  ;;  %2742 = vadd.xlane.f32.xlu1 %v2741_v38 }
 0xe87   : > { %v2744_v44 = vsel %vm1717_vm8, %v5245_v42, 0.0 }
 0xe88   : > { %v5247_v40 = vpop.eup %5246  ;;  %2745 = vadd.xlane.f32.xlu0 %v2744_v44 }
 0xe89   : > { %v2747_v47 = vsel %vm1724_vm9, %v5247_v40, 0.0 }
 0xe8a   : > { %2748 = vadd.xlane.f32.xlu1 %v2747_v47 }
 0xf13   : > { %v2743_v50 = vpop.xlane.xlu1 %2742 }
 0xf14   : > { %v2750_v52 = vmax.f32 %v2743_v50, 1e-30 }
 0xf15   : > { %v2746_v53 = vpop.xlane.xlu0 %2745 }
 0xf16   : > { %5248 = vrcp.f32 %v2750_v52  ;;  %v2751_v54 = vmax.f32 %v2746_v53, 1e-30 }
 0xf17   : > { %v2749_v18 = vpop.xlane.xlu1 %2748 }
 0xf18   : > { %5250 = vrcp.f32 %v2751_v54  ;;  %v2752_v55 = vmax.f32 %v2749_v18, 1e-30 }
 0xf1a   : > { %5252 = vrcp.f32 %v2752_v55 }
 0xf20   : > { %v5249_v56 = vpop.eup %5248 }
 0xf21   : > { %v2756_v62 = vmul.f32 %v5249_v56, %v5243_v37 }
 0xf22   : > { %v5251_v60 = vpop.eup %5250 }
 0xf23   : > { %v2757_v57 = vmul.f32 %v5251_v60, %v5245_v42  ;;  %v4497_v60 = vld [vmem:[%s6941_s8 + $0x3] sm:$0x1] }
 0xf24   : > { %v5253_v58 = vpop.eup %5252 }
 0xf25   : > { %v2758_v59 = vmul.f32 %v5253_v58, %v5247_v40  ;;  %v2759_v61 = vpack.c.bf16 %v2757_v57, %v2756_v62  ;;  %v2990_v62 = vunpack.c.l.bf16 %v4497_v60 }
 0xf27   : > { %4889 = vmatprep.mubr.msk.bf16.mxu0 %vm1717_vm8, %v2759_v61  ;;  %v2760_v0 = vpack.c.bf16 %v2758_v59, %v2758_v59 }
 0xf29   : > { %4890 = vmatmul.mubr.msk.bf16.vlgmr.msra.gmra.mrb[36].mxu0 %vm1717_vm8, %v2760_v0 }
 0xf2a   : > { %4900 = vmatpush3.bf16.msra.mxu0 %v5170_v48  ;;  %4907 = vmatprep.mubr.msk.bf16.mxu0 %vm1320_vm2, %v7021_v36 }
 0xf2b   : > { %4901 = vmatprep.subr.bf16.mxu0 %v5171_v19 }
 0xf2e   : > { %4902 = vmatpush3.bf16.msra.mxu0 %v5171_v19 }
 0xf2f   : > { %4903 = vmatprep.subr.bf16.mxu0 %v5172_v1 }
 0xf32   : > { %4904 = vmatpush3.bf16.msra.mxu0 %v5172_v1 }
 0xf33   : > { %4905 = vmatprep.subr.bf16.mxu0 %v5173_v2 }
 0xf36   : > { %4906 = vmatpush3.bf16.msra.mxu0 %v5173_v2 }
 0xf37   : > { %4923 = vmatprep.subr.bf16.mxu0 %v5174_v3 }
 0xf39   : > { %4908 = vmatmul.mubr.msk.bf16.vlgmr.msra.gmra.mrb[40].mxu0 %vm1320_vm2, %v7019_v35 }
 0xf3a   : > { %4924 = vmatpush3.bf16.msra.mxu0 %v5174_v3  ;;  %4931 = vmatprep.mubr.msk.bf16.mxu0 %vm1320_vm2, %v7021_v36 }
 0xf3b   : > { %4925 = vmatprep.subr.bf16.mxu0 %v5175_v4 }
 0xf3e   : > { %4926 = vmatpush3.bf16.msra.mxu0 %v5175_v4 }
 0xf3f   : > { %4927 = vmatprep.subr.bf16.mxu0 %v5176_v6 }
 0xf42   : > { %4928 = vmatpush3.bf16.msra.mxu0 %v5176_v6 }
 0xf43   : > { %4929 = vmatprep.subr.bf16.mxu0 %v5177_v7 }
 0xf46   : > { %4930 = vmatpush3.bf16.msra.mxu0 %v5177_v7 }
 0xf49   : > { %4932 = vmatmul.mubr.msk.bf16.vlgmr.msra.gmra.mrb[44].mxu0 %vm1320_vm2, %v7019_v35 }
 0xffc   : > { %v4891_v9 = vpop.f32.mrb[36].mxu0 }
 0xffd   : > { %v2806_v10 = vpop.f32.mrb[37].mxu0  ;;  %v2821_v14 = vpack.c.bf16 %v4891_v9, %v4891_v9 }
 0xffe   : > { %v4892_v11 = vpop.f32.mrb[38].mxu0 }
 0xfff   : > { %v2809_v12 = vpop.f32.mrb[39].mxu0 }
0x1000   : > { %v2820_v13 = vpack.c.bf16 %v2809_v12, %v2806_v10 }
0x1002   : > { %4895 = vmatprep.mubr.msk.bf16.mxu1 %vm1653_vm4, %v2820_v13 }
0x1003   : > { %4896 = vmatmul.mubr.msk.bf16.vlgmr.msra.gmra.mrb[28].mxu1 %vm1653_vm4, %v2821_v14 }
0x1004   : > { %4912 = vmatpush3.bf16.msra.mxu1 %v5179_v8  ;;  %4919 = vmatprep.mubr.msk.bf16.mxu1 %vm1320_vm2, %v7021_v36 }
0x1005   : > { %4913 = vmatprep.subr.bf16.mxu1 %v5180_v15 }
0x1008   : > { %4914 = vmatpush3.bf16.msra.mxu1 %v5180_v15 }
0x1009   : > { %4915 = vmatprep.subr.bf16.mxu1 %v5181_v17 }
0x100c   : > { %v4909_v22 = vpop.f32.mrb[40].mxu0  ;;  %4916 = vmatpush3.bf16.msra.mxu1 %v5181_v17 }
0x100d   : > { %v2971_v23 = vadd.f32 %v4909_v22, %v2903_v51  ;;  %v2962_v24 = vpop.f32.mrb[41].mxu0  ;;  %4917 = vmatprep.subr.bf16.mxu1 %v5182_v20 }
0x100e   : > { %v2963_v25 = vadd.f32 %v2962_v24, %v2903_v51  ;;  %v4910_v26 = vpop.f32.mrb[42].mxu0 }
0x100f   : > { %v2965_v27 = vpop.f32.mrb[43].mxu0  ;;  %v2978_v3 = vmul.f32 0.25, %v2971_v23 }
0x1010   : > { %v2966_v28 = vadd.f32 %v2965_v27, %v2903_v51  ;;  %4918 = vmatpush3.bf16.msra.mxu1 %v5182_v20  ;;  %v2976_v36 = vmul.f32 0.25, %v2963_v25 }
0x1011   : > { %v3156_v4 = vpack.c.bf16 %v2978_v3, %v2978_v3 }
0x1012   : > { %v2977_v5 = vmul.f32 0.25, %v2966_v28 }
0x1013   : > { %4920 = vmatmul.mubr.msk.bf16.vlgmr.msra.gmra.mrb[32].mxu1 %vm1320_vm2, %v7019_v35 }
0x1014   : > { %v3155_v30 = vpack.c.bf16 %v2977_v5, %v2976_v36 }
0x1016   : > { %4939 = vmatprep.mubr.msk.bf16.mxu1 %vm1653_vm4, %v3155_v30 }
0x101c   : > { %v4933_v34 = vpop.f32.mrb[44].mxu0 }
0x101d   : > { %v3150_v37 = vadd.f32 %v4933_v34, %v3082_v33  ;;  %v3141_v38 = vpop.f32.mrb[45].mxu0 }
0x101e   : > { %v4934_v42 = vpop.f32.mrb[46].mxu0  ;;  %v3142_v47 = vadd.f32 %v3141_v38, %v3082_v33 }
0x101f   : > { %v3144_v44 = vpop.f32.mrb[47].mxu0  ;;  %v3264_v40 = vpack.c.bf16 %v3150_v37, %v3150_v37 }
0x1020   : > { %v3145_v48 = vadd.f32 %v3144_v44, %v3082_v33  ;;  %v5183_v33 = vld [vmem:[%s6951_s21 + $0x18] sm:$0xff]  }
0x1021   : > { %v3272_v50 = vand.u32 %v3264_v40, %v7056_v21  ;;  %v2994_v21 = vrot.slane %v2990_v62, %v7044_v45 }
0x1022   : > { %v3263_v49 = vpack.c.bf16 %v3145_v48, %v3142_v47 }
0x1024   : > { %4943 = vmatprep.subr.bf16.mxu0 %v3263_v49 }
0x1025   : > { %4944 = vmatpush3.bf16.msra.mxu0 %v3263_v49 }
0x1026   : > { %4945 = vmatprep.subr.bf16.mxu0 %v3272_v50 }
0x1029   : > { %4946 = vmatpush3.bf16.msra.mxu0 %v3272_v50 }
0x10d6   : > { %v4897_v35 = vpop.f32.mrb[28].mxu1 }
0x10d7   : > { %v7258_v52 = vadd.f32 %v4897_v35, %v7195_v39  ;;  %v2871_v53 = vpop.f32.mrb[29].mxu1 }
0x10d8   : > { %v7261_v54 = vadd.f32 %v2871_v53, %v7198_v43  ;;  %v4898_v18 = vpop.f32.mrb[30].mxu1 }
0x10d9   : > { %v2874_v55 = vpop.f32.mrb[31].mxu1 }
0x10da   : > { %v7264_v56 = vadd.f32 %v2874_v55, %v7201_v46 }
0x10e6   : > { %v4921_v57 = vpop.f32.mrb[32].mxu1 }
0x10e7   : > { %v3053_v58 = vpop.f32.mrb[33].mxu1  ;;  %v3062_v0 = vadd.f32 %v4921_v57, %v2994_v21 }
0x10e8   : > { %v4922_v59 = vpop.f32.mrb[34].mxu1  ;;  %v3054_v39 = vadd.f32 %v3053_v58, %v2994_v21 }
0x10e9   : > { %v3056_v61 = vpop.f32.mrb[35].mxu1  ;;  %v3158_v2 = vpack.c.bf16 %v3062_v0, %v3062_v0 }
0x10ea   : > { %v3057_v19 = vadd.f32 %v3056_v61, %v2994_v21  ;;  %v3393_v61 = vld [vmem:[%s7601_s15] sm:$0x1] }
0x10eb   : > { %v3169_v46 = vsel %vm1653_vm4, %v3158_v2, 0  ;;  %v3394_v0 = vunpack.c.l.bf16 %v3393_v61  ;;  %v4529_v61 = vld [vmem:[%s7603_s26] ss:$0 sm:$0xff] }
0x10ec   : > { %v3157_v1 = vpack.c.bf16 %v3057_v19, %v3054_v39 }
0x10ee   : > { %4963 = vmatprep.subr.msk.bf16.mxu1 %vm1653_vm4, %v3157_v1  ;;  %v3166_v43 = vsel %vm1653_vm4, %v3157_v1, 0 }
0x10ef   : > { %4936 = vmatpush3.bf16.xpose.msra.mxu1 %v3166_v43 }
0x10f0   : > { %4964 = vmatprep.subr.msk.bf16.mxu1 %vm1653_vm4, %v3158_v2  ;;  %v3398_v2 = vrot.slane %v3394_v0, %v7044_v45 }
0x10f7   : > { %4938 = vmatpush3.bf16.xpose.msra.mxu1 %v3169_v46 }
0x10f8   : > { %4951 = vmatprep.subr.bf16.mxu1 %v5183_v33 }
0x10fe   : > { %4940 = vmatmul.mubr.msk.bf16.vlgmr.msra.gmra.mrb[36].mxu1 %vm1653_vm4, %v3156_v4  ;;  %v5296_v4 = vld [vmem:[#allocation2 + $0x10] sm:$0x7] }
0x10ff   : > { %4952 = vmatpush3.bf16.msra.mxu1 %v5183_v33  ;;  %v5192_v33 = vld [vmem:[%s6967_s23 + $0x24] ss:$8 sps:$4 sm:$0xff]  }
0x11d1   : > { %v4941_v6 = vpop.f32.mrb[36].mxu1 }
0x11d2   : > { %v3205_v7 = vpop.f32.mrb[37].mxu1  ;;  %v3221_v12 = vsel %vm1317_vm7, %v4941_v6, -1e+30 }
0x11d3   : > { %v3219_v8 = vsel %vm1317_vm7, %v3205_v7, -1e+30  ;;  %v4942_v9 = vpop.f32.mrb[38].mxu1  ;;  %v3228_v15 = vsel %vm1724_vm9, %v3221_v12, -inf  ;;  %v5297_v7 = vld [vmem:[#allocation2] sm:$0xff] }
0x11d4   : > { %v3208_v10 = vpop.f32.mrb[39].mxu1  ;;  %v3222_v11 = vsel %vm1717_vm8, %v3219_v8, -inf }
0x11d5   : > { %v3220_v13 = vsel %vm1317_vm7, %v3208_v10, -1e+30  ;;  %3223 = vmax.xlane.f32.xlu0 %v3222_v11  ;;  %v5298_v11 = vld [vmem:[#allocation2 + $0x8] sm:$0xff] }
0x11d6   : > { %v3225_v14 = vsel %vm1717_vm8, %v3220_v13, -inf }
0x11d7   : > { %3226 = vmax.xlane.f32.xlu1 %v3225_v14 }
0x11d9   : > { %3229 = vmax.xlane.f32.xlu0 %v3228_v15 }
0x1262   : > { %v3224_v16 = vpop.xlane.xlu0 %3223 }
0x1263   : > { %v3231_v17 = vmax.f32 %v3224_v16, -1e+30 }
0x1264   : > { %v3227_v63 = vpop.xlane.xlu1 %3226 }
0x1265   : > { %v3234_v51 = vsub.f32 %v3219_v8, %v3231_v17  ;;  %v3232_v20 = vmax.f32 %v3227_v63, -1e+30 }
0x1266   : > { %v3230_v22 = vpop.xlane.xlu0 %3229 }
0x1267   : > { %v3237_v23 = vmul.f32 1.442695, %v3234_v51  ;;  %v3235_v24 = vsub.f32 %v3220_v13, %v3232_v20  ;;  %v3233_v25 = vmax.f32 %v3230_v22, -1e+30 }
0x1269   : > { %5254 = vpow2.f32 %v3237_v23  ;;  %v3239_v32 = vmul.f32 1.442695, %v3235_v24  ;;  %v3236_v26 = vsub.f32 %v3221_v12, %v3233_v25 }
0x126b   : > { %5256 = vpow2.f32 %v3239_v32  ;;  %v3241_v27 = vmul.f32 1.442695, %v3236_v26 }
0x126d   : > { %5258 = vpow2.f32 %v3241_v27 }
0x1273   : > { %v5255_v28 = vpop.eup %5254 }
0x1274   : > { %v3243_v36 = vsel %vm1717_vm8, %v5255_v28, 0.0 }
0x1275   : > { %v5257_v5 = vpop.eup %5256  ;;  %3244 = vadd.xlane.f32.xlu1 %v3243_v36 }
0x1276   : > { %v3246_v29 = vsel %vm1717_vm8, %v5257_v5, 0.0 }
0x1277   : > { %v5259_v30 = vpop.eup %5258  ;;  %3247 = vadd.xlane.f32.xlu0 %v3246_v29  ;;  %v5184_v29 = vld [vmem:[%s6967_s23] ss:$8 sps:$4 sm:$0xff]  }
0x1278   : > { %v3249_v31 = vsel %vm1724_vm9, %v5259_v30, 0.0 }
0x1279   : > { %3250 = vadd.xlane.f32.xlu1 %v3249_v31  ;;  %v5187_v31 = vld [vmem:[%s6967_s23 + $0x10] ss:$8 sps:$4 sm:$0xff]  }
0x1302   : > { %v3245_v34 = vpop.xlane.xlu1 %3244 }
0x1303   : > { %v3252_v37 = vmax.f32 %v3245_v34, 1e-30  ;;  %v5190_v34 = vld [vmem:[%s6967_s23 + $0x20] ss:$8 sps:$4 sm:$0xff]  }
0x1304   : > { %v3248_v38 = vpop.xlane.xlu0 %3247 }
0x1305   : > { %5260 = vrcp.f32 %v3252_v37  ;;  %v3253_v42 = vmax.f32 %v3248_v38, 1e-30  ;;  %v5193_v37 = vld [vmem:[%s6967_s23 + $0x30] ss:$8 sps:$4 sm:$0xff]   ;;  %v5195_v38 = vld [vmem:[%s6967_s23 + $0x34] ss:$8 sps:$4 sm:$0xff]  }
0x1306   : > { %v3251_v44 = vpop.xlane.xlu1 %3250 }
0x1307   : > { %5262 = vrcp.f32 %v3253_v42  ;;  %v3254_v40 = vmax.f32 %v3251_v44, 1e-30  ;;  %v6017_v42 = vmov 0  }
0x1309   : > { %5264 = vrcp.f32 %v3254_v40 }
0x130f   : > { %v5261_v47 = vpop.eup %5260 }
0x1310   : > { %v3258_v49 = vmul.f32 %v5261_v47, %v5255_v28 }
0x1311   : > { %v5263_v48 = vpop.eup %5262 }
0x1312   : > { %v3259_v50 = vmul.f32 %v5263_v48, %v5257_v5  ;;  %v5186_v5 = vld [vmem:[%s6967_s23 + $0x4] ss:$8 sps:$4 sm:$0xff]  }
0x1313   : > { %v5265_v35 = vpop.eup %5264  ;;  %3538 = vmatprep.subr.bf16.mxu0 %v5186_v5 }
0x1314   : > { %v3260_v53 = vmul.f32 %v5265_v35, %v5259_v30  ;;  %v3261_v18 = vpack.c.bf16 %v3259_v50, %v3258_v49  ;;  %v5189_v30 = vld [vmem:[%s6967_s23 + $0x14] ss:$8 sps:$4 sm:$0xff]  }
0x1316   : > { %4947 = vmatprep.mubr.msk.bf16.mxu0 %vm1717_vm8, %v3261_v18  ;;  %v3262_v55 = vpack.c.bf16 %v3260_v53, %v3260_v53 }
0x1318   : > { %4948 = vmatmul.mubr.msk.bf16.vlgmr.msra.gmra.mrb[48].mxu0 %vm1717_vm8, %v3262_v55 }
0x1319   : > { %3539 = vmatpush1.bf16.msra.mxu0 %v5184_v29  ;;  %3570 = vmatprep.mubr.bf16.mxu0 %v6017_v42 }
0x131a   : > { %3540 = vmatprep.subr.bf16.mxu0 %v5189_v30 }
0x131d   : > { %3541 = vmatpush1.bf16.msra.mxu0 %v5187_v31 }
0x131e   : > { %3542 = vmatprep.subr.bf16.mxu0 %v5192_v33 }
0x1321   : > { %3543 = vmatpush1.bf16.msra.mxu0 %v5190_v34 }
0x1322   : > { %3544 = vmatprep.subr.bf16.mxu0 %v5195_v38 }
0x1325   : > { %3545 = vmatpush1.bf16.msra.mxu0 %v5193_v37 }
0x13eb   : > { %v4949_v60 = vpop.f32.mrb[48].mxu0 }
0x13ec   : > { %v3308_v62 = vpop.f32.mrb[49].mxu0  ;;  %v3323_v59 = vpack.c.bf16 %v4949_v60, %v4949_v60  ;;  %v4528_v60 = vld [vmem:[%s7602_s2] ss:$0 sm:$0xff] }
0x13ed   : > { %v4950_v21 = vpop.f32.mrb[50].mxu0 }
0x13ee   : > { %v3311_v57 = vpop.f32.mrb[51].mxu0 }
0x13ef   : > { %v3322_v58 = vpack.c.bf16 %v3311_v57, %v3308_v62 }
0x13f1   : > { %4953 = vmatprep.mubr.msk.bf16.mxu1 %vm1653_vm4, %v3322_v58 }
0x13f2   : > { %4954 = vmatmul.mubr.msk.bf16.vlgmr.msra.gmra.mrb[40].mxu1 %vm1653_vm4, %v3323_v59 }
0x14c5   : > { %v4955_v39 = vpop.f32.mrb[40].mxu1 }
0x14c6   : > { %v3389_v19 = vadd.f32 %v4955_v39, %v7258_v52  ;;  %v3373_v1 = vpop.f32.mrb[41].mxu1 }
0x14c7   : > { %v3387_v43 = vadd.f32 %v3373_v1, %v7261_v54  ;;  %v4956_v46 = vpop.f32.mrb[42].mxu1 }
0x14c8   : > { %v3376_v3 = vpop.f32.mrb[43].mxu1  ;;  %v3392_v6 = vadd.f32 %v5296_v4, %v3389_v19  ;;  %v5196_v4 = vld [vmem:[%s6978_s9 + $0x40] sm:$0xff]  }
0x14c9   : > { %v3390_v8 = vadd.f32 %v5297_v7, %v3387_v43  ;;  %v3388_v9 = vadd.f32 %v3376_v3, %v7264_v56  ;;  %4697 = vmatprep.subr.bf16.mxu1 %v5196_v4  ;;  %v5198_v7 = vld [vmem:[%s6978_s9 + $0x48] sm:$0xff]  }
0x14ca   : > { %v7298_v13 = vadd.f32 %v3398_v2, %v3392_v6  ;;  %v5197_v6 = vld [vmem:[%s6978_s9] sm:$0xff]  }
0x14cb   : > { %v7296_v10 = vadd.f32 %v3398_v2, %v3390_v8  ;;  %v3391_v12 = vadd.f32 %v5298_v11, %v3388_v9  ;;  %4698 = vmatpush3.bf16.msra.mxu1 %v5197_v6  ;;  %v5199_v8 = vld [vmem:[%s6978_s9 + $0x8] sm:$0xff]   ;;  %v5200_v9 = vld [vmem:[%s6978_s9 + $0x50] sm:$0xff]  }
0x14cc   : > { %v3410_v15 = vsel %vm1327_vm3, %v7298_v13, 0.0  ;;  %4699 = vmatprep.subr.bf16.mxu1 %v5198_v7  ;;  %v5201_v11 = vld [vmem:[%s6978_s9 + $0x10] sm:$0xff]  }
0x14cd   : > { %v7300_v52 = vadd.f32 %v3398_v2, %v3391_v12  ;;  %v3404_v14 = vsel %vm1320_vm2, %v7296_v10, 0.0  ;;  %v5202_v12 = vld [vmem:[%s6978_s9 + $0x58] sm:$0xff]  }
0x14ce   : > { %3405 = vadd.xlane.f32.xlu0 %v3404_v14  ;;  %v5203_v14 = vld [vmem:[%s6978_s9 + $0x18] sm:$0xff]  }
0x14cf   : > { %v3407_v54 = vsel %vm1320_vm2, %v7300_v52, 0.0  ;;  %4700 = vmatpush3.bf16.msra.mxu1 %v5199_v8 }
0x14d0   : > { %3408 = vadd.xlane.f32.xlu1 %v3407_v54  ;;  %4701 = vmatprep.subr.bf16.mxu1 %v5200_v9  ;;  %v5204_v54 = vld [vmem:[%s6978_s9 + $0x60] sm:$0xff]  }
0x14d2   : > { %3411 = vadd.xlane.f32.xlu0 %v3410_v15  ;;  %v5205_v15 = vld [vmem:[%s6978_s9 + $0x20] sm:$0xff]  }
0x14d3   : > { %4702 = vmatpush3.bf16.msra.mxu1 %v5201_v11 }
0x14d4   : > { %4703 = vmatprep.subr.bf16.mxu1 %v5202_v12 }
0x14d7   : > { %4704 = vmatpush3.bf16.msra.mxu1 %v5203_v14 }
0x14d8   : > { %4705 = vmatprep.subr.bf16.mxu1 %v5204_v54 }
0x14db   : > { %4706 = vmatpush3.bf16.msra.mxu1 %v5205_v15 }
0x155b   : > { %v3406_v56 = vpop.xlane.xlu0 %3405 }
0x155c   : > { %v3413_v16 = vmul.f32 0.015625, %v3406_v56  ;;  %v5206_v56 = vld [vmem:[%s6978_s9 + $0x68] sm:$0xff]  }
0x155d   : > { %v3409_v17 = vpop.xlane.xlu1 %3408  ;;  %4707 = vmatprep.subr.bf16.mxu1 %v5206_v56 }
0x155e   : > { %v3416_v63 = vsub.f32 %v7296_v10, %v3413_v16  ;;  %v3414_v51 = vmul.f32 0.015625, %v3409_v17  ;;  %v5207_v16 = vld [vmem:[%s6978_s9 + $0x28] sm:$0xff]   ;;  %v5208_v17 = vld [vmem:[%s6978_s9 + $0x70] sm:$0xff]  }
0x155f   : > { %v3412_v20 = vpop.xlane.xlu0 %3411  ;;  %4708 = vmatpush3.bf16.msra.mxu1 %v5207_v16 }
0x1560   : > { %v3417_v22 = vsub.f32 %v7300_v52, %v3414_v51  ;;  %v3415_v23 = vmul.f32 0.015625, %v3412_v20  ;;  %v3419_v24 = vmul.f32 %v3416_v63, %v3416_v63  ;;  %4709 = vmatprep.subr.bf16.mxu1 %v5208_v17  ;;  %v5210_v51 = vld [vmem:[%s6978_s9 + $0x78] sm:$0xff]  }
0x1561   : > { %v5211_v20 = vld [vmem:[%s6978_s9 + $0x38] sm:$0xff]  }
0x1562   : > { %v3418_v25 = vsub.f32 %v7298_v13, %v3415_v23  ;;  %v3422_v32 = vsel %vm1320_vm2, %v3419_v24, 0.0  ;;  %v3420_v26 = vmul.f32 %v3417_v22, %v3417_v22  ;;  %v3480_v24 = vsub.s32 2, %v7039_v41 }
0x1563   : > { %3423 = vadd.xlane.f32.xlu1 %v3422_v32 }
0x1564   : > { %v3425_v27 = vsel %vm1320_vm2, %v3420_v26, 0.0  ;;  %v3421_v28 = vmul.f32 %v3418_v25, %v3418_v25 }
0x1565   : > { %3426 = vadd.xlane.f32.xlu0 %v3425_v27 }
0x1566   : > { %v3428_v36 = vsel %vm1327_vm3, %v3421_v28, 0.0 }
0x1567   : > { %3429 = vadd.xlane.f32.xlu1 %v3428_v36 }
0x15f0   : > { %v3424_v44 = vpop.xlane.xlu1 %3423 }
0x15f1   : > { %v3431_v40 = vmul.f32 0.015625, %v3424_v44 }
0x15f2   : > { %v3427_v47 = vpop.xlane.xlu0 %3426 }
0x15f3   : > { %v3434_v48 = vadd.f32 1e-05, %v3431_v40  ;;  %v3432_v49 = vmul.f32 0.015625, %v3427_v47 }
0x15f4   : > { %v3430_v50 = vpop.xlane.xlu1 %3429 }
0x15f5   : > { %5266 = vrsqrt.f32 %v3434_v48  ;;  %v3435_v35 = vadd.f32 1e-05, %v3432_v49  ;;  %v3433_v53 = vmul.f32 0.015625, %v3430_v50 }
0x15f7   : > { %5268 = vrsqrt.f32 %v3435_v35  ;;  %v3436_v18 = vadd.f32 1e-05, %v3433_v53 }
0x15f9   : > { %5270 = vrsqrt.f32 %v3436_v18 }
0x15ff   : > { %v5267_v55 = vpop.eup %5266 }
0x1600   : > { %v3440_v62 = vmul.f32 %v5267_v55, %v3416_v63  ;;  %v5209_v63 = vld [vmem:[%s6978_s9 + $0x30] sm:$0xff]   ;;  %s7604_s9 = sld [smem:[#allocation49_spill]] }
0x1601   : > { %v5269_v21 = vpop.eup %5268  ;;  %4710 = vmatpush3.bf16.msra.mxu1 %v5209_v63 }
0x1602   : > { %v3449_v57 = vmul.f32 %v4528_v60, %v3440_v62  ;;  %v3441_v58 = vmul.f32 %v5269_v21, %v3417_v22  ;;  %4711 = vmatprep.subr.bf16.mxu1 %v5210_v51  ;;  %v3471_v22 = vld [vmem:[%s6974_s10] sm:$0x3] }
0x1603   : > { %v5271_v59 = vpop.eup %5270  ;;  %v3472_v23 = vunpack.c.l.bf16 %v3471_v22 }
0x1604   : > { %v3450_v0 = vmul.f32 %v4528_v60, %v3441_v58  ;;  %v3442_v39 = vmul.f32 %v5271_v59, %v3418_v25  ;;  %v3458_v19 = vadd.f32 %v4529_v61, %v3449_v57 }
0x1605   : > { %4712 = vmatpush3.bf16.msra.mxu1 %v5211_v20  ;;  %v3477_v25 = vrot.slane %v3472_v23, %v7044_v45  ;;  %v3481_v32 = vrot.slane %v3472_v23, %v3480_v24  ;;  %v3820_v23 = vld [vmem:[%s1107_s19] sm:$0x1] }
0x1606   : > { %v3459_v1 = vadd.f32 %v4529_v61, %v3450_v0  ;;  %v3451_v43 = vmul.f32 %v4528_v60, %v3442_v39  ;;  %v3821_v24 = vunpack.c.l.bf16 %v3820_v23  ;;  %p4562_p12 = scmp.ne.s32.totalorder %s7604_s9, 1 }
0x1607   : > { %v3487_v26 = vrot.slane %v3477_v25, %v7044_v45  ;;  %v3491_v27 = vrot.slane %v3481_v32, %v7044_v45  ;;  %vm3837_vm10 = vcmask (!%p4562_p12), 517120  }
0x1608   : > { %v3461_v2 = vpack.c.bf16 %v3459_v1, %v3458_v19  ;;  %v3460_v46 = vadd.f32 %v4529_v61, %v3451_v43 }
0x160a   : > { %4538 = vmatmul.mubr.msk.bf16.vlgmr.msra.gmra.mrb[52].mxu0 %vm1320_vm2, %v3461_v2  ;;  %v3462_v3 = vpack.c.bf16 %v3460_v46, %v3460_v46 }
0x160b   : > { %3580 = vmatprep.mubr.bf16.mxu0 %v6017_v42 }
0x1612   : > { %4539 = vmatmul.mubr.msk.bf16.gmra.mrb[56].mxu0 %vm1320_vm2, %v3462_v3 }
0x16dd   : > { %v3572_v28 = vpop.f32.mrb[52].mxu0 }
0x16de   : > { %v3573_v36 = vadd.f32 %v3572_v28, %v3487_v26  ;;  %v3574_v5 = vpop.f32.mrb[53].mxu0 }
0x16df   : > { %v3575_v29 = vadd.f32 %v3574_v5, %v3491_v27  ;;  %v3576_v30 = vpop.f32.mrb[54].mxu0 }
0x16e0   : > { %v4540_v31 = vmul.f32 -1.702, %v3573_v36  ;;  %v3577_v33 = vadd.f32 %v3576_v30, %v3487_v26  ;;  %v3578_v34 = vpop.f32.mrb[55].mxu0 }
0x16e1   : > { %v4541_v37 = vmul.f32 -1.702, %v3575_v29  ;;  %v3579_v38 = vadd.f32 %v3578_v34, %v3491_v27 }
0x16e2   : > { %v3601_v42 = vmul.f32 1.442695, %v4540_v31  ;;  %v4542_v44 = vmul.f32 -1.702, %v3577_v33 }
0x16e3   : > { %v3603_v41 = vmul.f32 1.442695, %v4541_v37  ;;  %v4543_v40 = vmul.f32 -1.702, %v3579_v38 }
0x16e4   : > { %5272 = vpow2.f32 %v3601_v42  ;;  %v3605_v47 = vmul.f32 1.442695, %v4542_v44 }
0x16e5   : > { %5274 = vpow2.f32 %v3603_v41  ;;  %v3607_v48 = vmul.f32 1.442695, %v4543_v40  ;;  %v3582_v49 = vpop.f32.mrb[56].mxu0 }
0x16e6   : > { %5276 = vpow2.f32 %v3605_v47  ;;  %v3583_v50 = vadd.f32 %v3582_v49, %v3487_v26  ;;  %v3584_v35 = vpop.f32.mrb[57].mxu0 }
0x16e7   : > { %5278 = vpow2.f32 %v3607_v48  ;;  %v3585_v53 = vadd.f32 %v3584_v35, %v3491_v27  ;;  %v3586_v18 = vpop.f32.mrb[58].mxu0  ;;  %v3825_v27 = vrot.slane %v3821_v24, %v7044_v45 }
0x16e8   : > { %v4544_v55 = vmul.f32 -1.702, %v3583_v50  ;;  %v3587_v60 = vpop.f32.mrb[59].mxu0 }
0x16e9   : > { %v4545_v62 = vmul.f32 -1.702, %v3585_v53 }
0x16ea   : > { %v3609_v21 = vmul.f32 1.442695, %v4544_v55 }
0x16eb   : > { %v3611_v57 = vmul.f32 1.442695, %v4545_v62 }
0x16ec   : > { %5280 = vpow2.f32 %v3609_v21 }
0x16ed   : > { %5282 = vpow2.f32 %v3611_v57 }
0x16ee   : > { %v5273_v58 = vpop.eup %5272 }
0x16ef   : > { %v5275_v59 = vpop.eup %5274  ;;  %v3613_v61 = vadd.f32 1.0, %v5273_v58 }
0x16f0   : > { %v5277_v0 = vpop.eup %5276  ;;  %v3614_v39 = vadd.f32 1.0, %v5275_v59 }
0x16f1   : > { %v5279_v19 = vpop.eup %5278  ;;  %5284 = vrcp.f32 %v3613_v61  ;;  %v3615_v1 = vadd.f32 1.0, %v5277_v0 }
0x16f2   : > { %5286 = vrcp.f32 %v3614_v39  ;;  %v3616_v2 = vadd.f32 1.0, %v5279_v19 }
0x16f3   : > { %5288 = vrcp.f32 %v3615_v1 }
0x16f4   : > { %5290 = vrcp.f32 %v3616_v2 }
0x16f6   : > { %v5281_v43 = vpop.eup %5280 }
0x16f7   : > { %v5283_v46 = vpop.eup %5282  ;;  %v3617_v3 = vadd.f32 1.0, %v5281_v43 }
0x16f8   : > { %v3618_v4 = vadd.f32 1.0, %v5283_v46 }
0x16f9   : > { %5292 = vrcp.f32 %v3617_v3 }
0x16fa   : > { %5294 = vrcp.f32 %v3618_v4 }
0x16fb   : > { %v5285_v6 = vpop.eup %5284 }
0x16fc   : > { %v5287_v7 = vpop.eup %5286  ;;  %v3631_v11 = vmul.f32 %v5285_v6, %v3573_v36 }
0x16fd   : > { %v5289_v8 = vpop.eup %5288  ;;  %v3632_v14 = vmul.f32 %v5287_v7, %v3575_v29 }
0x16fe   : > { %v5291_v9 = vpop.eup %5290  ;;  %v3633_v12 = vmul.f32 %v5289_v8, %v3577_v33 }
0x16ff   : > { %v3634_v54 = vmul.f32 %v5291_v9, %v3579_v38 }
0x1700   : > { %v3637_v15 = vpack.c.bf16 %v3633_v12, %v3631_v11 }
0x1701   : > { %v3638_v56 = vpack.c.bf16 %v3634_v54, %v3632_v14 }
0x1703   : > { %v5293_v16 = vpop.eup %5292  ;;  %3801 = vmatprep.mubr.bf16.mxu1 %v3638_v56 }
0x1704   : > { %v5295_v17 = vpop.eup %5294  ;;  %3802 = vmatmul.mubr.bf16.vlgmr.msra.gmra.mrb[44].mxu1 %v3637_v15  ;;  %v3635_v51 = vmul.f32 %v5293_v16, %v3583_v50 }
0x1705   : > { %v3636_v63 = vmul.f32 %v5295_v17, %v3585_v53 }
0x1706   : > { %v3639_v22 = vpack.c.bf16 %v3635_v51, %v3635_v51 }
0x1707   : > { %v3640_v20 = vpack.c.bf16 %v3636_v63, %v3636_v63 }
0x1709   : > { %3809 = vmatprep.mubr.bf16.mxu1 %v3640_v20 }
0x170c   : > { %3810 = vmatmul.mubr.bf16.gmra.mrb[48].mxu1 %v3639_v22 }
0x17d7   : > { %v4713_v25 = vpop.f32.mrb[44].mxu1 }
0x17d8   : > { %v4714_v32 = vpop.f32.mrb[45].mxu1 }
0x17d9   : > { %v4715_v26 = vadd.f32 %v4714_v32, %v4713_v25  ;;  %v4716_v28 = vpop.f32.mrb[46].mxu1 }
0x17da   : > { %v4717_v36 = vpop.f32.mrb[47].mxu1 }
0x17db   : > { %v3817_v5 = vadd.f32 %v4715_v26, %v7296_v10  ;;  %v4718_v29 = vadd.f32 %v4717_v36, %v4716_v28 }
0x17dd   : > { %v3826_v30 = vadd.f32 %v3825_v27, %v3817_v5  ;;  %v3818_v31 = vadd.f32 %v4718_v29, %v7300_v52 }
0x17df   : > { %3829 = vst.msk [vmem:[#allocation2] sm:$0xff] %vm1320_vm2, %v3826_v30  ;;  %v3827_v33 = vadd.f32 %v3825_v27, %v3818_v31  ;;  %v4719_v34 = vpop.f32.mrb[48].mxu1 }
0x17e0   : > { %v4720_v37 = vpop.f32.mrb[49].mxu1 }
0x17e1   : > { %3830 = vst.msk [vmem:[#allocation2 + $0x8] sm:$0xff] %vm1320_vm2, %v3827_v33  ;;  %v4721_v38 = vadd.f32 %v4720_v37, %v4719_v34  ;;  %v4722_v42 = vpop.f32.mrb[50].mxu1  ;;  %3835 = sbr.rel (%p4562_p12) target bundleno = 6128 (0x17f0), region = 180 }
0x17e2   : > { %v4723_v44 = vpop.f32.mrb[51].mxu1 }
0x17e3   : > { %v3819_v45 = vadd.f32 %v4721_v38, %v7298_v13 }
0x17e5   : > { %v3828_v41 = vadd.f32 %v3825_v27, %v3819_v45 }
0x17e7   : > { %3831 = vst.msk [vmem:[#allocation2 + $0x10] sm:$0x7] %vm1327_vm3, %v3828_v41 }
0x17ee   : > { %v3836_v10 = vld [vmem:[#allocation2 + $0x11] sm:$0x3] }
0x17ef   : > { %3838 = vst.msk [vmem:[%s6986_s6] sm:$0x3] %vm3837_vm10, %v3836_v10 }
0x17f0 PF: > { %s7605_s5 = sld [smem:[#allocation50_spill]]  ;;  %s7606_s28 = sld [smem:[#allocation59_spill]] }
0x17f1   : > { %s7607_s30 = sld [smem:[#allocation80_spill]]  ;;  %s3853_s8 = sshll.u32 %s6986_s6, 4  ;;  %s3854_s8 = int_to_ptr.vmem [resolvable:$true] %s3853_s8 }
0x17f2   : > { %s3840_s7 = scalar_lea.sflag [#allocation5], %s6888_s1  ;;  %s5831_s19 = scalar_lea.vmem %s3854_s8, 32 }
0x17f3   : > { %p5832_p0 = scmp.ne.s32.totalorder %s3854_s8, %s5831_s19  ;;  %s6018_s23 = smov [#allocation33]  }
0x17f4   : > { %s5835_s10 = sshll.u32 %s6018_s23, 4  ;;  %s5836_s10 = int_to_ptr.vmem [resolvable:$false] %s5835_s10 }
0x17f5   : > { %s5837_s20 = scalar_lea.vmem %s5836_s10, 64  ;;  %p5838_p6 = scmp.lt.s32.totalorder %s3854_s8, %s5836_s10 }
0x17f6   : > { %s4564_s0 = sshll.u32 %s7605_s5, 5  ;;  %p7609_p5 = scmp.ne.s32.totalorder %s7606_s28, 0 }
0x17f7   : > { %s7608_s29 = smov %s7607_s30  ;;  %s7364_s3 = scalar_lea.hbm %s7607_s30, %s4564_s0 }
0x17f8   : > { %p5833_p11 = pnand %p5832_p0, %p7609_p5  ;;  %p5839_p10 = scmp.lt.s32.totalorder %s5837_s20, %s5831_s19 }
0x17fa   : > { %p5834_p9 = pneg %p5833_p11  ;;  %p5840_p3 = por %p5839_p10, %p5838_p6 }
0x17fc   : > { %p5841_p7 = pnand %p5840_p3, %p5834_p9 }
0x17fe   : > { %5844 = shalt.err (!%p5841_p7)
}
0x17ff   : > { %s5845_s1 = scalar_lea.hbm %s7364_s3, 32  ;;  %s5849_s11 = scalar_lea.hbm %s7608_s29, 64 }
0x1800   : > { %p5846_p13 = scmp.ne.s32.totalorder %s7364_s3, %s5845_s1  ;;  %p5850_p2 = scmp.lt.u32.totalorder %s7364_s3, %s7608_s29 }
0x1801   : > { %p5851_p1 = scmp.lt.u32.totalorder %s5849_s11, %s5845_s1  ;;  %p5853_p0 = scmp.lt.u32.totalorder %s5845_s1, %s7364_s3 }
0x1802   : > { %p5847_p4 = pnand %p5846_p13, %p7609_p5 }
0x1803   : > { %p5852_p12 = por %p5851_p1, %p5850_p2 }
0x1804   : > { %p5848_p8 = pneg %p5847_p4 }
0x1805   : > { %p5854_p11 = por %p5853_p0, %p5852_p12 }
0x1807   : > { %p5855_p9 = pnand %p5854_p11, %p5848_p8 }
0x1809   : > { %5858 = shalt.err (!%p5855_p9)
}
0x180a   : > { %5010 = dma.vmem_to_hbm [thread:$0]  (%p7609_p5), %s3854_s8, 32, %s7364_s3, %s3840_s7  }
0x180b PF: > { %s7610_s26 = sld [smem:[#allocation51_spill]]  ;;  %s7611_s9 = sld [smem:[#allocation47_spill]] }
0x180c   : > { %s7612_s5 = sld [smem:[#allocation60_spill]] }
0x1811   : > { %p5027_p6 = scmp.ge.s32.totalorder %s7610_s26, 2  ;;  %s3865_s0 = sand.u32 1, %s7611_s9  }
0x1812   : > { %p7613_p10 = scmp.ne.s32.totalorder %s7612_s5, 0  ;;  %s3866_s21 = scalar_lea.sflag [#allocation5], %s3865_s0 }
0x1814   : > { %p5020_p3 = pnand %p5027_p6, %p7613_p10 }
0x1816   : > { %5944 = dma.done.wait (!%p5020_p3), %s3866_s21, 32  }
0x1817   : > { %5946 = vsyncadd (!%p5020_p3), %s3866_s21, 4294967264  ;;  %s60_s3 = sadd.s32 1, %s7610_s26   ;;  %s7614_s0 = sld [smem:[#allocation45_spill]] }
0x1818   : > { %p57_p7 = scmp.ge.s32.totalorder %s60_s3, 6   ;;  %s7615_s30 = sld [smem:[#allocation46_spill]] }
0x1819   : > { %s7616_s20 = sld [smem:[#allocation56_spill]]  ;;  %s7617_s21 = sld [smem:[#allocation48_spill]] }
0x181a   : > { %s7618_s28 = sld [smem:[#allocation57_spill]]  ;;  %s7619_s12 = sld [smem:[#allocation53_spill]] }
0x181b   : > { %s7620_s8 = sld [smem:[#allocation54_spill]]  ;;  %s7621_s1 = smov %s5969_s22 }
0x181c   : > { %s7623_s2 = smov %s5981_s24  ;;  %s7624_s23 = smov %s5985_s25 }
0x181d   :  { %59 = sbr.rel (!%p57_p7) target bundleno = 46 (0x2e), region = 370 }
0x1820   : > { %s7622_s22 = smov %s7618_s28  ;;  %s7625_s24 = smov %s7619_s12 }
0x1821   : > { %s7626_s25 = smov %s7620_s8 }
0x1824   :  { %3871 = vsyncpa [#allocation4], 1 }
0x1825   :  { %3873 = vsyncpa [#allocation4 + $0x1], 1 }
0x1826   :  { %3874 = vsyncpa [#allocation7], 1 }
0x1827   :  { %3875 = vsyncpa [#allocation10], 1 }
0x1828   :  { %3877 = vsyncpa [#allocation10 + $0x1], 1 }
0x1829   :  { %3878 = vsyncpa [#allocation13], 1 }
0x182a   :  { %3880 = vsyncpa [#allocation13 + $0x1], 1 }
0x182b   :  { %3881 = vsyncpa [#allocation16], 1 }
0x182c   :  { %3883 = vsyncpa [#allocation16 + $0x1], 1 }
0x182d   :  { %3884 = vsyncpa [#allocation19], 1 }
0x182e   :  { %3886 = vsyncpa [#allocation19 + $0x1], 1 }
0x182f   :  { %3887 = vsyncpa [#allocation22], 1 }
0x1830   :  { %3889 = vsyncpa [#allocation22 + $0x1], 1 }
0x1831   :  { %3890 = vsyncpa [#allocation25], 1 }
0x1832   :  { %3892 = vsyncpa [#allocation25 + $0x1], 1 }
0x1833   :  { %3893 = vsyncpa [#allocation28], 1 }
0x1834   :  { %3895 = vsyncpa [#allocation28 + $0x1], 1 }
0x1835   :  { %3896 = vsyncpa [#allocation31], 1 }
0x1836   :  { %3898 = vsyncpa [#allocation31 + $0x1], 1 }
0x1837   :  { %3899 = vsyncpa [#allocation5], 1 }
0x1838   :  { %3901 = vsyncpa [#allocation5 + $0x1], 1 }

// kernel: custom_clip_forward.6
= control target key start
LH: loop header
LB: loop body
LE: loop exit
PB: predicated region body
PF: predicated region fallthrough
CT: control target
= control target key end

     0   :  { %s6069_s0 = inlined_call_operand.hbm [shape: s32[3], index: 0, kind: input, shape index: {}]   ;;  %s6070_s1 = inlined_call_operand.hbm [shape: bf16[3,16,32], index: 1, kind: input, shape index: {}]   ;;  %s6071_s2 = inlined_call_operand.hbm [shape: bf16[2,32], index: 2, kind: input, shape index: {}]   ;;  %s6072_s3 = inlined_call_operand.hbm [shape: f32[2,1,32], index: 3, kind: input, shape index: {}]   ;;  %s6073_s4 = inlined_call_operand.hbm [shape: f32[2,1,32], index: 4, kind: input, shape index: {}]   ;;  %s6074_s5 = inlined_call_operand.hbm [shape: bf16[2,4,32,8], index: 5, kind: input, shape index: {}]   ;;  %s6075_s6 = inlined_call_operand.hbm [shape: bf16[2,4,32,8], index: 6, kind: input, shape index: {}]   ;;  %s6076_s7 = inlined_call_operand.hbm [shape: bf16[2,4,32,8], index: 7, kind: input, shape index: {}]   ;;  %s6077_s8 = inlined_call_operand.hbm [shape: bf16[2,4,1,8], index: 8, kind: input, shape index: {}]   ;;  %s6078_s9 = inlined_call_operand.hbm [shape: bf16[2,4,1,8], index: 9, kind: input, shape index: {}]   ;;  %s6079_s10 = inlined_call_operand.hbm [shape: bf16[2,4,1,8], index: 10, kind: input, shape index: {}]   ;;  %s6080_s11 = inlined_call_operand.hbm [shape: bf16[2,4,8,32], index: 11, kind: input, shape index: {}]   ;;  %s6081_s12 = inlined_call_operand.hbm [shape: bf16[2,1,32], index: 12, kind: input, shape index: {}]   ;;  %s6082_s13 = inlined_call_operand.hbm [shape: f32[2,1,32], index: 13, kind: input, shape index: {}]   ;;  %s6083_s14 = inlined_call_operand.hbm [shape: f32[2,1,32], index: 14, kind: input, shape index: {}]   ;;  %s6084_s15 = inlined_call_operand.hbm [shape: bf16[2,32,128], index: 15, kind: input, shape index: {}]   ;;  %s6085_s16 = inlined_call_operand.hbm [shape: bf16[2,1,128], index: 16, kind: input, shape index: {}]   ;;  %s6086_s17 = inlined_call_operand.hbm [shape: bf16[2,128,32], index: 17, kind: input, shape index: {}]   ;;  %s6087_s18 = inlined_call_operand.hbm [shape: bf16[2,1,32], index: 18, kind: input, shape index: {}]   ;;  %s6088_s19 = inlined_call_operand.hbm [shape: f32[3,2,32], index: 19, kind: output, shape index: {}]  }
   0x1   :  { %6135 = sst [smem:[#allocation46_spill]] %s6069_s0 }
   0x2   :  { %6136 = sst [smem:[#allocation47_spill]] %s6070_s1  ;;  %s6154_s20 = sld [smem:[#allocation46_spill]] }
   0x3   :  { %6137 = sst [smem:[#allocation48_spill]] %s6071_s2 }
   0x4   :  { %6138 = sst [smem:[#allocation49_spill]] %s6072_s3 }
   0x5   :  { %6139 = sst [smem:[#allocation50_spill]] %s6073_s4 }
   0x6   :  { %6140 = sst [smem:[#allocation51_spill]] %s6074_s5 }
   0x7   :  { %6141 = sst [smem:[#allocation52_spill]] %s6075_s6 }
   0x8   :  { %6142 = sst [smem:[#allocation53_spill]] %s6076_s7 }
   0x9   :  { %6143 = sst [smem:[#allocation54_spill]] %s6077_s8 }
   0xa   :  { %6144 = sst [smem:[#allocation55_spill]] %s6078_s9 }
   0xb   :  { %6145 = sst [smem:[#allocation56_spill]] %s6079_s10 }
   0xc   :  { %6146 = sst [smem:[#allocation57_spill]] %s6080_s11 }
   0xd   :  { %6147 = sst [smem:[#allocation58_spill]] %s6082_s13  ;;  %s4128_s13 = scalar_lea.hbm %s6154_s20, 16 }
   0xe   :  { %6148 = sst [smem:[#allocation59_spill]] %s6083_s14  ;;  %p4129_p0 = scmp.ne.s32.totalorder %s6154_s20, %s4128_s13 }
   0xf   :  { %6149 = sst [smem:[#allocation60_spill]] %s6084_s15  ;;  %p4132_p1 = scmp.lt.u32.totalorder %s4128_s13, %s6154_s20 }
  0x10   :  { %6150 = sst [smem:[#allocation61_spill]] %s6085_s16 }
  0x11   :  { %6151 = sst [smem:[#allocation62_spill]] %s6086_s17  ;;  %p4134_p2 = pnand %p4132_p1, %p4129_p0 }
  0x12   :  { %6152 = sst [smem:[#allocation63_spill]] %s6087_s18 }
  0x13   :  { %6153 = sst [smem:[#allocation64_spill]] %s6088_s19 }
  0x14   :  { %4137 = shalt.err (!%p4134_p2)  }
  0x15   :  { %s4776_s23 = smov [#allocation4]  }
  0x16   :  { %25 = dma.hbm_to_smem %s6154_s20, 16, %s4776_s23, [#allocation3] }
  0x17   :  { %4714 = dma.done.wait [#allocation3], 16 }
  0x18   :  { %4715 = vsyncadd [#allocation3], 4294967280 }
  0x19   :  { %27 = sfence }
  0x1a   :  { %28 = vsyncpa [#allocation6], 0 }
  0x1b   :  { %30 = vsyncpa [#allocation6 + $0x1], 0 }
  0x1c   :  { %31 = vsyncpa [#allocation9], 0 }
  0x1d   :  { %32 = vsyncpa [#allocation7], 0 }
  0x1e   :  { %34 = vsyncpa [#allocation7 + $0x1], 0  ;;  %s4914_s3 = smov 0   ;;  %s4916_s26 = smov 0  }
  0x1f   :  { %s4918_s13 = smov 0   ;;  %s4920_s27 = smov 0  }
  0x20   :  { %s4922_s28 = smov 0   ;;  %s4924_s29 = smov 0  }
  0x21   :  { %s4926_s0 = smov 0   ;;  %s4928_s30 = smov 0  }
  0x22   :  { %s4930_s20 = smov 0   ;;  %s4932_s21 = smov 0  }
  0x23   :  { %s4934_s1 = smov 0  }
  0x24 LB: > { %6155 = sst [smem:[#allocation32_spill]] %s4738_s26  ;;  %s4970_s22 = sadd.s32 4294967295, %s4774_s1   ;;  %s4774_s1 = sphi %s4934_s1, %s40_s1   ;;  %s4770_s21 = sphi %s4932_s21, %s6233_s21   ;;  %s4766_s20 = sphi %s4930_s20, %s6239_s20   ;;  %s4762_s30 = sphi %s4928_s30, %s6231_s30   ;;  %s4758_s0 = sphi %s4926_s0, %s6238_s0   ;;  %s4754_s29 = sphi %s4924_s29, %s6230_s29   ;;  %s4750_s28 = sphi %s4922_s28, %s6237_s28   ;;  %s4746_s27 = sphi %s4920_s27, %s6236_s27   ;;  %s4742_s13 = sphi %s4918_s13, %s6235_s13   ;;  %s4738_s26 = sphi %s4916_s26, %s6234_s26   ;;  %s4734_s3 = sphi %s4914_s3, %s6227_s3  }
  0x25   : > { %6156 = sst [smem:[#allocation33_spill]] %s4746_s27  ;;  %s3441_s2 = sadd.s32 4294967294, %s4774_s1  }
  0x26   : > { %6157 = sst [smem:[#allocation34_spill]] %s4754_s29  ;;  %s49_s23 = sadd.s32 1, %s4766_s20 }
  0x27   : > { %6158 = sst [smem:[#allocation35_spill]] %s4758_s0  ;;  %s52_s24 = sadd.s32 1, %s4770_s21 }
  0x28   : > { %6159 = sst [smem:[#allocation36_spill]] %s4762_s30  ;;  %p50_p3 = scmp.ge.s32.totalorder %s49_s23, 2 }
  0x29   : > { %6160 = sst [smem:[#allocation37_spill]] %s4770_s21  ;;  %s59_s25 = sadd.s32 1, %s4754_s29 }
  0x2a   : > { %p6102_p4 = scmp.ne.s32.totalorder %s4754_s29, %s4750_s28  ;;  %p67_p5 = scmp.eq.s32.totalorder %s4774_s1, 0 }
  0x2b   : > { %s6241_s23 = smov (%p50_p3, %s49_s23), 0  ;;  %s6243_s24 = smov (!%p50_p3, %s52_s24), %s4770_s21 }
  0x2c   : > { %6161 = sst [smem:[#allocation38_spill]] %s6241_s23  ;;  %p4987_p6 = por %p67_p5, %p6102_p4 }
  0x2d   : > { %p6101_p7 = scmp.ne.s32.totalorder %s4750_s28, %s4746_s27  ;;  %p54_p8 = scmp.ge.s32.totalorder %s6243_s24, 3 }
  0x2e   : > { %s6162_s19 = scalar_select %p4987_p6, 1, 0 }
  0x2f   : > { %p6113_p9 = scmp.eq.s32.totalorder %s4970_s22, 0  ;;  %s103_s0 = ssub.s32 %s4766_s20, %s6241_s23 }
  0x30   : > { %s106_s30 = sadd.s32 1, %s4742_s13  ;;  %s6245_s24 = smov (%p54_p8, %s6243_s24), 0 }
  0x31   : > { %6163 = sst [smem:[#allocation39_spill]] %s6245_s24  ;;  %p5004_p10 = por %p6113_p9, %p6101_p7 }
  0x32   : > { %p104_p11 = scmp.eq.s32.totalorder %s103_s0, 0  ;;  %s56_s17 = ssub.s32 %s4770_s21, %s6245_s24 }
  0x33   : > { %s6164_s18 = scalar_select %p5004_p10, 1, 0 }
  0x34   : > { %p113_p12 = scmp.ne.s32.totalorder %s4742_s13, %s4738_s26  ;;  %p57_p13 = scmp.eq.s32.totalorder %s56_s17, 0 }
  0x35   : > { %6165 = sst [smem:[#allocation40_spill]] %s6164_s18  ;;  %p119_p0 = scmp.ne.s32.totalorder %s4738_s26, %s4734_s3 }
  0x36   : > { %s5015_s23 = scalar_select %p104_p11, %s4742_s13, %s106_s30  }
  0x37   : > { %s5018_s16 = scalar_select %p57_p13, %s4754_s29, %s59_s25  }
  0x38   : > { %6166 = sst [smem:[#allocation41_spill]] %s5015_s23  ;;  %p5022_p1 = por %p113_p12, %p67_p5 }
  0x39   : > { %6167 = sst [smem:[#allocation42_spill]] %s5018_s16  ;;  %p5028_p2 = por %p119_p0, %p6113_p9 }
  0x3a   : > { %s6168_s15 = scalar_select %p5022_p1, 1, 0 }
  0x3b   : > { %s6169_s14 = scalar_select %p5028_p2, 1, 0 }
  0x3c   : > { %p533_p3 = scmp.eq.s32.totalorder %s4970_s22, 5  ;;  %p539_p8 = scmp.eq.s32.totalorder %s3441_s2, 5 }
  0x3d   : > { %6170 = sst [smem:[#allocation43_spill]] %s6169_s14  ;;  %p3442_p7 = scmp.ge.s32.totalorder %s4774_s1, 1 }
  0x3e   : > { %p546_p4 = scmp.lt.s32.totalorder %s4774_s1, 7  ;;  %p6171_p10 = scmp.ne.s32.totalorder %s4754_s29, %s4750_s28 }
  0x3f   : > { %p6174_p11 = scmp.ne.s32.totalorder %s4750_s28, %s4746_s27  ;;  %s4777_s30 = smov [#allocation8]  }
  0x40   : > { %p5038_p6 = por %p533_p3, %p6171_p10  ;;  %p5049_p5 = pnand %p3442_p7, %p546_p4 }
  0x41   : > { %p5045_p13 = por %p539_p8, %p6174_p11  ;;  %s559_s2 = sshll.u32 %s4777_s30, 4  ;;  %s560_s2 = int_to_ptr.vmem [resolvable:$true] %s559_s2 }
  0x42   : > { %s6172_s17 = scalar_select %p5038_p6, 1, 0 }
  0x43   : > { %s6175_s3 = scalar_select %p5045_p13, 1, 0 }
  0x44   : > { %6173 = sst [smem:[#allocation44_spill]] %s6172_s17  ;;  %p3937_p12 = pneg %p5049_p5 }
  0x45   : > { %6176 = sst [smem:[#allocation45_spill]] %s6175_s3  ;;  %s6179_s23 = sld [smem:[#allocation48_spill]] }
  0x46   : > { %s6177_s0 = scalar_select %p5049_p5, 1, 0 }
  0x47   : > { %p5057_p10 = pnand %p3937_p12, %p6113_p9 }
  0x49   : > { %p4140_p7 = pneg %p5057_p10 }
  0x4b   : > { %s4138_s3 = scalar_lea.hbm %s6179_s23, 16 }
  0x4c   : > { %p4139_p4 = scmp.ne.s32.totalorder %s6179_s23, %s4138_s3  ;;  %p4145_p8 = scmp.lt.u32.totalorder %s4138_s3, %s6179_s23 }
  0x4e   : > { %p4141_p0 = pnand %p4140_p7, %p4139_p4 }
  0x50   : > { %p4142_p3 = pneg %p4141_p0 }
  0x52   : > { %p4147_p11 = pnand %p4145_p8, %p4142_p3 }
  0x54   : > { %4150 = shalt.err (!%p4147_p11)
}
  0x55   : > { %s4151_s26 = scalar_lea.vmem %s560_s2, 16  ;;  %s4158_s16 = scalar_lea.vmem %s560_s2, 32 }
  0x56   : > { %p4152_p12 = scmp.ne.s32.totalorder %s560_s2, %s4151_s26  ;;  %p4159_p6 = scmp.lt.s32.totalorder %s560_s2, %s560_s2 }
  0x57   : > { %p4160_p2 = scmp.lt.s32.totalorder %s4158_s16, %s4151_s26 }
  0x58   : > { %p4154_p9 = pnand %p4152_p12, %p4140_p7 }
  0x59   : > { %p4161_p5 = por %p4160_p2, %p4159_p6 }
  0x5a   : > { %p4155_p13 = pneg %p4154_p9 }
  0x5c   : > { %p4162_p1 = pnand %p4161_p5, %p4155_p13 }
  0x5e   : > { %4165 = shalt.err (!%p4162_p1)
}
  0x5f   : > { %3940 = dma.hbm_to_vmem [thread:$0]  (!%p5057_p10), %s6179_s23, 16, %s560_s2, [#allocation9]  }
  0x60   : > { %p3444_p4 = scmp.ge.s32.totalorder %s4774_s1, 6 }
  0x61   : > { %s570_s14 = sand.u32 (!%p3444_p4), 1, %s4774_s1   ;;  %s572_s17 = sand.u32 (!%p3444_p4), 1, %s4754_s29  }
  0x62   : > { %566 = sbr.rel (%p3444_p4) target bundleno = 574 (0x23e), region = 20  ;;  %s3445_s26 = sshll.u32 (!%p3444_p4), %s572_s17, 3 }
  0x63   : > { %s3615_s3 = sshll.u32 (!%p3444_p4), %s4770_s21, 7  ;;  %s6180_s18 = sld [smem:[#allocation47_spill]] (!%p3444_p4) }
  0x64   : > { %s574_s2 = scalar_lea.vmem (!%p3444_p4), [#allocation5], %s3445_s26  ;;  %s5089_s24 = sand.u32 (!%p3444_p4), 1, %s4742_s13  }
  0x65   : > { %s581_s27 = sshll.u32 (!%p3444_p4), %s574_s2, 4  ;;  %s5091_s23 = scalar_lea.sflag (!%p3444_p4), [#allocation6], %s570_s14  ;;  %s5086_s27 = int_to_ptr.vmem [resolvable:$true] %s581_s27 }
  0x66   : > { %p6181_p9 = scmp.ne.s32.totalorder (!%p3444_p4), %s6162_s19, 0 }
  0x69   : > { %s5084_s25 = scalar_lea.hbm %s6180_s18, %s3615_s3  ;;  %s4170_s30 = scalar_lea.hbm %s6180_s18, 384 }
  0x6a   : > { %s4166_s29 = scalar_lea.hbm %s5084_s25, 128  ;;  %p4171_p13 = scmp.lt.u32.totalorder %s5084_s25, %s6180_s18 }
  0x6b   : > { %p4167_p6 = scmp.ne.s32.totalorder %s5084_s25, %s4166_s29  ;;  %p4172_p5 = scmp.lt.u32.totalorder %s4170_s30, %s4166_s29 }
  0x6c   : > { %p4174_p7 = scmp.lt.u32.totalorder %s4166_s29, %s5084_s25 }
  0x6d   : > { %p4168_p1 = pnand %p4167_p6, %p6181_p9  ;;  %p4173_p10 = por %p4172_p5, %p4171_p13 }
  0x6f   : > { %p4169_p2 = pneg %p4168_p1  ;;  %p4175_p0 = por %p4174_p7, %p4173_p10 }
  0x71   : > { %p4176_p3 = pnand %p4175_p0, %p4169_p2 }
  0x73   : > { %4179 = shalt.err (!%p4176_p3)
}
  0x74   : > { %s4180_s14 = scalar_lea.vmem %s5086_s27, 128  ;;  %s4778_s26 = smov [#allocation5]  }
  0x75   : > { %p4181_p8 = scmp.ne.s32.totalorder %s5086_s27, %s4180_s14  ;;  %s4184_s2 = sshll.u32 %s4778_s26, 4  ;;  %s4185_s2 = int_to_ptr.vmem [resolvable:$false] %s4184_s2 }
  0x76   : > { %s4186_s21 = scalar_lea.vmem %s4185_s2, 256  ;;  %p4187_p4 = scmp.lt.s32.totalorder %s5086_s27, %s4185_s2 }
  0x77   : > { %p4182_p11 = pnand %p4181_p8, %p6181_p9  ;;  %p4188_p6 = scmp.lt.s32.totalorder %s4186_s21, %s4180_s14 }
  0x79   : > { %p4183_p12 = pneg %p4182_p11  ;;  %p4189_p1 = por %p4188_p6, %p4187_p4 }
  0x7b   : > { %p4190_p13 = pnand %p4189_p1, %p4183_p12 }
  0x7d   : > { %4193 = shalt.err (!%p4190_p13)
}
  0x7e   : > { %s6123_s29 = smov 64   ;;  %s6125_s17 = smov 4  }
  0x7f   : > { %3899 = dma.hbm_to_vmem [thread:$0]  (%p6181_p9), %s5084_s25, 128, %s5086_s27, %s5091_s23, %s6123_s29, %s6123_s29, %s6125_s17  }
  0x80   : > { %s5119_s3 = sshll.u32 %s4766_s20, 4  ;;  %s6182_s14 = sld [smem:[#allocation49_spill]] }
  0x81   : > { %s594_s2 = scalar_lea.vmem [#allocation10], %s5089_s24  ;;  %p6183_p5 = scmp.ne.s32.totalorder %s6168_s15, 0 }
  0x82   : > { %s601_s21 = sshll.u32 %s594_s2, 4  ;;  %s602_s21 = int_to_ptr.vmem [resolvable:$true] %s601_s21 }
  0x86   : > { %s5125_s26 = scalar_lea.hbm %s6182_s14, %s5119_s3  ;;  %s4198_s29 = scalar_lea.hbm %s6182_s14, 32 }
  0x87   : > { %s4194_s19 = scalar_lea.hbm %s5125_s26, 16  ;;  %p4199_p7 = scmp.lt.u32.totalorder %s5125_s26, %s6182_s14 }
  0x88   : > { %p4195_p2 = scmp.ne.s32.totalorder %s5125_s26, %s4194_s19  ;;  %p4200_p0 = scmp.lt.u32.totalorder %s4198_s29, %s4194_s19 }
  0x89   : > { %p4202_p8 = scmp.lt.u32.totalorder %s4194_s19, %s5125_s26 }
  0x8a   : > { %p4196_p10 = pnand %p4195_p2, %p6183_p5  ;;  %p4201_p3 = por %p4200_p0, %p4199_p7 }
  0x8c   : > { %p4197_p9 = pneg %p4196_p10  ;;  %p4203_p11 = por %p4202_p8, %p4201_p3 }
  0x8e   : > { %p4204_p12 = pnand %p4203_p11, %p4197_p9 }
  0x90   : > { %4207 = shalt.err (!%p4204_p12)
}
  0x91   : > { %s4208_s16 = scalar_lea.vmem %s602_s21, 16  ;;  %s4781_s2 = smov [#allocation10]  }
  0x92   : > { %p4209_p4 = scmp.ne.s32.totalorder %s602_s21, %s4208_s16  ;;  %s4212_s18 = sshll.u32 %s4781_s2, 4  ;;  %s4213_s18 = int_to_ptr.vmem [resolvable:$false] %s4212_s18 }
  0x93   : > { %s4214_s25 = scalar_lea.vmem %s4213_s18, 32  ;;  %p4215_p13 = scmp.lt.s32.totalorder %s602_s21, %s4213_s18 }
  0x94   : > { %p4210_p6 = pnand %p4209_p4, %p6183_p5  ;;  %p4216_p2 = scmp.lt.s32.totalorder %s4214_s25, %s4208_s16 }
  0x96   : > { %p4211_p1 = pneg %p4210_p6  ;;  %p4217_p10 = por %p4216_p2, %p4215_p13 }
  0x98   : > { %p4218_p0 = pnand %p4217_p10, %p4211_p1 }
  0x9a   : > { %4221 = shalt.err (!%p4218_p0)
}
  0x9b   : > { %3900 = dma.hbm_to_vmem [thread:$0]  (%p6183_p5), %s5125_s26, 16, %s602_s21, %s5091_s23  }
  0x9c   : > { %s6184_s4 = sld [smem:[#allocation50_spill]]  ;;  %s611_s18 = scalar_lea.vmem [#allocation11], %s5089_s24 }
  0x9d   : > { %s618_s27 = sshll.u32 %s611_s18, 4  ;;  %s5154_s30 = sshll.u32 %s5089_s24, 6  ;;  %s619_s27 = int_to_ptr.vmem [resolvable:$true] %s618_s27 }
  0xa2   : > { %s5150_s19 = scalar_lea.hbm %s6184_s4, %s5119_s3  ;;  %s4226_s2 = scalar_lea.hbm %s6184_s4, 32 }
  0xa3   : > { %s4222_s16 = scalar_lea.hbm %s5150_s19, 16  ;;  %p4227_p8 = scmp.lt.u32.totalorder %s5150_s19, %s6184_s4 }
  0xa4   : > { %p4223_p9 = scmp.ne.s32.totalorder %s5150_s19, %s4222_s16  ;;  %p4228_p11 = scmp.lt.u32.totalorder %s4226_s2, %s4222_s16 }
  0xa5   : > { %p4230_p4 = scmp.lt.u32.totalorder %s4222_s16, %s5150_s19 }
  0xa6   : > { %p4224_p7 = pnand %p4223_p9, %p6183_p5  ;;  %p4229_p12 = por %p4228_p11, %p4227_p8 }
  0xa8   : > { %p4225_p3 = pneg %p4224_p7  ;;  %p4231_p6 = por %p4230_p4, %p4229_p12 }
  0xaa   : > { %p4232_p1 = pnand %p4231_p6, %p4225_p3 }
  0xac   : > { %4235 = shalt.err (!%p4232_p1)
}
  0xad   : > { %s4236_s17 = scalar_lea.vmem %s619_s27, 16  ;;  %s4782_s18 = smov [#allocation11]  }
  0xae   : > { %p4237_p13 = scmp.ne.s32.totalorder %s619_s27, %s4236_s17  ;;  %s4240_s14 = sshll.u32 %s4782_s18, 4  ;;  %s4241_s14 = int_to_ptr.vmem [resolvable:$false] %s4240_s14 }
  0xaf   : > { %s4242_s26 = scalar_lea.vmem %s4241_s14, 32  ;;  %p4243_p0 = scmp.lt.s32.totalorder %s619_s27, %s4241_s14 }
  0xb0   : > { %p4238_p2 = pnand %p4237_p13, %p6183_p5  ;;  %p4244_p9 = scmp.lt.s32.totalorder %s4242_s26, %s4236_s17 }
  0xb2   : > { %p4239_p10 = pneg %p4238_p2  ;;  %p4245_p7 = por %p4244_p9, %p4243_p0 }
  0xb4   : > { %p4246_p8 = pnand %p4245_p7, %p4239_p10 }
  0xb6   : > { %4249 = shalt.err (!%p4246_p8)
}
  0xb7   : > { %3901 = dma.hbm_to_vmem [thread:$0]  (%p6183_p5), %s5150_s19, 16, %s619_s27, %s5091_s23  }
  0xb8   : > { %s5175_s16 = sshll.u32 %s4766_s20, 10  ;;  %s6185_s5 = sld [smem:[#allocation51_spill]] }
  0xb9   : > { %s629_s14 = scalar_lea.vmem [#allocation12], %s5154_s30 }
  0xba   : > { %s636_s29 = sshll.u32 %s629_s14, 4  ;;  %s5184_s29 = int_to_ptr.vmem [resolvable:$true] %s636_s29 }
  0xbe   : > { %s5181_s25 = scalar_lea.hbm %s6185_s5, %s5175_s16  ;;  %s4254_s18 = scalar_lea.hbm %s6185_s5, 2048 }
  0xbf   : > { %s4250_s17 = scalar_lea.hbm %s5181_s25, 1024  ;;  %p4255_p4 = scmp.lt.u32.totalorder %s5181_s25, %s6185_s5 }
  0xc0   : > { %p4251_p3 = scmp.ne.s32.totalorder %s5181_s25, %s4250_s17  ;;  %p4256_p6 = scmp.lt.u32.totalorder %s4254_s18, %s4250_s17 }
  0xc1   : > { %p4258_p13 = scmp.lt.u32.totalorder %s4250_s17, %s5181_s25 }
  0xc2   : > { %p4252_p11 = pnand %p4251_p3, %p6183_p5  ;;  %p4257_p1 = por %p4256_p6, %p4255_p4 }
  0xc4   : > { %p4253_p12 = pneg %p4252_p11  ;;  %p4259_p2 = por %p4258_p13, %p4257_p1 }
  0xc6   : > { %p4260_p10 = pnand %p4259_p2, %p4253_p12 }
  0xc8   : > { %4263 = shalt.err (!%p4260_p10)
}
  0xc9   : > { %s4264_s2 = scalar_lea.vmem %s5184_s29, 1024  ;;  %s4783_s14 = smov [#allocation12]  }
  0xca   : > { %p4265_p0 = scmp.ne.s32.totalorder %s5184_s29, %s4264_s2  ;;  %s4268_s19 = sshll.u32 %s4783_s14, 4  ;;  %s4269_s19 = int_to_ptr.vmem [resolvable:$false] %s4268_s19 }
  0xcb   : > { %s4270_s27 = scalar_lea.vmem %s4269_s19, 2048  ;;  %p4271_p8 = scmp.lt.s32.totalorder %s5184_s29, %s4269_s19 }
  0xcc   : > { %p4266_p9 = pnand %p4265_p0, %p6183_p5  ;;  %p4272_p3 = scmp.lt.s32.totalorder %s4270_s27, %s4264_s2 }
  0xce   : > { %p4267_p7 = pneg %p4266_p9  ;;  %p4273_p11 = por %p4272_p3, %p4271_p8 }
  0xd0   : > { %p4274_p4 = pnand %p4273_p11, %p4267_p7 }
  0xd2   : > { %4277 = shalt.err (!%p4274_p4)
}
  0xd3   : > { %s6186_s17 = smov 4   ;;  %s6187_s18 = smov 64  }
  0xd4   : > { %3902 = dma.hbm_to_vmem [thread:$0]  (%p6183_p5), %s5181_s25, 1024, %s5184_s29, %s5091_s23, %s6187_s18, %s6187_s18, %s6186_s17  }
  0xd5   : > { %s6188_s6 = sld [smem:[#allocation52_spill]]  ;;  %s650_s2 = scalar_lea.vmem [#allocation13], %s5154_s30 }
  0xd6   : > { %s657_s19 = sshll.u32 %s650_s2, 4  ;;  %s5218_s19 = int_to_ptr.vmem [resolvable:$true] %s657_s19 }
  0xdb   : > { %s5215_s14 = scalar_lea.hbm %s6188_s6, %s5175_s16  ;;  %s4282_s29 = scalar_lea.hbm %s6188_s6, 2048 }
  0xdc   : > { %s4278_s27 = scalar_lea.hbm %s5215_s14, 1024  ;;  %p4283_p13 = scmp.lt.u32.totalorder %s5215_s14, %s6188_s6 }
  0xdd   : > { %p4279_p12 = scmp.ne.s32.totalorder %s5215_s14, %s4278_s27  ;;  %p4284_p2 = scmp.lt.u32.totalorder %s4282_s29, %s4278_s27 }
  0xde   : > { %p4286_p0 = scmp.lt.u32.totalorder %s4278_s27, %s5215_s14 }
  0xdf   : > { %p4280_p6 = pnand %p4279_p12, %p6183_p5  ;;  %p4285_p10 = por %p4284_p2, %p4283_p13 }
  0xe1   : > { %p4281_p1 = pneg %p4280_p6  ;;  %p4287_p9 = por %p4286_p0, %p4285_p10 }
  0xe3   : > { %p4288_p7 = pnand %p4287_p9, %p4281_p1 }
  0xe5   : > { %4291 = shalt.err (!%p4288_p7)
}
  0xe6   : > { %s4292_s2 = scalar_lea.vmem %s5218_s19, 1024  ;;  %s4784_s4 = smov [#allocation13]  }
  0xe7   : > { %p4293_p8 = scmp.ne.s32.totalorder %s5218_s19, %s4292_s2  ;;  %s4296_s25 = sshll.u32 %s4784_s4, 4  ;;  %s4297_s25 = int_to_ptr.vmem [resolvable:$false] %s4296_s25 }
  0xe8   : > { %s4298_s26 = scalar_lea.vmem %s4297_s25, 2048  ;;  %p4299_p4 = scmp.lt.s32.totalorder %s5218_s19, %s4297_s25 }
  0xe9   : > { %p4294_p3 = pnand %p4293_p8, %p6183_p5  ;;  %p4300_p12 = scmp.lt.s32.totalorder %s4298_s26, %s4292_s2 }
  0xeb   : > { %p4295_p11 = pneg %p4294_p3  ;;  %p4301_p6 = por %p4300_p12, %p4299_p4 }
  0xed   : > { %p4302_p13 = pnand %p4301_p6, %p4295_p11 }
  0xef   : > { %4305 = shalt.err (!%p4302_p13)
}
  0xf0   : > { %3903 = dma.hbm_to_vmem [thread:$0]  (%p6183_p5), %s5215_s14, 1024, %s5218_s19, %s5091_s23, %s6187_s18, %s6187_s18, %s6186_s17  }
  0xf1   : > { %s6189_s7 = sld [smem:[#allocation53_spill]]  ;;  %s671_s2 = scalar_lea.vmem [#allocation14], %s5154_s30 }
  0xf2   : > { %s678_s4 = sshll.u32 %s671_s2, 4  ;;  %s5255_s25 = sshll.u32 %s5089_s24, 2  ;;  %s5252_s4 = int_to_ptr.vmem [resolvable:$true] %s678_s4 }
  0xf7   : > { %s5249_s21 = scalar_lea.hbm %s6189_s7, %s5175_s16  ;;  %s4310_s27 = scalar_lea.hbm %s6189_s7, 2048 }
  0xf8   : > { %s4306_s26 = scalar_lea.hbm %s5249_s21, 1024  ;;  %p4311_p0 = scmp.lt.u32.totalorder %s5249_s21, %s6189_s7 }
  0xf9   : > { %p4307_p1 = scmp.ne.s32.totalorder %s5249_s21, %s4306_s26  ;;  %p4312_p9 = scmp.lt.u32.totalorder %s4310_s27, %s4306_s26 }
  0xfa   : > { %p4314_p8 = scmp.lt.u32.totalorder %s4306_s26, %s5249_s21 }
  0xfb   : > { %p4308_p2 = pnand %p4307_p1, %p6183_p5  ;;  %p4313_p7 = por %p4312_p9, %p4311_p0 }
  0xfd   : > { %p4309_p10 = pneg %p4308_p2  ;;  %p4315_p3 = por %p4314_p8, %p4313_p7 }
  0xff   : > { %p4316_p11 = pnand %p4315_p3, %p4309_p10 }
 0x101   : > { %4319 = shalt.err (!%p4316_p11)
}
 0x102   : > { %s4320_s2 = scalar_lea.vmem %s5252_s4, 1024  ;;  %s4785_s14 = smov [#allocation14]  }
 0x103   : > { %p4321_p4 = scmp.ne.s32.totalorder %s5252_s4, %s4320_s2  ;;  %s4324_s19 = sshll.u32 %s4785_s14, 4  ;;  %s4325_s19 = int_to_ptr.vmem [resolvable:$false] %s4324_s19 }
 0x104   : > { %s4326_s5 = scalar_lea.vmem %s4325_s19, 2048  ;;  %p4327_p13 = scmp.lt.s32.totalorder %s5252_s4, %s4325_s19 }
 0x105   : > { %p4322_p12 = pnand %p4321_p4, %p6183_p5  ;;  %p4328_p1 = scmp.lt.s32.totalorder %s4326_s5, %s4320_s2 }
 0x107   : > { %p4323_p6 = pneg %p4322_p12  ;;  %p4329_p2 = por %p4328_p1, %p4327_p13 }
 0x109   : > { %p4330_p0 = pnand %p4329_p2, %p4323_p6 }
 0x10b   : > { %4333 = shalt.err (!%p4330_p0)
}
 0x10c   : > { %3904 = dma.hbm_to_vmem [thread:$0]  (%p6183_p5), %s5249_s21, 1024, %s5252_s4, %s5091_s23, %s6187_s18, %s6187_s18, %s6186_s17  }
 0x10d   : > { %s5283_s26 = sshll.u32 %s4766_s20, 6  ;;  %s6190_s8 = sld [smem:[#allocation54_spill]] }
 0x10e   : > { %s692_s14 = scalar_lea.vmem [#allocation15], %s5255_s25 }
 0x10f   : > { %s699_s19 = sshll.u32 %s692_s14, 4  ;;  %s5292_s19 = int_to_ptr.vmem [resolvable:$true] %s699_s19 }
 0x113   : > { %s5289_s2 = scalar_lea.hbm %s6190_s8, %s5283_s26  ;;  %s4338_s6 = scalar_lea.hbm %s6190_s8, 128 }
 0x114   : > { %s4334_s5 = scalar_lea.hbm %s5289_s2, 64  ;;  %p4339_p8 = scmp.lt.u32.totalorder %s5289_s2, %s6190_s8 }
 0x115   : > { %p4335_p10 = scmp.ne.s32.totalorder %s5289_s2, %s4334_s5  ;;  %p4340_p3 = scmp.lt.u32.totalorder %s4338_s6, %s4334_s5 }
 0x116   : > { %p4342_p4 = scmp.lt.u32.totalorder %s4334_s5, %s5289_s2 }
 0x117   : > { %p4336_p9 = pnand %p4335_p10, %p6183_p5  ;;  %p4341_p11 = por %p4340_p3, %p4339_p8 }
 0x119   : > { %p4337_p7 = pneg %p4336_p9  ;;  %p4343_p12 = por %p4342_p4, %p4341_p11 }
 0x11b   : > { %p4344_p6 = pnand %p4343_p12, %p4337_p7 }
 0x11d   : > { %4347 = shalt.err (!%p4344_p6)
}
 0x11e   : > { %s4348_s14 = scalar_lea.vmem %s5292_s19, 64  ;;  %s4786_s21 = smov [#allocation15]  }
 0x11f   : > { %p4349_p13 = scmp.ne.s32.totalorder %s5292_s19, %s4348_s14  ;;  %s4352_s4 = sshll.u32 %s4786_s21, 4  ;;  %s4353_s4 = int_to_ptr.vmem [resolvable:$false] %s4352_s4 }
 0x120   : > { %s4354_s27 = scalar_lea.vmem %s4353_s4, 128  ;;  %p4355_p0 = scmp.lt.s32.totalorder %s5292_s19, %s4353_s4 }
 0x121   : > { %p4350_p1 = pnand %p4349_p13, %p6183_p5  ;;  %p4356_p10 = scmp.lt.s32.totalorder %s4354_s27, %s4348_s14 }
 0x123   : > { %p4351_p2 = pneg %p4350_p1  ;;  %p4357_p9 = por %p4356_p10, %p4355_p0 }
 0x125   : > { %p4358_p8 = pnand %p4357_p9, %p4351_p2 }
 0x127   : > { %4361 = shalt.err (!%p4358_p8)
}
 0x128   : > { %s4787_s6 = smov 16   ;;  %s4788_s5 = smov 1  }
 0x129   : > { %3905 = dma.hbm_to_vmem [thread:$0]  (%p6183_p5), %s5289_s2, 64, %s5292_s19, %s5091_s23, %s4787_s6, %s4787_s6, %s4788_s5  }
 0x12a   : > { %s6191_s9 = sld [smem:[#allocation55_spill]]  ;;  %s713_s4 = scalar_lea.vmem [#allocation16], %s5255_s25 }
 0x12b   : > { %s720_s27 = sshll.u32 %s713_s4, 4  ;;  %s5326_s27 = int_to_ptr.vmem [resolvable:$true] %s720_s27 }
 0x130   : > { %s5323_s14 = scalar_lea.hbm %s6191_s9, %s5283_s26  ;;  %s4366_s19 = scalar_lea.hbm %s6191_s9, 128 }
 0x131   : > { %s4362_s7 = scalar_lea.hbm %s5323_s14, 64  ;;  %p4367_p4 = scmp.lt.u32.totalorder %s5323_s14, %s6191_s9 }
 0x132   : > { %p4363_p7 = scmp.ne.s32.totalorder %s5323_s14, %s4362_s7  ;;  %p4368_p12 = scmp.lt.u32.totalorder %s4366_s19, %s4362_s7 }
 0x133   : > { %p4370_p13 = scmp.lt.u32.totalorder %s4362_s7, %s5323_s14 }
 0x134   : > { %p4364_p3 = pnand %p4363_p7, %p6183_p5  ;;  %p4369_p6 = por %p4368_p12, %p4367_p4 }
 0x136   : > { %p4365_p11 = pneg %p4364_p3  ;;  %p4371_p1 = por %p4370_p13, %p4369_p6 }
 0x138   : > { %p4372_p2 = pnand %p4371_p1, %p4365_p11 }
 0x13a   : > { %4375 = shalt.err (!%p4372_p2)
}
 0x13b   : > { %s4376_s4 = scalar_lea.vmem %s5326_s27, 64  ;;  %s4789_s8 = smov [#allocation16]  }
 0x13c   : > { %p4377_p0 = scmp.ne.s32.totalorder %s5326_s27, %s4376_s4  ;;  %s4380_s2 = sshll.u32 %s4789_s8, 4  ;;  %s4381_s2 = int_to_ptr.vmem [resolvable:$false] %s4380_s2 }
 0x13d   : > { %s4382_s29 = scalar_lea.vmem %s4381_s2, 128  ;;  %p4383_p8 = scmp.lt.s32.totalorder %s5326_s27, %s4381_s2 }
 0x13e   : > { %p4378_p10 = pnand %p4377_p0, %p6183_p5  ;;  %p4384_p7 = scmp.lt.s32.totalorder %s4382_s29, %s4376_s4 }
 0x140   : > { %p4379_p9 = pneg %p4378_p10  ;;  %p4385_p3 = por %p4384_p7, %p4383_p8 }
 0x142   : > { %p4386_p4 = pnand %p4385_p3, %p4379_p9 }
 0x144   : > { %4389 = shalt.err (!%p4386_p4)
}
 0x145   : > { %3906 = dma.hbm_to_vmem [thread:$0]  (%p6183_p5), %s5323_s14, 64, %s5326_s27, %s5091_s23, %s4787_s6, %s4787_s6, %s4788_s5  }
 0x146   : > { %s6192_s10 = sld [smem:[#allocation56_spill]]  ;;  %s734_s4 = scalar_lea.vmem [#allocation17], %s5255_s25 }
 0x147   : > { %s741_s8 = sshll.u32 %s734_s4, 4  ;;  %s6129_s2 = sshll.u32 %s5089_s24, 4  ;;  %s5360_s8 = int_to_ptr.vmem [resolvable:$true] %s741_s8 }
 0x14c   : > { %s5357_s21 = scalar_lea.hbm %s6192_s10, %s5283_s26  ;;  %s4394_s7 = scalar_lea.hbm %s6192_s10, 128 }
 0x14d   : > { %s4390_s29 = scalar_lea.hbm %s5357_s21, 64  ;;  %p4395_p13 = scmp.lt.u32.totalorder %s5357_s21, %s6192_s10 }
 0x14e   : > { %p4391_p11 = scmp.ne.s32.totalorder %s5357_s21, %s4390_s29  ;;  %p4396_p1 = scmp.lt.u32.totalorder %s4394_s7, %s4390_s29 }
 0x14f   : > { %p4398_p0 = scmp.lt.u32.totalorder %s4390_s29, %s5357_s21 }
 0x150   : > { %p4392_p12 = pnand %p4391_p11, %p6183_p5  ;;  %p4397_p2 = por %p4396_p1, %p4395_p13 }
 0x152   : > { %p4393_p6 = pneg %p4392_p12  ;;  %p4399_p10 = por %p4398_p0, %p4397_p2 }
 0x154   : > { %p4400_p9 = pnand %p4399_p10, %p4393_p6 }
 0x156   : > { %4403 = shalt.err (!%p4400_p9)
}
 0x157   : > { %s4404_s25 = scalar_lea.vmem %s5360_s8, 64  ;;  %s4790_s4 = smov [#allocation17]  }
 0x158   : > { %p4405_p8 = scmp.ne.s32.totalorder %s5360_s8, %s4404_s25  ;;  %s4408_s14 = sshll.u32 %s4790_s4, 4  ;;  %s4409_s14 = int_to_ptr.vmem [resolvable:$false] %s4408_s14 }
 0x159   : > { %s4410_s27 = scalar_lea.vmem %s4409_s14, 128  ;;  %p4411_p4 = scmp.lt.s32.totalorder %s5360_s8, %s4409_s14 }
 0x15a   : > { %p4406_p7 = pnand %p4405_p8, %p6183_p5  ;;  %p4412_p11 = scmp.lt.s32.totalorder %s4410_s27, %s4404_s25 }
 0x15c   : > { %p4407_p3 = pneg %p4406_p7  ;;  %p4413_p12 = por %p4412_p11, %p4411_p4 }
 0x15e   : > { %p4414_p13 = pnand %p4413_p12, %p4407_p3 }
 0x160   : > { %4417 = shalt.err (!%p4414_p13)
}
 0x161   : > { %3907 = dma.hbm_to_vmem [thread:$0]  (%p6183_p5), %s5357_s21, 64, %s5360_s8, %s5091_s23, %s4787_s6, %s4787_s6, %s4788_s5  }
 0x162   : > { %s6130_s29 = sshll.u32 %s4766_s20, 8  ;;  %s6193_s11 = sld [smem:[#allocation57_spill]] }
 0x163   : > { %s755_s25 = scalar_lea.vmem [#allocation18], %s6129_s2 }
 0x164   : > { %s762_s4 = sshll.u32 %s755_s25, 4  ;;  %s5398_s4 = int_to_ptr.vmem [resolvable:$true] %s762_s4 }
 0x168   : > { %s5394_s19 = scalar_lea.hbm %s6193_s11, %s6130_s29  ;;  %s4422_s21 = scalar_lea.hbm %s6193_s11, 512 }
 0x169   : > { %s4418_s14 = scalar_lea.hbm %s5394_s19, 256  ;;  %p4423_p0 = scmp.lt.u32.totalorder %s5394_s19, %s6193_s11 }
 0x16a   : > { %p4419_p6 = scmp.ne.s32.totalorder %s5394_s19, %s4418_s14  ;;  %p4424_p10 = scmp.lt.u32.totalorder %s4422_s21, %s4418_s14 }
 0x16b   : > { %p4426_p8 = scmp.lt.u32.totalorder %s4418_s14, %s5394_s19 }
 0x16c   : > { %p4420_p1 = pnand %p4419_p6, %p6183_p5  ;;  %p4425_p9 = por %p4424_p10, %p4423_p0 }
 0x16e   : > { %p4421_p2 = pneg %p4420_p1  ;;  %p4427_p7 = por %p4426_p8, %p4425_p9 }
 0x170   : > { %p4428_p3 = pnand %p4427_p7, %p4421_p2 }
 0x172   : > { %4431 = shalt.err (!%p4428_p3)
}
 0x173   : > { %s4432_s7 = scalar_lea.vmem %s5398_s4, 256  ;;  %s4791_s26 = smov [#allocation18]  }
 0x174   : > { %p4433_p4 = scmp.ne.s32.totalorder %s5398_s4, %s4432_s7  ;;  %s4436_s25 = sshll.u32 %s4791_s26, 4  ;;  %s4437_s25 = int_to_ptr.vmem [resolvable:$false] %s4436_s25 }
 0x175   : > { %s4438_s6 = scalar_lea.vmem %s4437_s25, 512  ;;  %p4439_p13 = scmp.lt.s32.totalorder %s5398_s4, %s4437_s25 }
 0x176   : > { %p4434_p11 = pnand %p4433_p4, %p6183_p5  ;;  %p4440_p6 = scmp.lt.s32.totalorder %s4438_s6, %s4432_s7 }
 0x178   : > { %p4435_p12 = pneg %p4434_p11  ;;  %p4441_p1 = por %p4440_p6, %p4439_p13 }
 0x17a   : > { %p4442_p0 = pnand %p4441_p1, %p4435_p12 }
 0x17c   : > { %4445 = shalt.err (!%p4442_p0)
}
 0x17d   : > { %3908 = dma.hbm_to_vmem [thread:$0]  (%p6183_p5), %s5394_s19, 256, %s5398_s4, %s5091_s23, %s6187_s18, %s6187_s18, %s6186_s17  }
 0x17e   : > { %s5429_s21 = scalar_lea.hbm %s6081_s12, %s5119_s3  ;;  %s775_s8 = scalar_lea.vmem [#allocation19], %s5089_s24 }
 0x17f   : > { %s782_s27 = sshll.u32 %s775_s8, 4  ;;  %s4446_s7 = scalar_lea.hbm %s5429_s21, 16  ;;  %s783_s27 = int_to_ptr.vmem [resolvable:$true] %s782_s27 }
 0x180   : > { %p4447_p2 = scmp.ne.s32.totalorder %s5429_s21, %s4446_s7  ;;  %s4450_s19 = scalar_lea.hbm %s6081_s12, 32 }
 0x181   : > { %p4451_p8 = scmp.lt.u32.totalorder %s5429_s21, %s6081_s12  ;;  %p4452_p7 = scmp.lt.u32.totalorder %s4450_s19, %s4446_s7 }
 0x182   : > { %p4448_p10 = pnand %p4447_p2, %p6183_p5  ;;  %p4454_p4 = scmp.lt.u32.totalorder %s4446_s7, %s5429_s21 }
 0x183   : > { %p4453_p3 = por %p4452_p7, %p4451_p8 }
 0x184   : > { %p4449_p9 = pneg %p4448_p10 }
 0x185   : > { %p4455_p11 = por %p4454_p4, %p4453_p3 }
 0x187   : > { %p4456_p12 = pnand %p4455_p11, %p4449_p9 }
 0x189   : > { %4459 = shalt.err (!%p4456_p12)
}
 0x18a   : > { %s4460_s14 = scalar_lea.vmem %s783_s27, 16  ;;  %s4792_s5 = smov [#allocation19]  }
 0x18b   : > { %p4461_p13 = scmp.ne.s32.totalorder %s783_s27, %s4460_s14  ;;  %s4464_s8 = sshll.u32 %s4792_s5, 4  ;;  %s4465_s8 = int_to_ptr.vmem [resolvable:$false] %s4464_s8 }
 0x18c   : > { %s4466_s26 = scalar_lea.vmem %s4465_s8, 32  ;;  %p4467_p0 = scmp.lt.s32.totalorder %s783_s27, %s4465_s8 }
 0x18d   : > { %p4462_p6 = pnand %p4461_p13, %p6183_p5  ;;  %p4468_p2 = scmp.lt.s32.totalorder %s4466_s26, %s4460_s14 }
 0x18f   : > { %p4463_p1 = pneg %p4462_p6  ;;  %p4469_p10 = por %p4468_p2, %p4467_p0 }
 0x191   : > { %p4470_p7 = pnand %p4469_p10, %p4463_p1 }
 0x193   : > { %4473 = shalt.err (!%p4470_p7)
}
 0x194   : > { %3909 = dma.hbm_to_vmem [thread:$0]  (%p6183_p5), %s5429_s21, 16, %s783_s27, %s5091_s23  }
 0x195   : > { %s6194_s19 = sld [smem:[#allocation58_spill]]  ;;  %s792_s6 = scalar_lea.vmem [#allocation20], %s5089_s24 }
 0x196   : > { %s799_s14 = sshll.u32 %s792_s6, 4  ;;  %s800_s14 = int_to_ptr.vmem [resolvable:$true] %s799_s14 }
 0x19b   : > { %s5454_s4 = scalar_lea.hbm %s6194_s19, %s5119_s3  ;;  %s4478_s21 = scalar_lea.hbm %s6194_s19, 32 }
 0x19c   : > { %s4474_s5 = scalar_lea.hbm %s5454_s4, 16  ;;  %p4479_p4 = scmp.lt.u32.totalorder %s5454_s4, %s6194_s19 }
 0x19d   : > { %p4475_p9 = scmp.ne.s32.totalorder %s5454_s4, %s4474_s5  ;;  %p4480_p11 = scmp.lt.u32.totalorder %s4478_s21, %s4474_s5 }
 0x19e   : > { %p4482_p13 = scmp.lt.u32.totalorder %s4474_s5, %s5454_s4 }
 0x19f   : > { %p4476_p8 = pnand %p4475_p9, %p6183_p5  ;;  %p4481_p12 = por %p4480_p11, %p4479_p4 }
 0x1a1   : > { %p4477_p3 = pneg %p4476_p8  ;;  %p4483_p6 = por %p4482_p13, %p4481_p12 }
 0x1a3   : > { %p4484_p1 = pnand %p4483_p6, %p4477_p3 }
 0x1a5   : > { %4487 = shalt.err (!%p4484_p1)
}
 0x1a6   : > { %s4488_s25 = scalar_lea.vmem %s800_s14, 16  ;;  %s4793_s6 = smov [#allocation20]  }
 0x1a7   : > { %p4489_p0 = scmp.ne.s32.totalorder %s800_s14, %s4488_s25  ;;  %s4492_s2 = sshll.u32 %s4793_s6, 4  ;;  %s4493_s2 = int_to_ptr.vmem [resolvable:$false] %s4492_s2 }
 0x1a8   : > { %s4494_s8 = scalar_lea.vmem %s4493_s2, 32  ;;  %p4495_p7 = scmp.lt.s32.totalorder %s800_s14, %s4493_s2 }
 0x1a9   : > { %p4490_p2 = pnand %p4489_p0, %p6183_p5  ;;  %p4496_p9 = scmp.lt.s32.totalorder %s4494_s8, %s4488_s25 }
 0x1ab   : > { %p4491_p10 = pneg %p4490_p2  ;;  %p4497_p8 = por %p4496_p9, %p4495_p7 }
 0x1ad   : > { %p4498_p4 = pnand %p4497_p8, %p4491_p10 }
 0x1af   : > { %4501 = shalt.err (!%p4498_p4)
}
 0x1b0   : > { %3910 = dma.hbm_to_vmem [thread:$0]  (%p6183_p5), %s5454_s4, 16, %s800_s14, %s5091_s23  }
 0x1b1   : > { %s6195_s21 = sld [smem:[#allocation59_spill]]  ;;  %s809_s2 = scalar_lea.vmem [#allocation21], %s5089_s24 }
 0x1b2   : > { %s816_s25 = sshll.u32 %s809_s2, 4  ;;  %s817_s25 = int_to_ptr.vmem [resolvable:$true] %s816_s25 }
 0x1b7   : > { %s6196_s7 = smov %s6195_s21  ;;  %s5479_s27 = scalar_lea.hbm %s6195_s21, %s5119_s3 }
 0x1b8   : > { %s4502_s6 = scalar_lea.hbm %s5479_s27, 16  ;;  %s4506_s4 = scalar_lea.hbm %s6196_s7, 32 }
 0x1b9   : > { %p4503_p3 = scmp.ne.s32.totalorder %s5479_s27, %s4502_s6  ;;  %p4507_p13 = scmp.lt.u32.totalorder %s5479_s27, %s6196_s7 }
 0x1ba   : > { %p4508_p6 = scmp.lt.u32.totalorder %s4506_s4, %s4502_s6  ;;  %p4510_p0 = scmp.lt.u32.totalorder %s4502_s6, %s5479_s27 }
 0x1bb   : > { %p4504_p11 = pnand %p4503_p3, %p6183_p5 }
 0x1bc   : > { %p4509_p1 = por %p4508_p6, %p4507_p13 }
 0x1bd   : > { %p4505_p12 = pneg %p4504_p11 }
 0x1be   : > { %p4511_p2 = por %p4510_p0, %p4509_p1 }
 0x1c0   : > { %p4512_p10 = pnand %p4511_p2, %p4505_p12 }
 0x1c2   : > { %4515 = shalt.err (!%p4512_p10)
}
 0x1c3   : > { %s4516_s26 = scalar_lea.vmem %s817_s25, 16  ;;  %s4794_s21 = smov [#allocation21]  }
 0x1c4   : > { %p4517_p7 = scmp.ne.s32.totalorder %s817_s25, %s4516_s26  ;;  %s4520_s2 = sshll.u32 %s4794_s21, 4  ;;  %s4521_s2 = int_to_ptr.vmem [resolvable:$false] %s4520_s2 }
 0x1c5   : > { %s4522_s29 = scalar_lea.vmem %s4521_s2, 32  ;;  %p4523_p4 = scmp.lt.s32.totalorder %s817_s25, %s4521_s2 }
 0x1c6   : > { %p4518_p9 = pnand %p4517_p7, %p6183_p5  ;;  %p4524_p3 = scmp.lt.s32.totalorder %s4522_s29, %s4516_s26 }
 0x1c8   : > { %p4519_p8 = pneg %p4518_p9  ;;  %p4525_p11 = por %p4524_p3, %p4523_p4 }
 0x1ca   : > { %p4526_p6 = pnand %p4525_p11, %p4519_p8 }
 0x1cc   : > { %4529 = shalt.err (!%p4526_p6)
}
 0x1cd   : > { %3911 = dma.hbm_to_vmem [thread:$0]  (%p6183_p5), %s5479_s27, 16, %s817_s25, %s5091_s23  }
 0x1ce   : > { %s6197_s6 = sshll.u32 %s4766_s20, 8  ;;  %s6198_s14 = sld [smem:[#allocation60_spill]] }
 0x1cf   : > { %s6199_s21 = sshll.u32 %s5089_s24, 4 }
 0x1d0   : > { %s827_s26 = scalar_lea.vmem [#allocation22], %s6199_s21 }
 0x1d1   : > { %s834_s2 = sshll.u32 %s827_s26, 4  ;;  %s5509_s2 = int_to_ptr.vmem [resolvable:$true] %s834_s2 }
 0x1d4   : > { %s5505_s5 = scalar_lea.hbm %s6198_s14, %s6197_s6  ;;  %s4534_s8 = scalar_lea.hbm %s6198_s14, 512 }
 0x1d5   : > { %s4530_s29 = scalar_lea.hbm %s5505_s5, 256  ;;  %p4535_p0 = scmp.lt.u32.totalorder %s5505_s5, %s6198_s14 }
 0x1d6   : > { %p4531_p12 = scmp.ne.s32.totalorder %s5505_s5, %s4530_s29  ;;  %p4536_p2 = scmp.lt.u32.totalorder %s4534_s8, %s4530_s29 }
 0x1d7   : > { %p4538_p7 = scmp.lt.u32.totalorder %s4530_s29, %s5505_s5 }
 0x1d8   : > { %p4532_p13 = pnand %p4531_p12, %p6183_p5  ;;  %p4537_p10 = por %p4536_p2, %p4535_p0 }
 0x1da   : > { %p4533_p1 = pneg %p4532_p13  ;;  %p4539_p9 = por %p4538_p7, %p4537_p10 }
 0x1dc   : > { %p4540_p8 = pnand %p4539_p9, %p4533_p1 }
 0x1de   : > { %4543 = shalt.err (!%p4540_p8)
}
 0x1df   : > { %s4544_s21 = scalar_lea.vmem %s5509_s2, 256  ;;  %s4795_s26 = smov [#allocation22]  }
 0x1e0   : > { %p4545_p4 = scmp.ne.s32.totalorder %s5509_s2, %s4544_s21  ;;  %s4548_s27 = sshll.u32 %s4795_s26, 4  ;;  %s4549_s27 = int_to_ptr.vmem [resolvable:$false] %s4548_s27 }
 0x1e1   : > { %s4550_s25 = scalar_lea.vmem %s4549_s27, 512  ;;  %p4551_p6 = scmp.lt.s32.totalorder %s5509_s2, %s4549_s27 }
 0x1e2   : > { %p4546_p3 = pnand %p4545_p4, %p6183_p5  ;;  %p4552_p12 = scmp.lt.s32.totalorder %s4550_s25, %s4544_s21 }
 0x1e4   : > { %p4547_p11 = pneg %p4546_p3  ;;  %p4553_p13 = por %p4552_p12, %p4551_p6 }
 0x1e6   : > { %p4554_p0 = pnand %p4553_p13, %p4547_p11 }
 0x1e8   : > { %4557 = shalt.err (!%p4554_p0)
}
 0x1e9   : > { %3912 = dma.hbm_to_vmem [thread:$0]  (%p6183_p5), %s5505_s5, 256, %s5509_s2, %s5091_s23, %s6187_s18, %s6187_s18, %s6186_s17  }
 0x1ea   : > { %s6200_s6 = sld [smem:[#allocation61_spill]]  ;;  %s847_s21 = scalar_lea.vmem [#allocation23], %s5089_s24 }
 0x1eb   : > { %s854_s26 = sshll.u32 %s847_s21, 4  ;;  %s855_s26 = int_to_ptr.vmem [resolvable:$true] %s854_s26 }
 0x1f0   : > { %s5540_s4 = scalar_lea.hbm %s6200_s6, %s5119_s3  ;;  %s4562_s5 = scalar_lea.hbm %s6200_s6, 32 }
 0x1f1   : > { %s4558_s27 = scalar_lea.hbm %s5540_s4, 16  ;;  %p4563_p7 = scmp.lt.u32.totalorder %s5540_s4, %s6200_s6 }
 0x1f2   : > { %p4559_p1 = scmp.ne.s32.totalorder %s5540_s4, %s4558_s27  ;;  %p4564_p9 = scmp.lt.u32.totalorder %s4562_s5, %s4558_s27 }
 0x1f3   : > { %p4566_p4 = scmp.lt.u32.totalorder %s4558_s27, %s5540_s4 }
 0x1f4   : > { %p4560_p2 = pnand %p4559_p1, %p6183_p5  ;;  %p4565_p8 = por %p4564_p9, %p4563_p7 }
 0x1f6   : > { %p4561_p10 = pneg %p4560_p2  ;;  %p4567_p3 = por %p4566_p4, %p4565_p8 }
 0x1f8   : > { %p4568_p11 = pnand %p4567_p3, %p4561_p10 }
 0x1fa   : > { %4571 = shalt.err (!%p4568_p11)
}
 0x1fb   : > { %s4572_s8 = scalar_lea.vmem %s855_s26, 16  ;;  %s4796_s21 = smov [#allocation23]  }
 0x1fc   : > { %p4573_p6 = scmp.ne.s32.totalorder %s855_s26, %s4572_s8  ;;  %s4576_s9 = sshll.u32 %s4796_s21, 4  ;;  %s4577_s9 = int_to_ptr.vmem [resolvable:$false] %s4576_s9 }
 0x1fd   : > { %s4578_s7 = scalar_lea.vmem %s4577_s9, 32  ;;  %p4579_p0 = scmp.lt.s32.totalorder %s855_s26, %s4577_s9 }
 0x1fe   : > { %p4574_p12 = pnand %p4573_p6, %p6183_p5  ;;  %p4580_p1 = scmp.lt.s32.totalorder %s4578_s7, %s4572_s8 }
 0x200   : > { %p4575_p13 = pneg %p4574_p12  ;;  %p4581_p2 = por %p4580_p1, %p4579_p0 }
 0x202   : > { %p4582_p7 = pnand %p4581_p2, %p4575_p13 }
 0x204   : > { %4585 = shalt.err (!%p4582_p7)
}
 0x205   : > { %3913 = dma.hbm_to_vmem [thread:$0]  (%p6183_p5), %s5540_s4, 16, %s855_s26, %s5091_s23  }
 0x206   : > { %s6201_s5 = sld [smem:[#allocation62_spill]]  ;;  %s865_s9 = scalar_lea.vmem [#allocation24], %s5154_s30 }
 0x207   : > { %s872_s29 = sshll.u32 %s865_s9, 4  ;;  %s5568_s29 = int_to_ptr.vmem [resolvable:$true] %s872_s29 }
 0x20c   : > { %s5565_s2 = scalar_lea.hbm %s6201_s5, %s5175_s16  ;;  %s4590_s26 = scalar_lea.hbm %s6201_s5, 2048 }
 0x20d   : > { %s4586_s8 = scalar_lea.hbm %s5565_s2, 1024  ;;  %p4591_p4 = scmp.lt.u32.totalorder %s5565_s2, %s6201_s5 }
 0x20e   : > { %p4587_p10 = scmp.ne.s32.totalorder %s5565_s2, %s4586_s8  ;;  %p4592_p3 = scmp.lt.u32.totalorder %s4590_s26, %s4586_s8 }
 0x20f   : > { %p4594_p6 = scmp.lt.u32.totalorder %s4586_s8, %s5565_s2 }
 0x210   : > { %p4588_p9 = pnand %p4587_p10, %p6183_p5  ;;  %p4593_p11 = por %p4592_p3, %p4591_p4 }
 0x212   : > { %p4589_p8 = pneg %p4588_p9  ;;  %p4595_p12 = por %p4594_p6, %p4593_p11 }
 0x214   : > { %p4596_p13 = pnand %p4595_p12, %p4589_p8 }
 0x216   : > { %4599 = shalt.err (!%p4596_p13)
}
 0x217   : > { %s4600_s30 = scalar_lea.vmem %s5568_s29, 1024  ;;  %s4797_s27 = smov [#allocation24]  }
 0x218   : > { %p4601_p0 = scmp.ne.s32.totalorder %s5568_s29, %s4600_s30  ;;  %s4604_s25 = sshll.u32 %s4797_s27, 4  ;;  %s4605_s25 = int_to_ptr.vmem [resolvable:$false] %s4604_s25 }
 0x219   : > { %s4606_s9 = scalar_lea.vmem %s4605_s25, 2048  ;;  %p4607_p7 = scmp.lt.s32.totalorder %s5568_s29, %s4605_s25 }
 0x21a   : > { %p4602_p1 = pnand %p4601_p0, %p6183_p5  ;;  %p4608_p10 = scmp.lt.s32.totalorder %s4606_s9, %s4600_s30 }
 0x21c   : > { %p4603_p2 = pneg %p4602_p1  ;;  %p4609_p9 = por %p4608_p10, %p4607_p7 }
 0x21e   : > { %p4610_p4 = pnand %p4609_p9, %p4603_p2 }
 0x220   : > { %4613 = shalt.err (!%p4610_p4)
}
 0x221   : > { %3914 = dma.hbm_to_vmem [thread:$0]  (%p6183_p5), %s5565_s2, 1024, %s5568_s29, %s5091_s23, %s6187_s18, %s6187_s18, %s6186_s17  }
 0x222   : > { %s6202_s4 = sld [smem:[#allocation63_spill]]  ;;  %s885_s7 = scalar_lea.vmem [#allocation25], %s5089_s24 }
 0x223   : > { %s892_s16 = sshll.u32 %s885_s7, 4  ;;  %s893_s16 = int_to_ptr.vmem [resolvable:$true] %s892_s16 }
 0x228   : > { %s5599_s26 = scalar_lea.hbm %s6202_s4, %s5119_s3  ;;  %s4618_s17 = scalar_lea.hbm %s6202_s4, 32 }
 0x229   : > { %s4614_s30 = scalar_lea.hbm %s5599_s26, 16  ;;  %p4619_p6 = scmp.lt.u32.totalorder %s5599_s26, %s6202_s4 }
 0x22a   : > { %p4615_p8 = scmp.ne.s32.totalorder %s5599_s26, %s4614_s30  ;;  %p4620_p12 = scmp.lt.u32.totalorder %s4618_s17, %s4614_s30 }
 0x22b   : > { %p4622_p0 = scmp.lt.u32.totalorder %s4614_s30, %s5599_s26 }
 0x22c   : > { %p4616_p3 = pnand %p4615_p8, %p6183_p5  ;;  %p4621_p13 = por %p4620_p12, %p4619_p6 }
 0x22e   : > { %p4617_p11 = pneg %p4616_p3  ;;  %p4623_p1 = por %p4622_p0, %p4621_p13 }
 0x230   : > { %p4624_p2 = pnand %p4623_p1, %p4617_p11 }
 0x232   : > { %4627 = shalt.err (!%p4624_p2)
}
 0x233   : > { %s4628_s24 = scalar_lea.vmem %s893_s16, 16  ;;  %s4798_s3 = smov [#allocation25]  }
 0x234   : > { %p4629_p7 = scmp.ne.s32.totalorder %s893_s16, %s4628_s24  ;;  %s4632_s29 = sshll.u32 %s4798_s3, 4  ;;  %s4633_s29 = int_to_ptr.vmem [resolvable:$false] %s4632_s29 }
 0x235   : > { %s4634_s9 = scalar_lea.vmem %s4633_s29, 32  ;;  %p4635_p4 = scmp.lt.s32.totalorder %s893_s16, %s4633_s29 }
 0x236   : > { %p4630_p10 = pnand %p4629_p7, %p6183_p5  ;;  %p4636_p8 = scmp.lt.s32.totalorder %s4634_s9, %s4628_s24 }
 0x238   : > { %p4631_p9 = pneg %p4630_p10  ;;  %p4637_p3 = por %p4636_p8, %p4635_p4 }
 0x23a   : > { %p4638_p6 = pnand %p4637_p3, %p4631_p9 }
 0x23c   : > { %4641 = shalt.err (!%p4638_p6)
}
 0x23d   : > { %3915 = dma.hbm_to_vmem [thread:$0]  (%p6183_p5), %s5599_s26, 16, %s893_s16, %s5091_s23  }
 0x23e PF: > { %p6203_p11 = scmp.ne.s32.totalorder %s6177_s0, 0 }
 0x23f   : > { %s6204_s8 = sld [smem:[#allocation40_spill]] (!%p6203_p11)  ;;  %s903_s21 = sand.u32 (!%p6203_p11), 1, %s4970_s22  }
 0x240   : > { %901 = sbr.rel (%p6203_p11) target bundleno = 5708 (0x164c), region = 92  ;;  %s5624_s7 = sand.u32 (!%p6203_p11), 1, %s4750_s28  }
 0x241   : > { %s3483_s30 = sshll.u32 (!%p6203_p11), %s5624_s7, 3  ;;  %s904_s27 = scalar_lea.sflag (!%p6203_p11), [#allocation6], %s903_s21 }
 0x242   : > { %s5627_s25 = scalar_lea.vmem (!%p6203_p11), [#allocation5], %s3483_s30 }
 0x245   : > { %p6205_p12 = scmp.ne.s32.totalorder (!%p6203_p11), %s6204_s8, 0 }
 0x247   : > { %4717 = dma.done.wait (%p6205_p12), %s904_s27, 128  }
 0x248   : > { %4719 = vsyncadd (%p6205_p12), %s904_s27, 4294967168  ;;  %p6206_p5 = scmp.eq.s32.totalorder %s4970_s22, 0 }
 0x24a   : > { %4721 = dma.done.wait (%p6206_p5), [#allocation9], 16   ;;  %p6207_p13 = pmov %p6206_p5 }
 0x24b   : > { %s6208_s15 = sld [smem:[#allocation32_spill]]  ;;  %s6209_s23 = sld [smem:[#allocation43_spill]] }
 0x24c   : > { %4723 = vsyncadd (%p6207_p13), [#allocation9], 4294967280 }
 0x251   : > { %s5638_s0 = sand.u32 1, %s6208_s15   ;;  %p6210_p0 = scmp.ne.s32.totalorder %s6209_s23, 0 }
 0x253   : > { %4725 = dma.done.wait (%p6210_p0), %s904_s27, 4912  }
 0x254   : > { %4727 = vsyncadd (%p6210_p0), %s904_s27, 4294962384  ;;  %s6211_s16 = sld [smem:[#allocation36_spill]]  ;;  %s3485_s22 = sshll.u32 %s5638_s0, 6 }
 0x255   : > { %s3488_s18 = sshll.u32 %s5638_s0, 2  ;;  %s3491_s2 = sshll.u32 %s5638_s0, 4 }
 0x256   : > { %s3494_s24 = sshll.u32 %s5624_s7, 1  ;;  %s5653_s29 = scalar_lea.vmem [#allocation12], %s3485_s22 }
 0x257   : > { %s5655_s9 = scalar_lea.vmem [#allocation13], %s3485_s22  ;;  %s5657_s8 = scalar_lea.vmem [#allocation14], %s3485_s22 }
 0x258   : > { %s5659_s21 = scalar_lea.vmem [#allocation15], %s3488_s18  ;;  %s5661_s30 = scalar_lea.vmem [#allocation16], %s3488_s18 }
 0x259   : > { %s5663_s27 = scalar_lea.vmem [#allocation17], %s3488_s18  ;;  %s5665_s15 = scalar_lea.vmem [#allocation18], %s3491_s2 }
 0x25a   : > { %s5647_s17 = sld [smem:[#allocation4 + %s6211_s16]]  ;;  %s998_s23 = scalar_lea.vmem [#allocation19], %s5638_s0 }
 0x25b   : > { %s1006_s16 = scalar_lea.vmem [#allocation20], %s5638_s0  ;;  %s1014_s26 = scalar_lea.vmem [#allocation21], %s5638_s0 }
 0x25c   : > { %s5670_s4 = scalar_lea.vmem [#allocation22], %s3491_s2  ;;  %s1031_s3 = scalar_lea.vmem [#allocation23], %s5638_s0 }
 0x25d   : > { %s5673_s5 = scalar_lea.vmem [#allocation24], %s3485_s22  ;;  %s1048_s6 = scalar_lea.vmem [#allocation25], %s5638_s0 }
 0x25e   : > { %s5676_s10 = scalar_lea.vmem [#allocation26], %s3494_s24  ;;  %s6212_s11 = sld [smem:[#allocation35_spill]] }
 0x264   : > { %p3495_p1 = scmp.ne.s32.totalorder %s6212_s11, 0 }
 0x265   : > { %v1184_v0 = vlaneseq (!%p3495_p1)  ;;  %v1187_v1 = vld [vmem:[#allocation8] sm:$0x1] (!%p3495_p1)  ;;  %s1202_s18 = sadd.s32 (!%p3495_p1), 1, %s5647_s17  ;;  %v3626_v2 = vld [vmem:[%s5627_s25] sm:$0xff] (!%p3495_p1)   ;;  %v1189_v5 = vstv (!%p3495_p1), %s5647_s17  ;;  %vm1216_vm2 = vcmask (!%p3495_p1), 261120  }
 0x266   : > { %1179 = sbr.rel (%p3495_p1) target bundleno = 624 (0x270), region = 168  ;;  %v1188_v4 = vunpack.c.l.bf16 (!%p3495_p1), %v1187_v1  ;;  %v1203_v6 = vstv (!%p3495_p1), %s1202_s18  ;;  %v3627_v7 = vunpack.c.l.bf16 (!%p3495_p1), %v3626_v2  ;;  %v3628_v10 = vunpack.c.h.bf16 (!%p3495_p1), %v3626_v2 }
 0x267   : > { %v1185_v3 = vshrl.u32 (!%p3495_p1), %v1184_v0, 7 }
 0x269   : > { %v1198_v8 = vsub.s32 (!%p3495_p1), 0, %v1185_v3  ;;  %v1212_v9 = vsub.s32 (!%p3495_p1), 1, %v1185_v3  ;;  %vm1190_vm0 = vcmp.eq.s32.totalorder (!%p3495_p1), %v1185_v3, %v1189_v5  ;;  %v1186_v11 = vadd.s32 (!%p3495_p1), 8, %v1185_v3 }
 0x26a   : > { %vm1204_vm1 = vcmp.eq.s32.totalorder (!%p3495_p1), %v1185_v3, %v1203_v6 }
 0x26b   : > { %v1199_v12 = vrot.slane (!%p3495_p1), %v1188_v4, %v1198_v8  ;;  %v1213_v13 = vrot.slane (!%p3495_p1), %v1188_v4, %v1212_v9  ;;  %vm1191_vm3 = vcmp.eq.s32.totalorder (!%p3495_p1), %v1186_v11, %v1189_v5  ;;  %vm1205_vm4 = vcmp.eq.s32.totalorder (!%p3495_p1), %v1186_v11, %v1203_v6 }
 0x26d   : > { %v1200_v14 = vsel %vm1190_vm0, %v1199_v12, %v3627_v7  ;;  %v1201_v15 = vsel %vm1191_vm3, %v1199_v12, %v3628_v10 }
 0x26e   : > { %v1214_v16 = vsel %vm1204_vm1, %v1213_v13, %v1200_v14  ;;  %v1215_v17 = vsel %vm1205_vm4, %v1213_v13, %v1201_v15 }
 0x26f   : > { %1217 = vst.msk [vmem:[#allocation2] sm:$0xff] %vm1216_vm2, %v1214_v16  ;;  %1218 = vst.msk [vmem:[#allocation2 + $0x8] sm:$0xff] %vm1216_vm2, %v1215_v17 }
 0x270 PF: > { %vm1234_vm5 = vcmask 261120   ;;  %v4044_v32 = vld [vmem:[%s5653_s29] sm:$0xff]   ;;  %v4799_v33 = vmov 0.0   ;;  %v4045_v34 = vld [vmem:[%s5653_s29 + $0x8] sm:$0xff]   ;;  %vm4800_vm6 = vmmov 0   ;;  %s6213_s11 = scalar_lea.vmem [#allocation10], %s5638_s0  ;;  %v1221_v56 = vlaneseq }
 0x271   : > { %3701 = vmatprep.subr.bf16.mxu0 %v4799_v33  ;;  %3725 = vmatprep.subr.bf16.mxu1 %v4799_v33  ;;  %v3496_v43 = vld [vmem:[%s6213_s11] ss:$0 sm:$0xff]  ;;  %s6214_s25 = scalar_lea.vmem [#allocation11], %s5638_s0  ;;  %v4046_v51 = vld [vmem:[%s5655_s9] sm:$0xff]   ;;  %v4047_v53 = vld [vmem:[%s5655_s9 + $0x8] sm:$0xff]   ;;  %vm1475_vm7 = vcmask 64512  }
 0x272   : > { %3702 = vmatpush3.bf16.msra.mxu0 %v4044_v32  ;;  %3705 = vmatprep.mubr.msk.bf16.mxu0 %vm4800_vm6, %v4799_v33  ;;  %v3497_v47 = vld [vmem:[%s6214_s25] ss:$0 sm:$0xff]  ;;  %v4048_v54 = vld [vmem:[%s5657_s8] sm:$0xff]   ;;  %v4049_v55 = vld [vmem:[%s5657_s8 + $0x8] sm:$0xff]   ;;  %v5722_v57 = vshrl.u32 %v1221_v56, 7  ;;  %v1222_v32 = vand.u32 127, %v1221_v56 }
 0x273   : > { %3703 = vmatprep.subr.bf16.mxu0 %v4799_v33  ;;  %3727 = vmatprep.mubr.msk.bf16.mxu1 %vm4800_vm6, %v4799_v33  ;;  %v1283_v58 = vld [vmem:[%s5659_s21] sm:$0x1]  ;;  %v1351_v63 = vld [vmem:[%s5661_s30] sm:$0x1]  ;;  %v1414_v11 = vld [vmem:[%s5663_s27] sm:$0x1] }
 0x274   : > { %v1284_v59 = vunpack.c.l.bf16 %v1283_v58  ;;  %v5726_v60 = vsub.s32 0, %v5722_v57  ;;  %v1352_v5 = vunpack.c.l.bf16 %v1351_v63  ;;  %v1415_v17 = vunpack.c.l.bf16 %v1414_v11 }
 0x275   : > { %vm1226_vm8 = vcmp.le.s32.totalorder %v1222_v32, %v5722_v57  ;;  %vm1525_vm12 = vcmask 130048   ;;  %vm1926_vm14 = vcmask 1043456  }
 0x276   : > { %v1219_v18 = vld [vmem:[#allocation2] sm:$0xff]  ;;  %v1220_v19 = vld [vmem:[#allocation2 + $0x8] sm:$0xff]  ;;  %3704 = vmatpush3.bf16.msra.mxu0 %v4045_v34  ;;  %v1288_v61 = vrot.slane %v1284_v59, %v5726_v60  ;;  %v1356_v9 = vrot.slane %v1352_v5, %v5726_v60  ;;  %v1228_v34 = vstv %s5647_s17 }
 0x277   : > { %v1235_v20 = vsel %vm1234_vm5, %v1219_v18, 0.0  ;;  %v1238_v21 = vsel %vm1234_vm5, %v1220_v19, 0.0  ;;  %3709 = vmatprep.subr.bf16.mxu0 %v4799_v33  ;;  %vm1229_vm9 = vcmp.lt.s32.totalorder %v1222_v32, %v1228_v34 }
 0x278   : > { %1236 = vadd.xlane.f32.xlu0 %v1235_v20  ;;  %vm5758_vm11 = vmand %vm1226_vm8, %vm1229_vm9 }
 0x27c   : > { %1239 = vadd.xlane.f32.xlu0 %v1238_v21 }
 0x305   : > { %v1237_v22 = vpop.xlane.xlu0 %1236 }
 0x306   : > { %v1242_v23 = vmul.f32 0.03125, %v1237_v22 }
 0x308   : > { %v1244_v24 = vsub.f32 %v1219_v18, %v1242_v23 }
 0x309   : > { %v1240_v25 = vpop.xlane.xlu0 %1239 }
 0x30a   : > { %v1243_v26 = vmul.f32 0.03125, %v1240_v25  ;;  %v1246_v27 = vmul.f32 %v1244_v24, %v1244_v24 }
 0x30c   : > { %v1245_v28 = vsub.f32 %v1220_v19, %v1243_v26  ;;  %v1248_v29 = vsel %vm1234_vm5, %v1246_v27, 0.0  ;;  %v1419_v19 = vrot.slane %v1415_v17, %v5726_v60  ;;  %v4050_v27 = vld [vmem:[%s5653_s29 + $0x10] sm:$0xff]  }
 0x30d   : > { %1249 = vadd.xlane.f32.xlu1 %v1248_v29  ;;  %v4051_v29 = vld [vmem:[%s5653_s29 + $0x18] sm:$0xff]  }
 0x30e   : > { %v1247_v30 = vmul.f32 %v1245_v28, %v1245_v28 }
 0x310   : > { %v1251_v31 = vsel %vm1234_vm5, %v1247_v30, 0.0  ;;  %v4052_v30 = vld [vmem:[%s5657_s8 + $0x10] sm:$0xff]  }
 0x311   : > { %1252 = vadd.xlane.f32.xlu1 %v1251_v31  ;;  %v4053_v31 = vld [vmem:[%s5657_s8 + $0x18] sm:$0xff]  }
 0x39a   : > { %v1250_v35 = vpop.xlane.xlu1 %1249 }
 0x39b   : > { %v1254_v36 = vmul.f32 0.03125, %v1250_v35  ;;  %v1225_v35 = vadd.s32 8, %v5722_v57 }
 0x39d   : > { %v1256_v37 = vadd.f32 1e-05, %v1254_v36  ;;  %vm1227_vm10 = vcmp.le.s32.totalorder %v1222_v32, %v1225_v35 }
 0x39e   : > { %v1253_v38 = vpop.xlane.xlu1 %1252  ;;  %vm5763_vm13 = vmand %vm1227_vm10, %vm1229_vm9 }
 0x39f   : > { %4078 = vrsqrt.f32 %v1256_v37  ;;  %v1255_v39 = vmul.f32 0.03125, %v1253_v38  ;;  %v3513_v37 = vld [vmem:[%s5659_s21 + $0x1] sm:$0x1] }
 0x3a1   : > { %v1257_v40 = vadd.f32 1e-05, %v1255_v39 }
 0x3a3   : > { %4080 = vrsqrt.f32 %v1257_v40 }
 0x3a9   : > { %v4079_v41 = vpop.eup %4078 }
 0x3aa   : > { %v1260_v42 = vmul.f32 %v4079_v41, %v1244_v24 }
 0x3ac   : > { %v1268_v45 = vmul.f32 %v3496_v43, %v1260_v42  ;;  %v1607_v42 = vunpack.c.l.bf16 %v3513_v37 }
 0x3ad   : > { %v4081_v44 = vpop.eup %4080 }
 0x3ae   : > { %v1261_v46 = vmul.f32 %v4081_v44, %v1245_v28  ;;  %v1276_v49 = vadd.f32 %v3497_v47, %v1268_v45 }
 0x3b0   : > { %v1269_v48 = vmul.f32 %v3496_v43, %v1261_v46 }
 0x3b2   : > { %v1277_v50 = vadd.f32 %v3497_v47, %v1269_v48  ;;  %v1611_v48 = vrot.slane %v1607_v42, %v5726_v60 }
 0x3b4   : > { %v5701_v52 = vpack.c.bf16 %v1277_v50, %v1276_v49  ;;  %v3529_v50 = vld [vmem:[%s5663_s27 + $0x1] sm:$0x1] }
 0x3b5   : > { %v1739_v57 = vunpack.c.l.bf16 %v3529_v50 }
 0x3b6   : > { %3706 = vmatmul.mubr.msk.bf16.vlgmr.msra.gmra.mrb[0].mxu0 %vm1234_vm5, %v5701_v52 }
 0x3b7   : > { %3710 = vmatpush3.bf16.msra.mxu0 %v4046_v51  ;;  %3713 = vmatprep.mubr.msk.bf16.mxu0 %vm4800_vm6, %v4799_v33 }
 0x3b8   : > { %3711 = vmatprep.subr.bf16.mxu0 %v4799_v33 }
 0x3bb   : > { %3712 = vmatpush3.bf16.msra.mxu0 %v4047_v53 }
 0x3bc   : > { %3717 = vmatprep.subr.bf16.mxu0 %v4799_v33 }
 0x3be   : > { %3714 = vmatmul.mubr.msk.bf16.vlgmr.msra.gmra.mrb[4].mxu0 %vm1234_vm5, %v5701_v52 }
 0x3bf   : > { %3718 = vmatpush3.bf16.msra.mxu0 %v4048_v54  ;;  %3721 = vmatprep.mubr.msk.bf16.mxu0 %vm4800_vm6, %v4799_v33 }
 0x3c0   : > { %3719 = vmatprep.subr.bf16.mxu0 %v4799_v33 }
 0x3c3   : > { %3720 = vmatpush3.bf16.msra.mxu0 %v4049_v55 }
 0x3c4   : > { %3731 = vmatprep.subr.bf16.mxu0 %v4799_v33 }
 0x3c6   : > { %3722 = vmatmul.mubr.msk.bf16.vlgmr.msra.gmra.mrb[8].mxu0 %vm1234_vm5, %v5701_v52 }
 0x3c7   : > { %3733 = vmatprep.mubr.msk.bf16.mxu0 %vm4800_vm6, %v4799_v33 }
 0x489   : > { %v1338_v62 = vpop.f32.mrb[0].mxu0 }
 0x48a   : > { %v1339_v0 = vadd.f32 %v1338_v62, %v1288_v61  ;;  %v3707_v1 = vpop.f32.mrb[1].mxu0  ;;  %v1743_v62 = vrot.slane %v1739_v57, %v5726_v60 }
 0x48b   : > { %v1341_v2 = vpop.f32.mrb[2].mxu0 }
 0x48c   : > { %v1342_v3 = vadd.f32 %v1341_v2, %v1288_v61  ;;  %v3708_v4 = vpop.f32.mrb[3].mxu0  ;;  %v1345_v6 = vmul.f32 0.35355338, %v1339_v0 }
 0x48e   : > { %v1346_v7 = vmul.f32 0.35355338, %v1342_v3 }
 0x490   : > { %v1473_v8 = vpack.c.bf16 %v1346_v7, %v1345_v6 }
 0x491   : > { %v1403_v10 = vpop.f32.mrb[4].mxu0 }
 0x492   : > { %v3715_v12 = vpop.f32.mrb[5].mxu0  ;;  %v1404_v14 = vadd.f32 %v1403_v10, %v1356_v9 }
 0x493   : > { %v1406_v13 = vpop.f32.mrb[6].mxu0 }
 0x494   : > { %v1407_v15 = vadd.f32 %v1406_v13, %v1356_v9  ;;  %v3716_v16 = vpop.f32.mrb[7].mxu0 }
 0x496   : > { %v1474_v18 = vpack.c.bf16 %v1407_v15, %v1404_v14 }
 0x498   : > { %v1480_v20 = vsel %vm1475_vm7, %v1474_v18, 0 }
 0x499   : > { %v1466_v21 = vpop.f32.mrb[8].mxu0  ;;  %3726 = vmatpush3.bf16.xpose.msra.mxu1 %v1480_v20 }
 0x49a   : > { %v3723_v22 = vpop.f32.mrb[9].mxu0  ;;  %3737 = vmatprep.subr.bf16.mxu1 %v4799_v33  ;;  %v1467_v24 = vadd.f32 %v1466_v21, %v1419_v19 }
 0x49b   : > { %v1469_v23 = vpop.f32.mrb[10].mxu0 }
 0x49c   : > { %v1470_v25 = vadd.f32 %v1469_v23, %v1419_v19  ;;  %v3724_v26 = vpop.f32.mrb[11].mxu0 }
 0x49d   : > { %v4054_v26 = vld [vmem:[%s5655_s9 + $0x10] sm:$0xff]  }
 0x49e   : > { %v1553_v28 = vpack.c.bf16 %v1470_v25, %v1467_v24 }
 0x4a0   : > { %3728 = vmatmul.mubr.msk.bf16.vlgmr.msra.gmra.mrb[0].mxu1 %vm1475_vm7, %v1473_v8  ;;  %3732 = vmatpush3.bf16.msra.mxu0 %v1553_v28  ;;  %v4055_v28 = vld [vmem:[%s5655_s9 + $0x18] sm:$0xff]  }
 0x4a1   : > { %3738 = vmatpush3.bf16.msra.mxu1 %v4050_v27  ;;  %3741 = vmatprep.mubr.msk.bf16.mxu1 %vm4800_vm6, %v4799_v33 }
 0x4a2   : > { %3739 = vmatprep.subr.bf16.mxu1 %v4799_v33  ;;  %3745 = vmatprep.subr.bf16.mxu0 %v4799_v33 }
 0x4a5   : > { %3740 = vmatpush3.bf16.msra.mxu1 %v4051_v29 }
 0x4a6   : > { %3753 = vmatprep.subr.bf16.mxu1 %v4799_v33 }
 0x4a8   : > { %3742 = vmatmul.mubr.msk.bf16.vlgmr.msra.gmra.mrb[4].mxu1 %vm1234_vm5, %v5701_v52 }
 0x4a9   : > { %3754 = vmatpush3.bf16.msra.mxu1 %v4052_v30  ;;  %3757 = vmatprep.mubr.msk.bf16.mxu1 %vm4800_vm6, %v4799_v33  ;;  %v3521_v30 = vld [vmem:[%s5661_s30 + $0x1] sm:$0x1] }
 0x4aa   : > { %3755 = vmatprep.subr.bf16.mxu1 %v4799_v33  ;;  %v1674_v37 = vunpack.c.l.bf16 %v3521_v30 }
 0x4ad   : > { %3756 = vmatpush3.bf16.msra.mxu1 %v4053_v31 }
 0x4ae   : > { %3767 = vmatprep.subr.bf16.mxu1 %v4799_v33 }
 0x4b0   : > { %3758 = vmatmul.mubr.msk.bf16.vlgmr.msra.gmra.mrb[8].mxu1 %vm1234_vm5, %v5701_v52 }
 0x4b1   : > { %3769 = vmatprep.mubr.msk.bf16.mxu1 %vm4800_vm6, %v4799_v33 }
 0x573   : > { %v1516_v38 = vpop.f32.mrb[0].mxu1 }
 0x574   : > { %v1523_v40 = vsel %vm5758_vm11, %v1516_v38, -1e+30  ;;  %v3729_v41 = vpop.f32.mrb[1].mxu1  ;;  %v1678_v38 = vrot.slane %v1674_v37, %v5726_v60  ;;  %v4061_v37 = vld [vmem:[%s5657_s8 + $0x28] sm:$0xff]  }
 0x575   : > { %v1519_v43 = vpop.f32.mrb[2].mxu1  ;;  %v1526_v44 = vsel %vm1525_vm12, %v1523_v40, -inf }
 0x576   : > { %v1524_v45 = vsel %vm5763_vm13, %v1519_v43, -1e+30  ;;  %1527 = vmax.xlane.f32.xlu0 %v1526_v44  ;;  %v3730_v46 = vpop.f32.mrb[3].mxu1 }
 0x577   : > { %v1529_v47 = vsel %vm1525_vm12, %v1524_v45, -inf }
 0x578   : > { %1530 = vmax.xlane.f32.xlu1 %v1529_v47 }
 0x57b   : > { %v1658_v49 = vpop.f32.mrb[4].mxu1 }
 0x57c   : > { %v1659_v51 = vadd.f32 %v1658_v49, %v1611_v48  ;;  %v3743_v53 = vpop.f32.mrb[5].mxu1 }
 0x57d   : > { %v1661_v54 = vpop.f32.mrb[6].mxu1 }
 0x57e   : > { %v1662_v55 = vadd.f32 %v1661_v54, %v1611_v48  ;;  %v3744_v56 = vpop.f32.mrb[7].mxu1  ;;  %v5775_v58 = vmul.f32 0.35355338, %v1659_v51 }
 0x580   : > { %v5777_v59 = vmul.f32 0.35355338, %v1662_v55 }
 0x582   : > { %v1797_v61 = vpack.c.bf16 %v5777_v59, %v5775_v58 }
 0x583   : > { %v1790_v63 = vpop.f32.mrb[8].mxu1 }
 0x584   : > { %v3759_v0 = vpop.f32.mrb[9].mxu1  ;;  %v1791_v2 = vadd.f32 %v1790_v63, %v1743_v62 }
 0x585   : > { %v1793_v1 = vpop.f32.mrb[10].mxu1 }
 0x586   : > { %v1794_v3 = vadd.f32 %v1793_v1, %v1743_v62  ;;  %v3760_v4 = vpop.f32.mrb[11].mxu1 }
 0x588   : > { %v1875_v5 = vpack.c.bf16 %v1794_v3, %v1791_v2 }
 0x58a   : > { %3768 = vmatpush3.bf16.msra.mxu1 %v1875_v5 }
 0x58b   : > { %3779 = vmatprep.subr.bf16.mxu1 %v4799_v33 }
 0x603   : > { %v1528_v6 = vpop.xlane.xlu0 %1527 }
 0x604   : > { %v1532_v7 = vmax.f32 %v1528_v6, -1e+30  ;;  %v3535_v6 = vld [vmem:[%s5665_s15 + $0x4] sm:$0xf] }
 0x605   : > { %v1531_v8 = vpop.xlane.xlu1 %1530 }
 0x606   : > { %v1534_v9 = vsub.f32 %v1523_v40, %v1532_v7  ;;  %v1533_v10 = vmax.f32 %v1531_v8, -1e+30  ;;  %v1928_v7 = vsel %vm1926_vm14, %v3535_v6, 0 }
 0x608   : > { %v1536_v11 = vmul.f32 1.442695, %v1534_v9  ;;  %v1535_v12 = vsub.f32 %v1524_v45, %v1533_v10 }
 0x60a   : > { %4082 = vpow2.f32 %v1536_v11  ;;  %v1538_v13 = vmul.f32 1.442695, %v1535_v12 }
 0x60c   : > { %4084 = vpow2.f32 %v1538_v13 }
 0x614   : > { %v4083_v14 = vpop.eup %4082 }
 0x615   : > { %v1540_v15 = vsel %vm1525_vm12, %v4083_v14, 0.0 }
 0x616   : > { %v4085_v16 = vpop.eup %4084  ;;  %1541 = vadd.xlane.f32.xlu0 %v1540_v15 }
 0x617   : > { %v1543_v17 = vsel %vm1525_vm12, %v4085_v16, 0.0 }
 0x618   : > { %1544 = vadd.xlane.f32.xlu1 %v1543_v17 }
 0x6a3   : > { %v1542_v18 = vpop.xlane.xlu0 %1541 }
 0x6a4   : > { %v1546_v19 = vmax.f32 %v1542_v18, 1e-30 }
 0x6a5   : > { %v1545_v20 = vpop.xlane.xlu1 %1544 }
 0x6a6   : > { %4086 = vrcp.f32 %v1546_v19  ;;  %v1547_v21 = vmax.f32 %v1545_v20, 1e-30  ;;  %v4056_v19 = vld [vmem:[%s5655_s9 + $0x20] sm:$0xff]   ;;  %v4057_v20 = vld [vmem:[%s5655_s9 + $0x28] sm:$0xff]  }
 0x6a8   : > { %4088 = vrcp.f32 %v1547_v21 }
 0x6b0   : > { %v4087_v22 = vpop.eup %4086 }
 0x6b1   : > { %v1550_v24 = vmul.f32 %v4087_v22, %v4083_v14  ;;  %v1599_v14 = vld [vmem:[%s5665_s15] sm:$0xf] }
 0x6b2   : > { %v4089_v23 = vpop.eup %4088  ;;  %v1975_v18 = vsel %vm1926_vm14, %v1599_v14, 0 }
 0x6b3   : > { %v1551_v25 = vmul.f32 %v4089_v23, %v4085_v16 }
 0x6b5   : > { %v1552_v27 = vpack.c.bf16 %v1551_v25, %v1550_v24  ;;  %v4058_v24 = vld [vmem:[%s5653_s29 + $0x20] sm:$0xff]  }
 0x6b7   : > { %3734 = vmatmul.mubr.msk.bf16.vlgmr.msra.gmra.mrb[12].mxu0 %vm1525_vm12, %v1552_v27  ;;  %v4059_v27 = vld [vmem:[%s5653_s29 + $0x28] sm:$0xff]  }
 0x6b8   : > { %3746 = vmatpush3.bf16.msra.mxu0 %v4054_v26  ;;  %3749 = vmatprep.mubr.msk.bf16.mxu0 %vm4800_vm6, %v4799_v33 }
 0x6b9   : > { %3747 = vmatprep.subr.bf16.mxu0 %v4799_v33 }
 0x6bc   : > { %3748 = vmatpush3.bf16.msra.mxu0 %v4055_v28 }
 0x6bd   : > { %3761 = vmatprep.subr.bf16.mxu0 %v4799_v33 }
 0x6bf   : > { %3750 = vmatmul.mubr.msk.bf16.vlgmr.msra.gmra.mrb[16].mxu0 %vm1234_vm5, %v5701_v52 }
 0x6c0   : > { %3763 = vmatprep.mubr.msk.bf16.mxu0 %vm4800_vm6, %v4799_v33 }
 0x78a   : > { %v5796_v29 = vpop.f32.mrb[12].mxu0 }
 0x78b   : > { %v3735_v31 = vpop.f32.mrb[13].mxu0 }
 0x78c   : > { %v5799_v32 = vpop.f32.mrb[14].mxu0 }
 0x78d   : > { %v1598_v34 = vpack.c.bf16 %v5799_v32, %v5796_v29  ;;  %v3736_v35 = vpop.f32.mrb[15].mxu0  ;;  %v3550_v29 = vld [vmem:[%s5661_s30 + $0x2] sm:$0x1]  ;;  %v4060_v32 = vld [vmem:[%s5657_s8 + $0x20] sm:$0xff]  }
 0x78e   : > { %v2092_v35 = vunpack.c.l.bf16 %v3550_v29 }
 0x792   : > { %v1725_v40 = vpop.f32.mrb[16].mxu0 }
 0x793   : > { %v3751_v41 = vpop.f32.mrb[17].mxu0  ;;  %v1726_v43 = vadd.f32 %v1725_v40, %v1678_v38 }
 0x794   : > { %v1728_v42 = vpop.f32.mrb[18].mxu0 }
 0x795   : > { %v1729_v44 = vadd.f32 %v1728_v42, %v1678_v38  ;;  %v3752_v45 = vpop.f32.mrb[19].mxu0  ;;  %v2096_v38 = vrot.slane %v2092_v35, %v5726_v60  ;;  %v3564_v35 = vld [vmem:[%s5665_s15 + $0x8] sm:$0xf] }
 0x797   : > { %v1798_v46 = vpack.c.bf16 %v1729_v44, %v1726_v43 }
 0x799   : > { %v1803_v47 = vsel %vm1475_vm7, %v1798_v46, 0 }
 0x79a   : > { %3762 = vmatpush3.bf16.xpose.msra.mxu0 %v1803_v47 }
 0x79b   : > { %3773 = vmatprep.subr.bf16.mxu0 %v4799_v33 }
 0x7a1   : > { %3764 = vmatmul.mubr.msk.bf16.vlgmr.msra.gmra.mrb[20].mxu0 %vm1475_vm7, %v1797_v61 }
 0x7a2   : > { %3775 = vmatprep.mubr.msk.bf16.mxu0 %vm4800_vm6, %v4799_v33  ;;  %3774 = vmatpush3.bf16.msra.mxu0 %v1928_v7 }
 0x7a3   : > { %3785 = vmatprep.subr.bf16.mxu0 %v4799_v33 }
 0x874   : > { %v1839_v48 = vpop.f32.mrb[20].mxu0 }
 0x875   : > { %v1846_v49 = vsel %vm5758_vm11, %v1839_v48, -1e+30  ;;  %v3765_v50 = vpop.f32.mrb[21].mxu0  ;;  %v3542_v48 = vld [vmem:[%s5659_s21 + $0x2] sm:$0x1] }
 0x876   : > { %v1842_v51 = vpop.f32.mrb[22].mxu0  ;;  %v1848_v53 = vsel %vm1525_vm12, %v1846_v49, -inf }
 0x877   : > { %v1847_v54 = vsel %vm5763_vm13, %v1842_v51, -1e+30  ;;  %1849 = vmax.xlane.f32.xlu0 %v1848_v53  ;;  %v3766_v55 = vpop.f32.mrb[23].mxu0  ;;  %v2025_v53 = vunpack.c.l.bf16 %v3542_v48 }
 0x878   : > { %v1851_v56 = vsel %vm1525_vm12, %v1847_v54, -inf }
 0x879   : > { %1852 = vmax.xlane.f32.xlu1 %v1851_v56 }
 0x904   : > { %v1850_v57 = vpop.xlane.xlu0 %1849 }
 0x905   : > { %v1854_v58 = vmax.f32 %v1850_v57, -1e+30  ;;  %v2029_v57 = vrot.slane %v2025_v53, %v5726_v60  ;;  %v4065_v53 = vld [vmem:[%s5657_s8 + $0x38] sm:$0xff]  }
 0x906   : > { %v1853_v59 = vpop.xlane.xlu1 %1852 }
 0x907   : > { %v1856_v61 = vsub.f32 %v1846_v49, %v1854_v58  ;;  %v1855_v62 = vmax.f32 %v1853_v59, -1e+30  ;;  %v3558_v59 = vld [vmem:[%s5663_s27 + $0x2] sm:$0x1] }
 0x909   : > { %v1858_v63 = vmul.f32 1.442695, %v1856_v61  ;;  %v1857_v0 = vsub.f32 %v1847_v54, %v1855_v62 }
 0x90b   : > { %4090 = vpow2.f32 %v1858_v63  ;;  %v1860_v1 = vmul.f32 1.442695, %v1857_v0 }
 0x90d   : > { %4092 = vpow2.f32 %v1860_v1 }
 0x915   : > { %v4091_v2 = vpop.eup %4090 }
 0x916   : > { %v1862_v3 = vsel %vm1525_vm12, %v4091_v2, 0.0 }
 0x917   : > { %v4093_v4 = vpop.eup %4092  ;;  %1863 = vadd.xlane.f32.xlu0 %v1862_v3 }
 0x918   : > { %v1865_v5 = vsel %vm1525_vm12, %v4093_v4, 0.0 }
 0x919   : > { %1866 = vadd.xlane.f32.xlu1 %v1865_v5 }
 0x9a4   : > { %v1864_v8 = vpop.xlane.xlu0 %1863 }
 0x9a5   : > { %v1868_v9 = vmax.f32 %v1864_v8, 1e-30 }
 0x9a6   : > { %v1867_v10 = vpop.xlane.xlu1 %1866 }
 0x9a7   : > { %4094 = vrcp.f32 %v1868_v9  ;;  %v1869_v11 = vmax.f32 %v1867_v10, 1e-30 }
 0x9a9   : > { %4096 = vrcp.f32 %v1869_v11 }
 0x9b1   : > { %v4095_v12 = vpop.eup %4094 }
 0x9b2   : > { %v1872_v15 = vmul.f32 %v4095_v12, %v4091_v2  ;;  %v2157_v2 = vunpack.c.l.bf16 %v3558_v59 }
 0x9b3   : > { %v4097_v13 = vpop.eup %4096 }
 0x9b4   : > { %v1873_v16 = vmul.f32 %v4097_v13, %v4093_v4  ;;  %v2161_v6 = vrot.slane %v2157_v2, %v5726_v60 }
 0x9b6   : > { %v1874_v17 = vpack.c.bf16 %v1873_v16, %v1872_v15 }
 0x9b8   : > { %3770 = vmatmul.mubr.msk.bf16.vlgmr.msra.gmra.mrb[12].mxu1 %vm1525_vm12, %v1874_v17 }
 0x9b9   : > { %3780 = vmatpush3.bf16.msra.mxu1 %v1975_v18  ;;  %3781 = vmatprep.mubr.msk.bf16.mxu1 %vm4800_vm6, %v4799_v33 }
 0x9ba   : > { %3793 = vmatprep.subr.bf16.mxu1 %v4799_v33 }
 0x9c0   : > { %3782 = vmatmul.mubr.msk.bf16.vlgmr.msra.gmra.mrb[16].mxu1 %vm1475_vm7, %v1598_v34 }
 0x9c1   : > { %3794 = vmatpush3.bf16.msra.mxu1 %v4056_v19  ;;  %3797 = vmatprep.mubr.msk.bf16.mxu1 %vm4800_vm6, %v4799_v33 }
 0x9c2   : > { %3795 = vmatprep.subr.bf16.mxu1 %v4799_v33 }
 0x9c5   : > { %3796 = vmatpush3.bf16.msra.mxu1 %v4057_v20 }
 0x9c6   : > { %3809 = vmatprep.subr.bf16.mxu1 %v4799_v33 }
 0x9c8   : > { %3798 = vmatmul.mubr.msk.bf16.vlgmr.msra.gmra.mrb[20].mxu1 %vm1234_vm5, %v5701_v52 }
 0x9c9   : > { %3811 = vmatprep.mubr.msk.bf16.mxu1 %vm4800_vm6, %v4799_v33 }
 0xa8b   : > { %v1913_v21 = vpop.f32.mrb[12].mxu1 }
 0xa8c   : > { %v3771_v22 = vpop.f32.mrb[13].mxu1 }
 0xa8d   : > { %v1916_v23 = vpop.f32.mrb[14].mxu1 }
 0xa8e   : > { %v1920_v25 = vpack.c.bf16 %v1916_v23, %v1913_v21  ;;  %v3772_v26 = vpop.f32.mrb[15].mxu1 }
 0xa90   : > { %3776 = vmatmul.mubr.msk.bf16.vlgmr.msra.gmra.mrb[24].mxu0 %vm1475_vm7, %v1920_v25 }
 0xa91   : > { %3786 = vmatpush3.bf16.msra.mxu0 %v4058_v24  ;;  %3789 = vmatprep.mubr.msk.bf16.mxu0 %vm4800_vm6, %v4799_v33 }
 0xa92   : > { %3787 = vmatprep.subr.bf16.mxu0 %v4799_v33 }
 0xa93   : > { %v2011_v28 = vpop.f32.mrb[16].mxu1 }
 0xa94   : > { %v3783_v30 = vpop.f32.mrb[17].mxu1 }
 0xa95   : > { %v2014_v31 = vpop.f32.mrb[18].mxu1  ;;  %3788 = vmatpush3.bf16.msra.mxu0 %v4059_v27 }
 0xa96   : > { %v3784_v34 = vpop.f32.mrb[19].mxu1  ;;  %3801 = vmatprep.subr.bf16.mxu0 %v4799_v33 }
 0xa98   : > { %3790 = vmatmul.mubr.msk.bf16.vlgmr.msra.gmra.mrb[28].mxu0 %vm1234_vm5, %v5701_v52 }
 0xa99   : > { %3802 = vmatpush3.bf16.msra.mxu0 %v4060_v32  ;;  %3805 = vmatprep.mubr.msk.bf16.mxu0 %vm4800_vm6, %v4799_v33 }
 0xa9a   : > { %3803 = vmatprep.subr.bf16.mxu0 %v4799_v33 }
 0xa9b   : > { %v2143_v40 = vpop.f32.mrb[20].mxu1 }
 0xa9c   : > { %v3799_v41 = vpop.f32.mrb[21].mxu1  ;;  %v2144_v43 = vadd.f32 %v2143_v40, %v2096_v38 }
 0xa9d   : > { %v2146_v42 = vpop.f32.mrb[22].mxu1  ;;  %3804 = vmatpush3.bf16.msra.mxu0 %v4061_v37  ;;  %v2345_v37 = vsel %vm1926_vm14, %v3564_v35, 0 }
 0xa9e   : > { %v2147_v44 = vadd.f32 %v2146_v42, %v2096_v38  ;;  %v3800_v45 = vpop.f32.mrb[23].mxu1  ;;  %3815 = vmatprep.subr.bf16.mxu0 %v4799_v33 }
 0xaa0   : > { %v2216_v46 = vpack.c.bf16 %v2147_v44, %v2144_v43  ;;  %3806 = vmatmul.mubr.msk.bf16.vlgmr.msra.gmra.mrb[32].mxu0 %vm1234_vm5, %v5701_v52 }
 0xaa1   : > { %3817 = vmatprep.mubr.msk.bf16.mxu0 %vm4800_vm6, %v4799_v33 }
 0xaa2   : > { %v2221_v47 = vsel %vm1475_vm7, %v2216_v46, 0 }
 0xaa3   : > { %3810 = vmatpush3.bf16.xpose.msra.mxu1 %v2221_v47  ;;  %v4062_v47 = vld [vmem:[%s5653_s29 + $0x30] sm:$0xff]  }
 0xaa4   : > { %3821 = vmatprep.subr.bf16.mxu1 %v4799_v33 }
 0xb63   : > { %v1964_v49 = vpop.f32.mrb[24].mxu0 }
 0xb64   : > { %v5867_v50 = vadd.f32 %v2011_v28, %v1964_v49  ;;  %v3777_v51 = vpop.f32.mrb[25].mxu0  ;;  %v4063_v49 = vld [vmem:[%s5653_s29 + $0x38] sm:$0xff]  }
 0xb65   : > { %v1967_v54 = vpop.f32.mrb[26].mxu0  ;;  %v4064_v51 = vld [vmem:[%s5657_s8 + $0x30] sm:$0xff]  }
 0xb66   : > { %v5869_v55 = vadd.f32 %v2014_v31, %v1967_v54  ;;  %v3778_v56 = vpop.f32.mrb[27].mxu0  ;;  %v3570_v54 = vld [vmem:[%s5659_s21 + $0x3] sm:$0x1] }
 0xb6b   : > { %v2076_v58 = vpop.f32.mrb[28].mxu0 }
 0xb6c   : > { %v2077_v61 = vadd.f32 %v2076_v58, %v2029_v57  ;;  %v3791_v62 = vpop.f32.mrb[29].mxu0  ;;  %v2397_v58 = vunpack.c.l.bf16 %v3570_v54 }
 0xb6d   : > { %v2079_v63 = vpop.f32.mrb[30].mxu0 }
 0xb6e   : > { %v2080_v0 = vadd.f32 %v2079_v63, %v2029_v57  ;;  %v3792_v1 = vpop.f32.mrb[31].mxu0  ;;  %v2083_v3 = vmul.f32 0.35355338, %v2077_v61  ;;  %v4066_v61 = vld [vmem:[%s5655_s9 + $0x30] sm:$0xff]  }
 0xb6f   : > { %v4067_v1 = vld [vmem:[%s5655_s9 + $0x38] sm:$0xff]  }
 0xb70   : > { %v2084_v4 = vmul.f32 0.35355338, %v2080_v0  ;;  %v2401_v0 = vrot.slane %v2397_v58, %v5726_v60 }
 0xb72   : > { %v2215_v5 = vpack.c.bf16 %v2084_v4, %v2083_v3  ;;  %v3586_v3 = vld [vmem:[%s5663_s27 + $0x3] sm:$0x1] }
 0xb73   : > { %v2208_v7 = vpop.f32.mrb[32].mxu0 }
 0xb74   : > { %v3807_v8 = vpop.f32.mrb[33].mxu0  ;;  %3812 = vmatmul.mubr.msk.bf16.vlgmr.msra.gmra.mrb[24].mxu1 %vm1475_vm7, %v2215_v5  ;;  %v2209_v10 = vadd.f32 %v2208_v7, %v2161_v6 }
 0xb75   : > { %v2211_v9 = vpop.f32.mrb[34].mxu0  ;;  %3823 = vmatprep.mubr.msk.bf16.mxu1 %vm4800_vm6, %v4799_v33  ;;  %3822 = vmatpush3.bf16.msra.mxu1 %v2345_v37 }
 0xb76   : > { %v2212_v11 = vadd.f32 %v2211_v9, %v2161_v6  ;;  %v3808_v12 = vpop.f32.mrb[35].mxu0  ;;  %3835 = vmatprep.subr.bf16.mxu1 %v4799_v33  ;;  %v2529_v9 = vunpack.c.l.bf16 %v3586_v3 }
 0xb78   : > { %v2293_v13 = vpack.c.bf16 %v2212_v11, %v2209_v10 }
 0xb7a   : > { %3816 = vmatpush3.bf16.msra.mxu0 %v2293_v13  ;;  %v2533_v13 = vrot.slane %v2529_v9, %v5726_v60 }
 0xb7b   : > { %3827 = vmatprep.subr.bf16.mxu0 %v4799_v33 }
 0xc47   : > { %v2257_v14 = vpop.f32.mrb[24].mxu1 }
 0xc48   : > { %v2264_v15 = vsel %vm5758_vm11, %v2257_v14, -1e+30  ;;  %v3813_v16 = vpop.f32.mrb[25].mxu1 }
 0xc49   : > { %v2260_v17 = vpop.f32.mrb[26].mxu1  ;;  %v2266_v18 = vsel %vm1525_vm12, %v2264_v15, -inf }
 0xc4a   : > { %v2265_v19 = vsel %vm5763_vm13, %v2260_v17, -1e+30  ;;  %2267 = vmax.xlane.f32.xlu0 %v2266_v18  ;;  %v3814_v20 = vpop.f32.mrb[27].mxu1 }
 0xc4b   : > { %v2269_v21 = vsel %vm1525_vm12, %v2265_v19, -inf }
 0xc4c   : > { %2270 = vmax.xlane.f32.xlu1 %v2269_v21 }
 0xcd7   : > { %v2268_v22 = vpop.xlane.xlu0 %2267 }
 0xcd8   : > { %v2272_v23 = vmax.f32 %v2268_v22, -1e+30  ;;  %v3578_v22 = vld [vmem:[%s5661_s30 + $0x3] sm:$0x1] }
 0xcd9   : > { %v2271_v24 = vpop.xlane.xlu1 %2270 }
 0xcda   : > { %v2274_v25 = vsub.f32 %v2264_v15, %v2272_v23  ;;  %v2273_v26 = vmax.f32 %v2271_v24, -1e+30 }
 0xcdc   : > { %v2276_v27 = vmul.f32 1.442695, %v2274_v25  ;;  %v2275_v28 = vsub.f32 %v2265_v19, %v2273_v26 }
 0xcde   : > { %4098 = vpow2.f32 %v2276_v27  ;;  %v2278_v29 = vmul.f32 1.442695, %v2275_v28  ;;  %v2464_v27 = vunpack.c.l.bf16 %v3578_v22 }
 0xce0   : > { %4100 = vpow2.f32 %v2278_v29  ;;  %v2468_v28 = vrot.slane %v2464_v27, %v5726_v60 }
 0xce8   : > { %v4099_v30 = vpop.eup %4098 }
 0xce9   : > { %v2280_v31 = vsel %vm1525_vm12, %v4099_v30, 0.0 }
 0xcea   : > { %v4101_v32 = vpop.eup %4100  ;;  %2281 = vadd.xlane.f32.xlu0 %v2280_v31 }
 0xceb   : > { %v2283_v34 = vsel %vm1525_vm12, %v4101_v32, 0.0 }
 0xcec   : > { %2284 = vadd.xlane.f32.xlu1 %v2283_v34 }
 0xd77   : > { %v2282_v38 = vpop.xlane.xlu0 %2281 }
 0xd78   : > { %v2286_v40 = vmax.f32 %v2282_v38, 1e-30 }
 0xd79   : > { %v2285_v41 = vpop.xlane.xlu1 %2284 }
 0xd7a   : > { %4102 = vrcp.f32 %v2286_v40  ;;  %v2287_v42 = vmax.f32 %v2285_v41, 1e-30 }
 0xd7c   : > { %4104 = vrcp.f32 %v2287_v42 }
 0xd84   : > { %v4103_v43 = vpop.eup %4102 }
 0xd85   : > { %v2290_v45 = vmul.f32 %v4103_v43, %v4099_v30 }
 0xd86   : > { %v4105_v44 = vpop.eup %4104 }
 0xd87   : > { %v2291_v46 = vmul.f32 %v4105_v44, %v4101_v32 }
 0xd89   : > { %v2292_v48 = vpack.c.bf16 %v2291_v46, %v2290_v45 }
 0xd8b   : > { %3818 = vmatmul.mubr.msk.bf16.vlgmr.msra.gmra.mrb[36].mxu0 %vm1525_vm12, %v2292_v48 }
 0xd8c   : > { %3828 = vmatpush3.bf16.msra.mxu0 %v4062_v47  ;;  %3831 = vmatprep.mubr.msk.bf16.mxu0 %vm4800_vm6, %v4799_v33 }
 0xd8d   : > { %3829 = vmatprep.subr.bf16.mxu0 %v4799_v33 }
 0xd90   : > { %3830 = vmatpush3.bf16.msra.mxu0 %v4063_v49 }
 0xd91   : > { %3843 = vmatprep.subr.bf16.mxu0 %v4799_v33 }
 0xd93   : > { %3832 = vmatmul.mubr.msk.bf16.vlgmr.msra.gmra.mrb[40].mxu0 %vm1234_vm5, %v5701_v52 }
 0xd94   : > { %3844 = vmatpush3.bf16.msra.mxu0 %v4064_v51  ;;  %3847 = vmatprep.mubr.msk.bf16.mxu0 %vm4800_vm6, %v4799_v33 }
 0xd95   : > { %3845 = vmatprep.subr.bf16.mxu0 %v4799_v33 }
 0xd98   : > { %3846 = vmatpush3.bf16.msra.mxu0 %v4065_v53 }
 0xd99   : > { %3857 = vmatprep.subr.bf16.mxu0 %v4799_v33 }
 0xd9b   : > { %3848 = vmatmul.mubr.msk.bf16.vlgmr.msra.gmra.mrb[44].mxu0 %vm1234_vm5, %v5701_v52 }
 0xd9c   : > { %3859 = vmatprep.mubr.msk.bf16.mxu0 %vm4800_vm6, %v4799_v33 }
 0xe5e   : > { %v2331_v56 = vpop.f32.mrb[36].mxu0 }
 0xe5f   : > { %v3819_v57 = vpop.f32.mrb[37].mxu0 }
 0xe60   : > { %v2334_v59 = vpop.f32.mrb[38].mxu0 }
 0xe61   : > { %v2338_v62 = vpack.c.bf16 %v2334_v59, %v2331_v56  ;;  %v3820_v63 = vpop.f32.mrb[39].mxu0  ;;  %v3592_v59 = vld [vmem:[%s5665_s15 + $0xc] sm:$0xf] }
 0xe63   : > { %3824 = vmatmul.mubr.msk.bf16.vlgmr.msra.gmra.mrb[28].mxu1 %vm1475_vm7, %v2338_v62 }
 0xe64   : > { %3836 = vmatpush3.bf16.msra.mxu1 %v4066_v61  ;;  %3839 = vmatprep.mubr.msk.bf16.mxu1 %vm4800_vm6, %v4799_v33  ;;  %v2717_v61 = vsel %vm1926_vm14, %v3592_v59, 0  ;;  %v4070_v59 = vld [vmem:[%s5673_s5] sm:$0xff]  }
 0xe65   : > { %3837 = vmatprep.subr.bf16.mxu1 %v4799_v33 }
 0xe66   : > { %v2448_v2 = vpop.f32.mrb[40].mxu0 }
 0xe67   : > { %v2449_v4 = vadd.f32 %v2448_v2, %v2401_v0  ;;  %v3833_v5 = vpop.f32.mrb[41].mxu0 }
 0xe68   : > { %v2451_v6 = vpop.f32.mrb[42].mxu0  ;;  %3838 = vmatpush3.bf16.msra.mxu1 %v4067_v1 }
 0xe69   : > { %v2452_v7 = vadd.f32 %v2451_v6, %v2401_v0  ;;  %v3834_v8 = vpop.f32.mrb[43].mxu0  ;;  %3851 = vmatprep.subr.bf16.mxu1 %v4799_v33  ;;  %v2455_v10 = vmul.f32 0.35355338, %v2449_v4 }
 0xe6b   : > { %v2456_v11 = vmul.f32 0.35355338, %v2452_v7  ;;  %3840 = vmatmul.mubr.msk.bf16.vlgmr.msra.gmra.mrb[32].mxu1 %vm1234_vm5, %v5701_v52 }
 0xe6c   : > { %3853 = vmatprep.mubr.msk.bf16.mxu1 %vm4800_vm6, %v4799_v33 }
 0xe6d   : > { %v2587_v12 = vpack.c.bf16 %v2456_v11, %v2455_v10 }
 0xe6e   : > { %v2580_v14 = vpop.f32.mrb[44].mxu0 }
 0xe6f   : > { %v3849_v15 = vpop.f32.mrb[45].mxu0  ;;  %v2581_v17 = vadd.f32 %v2580_v14, %v2533_v13 }
 0xe70   : > { %v2583_v16 = vpop.f32.mrb[46].mxu0 }
 0xe71   : > { %v2584_v18 = vadd.f32 %v2583_v16, %v2533_v13  ;;  %v3850_v19 = vpop.f32.mrb[47].mxu0 }
 0xe72   : > { %v4126_v19 = vld [vmem:[#allocation2] sm:$0xff] }
 0xe73   : > { %v2665_v20 = vpack.c.bf16 %v2584_v18, %v2581_v17 }
 0xe75   : > { %3858 = vmatpush3.bf16.msra.mxu0 %v2665_v20 }
 0xe76   : > { %3869 = vmatprep.subr.bf16.mxu0 %v4799_v33 }
 0xf36   : > { %v2381_v21 = vpop.f32.mrb[28].mxu1 }
 0xf37   : > { %v5926_v52 = vadd.f32 %v2381_v21, %v5867_v50  ;;  %v3825_v23 = vpop.f32.mrb[29].mxu1 }
 0xf38   : > { %v2384_v24 = vpop.f32.mrb[30].mxu1 }
 0xf39   : > { %v5929_v25 = vadd.f32 %v2384_v24, %v5869_v55  ;;  %v3826_v26 = vpop.f32.mrb[31].mxu1  ;;  %v4127_v24 = vld [vmem:[#allocation2 + $0x8] sm:$0xff] }
 0xf3e   : > { %v2515_v29 = vpop.f32.mrb[32].mxu1 }
 0xf3f   : > { %v3841_v30 = vpop.f32.mrb[33].mxu1  ;;  %v2516_v32 = vadd.f32 %v2515_v29, %v2468_v28 }
 0xf40   : > { %v2518_v31 = vpop.f32.mrb[34].mxu1 }
 0xf41   : > { %v2519_v34 = vadd.f32 %v2518_v31, %v2468_v28  ;;  %v3842_v35 = vpop.f32.mrb[35].mxu1 }
 0xf43   : > { %v2588_v37 = vpack.c.bf16 %v2519_v34, %v2516_v32 }
 0xf45   : > { %v2593_v38 = vsel %vm1475_vm7, %v2588_v37, 0 }
 0xf46   : > { %3852 = vmatpush3.bf16.xpose.msra.mxu1 %v2593_v38 }
 0xf47   : > { %3863 = vmatprep.subr.bf16.mxu1 %v4799_v33 }
 0xf4d   : > { %3854 = vmatmul.mubr.msk.bf16.vlgmr.msra.gmra.mrb[36].mxu1 %vm1475_vm7, %v2587_v12  ;;  %v2764_v12 = vld [vmem:[%s998_s23] sm:$0x1] }
 0xf4e   : > { %3865 = vmatprep.mubr.msk.bf16.mxu1 %vm4800_vm6, %v4799_v33  ;;  %3864 = vmatpush3.bf16.msra.mxu1 %v2717_v61  ;;  %v2765_v13 = vunpack.c.l.bf16 %v2764_v12  ;;  %v4071_v61 = vld [vmem:[%s5673_s5 + $0x8] sm:$0xff]  }
 0xf4f   : > { %3877 = vmatprep.subr.bf16.mxu1 %v4799_v33 }
 0xf50   : > { %v2769_v16 = vrot.slane %v2765_v13, %v5726_v60 }
0x1020   : > { %v2629_v50 = vpop.f32.mrb[36].mxu1 }
0x1021   : > { %v2636_v55 = vsel %vm5758_vm11, %v2629_v50, -1e+30  ;;  %v3855_v40 = vpop.f32.mrb[37].mxu1 }
0x1022   : > { %v2632_v41 = vpop.f32.mrb[38].mxu1  ;;  %v2638_v42 = vsel %vm1525_vm12, %v2636_v55, -inf  ;;  %v4069_v40 = vld [vmem:[%s5670_s4 + $0x8] sm:$0xff]  }
0x1023   : > { %v2637_v43 = vsel %vm5763_vm13, %v2632_v41, -1e+30  ;;  %2639 = vmax.xlane.f32.xlu0 %v2638_v42  ;;  %v3856_v44 = vpop.f32.mrb[39].mxu1 }
0x1024   : > { %v2641_v45 = vsel %vm1525_vm12, %v2637_v43, -inf }
0x1025   : > { %2642 = vmax.xlane.f32.xlu1 %v2641_v45 }
0x10b0   : > { %v2640_v46 = vpop.xlane.xlu0 %2639 }
0x10b1   : > { %v2644_v47 = vmax.f32 %v2640_v46, -1e+30 }
0x10b2   : > { %v2643_v48 = vpop.xlane.xlu1 %2642 }
0x10b3   : > { %v2646_v49 = vsub.f32 %v2636_v55, %v2644_v47  ;;  %v2645_v51 = vmax.f32 %v2643_v48, -1e+30  ;;  %v4068_v55 = vld [vmem:[%s5670_s4] sm:$0xff]   ;;  %v3594_v48 = vld [vmem:[%s1006_s16] ss:$0 sm:$0xff] }
0x10b5   : > { %v2648_v36 = vmul.f32 1.442695, %v2646_v49  ;;  %v2647_v53 = vsub.f32 %v2637_v43, %v2645_v51 }
0x10b7   : > { %4106 = vpow2.f32 %v2648_v36  ;;  %v2650_v54 = vmul.f32 1.442695, %v2647_v53 }
0x10b9   : > { %4108 = vpow2.f32 %v2650_v54  ;;  %v3595_v54 = vld [vmem:[%s1014_s26] ss:$0 sm:$0xff] }
0x10c1   : > { %v4107_v56 = vpop.eup %4106 }
0x10c2   : > { %v2652_v39 = vsel %vm1525_vm12, %v4107_v56, 0.0 }
0x10c3   : > { %v4109_v57 = vpop.eup %4108  ;;  %2653 = vadd.xlane.f32.xlu0 %v2652_v39 }
0x10c4   : > { %v2655_v58 = vsel %vm1525_vm12, %v4109_v57, 0.0 }
0x10c5   : > { %2656 = vadd.xlane.f32.xlu1 %v2655_v58 }
0x1150   : > { %v2654_v62 = vpop.xlane.xlu0 %2653 }
0x1151   : > { %v2658_v63 = vmax.f32 %v2654_v62, 1e-30  ;;  %v4072_v62 = vld [vmem:[%s5673_s5 + $0x10] sm:$0xff]  }
0x1152   : > { %v2657_v0 = vpop.xlane.xlu1 %2656 }
0x1153   : > { %4110 = vrcp.f32 %v2658_v63  ;;  %v2659_v1 = vmax.f32 %v2657_v0, 1e-30  ;;  %v4073_v63 = vld [vmem:[%s5673_s5 + $0x18] sm:$0xff]   ;;  %v4074_v0 = vld [vmem:[%s5673_s5 + $0x20] sm:$0xff]  }
0x1155   : > { %4112 = vrcp.f32 %v2659_v1  ;;  %v4075_v1 = vld [vmem:[%s5673_s5 + $0x28] sm:$0xff]  }
0x115d   : > { %v4111_v2 = vpop.eup %4110 }
0x115e   : > { %v2662_v4 = vmul.f32 %v4111_v2, %v4107_v56  ;;  %v4076_v2 = vld [vmem:[%s5673_s5 + $0x30] sm:$0xff]  }
0x115f   : > { %v4113_v3 = vpop.eup %4112 }
0x1160   : > { %v2663_v5 = vmul.f32 %v4113_v3, %v4109_v57  ;;  %v4077_v3 = vld [vmem:[%s5673_s5 + $0x38] sm:$0xff]   ;;  %s6219_s5 = sld [smem:[#allocation35_spill]] }
0x1162   : > { %v2664_v6 = vpack.c.bf16 %v2663_v5, %v2662_v4  ;;  %v2821_v4 = vld [vmem:[%s1031_s3] sm:$0x1] }
0x1163   : > { %v2822_v5 = vunpack.c.l.bf16 %v2821_v4 }
0x1164   : > { %3860 = vmatmul.mubr.msk.bf16.vlgmr.msra.gmra.mrb[48].mxu0 %vm1525_vm12, %v2664_v6 }
0x1165   : > { %3873 = vmatprep.mubr.msk.bf16.mxu0 %vm4800_vm6, %v4799_v33  ;;  %3870 = vmatpush3.bf16.msra.mxu0 %v4068_v55  ;;  %v2826_v6 = vrot.slane %v2822_v5, %v5726_v60 }
0x1166   : > { %3871 = vmatprep.subr.bf16.mxu0 %v4799_v33  ;;  %p3609_p2 = scmp.ne.s32.totalorder %s6219_s5, 1 }
0x1167   : > { %vm3029_vm15 = vcmask (!%p3609_p2), 1040384   ;;  %vm3031_vm0 = vcmask (!%p3609_p2), 254976  }
0x1169   : > { %3872 = vmatpush3.bf16.msra.mxu0 %v4069_v40 }
0x1237   : > { %v2703_v7 = vpop.f32.mrb[48].mxu0 }
0x1238   : > { %v3861_v8 = vpop.f32.mrb[49].mxu0 }
0x1239   : > { %v2706_v9 = vpop.f32.mrb[50].mxu0 }
0x123a   : > { %v2710_v10 = vpack.c.bf16 %v2706_v9, %v2703_v7  ;;  %v3862_v11 = vpop.f32.mrb[51].mxu0 }
0x123c   : > { %3866 = vmatmul.mubr.msk.bf16.vlgmr.msra.gmra.mrb[40].mxu1 %vm1475_vm7, %v2710_v10 }
0x123d   : > { %3893 = vmatprep.mubr.msk.bf16.mxu1 %vm4800_vm6, %v4799_v33  ;;  %3878 = vmatpush3.bf16.msra.mxu1 %v4070_v59 }
0x123e   : > { %3879 = vmatprep.subr.bf16.mxu1 %v4799_v33 }
0x1241   : > { %3880 = vmatpush3.bf16.msra.mxu1 %v4071_v61 }
0x1242   : > { %3881 = vmatprep.subr.bf16.mxu1 %v4799_v33 }
0x1245   : > { %3882 = vmatpush3.bf16.msra.mxu1 %v4072_v62 }
0x1246   : > { %3883 = vmatprep.subr.bf16.mxu1 %v4799_v33 }
0x1249   : > { %3884 = vmatpush3.bf16.msra.mxu1 %v4073_v63 }
0x124a   : > { %3885 = vmatprep.subr.bf16.mxu1 %v4799_v33 }
0x124d   : > { %3886 = vmatpush3.bf16.msra.mxu1 %v4074_v0 }
0x124e   : > { %3887 = vmatprep.subr.bf16.mxu1 %v4799_v33 }
0x1251   : > { %3888 = vmatpush3.bf16.msra.mxu1 %v4075_v1 }
0x1252   : > { %3889 = vmatprep.subr.bf16.mxu1 %v4799_v33 }
0x1255   : > { %3890 = vmatpush3.bf16.msra.mxu1 %v4076_v2 }
0x1256   : > { %3891 = vmatprep.subr.bf16.mxu1 %v4799_v33 }
0x1259   : > { %3892 = vmatpush3.bf16.msra.mxu1 %v4077_v3 }
0x130f   : > { %v2753_v14 = vpop.f32.mrb[40].mxu1 }
0x1310   : > { %v2760_v15 = vadd.f32 %v2753_v14, %v5926_v52  ;;  %v3867_v17 = vpop.f32.mrb[41].mxu1 }
0x1311   : > { %v2756_v18 = vpop.f32.mrb[42].mxu1 }
0x1312   : > { %v2762_v20 = vadd.f32 %v4126_v19, %v2760_v15  ;;  %v2761_v21 = vadd.f32 %v2756_v18, %v5929_v25  ;;  %v3868_v22 = vpop.f32.mrb[43].mxu1 }
0x1314   : > { %v5959_v23 = vadd.f32 %v2769_v16, %v2762_v20  ;;  %v2763_v26 = vadd.f32 %v4127_v24, %v2761_v21 }
0x1316   : > { %v5961_v27 = vadd.f32 %v2769_v16, %v2763_v26  ;;  %v2774_v28 = vsel %vm1234_vm5, %v5959_v23, 0.0 }
0x1317   : > { %2775 = vadd.xlane.f32.xlu0 %v2774_v28  ;;  %v3007_v28 = vld [vmem:[%s1048_s6] sm:$0x1]  ;;  %s3021_s6 = scalar_lea.vmem (!%p3609_p2), [#allocation2], %s5647_s17 }
0x1318   : > { %v2777_v52 = vsel %vm1234_vm5, %v5961_v27, 0.0 }
0x1319   : > { %2778 = vadd.xlane.f32.xlu1 %v2777_v52  ;;  %v3008_v52 = vunpack.c.l.bf16 %v3007_v28 }
0x13a4   : > { %v2776_v29 = vpop.xlane.xlu0 %2775 }
0x13a5   : > { %v2780_v30 = vmul.f32 0.03125, %v2776_v29  ;;  %v3012_v29 = vrot.slane %v3008_v52, %v5726_v60 }
0x13a6   : > { %v2779_v25 = vpop.xlane.xlu1 %2778 }
0x13a7   : > { %v2782_v31 = vsub.f32 %v5959_v23, %v2780_v30  ;;  %v2781_v32 = vmul.f32 0.03125, %v2779_v25 }
0x13a9   : > { %v2783_v34 = vsub.f32 %v5961_v27, %v2781_v32  ;;  %v2784_v35 = vmul.f32 %v2782_v31, %v2782_v31 }
0x13ab   : > { %v2786_v37 = vsel %vm1234_vm5, %v2784_v35, 0.0  ;;  %v2785_v38 = vmul.f32 %v2783_v34, %v2783_v34 }
0x13ac   : > { %2787 = vadd.xlane.f32.xlu0 %v2786_v37 }
0x13ad   : > { %v2789_v50 = vsel %vm1234_vm5, %v2785_v38, 0.0 }
0x13ae   : > { %2790 = vadd.xlane.f32.xlu1 %v2789_v50 }
0x1439   : > { %v2788_v41 = vpop.xlane.xlu0 %2787 }
0x143a   : > { %v2792_v42 = vmul.f32 0.03125, %v2788_v41 }
0x143b   : > { %v2791_v43 = vpop.xlane.xlu1 %2790 }
0x143c   : > { %v2794_v44 = vadd.f32 1e-05, %v2792_v42  ;;  %v2793_v45 = vmul.f32 0.03125, %v2791_v43 }
0x143e   : > { %4114 = vrsqrt.f32 %v2794_v44  ;;  %v2795_v46 = vadd.f32 1e-05, %v2793_v45 }
0x1440   : > { %4116 = vrsqrt.f32 %v2795_v46 }
0x1448   : > { %v4115_v47 = vpop.eup %4114 }
0x1449   : > { %v2798_v49 = vmul.f32 %v4115_v47, %v2782_v31 }
0x144a   : > { %v4117_v51 = vpop.eup %4116 }
0x144b   : > { %v2806_v36 = vmul.f32 %v3594_v48, %v2798_v49  ;;  %v2799_v53 = vmul.f32 %v4117_v51, %v2783_v34 }
0x144d   : > { %v2807_v56 = vmul.f32 %v3594_v48, %v2799_v53  ;;  %v2814_v39 = vadd.f32 %v3595_v54, %v2806_v36 }
0x144f   : > { %v2815_v57 = vadd.f32 %v3595_v54, %v2807_v56 }
0x1451   : > { %v2816_v58 = vpack.c.bf16 %v2815_v57, %v2814_v39 }
0x1453   : > { %3874 = vmatmul.mubr.msk.bf16.vlgmr.msra.gmra.mrb[52].mxu0 %vm1234_vm5, %v2816_v58 }
0x1526   : > { %v2876_v7 = vpop.f32.mrb[52].mxu0 }
0x1527   : > { %v2877_v8 = vadd.f32 %v2876_v7, %v2826_v6  ;;  %v3875_v9 = vpop.f32.mrb[53].mxu0 }
0x1528   : > { %v2879_v10 = vpop.f32.mrb[54].mxu0 }
0x1529   : > { %v3599_v11 = vmul.f32 -1.702, %v2877_v8  ;;  %v2880_v12 = vadd.f32 %v2879_v10, %v2826_v6  ;;  %v3876_v13 = vpop.f32.mrb[55].mxu0 }
0x152b   : > { %v2887_v14 = vmul.f32 1.442695, %v3599_v11  ;;  %v3600_v15 = vmul.f32 -1.702, %v2880_v12 }
0x152d   : > { %4118 = vpow2.f32 %v2887_v14  ;;  %v2889_v16 = vmul.f32 1.442695, %v3600_v15 }
0x152f   : > { %4120 = vpow2.f32 %v2889_v16 }
0x1537   : > { %v4119_v33 = vpop.eup %4118 }
0x1538   : > { %v2891_v17 = vadd.f32 1.0, %v4119_v33 }
0x1539   : > { %v4121_v18 = vpop.eup %4120 }
0x153a   : > { %4122 = vrcp.f32 %v2891_v17  ;;  %v2892_v19 = vadd.f32 1.0, %v4121_v18 }
0x153c   : > { %4124 = vrcp.f32 %v2892_v19 }
0x1544   : > { %v4123_v20 = vpop.eup %4122 }
0x1545   : > { %v2897_v22 = vmul.f32 %v4123_v20, %v2877_v8 }
0x1546   : > { %v4125_v21 = vpop.eup %4124 }
0x1547   : > { %v2898_v24 = vmul.f32 %v4125_v21, %v2880_v12 }
0x1549   : > { %v2899_v26 = vpack.c.bf16 %v2898_v24, %v2897_v22 }
0x154b   : > { %3894 = vmatmul.mubr.bf16.vlgmr.msra.gmra.mrb[44].mxu1 %v2899_v26 }
0x161e   : > { %v2998_v30 = vpop.f32.mrb[44].mxu1 }
0x161f   : > { %v3005_v25 = vadd.f32 %v2998_v30, %v5959_v23  ;;  %v3895_v31 = vpop.f32.mrb[45].mxu1  ;;  %3020 = sbr.rel (%p3609_p2) target bundleno = 5681 (0x1631), region = 172 }
0x1620   : > { %v3001_v32 = vpop.f32.mrb[46].mxu1 }
0x1621   : > { %v3013_v34 = vadd.f32 %v3012_v29, %v3005_v25  ;;  %v3006_v35 = vadd.f32 %v3001_v32, %v5961_v27  ;;  %v3896_v37 = vpop.f32.mrb[47].mxu1 }
0x1623   : > { %3015 = vst.msk [vmem:[#allocation2] sm:$0xff] %vm1234_vm5, %v3013_v34  ;;  %v3014_v38 = vadd.f32 %v3012_v29, %v3006_v35 }
0x1625   : > { %3016 = vst.msk [vmem:[#allocation2 + $0x8] sm:$0xff] %vm1234_vm5, %v3014_v38 }
0x162c   : > { %v3022_v60 = vld [vmem:[%s3021_s6] sm:$0x1]  ;;  %v3610_v50 = vld [vmem:[%s3021_s6 + $0x1] sm:$0x1] }
0x162d   : > { %v3027_v23 = vrot.slane %v3610_v50, 7 }
0x162f   : > { %v3030_v55 = vsel %vm3029_vm15, %v3022_v60, %v3027_v23 }
0x1630   : > { %3032 = vst.msk [vmem:[%s5676_s10] sm:$0x3] %vm3031_vm0, %v3030_v55 }
0x1631 PF: > { %s6220_s4 = sld [smem:[#allocation36_spill]]  ;;  %s6221_s0 = sld [smem:[#allocation44_spill]] }
0x1632   : > { %s6222_s24 = sld [smem:[#allocation64_spill]]  ;;  %s3047_s29 = sshll.u32 %s5676_s10, 4  ;;  %s3048_s29 = int_to_ptr.vmem [resolvable:$true] %s3047_s29 }
0x1633   : > { %s3034_s17 = scalar_lea.sflag [#allocation7], %s5624_s7  ;;  %s4642_s9 = scalar_lea.vmem %s3048_s29, 32 }
0x1634   : > { %p4643_p7 = scmp.ne.s32.totalorder %s3048_s29, %s4642_s9  ;;  %s4801_s8 = smov [#allocation26]  }
0x1635   : > { %s4646_s21 = sshll.u32 %s4801_s8, 4  ;;  %s4647_s21 = int_to_ptr.vmem [resolvable:$false] %s4646_s21 }
0x1636   : > { %s4648_s30 = scalar_lea.vmem %s4647_s21, 64  ;;  %p4649_p8 = scmp.lt.s32.totalorder %s3048_s29, %s4647_s21 }
0x1637   : > { %s3612_s26 = sshll.u32 %s6220_s4, 5  ;;  %p6223_p10 = scmp.ne.s32.totalorder %s6221_s0, 0 }
0x1638   : > { %s6011_s3 = scalar_lea.hbm %s6222_s24, %s3612_s26  ;;  %p4650_p3 = scmp.lt.s32.totalorder %s4648_s30, %s4642_s9 }
0x1639   : > { %p4644_p9 = pnand %p4643_p7, %p6223_p10 }
0x163a   : > { %p4651_p6 = por %p4650_p3, %p4649_p8 }
0x163b   : > { %p4645_p4 = pneg %p4644_p9 }
0x163d   : > { %p4652_p11 = pnand %p4651_p6, %p4645_p4 }
0x163f   : > { %4655 = shalt.err (!%p4652_p11)
}
0x1640   : > { %s4656_s10 = scalar_lea.hbm %s6011_s3, 32  ;;  %s4660_s15 = scalar_lea.hbm %s6222_s24, 96 }
0x1641   : > { %p4657_p12 = scmp.ne.s32.totalorder %s6011_s3, %s4656_s10  ;;  %p4661_p0 = scmp.lt.u32.totalorder %s6011_s3, %s6222_s24 }
0x1642   : > { %p4662_p1 = scmp.lt.u32.totalorder %s4660_s15, %s4656_s10  ;;  %p4664_p7 = scmp.lt.u32.totalorder %s4656_s10, %s6011_s3 }
0x1643   : > { %p4658_p5 = pnand %p4657_p12, %p6223_p10 }
0x1644   : > { %p4663_p2 = por %p4662_p1, %p4661_p0 }
0x1645   : > { %p4659_p13 = pneg %p4658_p5 }
0x1646   : > { %p4665_p9 = por %p4664_p7, %p4663_p2 }
0x1648   : > { %p4666_p4 = pnand %p4665_p9, %p4659_p13 }
0x164a   : > { %4669 = shalt.err (!%p4666_p4)
}
0x164b   : > { %3935 = dma.vmem_to_hbm [thread:$0]  (%p6223_p10), %s3048_s29, 32, %s6011_s3, %s3034_s17  }
0x164c PF: > { %s6224_s18 = sld [smem:[#allocation33_spill]]  ;;  %s6225_s11 = sld [smem:[#allocation45_spill]] }
0x164d   : > { %p3947_p8 = scmp.ge.s32.totalorder %s4774_s1, 2 }
0x1652   : > { %s3059_s25 = sand.u32 1, %s6224_s18   ;;  %p6226_p3 = scmp.ne.s32.totalorder %s6225_s11, 0 }
0x1653   : > { %s3060_s5 = scalar_lea.sflag [#allocation7], %s3059_s25 }
0x1654   : > { %p3942_p6 = pnand %p3947_p8, %p6226_p3 }
0x1656   : > { %4729 = dma.done.wait (!%p3942_p6), %s3060_s5, 32  }
0x1657   : > { %4731 = vsyncadd (!%p3942_p6), %s3060_s5, 4294967264  ;;  %s40_s1 = sadd.s32 1, %s4774_s1   ;;  %s6227_s3 = sld [smem:[#allocation32_spill]] }
0x1658   : > { %p37_p11 = scmp.ge.s32.totalorder %s40_s1, 8   ;;  %s6228_s6 = sld [smem:[#allocation41_spill]] }
0x1659   : > { %s6229_s4 = sld [smem:[#allocation34_spill]]  ;;  %s6230_s29 = sld [smem:[#allocation42_spill]] }
0x165a   : > { %s6231_s30 = sld [smem:[#allocation37_spill]]  ;;  %s6232_s22 = sld [smem:[#allocation38_spill]] }
0x165b   : > { %s6233_s21 = sld [smem:[#allocation39_spill]]  ;;  %s6234_s26 = smov %s4742_s13 }
0x165c   : > { %s6236_s27 = smov %s4750_s28  ;;  %s6238_s0 = smov %s4766_s20 }
0x165d   :  { %39 = sbr.rel (!%p37_p11) target bundleno = 36 (0x24), region = 348 }
0x165e   : > { %s6235_s13 = smov %s6228_s6 }
0x165f   : > { %s6237_s28 = smov %s6229_s4 }
0x1660   : > { %s6239_s20 = smov %s6232_s22 }
0x1664   :  { %3065 = vsyncpa [#allocation6], 1 }
0x1665   :  { %3067 = vsyncpa [#allocation6 + $0x1], 1 }
0x1666   :  { %3068 = vsyncpa [#allocation9], 1 }
0x1667   :  { %3069 = vsyncpa [#allocation7], 1 }
0x1668   :  { %3071 = vsyncpa [#allocation7 + $0x1], 1 }

</bundles_post_ra>
